<compile_context>
chip_gen: v6e
topology: v6e:2x2x1
jax: 0.10.0
libtpu: 0.0.40
codegen_flags: <defaults>
</compile_context>

<pallas_src>
import functools

import jax
import jax.numpy as jnp
from jax.experimental import pallas as pl
from jax.experimental.pallas import tpu as pltpu

GP = 128      # lane-padded per-gate / hidden width (H <= 96 < 128)
BP = 8        # sublane-padded batch (B = 2 -> 8)
NEG = -1e30   # logit bias for padded softmax lanes


# ----------------------------------------------------------------------------
# Fused kernel: 3 wavefronted LSTM layers + folded head in one invocation.
# ----------------------------------------------------------------------------
def _fused_lstm_kernel(x_ref, h0_ref, c0_ref,
                       w1_ref, u1_ref, b1_ref,
                       wu2_ref, b2_ref,
                       wu3_ref, b3_ref,
                       wl_ref, bl_ref,
                       out_ref, xp_sc, y_sc, *, T):
    f32 = jnp.float32

    def cell(g, c):
        # gate order (packed at setup): i, f, o, g -> the three sigmoids are
        # one contiguous 3*GP slab, tanh gets the last GP slab.
        sg = jax.nn.sigmoid(g[:, :3 * GP])
        gi = sg[:, 0 * GP:1 * GP]
        gf = sg[:, 1 * GP:2 * GP]
        go = sg[:, 2 * GP:3 * GP]
        gg = jnp.tanh(g[:, 3 * GP:4 * GP])
        c_new = gf * c + gi * gg
        h_new = go * jnp.tanh(c_new)
        return h_new, c_new

    # Layer-1 batched input projection (whole sequence, off the recurrence
    # critical path), staged through VMEM to keep vreg pressure flat.
    xp_sc[...] = jnp.dot(x_ref[...], w1_ref[...],
                         preferred_element_type=f32) + b1_ref[...]

    zeros = jnp.zeros((BP, GP), f32)
    h1, c1 = h0_ref[...], c0_ref[...]
    h2, c2 = zeros, zeros
    h3, c3 = zeros, zeros

    # Wavefront: layer l+1's step t runs one wave after layer l produces h_t,
    # so the three per-wave steps are independent and pipeline in the MXU.
    # T is small & static -> full Python unroll (static slice indices).
    for w in range(T + 2):
        h1_prev, h2_prev = h1, h2            # outputs of the previous wave
        if w < T:                            # layer 1, step w
            g1 = xp_sc[w * BP:(w + 1) * BP, :] + jnp.dot(
                h1, u1_ref[...], preferred_element_type=f32)
            h1, c1 = cell(g1, c1)
        if 1 <= w <= T:                      # layer 2, step w-1
            g2 = jnp.dot(jnp.concatenate([h1_prev, h2], axis=-1),
                         wu2_ref[...], preferred_element_type=f32) + b2_ref[...]
            h2, c2 = cell(g2, c2)
        if w >= 2:                           # layer 3, step w-2
            g3 = jnp.dot(jnp.concatenate([h2_prev, h3], axis=-1),
                         wu3_ref[...], preferred_element_type=f32) + b3_ref[...]
            h3, c3 = cell(g3, c3)
            y_sc[(w - 2) * BP:(w - 1) * BP, :] = h3

    # Head: both Linears folded into one (GP, GP) matmul at pack time.
    # TODO(synk): both nn.Dropout layers are identity (inference mode).
    # Padded logit lanes have a -1e30 bias -> exp underflows to 0, so the
    # full-width softmax equals the 2-class softmax; the store is lane-dense.
    logits = jnp.dot(y_sc[...], wl_ref[...],
                     preferred_element_type=f32) + bl_ref[...]
    m = jnp.max(logits, axis=-1, keepdims=True)
    e = jnp.exp(logits - m)
    out_ref[...] = e / jnp.sum(e, axis=-1, keepdims=True)


def lstm_model_forward(packed, x, h0, c0):
    """packed: dict of pre-packed weights; x: (T, B, F); h0/c0: (B, 24F)."""
    T, B, F = x.shape
    H1 = h0.shape[-1]
    # Pad batch to BP sublanes and hidden to GP lanes (pad rows/cols are zero;
    # padded batch rows never mix with real rows, padded lanes stay exactly 0).
    xpad = jnp.zeros((T, BP, F), jnp.float32).at[:, :B, :].set(x)
    x2d = xpad.reshape(T * BP, F)
    h0p = jnp.zeros((BP, GP), jnp.float32).at[:B, :H1].set(h0)
    c0p = jnp.zeros((BP, GP), jnp.float32).at[:B, :H1].set(c0)

    args = ((x2d, h0p, c0p)
            + packed["lstm1"] + packed["lstm2"] + packed["lstm3"]
            + packed["head"])

    def full_spec(a):
        return pl.BlockSpec(a.shape, lambda i: (0,) * a.ndim)

    kernel = functools.partial(_fused_lstm_kernel, T=T)

    out = pl.pallas_call(
        kernel,
        out_shape=jax.ShapeDtypeStruct((T * BP, GP), jnp.float32),
        grid_spec=pltpu.PrefetchScalarGridSpec(
            num_scalar_prefetch=0,
            grid=(1,),
            in_specs=[full_spec(a) for a in args],
            out_specs=pl.BlockSpec((T * BP, GP), lambda i: (0, 0)),
            scratch_shapes=[pltpu.VMEM((T * BP, 4 * GP), jnp.float32),  # xp
                            pltpu.VMEM((T * BP, GP), jnp.float32)],     # y3
        ),
        compiler_params=pltpu.CompilerParams(
            dimension_semantics=("arbitrary",)),
    )(*args)
    probs = out.reshape(T, BP, GP)[:, :B, :2]
    return jnp.squeeze(probs)                       # torch.squeeze


# ----------------------------------------------------------------------------
# One-time parameter packing (outside jit): transpose, reorder gates to
# (i, f, o, g), pad each gate to 128 lanes, stack [W_ih; W_hh] for layers 2/3,
# fold the two head Linears.
# ----------------------------------------------------------------------------
def _reorder_pad_gates(mt, H):
    """(K, 4H) in PyTorch order (i, f, g, o) -> (K, 4*GP) in (i, f, o, g)."""
    def pad(m):
        return jnp.pad(m, ((0, 0), (0, GP - H)))
    gi, gf, gg, go = (mt[:, 0:H], mt[:, H:2 * H],
                      mt[:, 2 * H:3 * H], mt[:, 3 * H:4 * H])
    return jnp.concatenate([pad(gi), pad(gf), pad(go), pad(gg)], axis=1)


def _pack_bias(bih, bhh, H):
    b = bih + bhh
    return jnp.concatenate([
        jnp.pad(b[0:H], (0, GP - H)),          # i
        jnp.pad(b[H:2 * H], (0, GP - H)),      # f
        jnp.pad(b[3 * H:4 * H], (0, GP - H)),  # o
        jnp.pad(b[2 * H:3 * H], (0, GP - H)),  # g
    ])[None, :]                                # (1, 4*GP)


def pack_lstm1_params(p):
    """Layer 1: separate input projection (batched in-kernel) + recurrent U."""
    wih, whh, bih, bhh = p                     # (4H, F), (4H, H), (4H,), (4H,)
    H = whh.shape[1]
    w = _reorder_pad_gates(wih.T, H)                      # (F, 4*GP)
    u = _reorder_pad_gates(whh.T, H)                      # (H, 4*GP)
    u = jnp.pad(u, ((0, GP - H), (0, 0)))                 # zero rows for pad h
    return (w, u, _pack_bias(bih, bhh, H))


def pack_lstm_fused_params(p):
    """Layers 2/3: row-stacked [W_ih; W_hh] -> one K=2*GP matmul per step."""
    wih, whh, bih, bhh = p
    H = whh.shape[1]
    din = wih.shape[1]
    w = _reorder_pad_gates(wih.T, H)                      # (din, 4*GP)
    w = jnp.pad(w, ((0, GP - din), (0, 0)))               # zero rows: pad input
    u = _reorder_pad_gates(whh.T, H)                      # (H, 4*GP)
    u = jnp.pad(u, ((0, GP - H), (0, 0)))                 # zero rows: pad hidden
    wu = jnp.concatenate([w, u], axis=0)                  # (2*GP, 4*GP)
    return (wu, _pack_bias(bih, bhh, H))


def pack_head_params(lin1, lin2):
    """Fold Linear -> Dropout(id) -> Linear into one (GP, GP) matmul."""
    w1, b1 = lin1                  # (2F, 4F), (2F,)
    w2, b2 = lin2                  # (2, 2F), (2,)
    wf = w1.T @ w2.T               # (4F, 2)
    bf = b1 @ w2.T + b2            # (2,)
    wl = jnp.zeros((GP, GP), jnp.float32).at[:wf.shape[0], :2].set(wf)
    bl = jnp.full((1, GP), NEG, jnp.float32).at[0, :2].set(bf)
    return (wl, bl)


# ----------------------------------------------------------------------------
# Parameter init (deterministic, PyTorch-style uniform(-1/sqrt(H), 1/sqrt(H)))
# ----------------------------------------------------------------------------
def init_lstm_params(key, in_size, hidden):
    k1, k2, k3, k4 = jax.random.split(key, 4)
    s = 1.0 / jnp.sqrt(jnp.float32(hidden))
    wih = jax.random.uniform(k1, (4 * hidden, in_size), jnp.float32, -s, s)
    whh = jax.random.uniform(k2, (4 * hidden, hidden), jnp.float32, -s, s)
    bih = jax.random.uniform(k3, (4 * hidden,), jnp.float32, -s, s)
    bhh = jax.random.uniform(k4, (4 * hidden,), jnp.float32, -s, s)
    return wih, whh, bih, bhh


def init_linear_params(key, in_f, out_f):
    k1, k2 = jax.random.split(key)
    s = 1.0 / jnp.sqrt(jnp.float32(in_f))
    w = jax.random.uniform(k1, (out_f, in_f), jnp.float32, -s, s)
    b = jax.random.uniform(k2, (out_f,), jnp.float32, -s, s)
    return w, b


# ----------------------------------------------------------------------------
# Pure-JAX reference (for correctness check)
# ----------------------------------------------------------------------------
def lstm_layer_ref(x, p, h0, c0):
    wih, whh, bih, bhh = p
    H = whh.shape[1]

    def step(carry, x_t):
        h, c = carry
        gates = x_t @ wih.T + h @ whh.T + bih + bhh
        i = jax.nn.sigmoid(gates[:, 0 * H:1 * H])
        f = jax.nn.sigmoid(gates[:, 1 * H:2 * H])
        g = jnp.tanh(gates[:, 2 * H:3 * H])
        o = jax.nn.sigmoid(gates[:, 3 * H:4 * H])
        c = f * c + i * g
        h = o * jnp.tanh(c)
        return (h, c), h

    _, ys = jax.lax.scan(step, (h0, c0), x)
    return ys


def model_ref(params, x, h0, c0):
    T, B, _ = x.shape
    H1 = params["lstm1"][1].shape[1]
    H3 = params["lstm3"][1].shape[1]
    y = lstm_layer_ref(x, params["lstm1"], h0, c0)
    z = jnp.zeros((B, H1), jnp.float32)
    y = lstm_layer_ref(y, params["lstm2"], z, z)
    z3 = jnp.zeros((B, H3), jnp.float32)
    y = lstm_layer_ref(y, params["lstm3"], z3, z3)
    w1, b1 = params["lin1"]
    w2, b2 = params["lin2"]
    h = y @ w1.T + b1
    logits = h @ w2.T + b2
    return jnp.squeeze(jax.nn.softmax(logits, axis=-1))


# ----------------------------------------------------------------------------
if __name__ == "__main__":
    FACTORS = 4
    SEQ = 8
    BATCH = 2
    H1 = 24 * FACTORS      # 96
    H3 = 4 * FACTORS       # 16

    key = jax.random.PRNGKey(0)
    kx, kh, kc, k1, k2, k3, k4, k5 = jax.random.split(key, 8)

    # input: (seq_len, batch, factors)  -- PyTorch LSTM time-major layout
    x = jax.random.normal(kx, (SEQ, BATCH, FACTORS), jnp.float32)
    # h0/c0: torch.randn(1, batch, 24*factors) -> squeeze the layer dim
    h0 = jax.random.normal(kh, (1, BATCH, H1), jnp.float32)[0]
    c0 = jax.random.normal(kc, (1, BATCH, H1), jnp.float32)[0]

    raw_params = {
        "lstm1": init_lstm_params(k1, FACTORS, H1),
        "lstm2": init_lstm_params(k2, H1, H1),
        "lstm3": init_lstm_params(k3, H1, H3),
        "lin1": init_linear_params(k4, 4 * FACTORS, 2 * FACTORS),
        "lin2": init_linear_params(k5, 2 * FACTORS, 2),
    }

    # one-time layout packing (outside jit)
    packed = {
        "lstm1": pack_lstm1_params(raw_params["lstm1"]),
        "lstm2": pack_lstm_fused_params(raw_params["lstm2"]),
        "lstm3": pack_lstm_fused_params(raw_params["lstm3"]),
        "head": pack_head_params(raw_params["lin1"], raw_params["lin2"]),
    }
    packed = jax.block_until_ready(packed)

    fwd = jax.jit(functools.partial(lstm_model_forward, packed))
    out = jax.block_until_ready(fwd(x, h0, c0))

    ref = jax.block_until_ready(model_ref(raw_params, x, h0, c0))

    assert out.shape == (SEQ, BATCH, 2), out.shape
    assert jnp.allclose(jnp.sum(out, axis=-1), 1.0, atol=1e-5)
    # tolerance: fused K=256 gate matmuls + folded head change f32 summation
    # order slightly vs. the reference; still well within 1e-4.
    assert jnp.allclose(out, ref, atol=1e-4, rtol=1e-4), float(
        jnp.max(jnp.abs(out - ref)))

    print("KERNEL_OK")
</pallas_src>

<mosaic_0001>
module attributes {stable_mosaic.version = 11 : i64} {
  func.func @_fused_lstm_kernel(%arg0: i32, %arg1: memref<64x4xf32, #tpu.memory_space<vmem>>, %arg2: memref<8x128xf32, #tpu.memory_space<vmem>>, %arg3: memref<8x128xf32, #tpu.memory_space<vmem>>, %arg4: memref<4x512xf32, #tpu.memory_space<vmem>>, %arg5: memref<128x512xf32, #tpu.memory_space<vmem>>, %arg6: memref<1x512xf32, #tpu.memory_space<vmem>>, %arg7: memref<256x512xf32, #tpu.memory_space<vmem>>, %arg8: memref<1x512xf32, #tpu.memory_space<vmem>>, %arg9: memref<256x512xf32, #tpu.memory_space<vmem>>, %arg10: memref<1x512xf32, #tpu.memory_space<vmem>>, %arg11: memref<128x128xf32, #tpu.memory_space<vmem>>, %arg12: memref<1x128xf32, #tpu.memory_space<vmem>>, %arg13: memref<64x128xf32, #tpu.memory_space<vmem>>, %arg14: memref<64x512xf32, #tpu.memory_space<vmem>>, %arg15: memref<64x128xf32, #tpu.memory_space<vmem>>) attributes {dimension_semantics = [#tpu.dimension_semantics<arbitrary>], iteration_bounds = array<i64: 1>, scalar_prefetch = 0 : i64, scratch_operands = 2 : i64, tpu.core_type = #tpu.core_type<tc>, window_params = [{pipeline_mode = #tpu.pipeline_mode<synchronous>, transform_indices = @transform_0, window_bounds = array<i64: 64, 4>}, {pipeline_mode = #tpu.pipeline_mode<synchronous>, transform_indices = @transform_1, window_bounds = array<i64: 8, 128>}, {pipeline_mode = #tpu.pipeline_mode<synchronous>, transform_indices = @transform_2, window_bounds = array<i64: 8, 128>}, {pipeline_mode = #tpu.pipeline_mode<synchronous>, transform_indices = @transform_3, window_bounds = array<i64: 4, 512>}, {pipeline_mode = #tpu.pipeline_mode<synchronous>, transform_indices = @transform_4, window_bounds = array<i64: 128, 512>}, {pipeline_mode = #tpu.pipeline_mode<synchronous>, transform_indices = @transform_5, window_bounds = array<i64: 1, 512>}, {pipeline_mode = #tpu.pipeline_mode<synchronous>, transform_indices = @transform_6, window_bounds = array<i64: 256, 512>}, {pipeline_mode = #tpu.pipeline_mode<synchronous>, transform_indices = @transform_7, window_bounds = array<i64: 1, 512>}, {pipeline_mode = #tpu.pipeline_mode<synchronous>, transform_indices = @transform_8, window_bounds = array<i64: 256, 512>}, {pipeline_mode = #tpu.pipeline_mode<synchronous>, transform_indices = @transform_9, window_bounds = array<i64: 1, 512>}, {pipeline_mode = #tpu.pipeline_mode<synchronous>, transform_indices = @transform_10, window_bounds = array<i64: 128, 128>}, {pipeline_mode = #tpu.pipeline_mode<synchronous>, transform_indices = @transform_11, window_bounds = array<i64: 1, 128>}, {pipeline_mode = #tpu.pipeline_mode<synchronous>, transform_indices = @transform_12, window_bounds = array<i64: 64, 128>}]} {
    %c0 = arith.constant 0 : index
    %c0_0 = arith.constant 0 : index
    %0 = vector.load %arg1[%c0, %c0_0] : memref<64x4xf32, #tpu.memory_space<vmem>>, vector<64x4xf32>
    %c0_1 = arith.constant 0 : index
    %c0_2 = arith.constant 0 : index
    %1 = vector.load %arg4[%c0_1, %c0_2] : memref<4x512xf32, #tpu.memory_space<vmem>>, vector<4x512xf32>
    %cst = arith.constant dense<0.000000e+00> : vector<64x512xf32>
    %2 = tpu.matmul %0, %1, %cst {dimension_numbers = #tpu.dot_dimension_numbers<[1], [0], [0], [1], [0, 0, 1, 1], [], []>} : vector<64x4xf32>, vector<4x512xf32>, vector<64x512xf32> -> vector<64x512xf32>
    %c0_3 = arith.constant 0 : index
    %c0_4 = arith.constant 0 : index
    %3 = vector.load %arg6[%c0_3, %c0_4] : memref<1x512xf32, #tpu.memory_space<vmem>>, vector<1x512xf32>
    %4 = vector.broadcast %3 : vector<1x512xf32> to vector<64x512xf32>
    %5 = arith.addf %2, %4 : vector<64x512xf32>
    %c0_5 = arith.constant 0 : index
    %c0_6 = arith.constant 0 : index
    %6 = vector.load %arg14[%c0_5, %c0_6] : memref<64x512xf32, #tpu.memory_space<vmem>>, vector<64x512xf32>
    tpu.vector_store %arg14[%c0_5, %c0_6], %5 {strides = array<i32>} : memref<64x512xf32, #tpu.memory_space<vmem>>, vector<64x512xf32>,
    %cst_7 = arith.constant 0.000000e+00 : f32
    %7 = vector.broadcast %cst_7 : f32 to vector<8x128xf32>
    %c0_8 = arith.constant 0 : index
    %c0_9 = arith.constant 0 : index
    %8 = vector.load %arg2[%c0_8, %c0_9] : memref<8x128xf32, #tpu.memory_space<vmem>>, vector<8x128xf32>
    %c0_10 = arith.constant 0 : index
    %c0_11 = arith.constant 0 : index
    %9 = vector.load %arg3[%c0_10, %c0_11] : memref<8x128xf32, #tpu.memory_space<vmem>>, vector<8x128xf32>
    %c0_12 = arith.constant 0 : index
    %c0_13 = arith.constant 0 : index
    %10 = vector.load %arg14[%c0_12, %c0_13] : memref<64x512xf32, #tpu.memory_space<vmem>>, vector<8x512xf32>
    %c0_14 = arith.constant 0 : index
    %c0_15 = arith.constant 0 : index
    %11 = vector.load %arg5[%c0_14, %c0_15] : memref<128x512xf32, #tpu.memory_space<vmem>>, vector<128x512xf32>
    %cst_16 = arith.constant dense<0.000000e+00> : vector<8x512xf32>
    %12 = tpu.matmul %8, %11, %cst_16 {dimension_numbers = #tpu.dot_dimension_numbers<[1], [0], [0], [1], [0, 0, 1, 1], [], []>} : vector<8x128xf32>, vector<128x512xf32>, vector<8x512xf32> -> vector<8x512xf32>
    %13 = arith.addf %10, %12 : vector<8x512xf32>
    %14 = vector.extract_strided_slice %13 {offsets = [0, 0], sizes = [8, 384], strides = [1, 1]} : vector<8x512xf32> to vector<8x384xf32>
    %15 = arith.negf %14 : vector<8x384xf32>
    %16 = math.exp %15 : vector<8x384xf32>
    %cst_17 = arith.constant 1.000000e+00 : f32
    %17 = vector.broadcast %cst_17 : f32 to vector<8x384xf32>
    %18 = arith.addf %17, %16 : vector<8x384xf32>
    %19 = arith.divf %17, %18 : vector<8x384xf32>
    %20 = vector.extract_strided_slice %19 {offsets = [0, 0], sizes = [8, 128], strides = [1, 1]} : vector<8x384xf32> to vector<8x128xf32>
    %21 = vector.extract_strided_slice %19 {offsets = [0, 128], sizes = [8, 128], strides = [1, 1]} : vector<8x384xf32> to vector<8x128xf32>
    %22 = vector.extract_strided_slice %19 {offsets = [0, 256], sizes = [8, 128], strides = [1, 1]} : vector<8x384xf32> to vector<8x128xf32>
    %23 = vector.extract_strided_slice %13 {offsets = [0, 384], sizes = [8, 128], strides = [1, 1]} : vector<8x512xf32> to vector<8x128xf32>
    %24 = math.tanh %23 : vector<8x128xf32>
    %25 = arith.mulf %21, %9 : vector<8x128xf32>
    %26 = arith.mulf %20, %24 : vector<8x128xf32>
    %27 = arith.addf %25, %26 : vector<8x128xf32>
    %28 = math.tanh %27 : vector<8x128xf32>
    %29 = arith.mulf %22, %28 : vector<8x128xf32>
    %c8 = arith.constant 8 : index
    %c0_18 = arith.constant 0 : index
    %30 = vector.load %arg14[%c8, %c0_18] : memref<64x512xf32, #tpu.memory_space<vmem>>, vector<8x512xf32>
    %c0_19 = arith.constant 0 : index
    %c0_20 = arith.constant 0 : index
    %31 = vector.load %arg5[%c0_19, %c0_20] : memref<128x512xf32, #tpu.memory_space<vmem>>, vector<128x512xf32>
    %cst_21 = arith.constant dense<0.000000e+00> : vector<8x512xf32>
    %32 = tpu.matmul %29, %31, %cst_21 {dimension_numbers = #tpu.dot_dimension_numbers<[1], [0], [0], [1], [0, 0, 1, 1], [], []>} : vector<8x128xf32>, vector<128x512xf32>, vector<8x512xf32> -> vector<8x512xf32>
    %33 = arith.addf %30, %32 : vector<8x512xf32>
    %34 = vector.extract_strided_slice %33 {offsets = [0, 0], sizes = [8, 384], strides = [1, 1]} : vector<8x512xf32> to vector<8x384xf32>
    %35 = arith.negf %34 : vector<8x384xf32>
    %36 = math.exp %35 : vector<8x384xf32>
    %cst_22 = arith.constant 1.000000e+00 : f32
    %37 = vector.broadcast %cst_22 : f32 to vector<8x384xf32>
    %38 = arith.addf %37, %36 : vector<8x384xf32>
    %39 = arith.divf %37, %38 : vector<8x384xf32>
    %40 = vector.extract_strided_slice %39 {offsets = [0, 0], sizes = [8, 128], strides = [1, 1]} : vector<8x384xf32> to vector<8x128xf32>
    %41 = vector.extract_strided_slice %39 {offsets = [0, 128], sizes = [8, 128], strides = [1, 1]} : vector<8x384xf32> to vector<8x128xf32>
    %42 = vector.extract_strided_slice %39 {offsets = [0, 256], sizes = [8, 128], strides = [1, 1]} : vector<8x384xf32> to vector<8x128xf32>
    %43 = vector.extract_strided_slice %33 {offsets = [0, 384], sizes = [8, 128], strides = [1, 1]} : vector<8x512xf32> to vector<8x128xf32>
    %44 = math.tanh %43 : vector<8x128xf32>
    %45 = arith.mulf %41, %27 : vector<8x128xf32>
    %46 = arith.mulf %40, %44 : vector<8x128xf32>
    %47 = arith.addf %45, %46 : vector<8x128xf32>
    %48 = math.tanh %47 : vector<8x128xf32>
    %49 = arith.mulf %42, %48 : vector<8x128xf32>
    %50 = tpu.concatenate %29, %7 in 1 : vector<8x128xf32>, vector<8x128xf32> -> vector<8x256xf32>
    %c0_23 = arith.constant 0 : index
    %c0_24 = arith.constant 0 : index
    %51 = vector.load %arg7[%c0_23, %c0_24] : memref<256x512xf32, #tpu.memory_space<vmem>>, vector<256x512xf32>
    %cst_25 = arith.constant dense<0.000000e+00> : vector<8x512xf32>
    %52 = tpu.matmul %50, %51, %cst_25 {dimension_numbers = #tpu.dot_dimension_numbers<[1], [0], [0], [1], [0, 0, 1, 1], [], []>} : vector<8x256xf32>, vector<256x512xf32>, vector<8x512xf32> -> vector<8x512xf32>
    %c0_26 = arith.constant 0 : index
    %c0_27 = arith.constant 0 : index
    %53 = vector.load %arg8[%c0_26, %c0_27] : memref<1x512xf32, #tpu.memory_space<vmem>>, vector<1x512xf32>
    %54 = vector.broadcast %53 : vector<1x512xf32> to vector<8x512xf32>
    %55 = arith.addf %52, %54 : vector<8x512xf32>
    %56 = vector.extract_strided_slice %55 {offsets = [0, 0], sizes = [8, 384], strides = [1, 1]} : vector<8x512xf32> to vector<8x384xf32>
    %57 = arith.negf %56 : vector<8x384xf32>
    %58 = math.exp %57 : vector<8x384xf32>
    %cst_28 = arith.constant 1.000000e+00 : f32
    %59 = vector.broadcast %cst_28 : f32 to vector<8x384xf32>
    %60 = arith.addf %59, %58 : vector<8x384xf32>
    %61 = arith.divf %59, %60 : vector<8x384xf32>
    %62 = vector.extract_strided_slice %61 {offsets = [0, 0], sizes = [8, 128], strides = [1, 1]} : vector<8x384xf32> to vector<8x128xf32>
    %63 = vector.extract_strided_slice %61 {offsets = [0, 128], sizes = [8, 128], strides = [1, 1]} : vector<8x384xf32> to vector<8x128xf32>
    %64 = vector.extract_strided_slice %61 {offsets = [0, 256], sizes = [8, 128], strides = [1, 1]} : vector<8x384xf32> to vector<8x128xf32>
    %65 = vector.extract_strided_slice %55 {offsets = [0, 384], sizes = [8, 128], strides = [1, 1]} : vector<8x512xf32> to vector<8x128xf32>
    %66 = math.tanh %65 : vector<8x128xf32>
    %67 = arith.mulf %63, %7 : vector<8x128xf32>
    %68 = arith.mulf %62, %66 : vector<8x128xf32>
    %69 = arith.addf %67, %68 : vector<8x128xf32>
    %70 = math.tanh %69 : vector<8x128xf32>
    %71 = arith.mulf %64, %70 : vector<8x128xf32>
    %c16 = arith.constant 16 : index
    %c0_29 = arith.constant 0 : index
    %72 = vector.load %arg14[%c16, %c0_29] : memref<64x512xf32, #tpu.memory_space<vmem>>, vector<8x512xf32>
    %c0_30 = arith.constant 0 : index
    %c0_31 = arith.constant 0 : index
    %73 = vector.load %arg5[%c0_30, %c0_31] : memref<128x512xf32, #tpu.memory_space<vmem>>, vector<128x512xf32>
    %cst_32 = arith.constant dense<0.000000e+00> : vector<8x512xf32>
    %74 = tpu.matmul %49, %73, %cst_32 {dimension_numbers = #tpu.dot_dimension_numbers<[1], [0], [0], [1], [0, 0, 1, 1], [], []>} : vector<8x128xf32>, vector<128x512xf32>, vector<8x512xf32> -> vector<8x512xf32>
    %75 = arith.addf %72, %74 : vector<8x512xf32>
    %76 = vector.extract_strided_slice %75 {offsets = [0, 0], sizes = [8, 384], strides = [1, 1]} : vector<8x512xf32> to vector<8x384xf32>
    %77 = arith.negf %76 : vector<8x384xf32>
    %78 = math.exp %77 : vector<8x384xf32>
    %cst_33 = arith.constant 1.000000e+00 : f32
    %79 = vector.broadcast %cst_33 : f32 to vector<8x384xf32>
    %80 = arith.addf %79, %78 : vector<8x384xf32>
    %81 = arith.divf %79, %80 : vector<8x384xf32>
    %82 = vector.extract_strided_slice %81 {offsets = [0, 0], sizes = [8, 128], strides = [1, 1]} : vector<8x384xf32> to vector<8x128xf32>
    %83 = vector.extract_strided_slice %81 {offsets = [0, 128], sizes = [8, 128], strides = [1, 1]} : vector<8x384xf32> to vector<8x128xf32>
    %84 = vector.extract_strided_slice %81 {offsets = [0, 256], sizes = [8, 128], strides = [1, 1]} : vector<8x384xf32> to vector<8x128xf32>
    %85 = vector.extract_strided_slice %75 {offsets = [0, 384], sizes = [8, 128], strides = [1, 1]} : vector<8x512xf32> to vector<8x128xf32>
    %86 = math.tanh %85 : vector<8x128xf32>
    %87 = arith.mulf %83, %47 : vector<8x128xf32>
    %88 = arith.mulf %82, %86 : vector<8x128xf32>
    %89 = arith.addf %87, %88 : vector<8x128xf32>
    %90 = math.tanh %89 : vector<8x128xf32>
    %91 = arith.mulf %84, %90 : vector<8x128xf32>
    %92 = tpu.concatenate %49, %71 in 1 : vector<8x128xf32>, vector<8x128xf32> -> vector<8x256xf32>
    %c0_34 = arith.constant 0 : index
    %c0_35 = arith.constant 0 : index
    %93 = vector.load %arg7[%c0_34, %c0_35] : memref<256x512xf32, #tpu.memory_space<vmem>>, vector<256x512xf32>
    %cst_36 = arith.constant dense<0.000000e+00> : vector<8x512xf32>
    %94 = tpu.matmul %92, %93, %cst_36 {dimension_numbers = #tpu.dot_dimension_numbers<[1], [0], [0], [1], [0, 0, 1, 1], [], []>} : vector<8x256xf32>, vector<256x512xf32>, vector<8x512xf32> -> vector<8x512xf32>
    %c0_37 = arith.constant 0 : index
    %c0_38 = arith.constant 0 : index
    %95 = vector.load %arg8[%c0_37, %c0_38] : memref<1x512xf32, #tpu.memory_space<vmem>>, vector<1x512xf32>
    %96 = vector.broadcast %95 : vector<1x512xf32> to vector<8x512xf32>
    %97 = arith.addf %94, %96 : vector<8x512xf32>
    %98 = vector.extract_strided_slice %97 {offsets = [0, 0], sizes = [8, 384], strides = [1, 1]} : vector<8x512xf32> to vector<8x384xf32>
    %99 = arith.negf %98 : vector<8x384xf32>
    %100 = math.exp %99 : vector<8x384xf32>
    %cst_39 = arith.constant 1.000000e+00 : f32
    %101 = vector.broadcast %cst_39 : f32 to vector<8x384xf32>
    %102 = arith.addf %101, %100 : vector<8x384xf32>
    %103 = arith.divf %101, %102 : vector<8x384xf32>
    %104 = vector.extract_strided_slice %103 {offsets = [0, 0], sizes = [8, 128], strides = [1, 1]} : vector<8x384xf32> to vector<8x128xf32>
    %105 = vector.extract_strided_slice %103 {offsets = [0, 128], sizes = [8, 128], strides = [1, 1]} : vector<8x384xf32> to vector<8x128xf32>
    %106 = vector.extract_strided_slice %103 {offsets = [0, 256], sizes = [8, 128], strides = [1, 1]} : vector<8x384xf32> to vector<8x128xf32>
    %107 = vector.extract_strided_slice %97 {offsets = [0, 384], sizes = [8, 128], strides = [1, 1]} : vector<8x512xf32> to vector<8x128xf32>
    %108 = math.tanh %107 : vector<8x128xf32>
    %109 = arith.mulf %105, %69 : vector<8x128xf32>
    %110 = arith.mulf %104, %108 : vector<8x128xf32>
    %111 = arith.addf %109, %110 : vector<8x128xf32>
    %112 = math.tanh %111 : vector<8x128xf32>
    %113 = arith.mulf %106, %112 : vector<8x128xf32>
    %114 = tpu.concatenate %71, %7 in 1 : vector<8x128xf32>, vector<8x128xf32> -> vector<8x256xf32>
    %c0_40 = arith.constant 0 : index
    %c0_41 = arith.constant 0 : index
    %115 = vector.load %arg9[%c0_40, %c0_41] : memref<256x512xf32, #tpu.memory_space<vmem>>, vector<256x512xf32>
    %cst_42 = arith.constant dense<0.000000e+00> : vector<8x512xf32>
    %116 = tpu.matmul %114, %115, %cst_42 {dimension_numbers = #tpu.dot_dimension_numbers<[1], [0], [0], [1], [0, 0, 1, 1], [], []>} : vector<8x256xf32>, vector<256x512xf32>, vector<8x512xf32> -> vector<8x512xf32>
    %c0_43 = arith.constant 0 : index
    %c0_44 = arith.constant 0 : index
    %117 = vector.load %arg10[%c0_43, %c0_44] : memref<1x512xf32, #tpu.memory_space<vmem>>, vector<1x512xf32>
    %118 = vector.broadcast %117 : vector<1x512xf32> to vector<8x512xf32>
    %119 = arith.addf %116, %118 : vector<8x512xf32>
    %120 = vector.extract_strided_slice %119 {offsets = [0, 0], sizes = [8, 384], strides = [1, 1]} : vector<8x512xf32> to vector<8x384xf32>
    %121 = arith.negf %120 : vector<8x384xf32>
    %122 = math.exp %121 : vector<8x384xf32>
    %cst_45 = arith.constant 1.000000e+00 : f32
    %123 = vector.broadcast %cst_45 : f32 to vector<8x384xf32>
    %124 = arith.addf %123, %122 : vector<8x384xf32>
    %125 = arith.divf %123, %124 : vector<8x384xf32>
    %126 = vector.extract_strided_slice %125 {offsets = [0, 0], sizes = [8, 128], strides = [1, 1]} : vector<8x384xf32> to vector<8x128xf32>
    %127 = vector.extract_strided_slice %125 {offsets = [0, 128], sizes = [8, 128], strides = [1, 1]} : vector<8x384xf32> to vector<8x128xf32>
    %128 = vector.extract_strided_slice %125 {offsets = [0, 256], sizes = [8, 128], strides = [1, 1]} : vector<8x384xf32> to vector<8x128xf32>
    %129 = vector.extract_strided_slice %119 {offsets = [0, 384], sizes = [8, 128], strides = [1, 1]} : vector<8x512xf32> to vector<8x128xf32>
    %130 = math.tanh %129 : vector<8x128xf32>
    %131 = arith.mulf %127, %7 : vector<8x128xf32>
    %132 = arith.mulf %126, %130 : vector<8x128xf32>
    %133 = arith.addf %131, %132 : vector<8x128xf32>
    %134 = math.tanh %133 : vector<8x128xf32>
    %135 = arith.mulf %128, %134 : vector<8x128xf32>
    %c0_46 = arith.constant 0 : index
    %c0_47 = arith.constant 0 : index
    %136 = vector.load %arg15[%c0_46, %c0_47] : memref<64x128xf32, #tpu.memory_space<vmem>>, vector<8x128xf32>
    tpu.vector_store %arg15[%c0_46, %c0_47], %135 {strides = array<i32>} : memref<64x128xf32, #tpu.memory_space<vmem>>, vector<8x128xf32>,
    %c24 = arith.constant 24 : index
    %c0_48 = arith.constant 0 : index
    %137 = vector.load %arg14[%c24, %c0_48] : memref<64x512xf32, #tpu.memory_space<vmem>>, vector<8x512xf32>
    %c0_49 = arith.constant 0 : index
    %c0_50 = arith.constant 0 : index
    %138 = vector.load %arg5[%c0_49, %c0_50] : memref<128x512xf32, #tpu.memory_space<vmem>>, vector<128x512xf32>
    %cst_51 = arith.constant dense<0.000000e+00> : vector<8x512xf32>
    %139 = tpu.matmul %91, %138, %cst_51 {dimension_numbers = #tpu.dot_dimension_numbers<[1], [0], [0], [1], [0, 0, 1, 1], [], []>} : vector<8x128xf32>, vector<128x512xf32>, vector<8x512xf32> -> vector<8x512xf32>
    %140 = arith.addf %137, %139 : vector<8x512xf32>
    %141 = vector.extract_strided_slice %140 {offsets = [0, 0], sizes = [8, 384], strides = [1, 1]} : vector<8x512xf32> to vector<8x384xf32>
    %142 = arith.negf %141 : vector<8x384xf32>
    %143 = math.exp %142 : vector<8x384xf32>
    %cst_52 = arith.constant 1.000000e+00 : f32
    %144 = vector.broadcast %cst_52 : f32 to vector<8x384xf32>
    %145 = arith.addf %144, %143 : vector<8x384xf32>
    %146 = arith.divf %144, %145 : vector<8x384xf32>
    %147 = vector.extract_strided_slice %146 {offsets = [0, 0], sizes = [8, 128], strides = [1, 1]} : vector<8x384xf32> to vector<8x128xf32>
    %148 = vector.extract_strided_slice %146 {offsets = [0, 128], sizes = [8, 128], strides = [1, 1]} : vector<8x384xf32> to vector<8x128xf32>
    %149 = vector.extract_strided_slice %146 {offsets = [0, 256], sizes = [8, 128], strides = [1, 1]} : vector<8x384xf32> to vector<8x128xf32>
    %150 = vector.extract_strided_slice %140 {offsets = [0, 384], sizes = [8, 128], strides = [1, 1]} : vector<8x512xf32> to vector<8x128xf32>
    %151 = math.tanh %150 : vector<8x128xf32>
    %152 = arith.mulf %148, %89 : vector<8x128xf32>
    %153 = arith.mulf %147, %151 : vector<8x128xf32>
    %154 = arith.addf %152, %153 : vector<8x128xf32>
    %155 = math.tanh %154 : vector<8x128xf32>
    %156 = arith.mulf %149, %155 : vector<8x128xf32>
    %157 = tpu.concatenate %91, %113 in 1 : vector<8x128xf32>, vector<8x128xf32> -> vector<8x256xf32>
    %c0_53 = arith.constant 0 : index
    %c0_54 = arith.constant 0 : index
    %158 = vector.load %arg7[%c0_53, %c0_54] : memref<256x512xf32, #tpu.memory_space<vmem>>, vector<256x512xf32>
    %cst_55 = arith.constant dense<0.000000e+00> : vector<8x512xf32>
    %159 = tpu.matmul %157, %158, %cst_55 {dimension_numbers = #tpu.dot_dimension_numbers<[1], [0], [0], [1], [0, 0, 1, 1], [], []>} : vector<8x256xf32>, vector<256x512xf32>, vector<8x512xf32> -> vector<8x512xf32>
    %c0_56 = arith.constant 0 : index
    %c0_57 = arith.constant 0 : index
    %160 = vector.load %arg8[%c0_56, %c0_57] : memref<1x512xf32, #tpu.memory_space<vmem>>, vector<1x512xf32>
    %161 = vector.broadcast %160 : vector<1x512xf32> to vector<8x512xf32>
    %162 = arith.addf %159, %161 : vector<8x512xf32>
    %163 = vector.extract_strided_slice %162 {offsets = [0, 0], sizes = [8, 384], strides = [1, 1]} : vector<8x512xf32> to vector<8x384xf32>
    %164 = arith.negf %163 : vector<8x384xf32>
    %165 = math.exp %164 : vector<8x384xf32>
    %cst_58 = arith.constant 1.000000e+00 : f32
    %166 = vector.broadcast %cst_58 : f32 to vector<8x384xf32>
    %167 = arith.addf %166, %165 : vector<8x384xf32>
    %168 = arith.divf %166, %167 : vector<8x384xf32>
    %169 = vector.extract_strided_slice %168 {offsets = [0, 0], sizes = [8, 128], strides = [1, 1]} : vector<8x384xf32> to vector<8x128xf32>
    %170 = vector.extract_strided_slice %168 {offsets = [0, 128], sizes = [8, 128], strides = [1, 1]} : vector<8x384xf32> to vector<8x128xf32>
    %171 = vector.extract_strided_slice %168 {offsets = [0, 256], sizes = [8, 128], strides = [1, 1]} : vector<8x384xf32> to vector<8x128xf32>
    %172 = vector.extract_strided_slice %162 {offsets = [0, 384], sizes = [8, 128], strides = [1, 1]} : vector<8x512xf32> to vector<8x128xf32>
    %173 = math.tanh %172 : vector<8x128xf32>
    %174 = arith.mulf %170, %111 : vector<8x128xf32>
    %175 = arith.mulf %169, %173 : vector<8x128xf32>
    %176 = arith.addf %174, %175 : vector<8x128xf32>
    %177 = math.tanh %176 : vector<8x128xf32>
    %178 = arith.mulf %171, %177 : vector<8x128xf32>
    %179 = tpu.concatenate %113, %135 in 1 : vector<8x128xf32>, vector<8x128xf32> -> vector<8x256xf32>
    %c0_59 = arith.constant 0 : index
    %c0_60 = arith.constant 0 : index
    %180 = vector.load %arg9[%c0_59, %c0_60] : memref<256x512xf32, #tpu.memory_space<vmem>>, vector<256x512xf32>
    %cst_61 = arith.constant dense<0.000000e+00> : vector<8x512xf32>
    %181 = tpu.matmul %179, %180, %cst_61 {dimension_numbers = #tpu.dot_dimension_numbers<[1], [0], [0], [1], [0, 0, 1, 1], [], []>} : vector<8x256xf32>, vector<256x512xf32>, vector<8x512xf32> -> vector<8x512xf32>
    %c0_62 = arith.constant 0 : index
    %c0_63 = arith.constant 0 : index
    %182 = vector.load %arg10[%c0_62, %c0_63] : memref<1x512xf32, #tpu.memory_space<vmem>>, vector<1x512xf32>
    %183 = vector.broadcast %182 : vector<1x512xf32> to vector<8x512xf32>
    %184 = arith.addf %181, %183 : vector<8x512xf32>
    %185 = vector.extract_strided_slice %184 {offsets = [0, 0], sizes = [8, 384], strides = [1, 1]} : vector<8x512xf32> to vector<8x384xf32>
    %186 = arith.negf %185 : vector<8x384xf32>
    %187 = math.exp %186 : vector<8x384xf32>
    %cst_64 = arith.constant 1.000000e+00 : f32
    %188 = vector.broadcast %cst_64 : f32 to vector<8x384xf32>
    %189 = arith.addf %188, %187 : vector<8x384xf32>
    %190 = arith.divf %188, %189 : vector<8x384xf32>
    %191 = vector.extract_strided_slice %190 {offsets = [0, 0], sizes = [8, 128], strides = [1, 1]} : vector<8x384xf32> to vector<8x128xf32>
    %192 = vector.extract_strided_slice %190 {offsets = [0, 128], sizes = [8, 128], strides = [1, 1]} : vector<8x384xf32> to vector<8x128xf32>
    %193 = vector.extract_strided_slice %190 {offsets = [0, 256], sizes = [8, 128], strides = [1, 1]} : vector<8x384xf32> to vector<8x128xf32>
    %194 = vector.extract_strided_slice %184 {offsets = [0, 384], sizes = [8, 128], strides = [1, 1]} : vector<8x512xf32> to vector<8x128xf32>
    %195 = math.tanh %194 : vector<8x128xf32>
    %196 = arith.mulf %192, %133 : vector<8x128xf32>
    %197 = arith.mulf %191, %195 : vector<8x128xf32>
    %198 = arith.addf %196, %197 : vector<8x128xf32>
    %199 = math.tanh %198 : vector<8x128xf32>
    %200 = arith.mulf %193, %199 : vector<8x128xf32>
    %c8_65 = arith.constant 8 : index
    %c0_66 = arith.constant 0 : index
    %201 = vector.load %arg15[%c8_65, %c0_66] : memref<64x128xf32, #tpu.memory_space<vmem>>, vector<8x128xf32>
    tpu.vector_store %arg15[%c8_65, %c0_66], %200 {strides = array<i32>} : memref<64x128xf32, #tpu.memory_space<vmem>>, vector<8x128xf32>,
    %c32 = arith.constant 32 : index
    %c0_67 = arith.constant 0 : index
    %202 = vector.load %arg14[%c32, %c0_67] : memref<64x512xf32, #tpu.memory_space<vmem>>, vector<8x512xf32>
    %c0_68 = arith.constant 0 : index
    %c0_69 = arith.constant 0 : index
    %203 = vector.load %arg5[%c0_68, %c0_69] : memref<128x512xf32, #tpu.memory_space<vmem>>, vector<128x512xf32>
    %cst_70 = arith.constant dense<0.000000e+00> : vector<8x512xf32>
    %204 = tpu.matmul %156, %203, %cst_70 {dimension_numbers = #tpu.dot_dimension_numbers<[1], [0], [0], [1], [0, 0, 1, 1], [], []>} : vector<8x128xf32>, vector<128x512xf32>, vector<8x512xf32> -> vector<8x512xf32>
    %205 = arith.addf %202, %204 : vector<8x512xf32>
    %206 = vector.extract_strided_slice %205 {offsets = [0, 0], sizes = [8, 384], strides = [1, 1]} : vector<8x512xf32> to vector<8x384xf32>
    %207 = arith.negf %206 : vector<8x384xf32>
    %208 = math.exp %207 : vector<8x384xf32>
    %cst_71 = arith.constant 1.000000e+00 : f32
    %209 = vector.broadcast %cst_71 : f32 to vector<8x384xf32>
    %210 = arith.addf %209, %208 : vector<8x384xf32>
    %211 = arith.divf %209, %210 : vector<8x384xf32>
    %212 = vector.extract_strided_slice %211 {offsets = [0, 0], sizes = [8, 128], strides = [1, 1]} : vector<8x384xf32> to vector<8x128xf32>
    %213 = vector.extract_strided_slice %211 {offsets = [0, 128], sizes = [8, 128], strides = [1, 1]} : vector<8x384xf32> to vector<8x128xf32>
    %214 = vector.extract_strided_slice %211 {offsets = [0, 256], sizes = [8, 128], strides = [1, 1]} : vector<8x384xf32> to vector<8x128xf32>
    %215 = vector.extract_strided_slice %205 {offsets = [0, 384], sizes = [8, 128], strides = [1, 1]} : vector<8x512xf32> to vector<8x128xf32>
    %216 = math.tanh %215 : vector<8x128xf32>
    %217 = arith.mulf %213, %154 : vector<8x128xf32>
    %218 = arith.mulf %212, %216 : vector<8x128xf32>
    %219 = arith.addf %217, %218 : vector<8x128xf32>
    %220 = math.tanh %219 : vector<8x128xf32>
    %221 = arith.mulf %214, %220 : vector<8x128xf32>
    %222 = tpu.concatenate %156, %178 in 1 : vector<8x128xf32>, vector<8x128xf32> -> vector<8x256xf32>
    %c0_72 = arith.constant 0 : index
    %c0_73 = arith.constant 0 : index
    %223 = vector.load %arg7[%c0_72, %c0_73] : memref<256x512xf32, #tpu.memory_space<vmem>>, vector<256x512xf32>
    %cst_74 = arith.constant dense<0.000000e+00> : vector<8x512xf32>
    %224 = tpu.matmul %222, %223, %cst_74 {dimension_numbers = #tpu.dot_dimension_numbers<[1], [0], [0], [1], [0, 0, 1, 1], [], []>} : vector<8x256xf32>, vector<256x512xf32>, vector<8x512xf32> -> vector<8x512xf32>
    %c0_75 = arith.constant 0 : index
    %c0_76 = arith.constant 0 : index
    %225 = vector.load %arg8[%c0_75, %c0_76] : memref<1x512xf32, #tpu.memory_space<vmem>>, vector<1x512xf32>
    %226 = vector.broadcast %225 : vector<1x512xf32> to vector<8x512xf32>
    %227 = arith.addf %224, %226 : vector<8x512xf32>
    %228 = vector.extract_strided_slice %227 {offsets = [0, 0], sizes = [8, 384], strides = [1, 1]} : vector<8x512xf32> to vector<8x384xf32>
    %229 = arith.negf %228 : vector<8x384xf32>
    %230 = math.exp %229 : vector<8x384xf32>
    %cst_77 = arith.constant 1.000000e+00 : f32
    %231 = vector.broadcast %cst_77 : f32 to vector<8x384xf32>
    %232 = arith.addf %231, %230 : vector<8x384xf32>
    %233 = arith.divf %231, %232 : vector<8x384xf32>
    %234 = vector.extract_strided_slice %233 {offsets = [0, 0], sizes = [8, 128], strides = [1, 1]} : vector<8x384xf32> to vector<8x128xf32>
    %235 = vector.extract_strided_slice %233 {offsets = [0, 128], sizes = [8, 128], strides = [1, 1]} : vector<8x384xf32> to vector<8x128xf32>
    %236 = vector.extract_strided_slice %233 {offsets = [0, 256], sizes = [8, 128], strides = [1, 1]} : vector<8x384xf32> to vector<8x128xf32>
    %237 = vector.extract_strided_slice %227 {offsets = [0, 384], sizes = [8, 128], strides = [1, 1]} : vector<8x512xf32> to vector<8x128xf32>
    %238 = math.tanh %237 : vector<8x128xf32>
    %239 = arith.mulf %235, %176 : vector<8x128xf32>
    %240 = arith.mulf %234, %238 : vector<8x128xf32>
    %241 = arith.addf %239, %240 : vector<8x128xf32>
    %242 = math.tanh %241 : vector<8x128xf32>
    %243 = arith.mulf %236, %242 : vector<8x128xf32>
    %244 = tpu.concatenate %178, %200 in 1 : vector<8x128xf32>, vector<8x128xf32> -> vector<8x256xf32>
    %c0_78 = arith.constant 0 : index
    %c0_79 = arith.constant 0 : index
    %245 = vector.load %arg9[%c0_78, %c0_79] : memref<256x512xf32, #tpu.memory_space<vmem>>, vector<256x512xf32>
    %cst_80 = arith.constant dense<0.000000e+00> : vector<8x512xf32>
    %246 = tpu.matmul %244, %245, %cst_80 {dimension_numbers = #tpu.dot_dimension_numbers<[1], [0], [0], [1], [0, 0, 1, 1], [], []>} : vector<8x256xf32>, vector<256x512xf32>, vector<8x512xf32> -> vector<8x512xf32>
    %c0_81 = arith.constant 0 : index
    %c0_82 = arith.constant 0 : index
    %247 = vector.load %arg10[%c0_81, %c0_82] : memref<1x512xf32, #tpu.memory_space<vmem>>, vector<1x512xf32>
    %248 = vector.broadcast %247 : vector<1x512xf32> to vector<8x512xf32>
    %249 = arith.addf %246, %248 : vector<8x512xf32>
    %250 = vector.extract_strided_slice %249 {offsets = [0, 0], sizes = [8, 384], strides = [1, 1]} : vector<8x512xf32> to vector<8x384xf32>
    %251 = arith.negf %250 : vector<8x384xf32>
    %252 = math.exp %251 : vector<8x384xf32>
    %cst_83 = arith.constant 1.000000e+00 : f32
    %253 = vector.broadcast %cst_83 : f32 to vector<8x384xf32>
    %254 = arith.addf %253, %252 : vector<8x384xf32>
    %255 = arith.divf %253, %254 : vector<8x384xf32>
    %256 = vector.extract_strided_slice %255 {offsets = [0, 0], sizes = [8, 128], strides = [1, 1]} : vector<8x384xf32> to vector<8x128xf32>
    %257 = vector.extract_strided_slice %255 {offsets = [0, 128], sizes = [8, 128], strides = [1, 1]} : vector<8x384xf32> to vector<8x128xf32>
    %258 = vector.extract_strided_slice %255 {offsets = [0, 256], sizes = [8, 128], strides = [1, 1]} : vector<8x384xf32> to vector<8x128xf32>
    %259 = vector.extract_strided_slice %249 {offsets = [0, 384], sizes = [8, 128], strides = [1, 1]} : vector<8x512xf32> to vector<8x128xf32>
    %260 = math.tanh %259 : vector<8x128xf32>
    %261 = arith.mulf %257, %198 : vector<8x128xf32>
    %262 = arith.mulf %256, %260 : vector<8x128xf32>
    %263 = arith.addf %261, %262 : vector<8x128xf32>
    %264 = math.tanh %263 : vector<8x128xf32>
    %265 = arith.mulf %258, %264 : vector<8x128xf32>
    %c16_84 = arith.constant 16 : index
    %c0_85 = arith.constant 0 : index
    %266 = vector.load %arg15[%c16_84, %c0_85] : memref<64x128xf32, #tpu.memory_space<vmem>>, vector<8x128xf32>
    tpu.vector_store %arg15[%c16_84, %c0_85], %265 {strides = array<i32>} : memref<64x128xf32, #tpu.memory_space<vmem>>, vector<8x128xf32>,
    %c40 = arith.constant 40 : index
    %c0_86 = arith.constant 0 : index
    %267 = vector.load %arg14[%c40, %c0_86] : memref<64x512xf32, #tpu.memory_space<vmem>>, vector<8x512xf32>
    %c0_87 = arith.constant 0 : index
    %c0_88 = arith.constant 0 : index
    %268 = vector.load %arg5[%c0_87, %c0_88] : memref<128x512xf32, #tpu.memory_space<vmem>>, vector<128x512xf32>
    %cst_89 = arith.constant dense<0.000000e+00> : vector<8x512xf32>
    %269 = tpu.matmul %221, %268, %cst_89 {dimension_numbers = #tpu.dot_dimension_numbers<[1], [0], [0], [1], [0, 0, 1, 1], [], []>} : vector<8x128xf32>, vector<128x512xf32>, vector<8x512xf32> -> vector<8x512xf32>
    %270 = arith.addf %267, %269 : vector<8x512xf32>
    %271 = vector.extract_strided_slice %270 {offsets = [0, 0], sizes = [8, 384], strides = [1, 1]} : vector<8x512xf32> to vector<8x384xf32>
    %272 = arith.negf %271 : vector<8x384xf32>
    %273 = math.exp %272 : vector<8x384xf32>
    %cst_90 = arith.constant 1.000000e+00 : f32
    %274 = vector.broadcast %cst_90 : f32 to vector<8x384xf32>
    %275 = arith.addf %274, %273 : vector<8x384xf32>
    %276 = arith.divf %274, %275 : vector<8x384xf32>
    %277 = vector.extract_strided_slice %276 {offsets = [0, 0], sizes = [8, 128], strides = [1, 1]} : vector<8x384xf32> to vector<8x128xf32>
    %278 = vector.extract_strided_slice %276 {offsets = [0, 128], sizes = [8, 128], strides = [1, 1]} : vector<8x384xf32> to vector<8x128xf32>
    %279 = vector.extract_strided_slice %276 {offsets = [0, 256], sizes = [8, 128], strides = [1, 1]} : vector<8x384xf32> to vector<8x128xf32>
    %280 = vector.extract_strided_slice %270 {offsets = [0, 384], sizes = [8, 128], strides = [1, 1]} : vector<8x512xf32> to vector<8x128xf32>
    %281 = math.tanh %280 : vector<8x128xf32>
    %282 = arith.mulf %278, %219 : vector<8x128xf32>
    %283 = arith.mulf %277, %281 : vector<8x128xf32>
    %284 = arith.addf %282, %283 : vector<8x128xf32>
    %285 = math.tanh %284 : vector<8x128xf32>
    %286 = arith.mulf %279, %285 : vector<8x128xf32>
    %287 = tpu.concatenate %221, %243 in 1 : vector<8x128xf32>, vector<8x128xf32> -> vector<8x256xf32>
    %c0_91 = arith.constant 0 : index
    %c0_92 = arith.constant 0 : index
    %288 = vector.load %arg7[%c0_91, %c0_92] : memref<256x512xf32, #tpu.memory_space<vmem>>, vector<256x512xf32>
    %cst_93 = arith.constant dense<0.000000e+00> : vector<8x512xf32>
    %289 = tpu.matmul %287, %288, %cst_93 {dimension_numbers = #tpu.dot_dimension_numbers<[1], [0], [0], [1], [0, 0, 1, 1], [], []>} : vector<8x256xf32>, vector<256x512xf32>, vector<8x512xf32> -> vector<8x512xf32>
    %c0_94 = arith.constant 0 : index
    %c0_95 = arith.constant 0 : index
    %290 = vector.load %arg8[%c0_94, %c0_95] : memref<1x512xf32, #tpu.memory_space<vmem>>, vector<1x512xf32>
    %291 = vector.broadcast %290 : vector<1x512xf32> to vector<8x512xf32>
    %292 = arith.addf %289, %291 : vector<8x512xf32>
    %293 = vector.extract_strided_slice %292 {offsets = [0, 0], sizes = [8, 384], strides = [1, 1]} : vector<8x512xf32> to vector<8x384xf32>
    %294 = arith.negf %293 : vector<8x384xf32>
    %295 = math.exp %294 : vector<8x384xf32>
    %cst_96 = arith.constant 1.000000e+00 : f32
    %296 = vector.broadcast %cst_96 : f32 to vector<8x384xf32>
    %297 = arith.addf %296, %295 : vector<8x384xf32>
    %298 = arith.divf %296, %297 : vector<8x384xf32>
    %299 = vector.extract_strided_slice %298 {offsets = [0, 0], sizes = [8, 128], strides = [1, 1]} : vector<8x384xf32> to vector<8x128xf32>
    %300 = vector.extract_strided_slice %298 {offsets = [0, 128], sizes = [8, 128], strides = [1, 1]} : vector<8x384xf32> to vector<8x128xf32>
    %301 = vector.extract_strided_slice %298 {offsets = [0, 256], sizes = [8, 128], strides = [1, 1]} : vector<8x384xf32> to vector<8x128xf32>
    %302 = vector.extract_strided_slice %292 {offsets = [0, 384], sizes = [8, 128], strides = [1, 1]} : vector<8x512xf32> to vector<8x128xf32>
    %303 = math.tanh %302 : vector<8x128xf32>
    %304 = arith.mulf %300, %241 : vector<8x128xf32>
    %305 = arith.mulf %299, %303 : vector<8x128xf32>
    %306 = arith.addf %304, %305 : vector<8x128xf32>
    %307 = math.tanh %306 : vector<8x128xf32>
    %308 = arith.mulf %301, %307 : vector<8x128xf32>
    %309 = tpu.concatenate %243, %265 in 1 : vector<8x128xf32>, vector<8x128xf32> -> vector<8x256xf32>
    %c0_97 = arith.constant 0 : index
    %c0_98 = arith.constant 0 : index
    %310 = vector.load %arg9[%c0_97, %c0_98] : memref<256x512xf32, #tpu.memory_space<vmem>>, vector<256x512xf32>
    %cst_99 = arith.constant dense<0.000000e+00> : vector<8x512xf32>
    %311 = tpu.matmul %309, %310, %cst_99 {dimension_numbers = #tpu.dot_dimension_numbers<[1], [0], [0], [1], [0, 0, 1, 1], [], []>} : vector<8x256xf32>, vector<256x512xf32>, vector<8x512xf32> -> vector<8x512xf32>
    %c0_100 = arith.constant 0 : index
    %c0_101 = arith.constant 0 : index
    %312 = vector.load %arg10[%c0_100, %c0_101] : memref<1x512xf32, #tpu.memory_space<vmem>>, vector<1x512xf32>
    %313 = vector.broadcast %312 : vector<1x512xf32> to vector<8x512xf32>
    %314 = arith.addf %311, %313 : vector<8x512xf32>
    %315 = vector.extract_strided_slice %314 {offsets = [0, 0], sizes = [8, 384], strides = [1, 1]} : vector<8x512xf32> to vector<8x384xf32>
    %316 = arith.negf %315 : vector<8x384xf32>
    %317 = math.exp %316 : vector<8x384xf32>
    %cst_102 = arith.constant 1.000000e+00 : f32
    %318 = vector.broadcast %cst_102 : f32 to vector<8x384xf32>
    %319 = arith.addf %318, %317 : vector<8x384xf32>
    %320 = arith.divf %318, %319 : vector<8x384xf32>
    %321 = vector.extract_strided_slice %320 {offsets = [0, 0], sizes = [8, 128], strides = [1, 1]} : vector<8x384xf32> to vector<8x128xf32>
    %322 = vector.extract_strided_slice %320 {offsets = [0, 128], sizes = [8, 128], strides = [1, 1]} : vector<8x384xf32> to vector<8x128xf32>
    %323 = vector.extract_strided_slice %320 {offsets = [0, 256], sizes = [8, 128], strides = [1, 1]} : vector<8x384xf32> to vector<8x128xf32>
    %324 = vector.extract_strided_slice %314 {offsets = [0, 384], sizes = [8, 128], strides = [1, 1]} : vector<8x512xf32> to vector<8x128xf32>
    %325 = math.tanh %324 : vector<8x128xf32>
    %326 = arith.mulf %322, %263 : vector<8x128xf32>
    %327 = arith.mulf %321, %325 : vector<8x128xf32>
    %328 = arith.addf %326, %327 : vector<8x128xf32>
    %329 = math.tanh %328 : vector<8x128xf32>
    %330 = arith.mulf %323, %329 : vector<8x128xf32>
    %c24_103 = arith.constant 24 : index
    %c0_104 = arith.constant 0 : index
    %331 = vector.load %arg15[%c24_103, %c0_104] : memref<64x128xf32, #tpu.memory_space<vmem>>, vector<8x128xf32>
    tpu.vector_store %arg15[%c24_103, %c0_104], %330 {strides = array<i32>} : memref<64x128xf32, #tpu.memory_space<vmem>>, vector<8x128xf32>,
    %c48 = arith.constant 48 : index
    %c0_105 = arith.constant 0 : index
    %332 = vector.load %arg14[%c48, %c0_105] : memref<64x512xf32, #tpu.memory_space<vmem>>, vector<8x512xf32>
    %c0_106 = arith.constant 0 : index
    %c0_107 = arith.constant 0 : index
    %333 = vector.load %arg5[%c0_106, %c0_107] : memref<128x512xf32, #tpu.memory_space<vmem>>, vector<128x512xf32>
    %cst_108 = arith.constant dense<0.000000e+00> : vector<8x512xf32>
    %334 = tpu.matmul %286, %333, %cst_108 {dimension_numbers = #tpu.dot_dimension_numbers<[1], [0], [0], [1], [0, 0, 1, 1], [], []>} : vector<8x128xf32>, vector<128x512xf32>, vector<8x512xf32> -> vector<8x512xf32>
    %335 = arith.addf %332, %334 : vector<8x512xf32>
    %336 = vector.extract_strided_slice %335 {offsets = [0, 0], sizes = [8, 384], strides = [1, 1]} : vector<8x512xf32> to vector<8x384xf32>
    %337 = arith.negf %336 : vector<8x384xf32>
    %338 = math.exp %337 : vector<8x384xf32>
    %cst_109 = arith.constant 1.000000e+00 : f32
    %339 = vector.broadcast %cst_109 : f32 to vector<8x384xf32>
    %340 = arith.addf %339, %338 : vector<8x384xf32>
    %341 = arith.divf %339, %340 : vector<8x384xf32>
    %342 = vector.extract_strided_slice %341 {offsets = [0, 0], sizes = [8, 128], strides = [1, 1]} : vector<8x384xf32> to vector<8x128xf32>
    %343 = vector.extract_strided_slice %341 {offsets = [0, 128], sizes = [8, 128], strides = [1, 1]} : vector<8x384xf32> to vector<8x128xf32>
    %344 = vector.extract_strided_slice %341 {offsets = [0, 256], sizes = [8, 128], strides = [1, 1]} : vector<8x384xf32> to vector<8x128xf32>
    %345 = vector.extract_strided_slice %335 {offsets = [0, 384], sizes = [8, 128], strides = [1, 1]} : vector<8x512xf32> to vector<8x128xf32>
    %346 = math.tanh %345 : vector<8x128xf32>
    %347 = arith.mulf %343, %284 : vector<8x128xf32>
    %348 = arith.mulf %342, %346 : vector<8x128xf32>
    %349 = arith.addf %347, %348 : vector<8x128xf32>
    %350 = math.tanh %349 : vector<8x128xf32>
    %351 = arith.mulf %344, %350 : vector<8x128xf32>
    %352 = tpu.concatenate %286, %308 in 1 : vector<8x128xf32>, vector<8x128xf32> -> vector<8x256xf32>
    %c0_110 = arith.constant 0 : index
    %c0_111 = arith.constant 0 : index
    %353 = vector.load %arg7[%c0_110, %c0_111] : memref<256x512xf32, #tpu.memory_space<vmem>>, vector<256x512xf32>
    %cst_112 = arith.constant dense<0.000000e+00> : vector<8x512xf32>
    %354 = tpu.matmul %352, %353, %cst_112 {dimension_numbers = #tpu.dot_dimension_numbers<[1], [0], [0], [1], [0, 0, 1, 1], [], []>} : vector<8x256xf32>, vector<256x512xf32>, vector<8x512xf32> -> vector<8x512xf32>
    %c0_113 = arith.constant 0 : index
    %c0_114 = arith.constant 0 : index
    %355 = vector.load %arg8[%c0_113, %c0_114] : memref<1x512xf32, #tpu.memory_space<vmem>>, vector<1x512xf32>
    %356 = vector.broadcast %355 : vector<1x512xf32> to vector<8x512xf32>
    %357 = arith.addf %354, %356 : vector<8x512xf32>
    %358 = vector.extract_strided_slice %357 {offsets = [0, 0], sizes = [8, 384], strides = [1, 1]} : vector<8x512xf32> to vector<8x384xf32>
    %359 = arith.negf %358 : vector<8x384xf32>
    %360 = math.exp %359 : vector<8x384xf32>
    %cst_115 = arith.constant 1.000000e+00 : f32
    %361 = vector.broadcast %cst_115 : f32 to vector<8x384xf32>
    %362 = arith.addf %361, %360 : vector<8x384xf32>
    %363 = arith.divf %361, %362 : vector<8x384xf32>
    %364 = vector.extract_strided_slice %363 {offsets = [0, 0], sizes = [8, 128], strides = [1, 1]} : vector<8x384xf32> to vector<8x128xf32>
    %365 = vector.extract_strided_slice %363 {offsets = [0, 128], sizes = [8, 128], strides = [1, 1]} : vector<8x384xf32> to vector<8x128xf32>
    %366 = vector.extract_strided_slice %363 {offsets = [0, 256], sizes = [8, 128], strides = [1, 1]} : vector<8x384xf32> to vector<8x128xf32>
    %367 = vector.extract_strided_slice %357 {offsets = [0, 384], sizes = [8, 128], strides = [1, 1]} : vector<8x512xf32> to vector<8x128xf32>
    %368 = math.tanh %367 : vector<8x128xf32>
    %369 = arith.mulf %365, %306 : vector<8x128xf32>
    %370 = arith.mulf %364, %368 : vector<8x128xf32>
    %371 = arith.addf %369, %370 : vector<8x128xf32>
    %372 = math.tanh %371 : vector<8x128xf32>
    %373 = arith.mulf %366, %372 : vector<8x128xf32>
    %374 = tpu.concatenate %308, %330 in 1 : vector<8x128xf32>, vector<8x128xf32> -> vector<8x256xf32>
    %c0_116 = arith.constant 0 : index
    %c0_117 = arith.constant 0 : index
    %375 = vector.load %arg9[%c0_116, %c0_117] : memref<256x512xf32, #tpu.memory_space<vmem>>, vector<256x512xf32>
    %cst_118 = arith.constant dense<0.000000e+00> : vector<8x512xf32>
    %376 = tpu.matmul %374, %375, %cst_118 {dimension_numbers = #tpu.dot_dimension_numbers<[1], [0], [0], [1], [0, 0, 1, 1], [], []>} : vector<8x256xf32>, vector<256x512xf32>, vector<8x512xf32> -> vector<8x512xf32>
    %c0_119 = arith.constant 0 : index
    %c0_120 = arith.constant 0 : index
    %377 = vector.load %arg10[%c0_119, %c0_120] : memref<1x512xf32, #tpu.memory_space<vmem>>, vector<1x512xf32>
    %378 = vector.broadcast %377 : vector<1x512xf32> to vector<8x512xf32>
    %379 = arith.addf %376, %378 : vector<8x512xf32>
    %380 = vector.extract_strided_slice %379 {offsets = [0, 0], sizes = [8, 384], strides = [1, 1]} : vector<8x512xf32> to vector<8x384xf32>
    %381 = arith.negf %380 : vector<8x384xf32>
    %382 = math.exp %381 : vector<8x384xf32>
    %cst_121 = arith.constant 1.000000e+00 : f32
    %383 = vector.broadcast %cst_121 : f32 to vector<8x384xf32>
    %384 = arith.addf %383, %382 : vector<8x384xf32>
    %385 = arith.divf %383, %384 : vector<8x384xf32>
    %386 = vector.extract_strided_slice %385 {offsets = [0, 0], sizes = [8, 128], strides = [1, 1]} : vector<8x384xf32> to vector<8x128xf32>
    %387 = vector.extract_strided_slice %385 {offsets = [0, 128], sizes = [8, 128], strides = [1, 1]} : vector<8x384xf32> to vector<8x128xf32>
    %388 = vector.extract_strided_slice %385 {offsets = [0, 256], sizes = [8, 128], strides = [1, 1]} : vector<8x384xf32> to vector<8x128xf32>
    %389 = vector.extract_strided_slice %379 {offsets = [0, 384], sizes = [8, 128], strides = [1, 1]} : vector<8x512xf32> to vector<8x128xf32>
    %390 = math.tanh %389 : vector<8x128xf32>
    %391 = arith.mulf %387, %328 : vector<8x128xf32>
    %392 = arith.mulf %386, %390 : vector<8x128xf32>
    %393 = arith.addf %391, %392 : vector<8x128xf32>
    %394 = math.tanh %393 : vector<8x128xf32>
    %395 = arith.mulf %388, %394 : vector<8x128xf32>
    %c32_122 = arith.constant 32 : index
    %c0_123 = arith.constant 0 : index
    %396 = vector.load %arg15[%c32_122, %c0_123] : memref<64x128xf32, #tpu.memory_space<vmem>>, vector<8x128xf32>
    tpu.vector_store %arg15[%c32_122, %c0_123], %395 {strides = array<i32>} : memref<64x128xf32, #tpu.memory_space<vmem>>, vector<8x128xf32>,
    %c56 = arith.constant 56 : index
    %c0_124 = arith.constant 0 : index
    %397 = vector.load %arg14[%c56, %c0_124] : memref<64x512xf32, #tpu.memory_space<vmem>>, vector<8x512xf32>
    %c0_125 = arith.constant 0 : index
    %c0_126 = arith.constant 0 : index
    %398 = vector.load %arg5[%c0_125, %c0_126] : memref<128x512xf32, #tpu.memory_space<vmem>>, vector<128x512xf32>
    %cst_127 = arith.constant dense<0.000000e+00> : vector<8x512xf32>
    %399 = tpu.matmul %351, %398, %cst_127 {dimension_numbers = #tpu.dot_dimension_numbers<[1], [0], [0], [1], [0, 0, 1, 1], [], []>} : vector<8x128xf32>, vector<128x512xf32>, vector<8x512xf32> -> vector<8x512xf32>
    %400 = arith.addf %397, %399 : vector<8x512xf32>
    %401 = vector.extract_strided_slice %400 {offsets = [0, 0], sizes = [8, 384], strides = [1, 1]} : vector<8x512xf32> to vector<8x384xf32>
    %402 = arith.negf %401 : vector<8x384xf32>
    %403 = math.exp %402 : vector<8x384xf32>
    %cst_128 = arith.constant 1.000000e+00 : f32
    %404 = vector.broadcast %cst_128 : f32 to vector<8x384xf32>
    %405 = arith.addf %404, %403 : vector<8x384xf32>
    %406 = arith.divf %404, %405 : vector<8x384xf32>
    %407 = vector.extract_strided_slice %406 {offsets = [0, 0], sizes = [8, 128], strides = [1, 1]} : vector<8x384xf32> to vector<8x128xf32>
    %408 = vector.extract_strided_slice %406 {offsets = [0, 128], sizes = [8, 128], strides = [1, 1]} : vector<8x384xf32> to vector<8x128xf32>
    %409 = vector.extract_strided_slice %406 {offsets = [0, 256], sizes = [8, 128], strides = [1, 1]} : vector<8x384xf32> to vector<8x128xf32>
    %410 = vector.extract_strided_slice %400 {offsets = [0, 384], sizes = [8, 128], strides = [1, 1]} : vector<8x512xf32> to vector<8x128xf32>
    %411 = math.tanh %410 : vector<8x128xf32>
    %412 = arith.mulf %408, %349 : vector<8x128xf32>
    %413 = arith.mulf %407, %411 : vector<8x128xf32>
    %414 = arith.addf %412, %413 : vector<8x128xf32>
    %415 = math.tanh %414 : vector<8x128xf32>
    %416 = arith.mulf %409, %415 : vector<8x128xf32>
    %417 = tpu.concatenate %351, %373 in 1 : vector<8x128xf32>, vector<8x128xf32> -> vector<8x256xf32>
    %c0_129 = arith.constant 0 : index
    %c0_130 = arith.constant 0 : index
    %418 = vector.load %arg7[%c0_129, %c0_130] : memref<256x512xf32, #tpu.memory_space<vmem>>, vector<256x512xf32>
    %cst_131 = arith.constant dense<0.000000e+00> : vector<8x512xf32>
    %419 = tpu.matmul %417, %418, %cst_131 {dimension_numbers = #tpu.dot_dimension_numbers<[1], [0], [0], [1], [0, 0, 1, 1], [], []>} : vector<8x256xf32>, vector<256x512xf32>, vector<8x512xf32> -> vector<8x512xf32>
    %c0_132 = arith.constant 0 : index
    %c0_133 = arith.constant 0 : index
    %420 = vector.load %arg8[%c0_132, %c0_133] : memref<1x512xf32, #tpu.memory_space<vmem>>, vector<1x512xf32>
    %421 = vector.broadcast %420 : vector<1x512xf32> to vector<8x512xf32>
    %422 = arith.addf %419, %421 : vector<8x512xf32>
    %423 = vector.extract_strided_slice %422 {offsets = [0, 0], sizes = [8, 384], strides = [1, 1]} : vector<8x512xf32> to vector<8x384xf32>
    %424 = arith.negf %423 : vector<8x384xf32>
    %425 = math.exp %424 : vector<8x384xf32>
    %cst_134 = arith.constant 1.000000e+00 : f32
    %426 = vector.broadcast %cst_134 : f32 to vector<8x384xf32>
    %427 = arith.addf %426, %425 : vector<8x384xf32>
    %428 = arith.divf %426, %427 : vector<8x384xf32>
    %429 = vector.extract_strided_slice %428 {offsets = [0, 0], sizes = [8, 128], strides = [1, 1]} : vector<8x384xf32> to vector<8x128xf32>
    %430 = vector.extract_strided_slice %428 {offsets = [0, 128], sizes = [8, 128], strides = [1, 1]} : vector<8x384xf32> to vector<8x128xf32>
    %431 = vector.extract_strided_slice %428 {offsets = [0, 256], sizes = [8, 128], strides = [1, 1]} : vector<8x384xf32> to vector<8x128xf32>
    %432 = vector.extract_strided_slice %422 {offsets = [0, 384], sizes = [8, 128], strides = [1, 1]} : vector<8x512xf32> to vector<8x128xf32>
    %433 = math.tanh %432 : vector<8x128xf32>
    %434 = arith.mulf %430, %371 : vector<8x128xf32>
    %435 = arith.mulf %429, %433 : vector<8x128xf32>
    %436 = arith.addf %434, %435 : vector<8x128xf32>
    %437 = math.tanh %436 : vector<8x128xf32>
    %438 = arith.mulf %431, %437 : vector<8x128xf32>
    %439 = tpu.concatenate %373, %395 in 1 : vector<8x128xf32>, vector<8x128xf32> -> vector<8x256xf32>
    %c0_135 = arith.constant 0 : index
    %c0_136 = arith.constant 0 : index
    %440 = vector.load %arg9[%c0_135, %c0_136] : memref<256x512xf32, #tpu.memory_space<vmem>>, vector<256x512xf32>
    %cst_137 = arith.constant dense<0.000000e+00> : vector<8x512xf32>
    %441 = tpu.matmul %439, %440, %cst_137 {dimension_numbers = #tpu.dot_dimension_numbers<[1], [0], [0], [1], [0, 0, 1, 1], [], []>} : vector<8x256xf32>, vector<256x512xf32>, vector<8x512xf32> -> vector<8x512xf32>
    %c0_138 = arith.constant 0 : index
    %c0_139 = arith.constant 0 : index
    %442 = vector.load %arg10[%c0_138, %c0_139] : memref<1x512xf32, #tpu.memory_space<vmem>>, vector<1x512xf32>
    %443 = vector.broadcast %442 : vector<1x512xf32> to vector<8x512xf32>
    %444 = arith.addf %441, %443 : vector<8x512xf32>
    %445 = vector.extract_strided_slice %444 {offsets = [0, 0], sizes = [8, 384], strides = [1, 1]} : vector<8x512xf32> to vector<8x384xf32>
    %446 = arith.negf %445 : vector<8x384xf32>
    %447 = math.exp %446 : vector<8x384xf32>
    %cst_140 = arith.constant 1.000000e+00 : f32
    %448 = vector.broadcast %cst_140 : f32 to vector<8x384xf32>
    %449 = arith.addf %448, %447 : vector<8x384xf32>
    %450 = arith.divf %448, %449 : vector<8x384xf32>
    %451 = vector.extract_strided_slice %450 {offsets = [0, 0], sizes = [8, 128], strides = [1, 1]} : vector<8x384xf32> to vector<8x128xf32>
    %452 = vector.extract_strided_slice %450 {offsets = [0, 128], sizes = [8, 128], strides = [1, 1]} : vector<8x384xf32> to vector<8x128xf32>
    %453 = vector.extract_strided_slice %450 {offsets = [0, 256], sizes = [8, 128], strides = [1, 1]} : vector<8x384xf32> to vector<8x128xf32>
    %454 = vector.extract_strided_slice %444 {offsets = [0, 384], sizes = [8, 128], strides = [1, 1]} : vector<8x512xf32> to vector<8x128xf32>
    %455 = math.tanh %454 : vector<8x128xf32>
    %456 = arith.mulf %452, %393 : vector<8x128xf32>
    %457 = arith.mulf %451, %455 : vector<8x128xf32>
    %458 = arith.addf %456, %457 : vector<8x128xf32>
    %459 = math.tanh %458 : vector<8x128xf32>
    %460 = arith.mulf %453, %459 : vector<8x128xf32>
    %c40_141 = arith.constant 40 : index
    %c0_142 = arith.constant 0 : index
    %461 = vector.load %arg15[%c40_141, %c0_142] : memref<64x128xf32, #tpu.memory_space<vmem>>, vector<8x128xf32>
    tpu.vector_store %arg15[%c40_141, %c0_142], %460 {strides = array<i32>} : memref<64x128xf32, #tpu.memory_space<vmem>>, vector<8x128xf32>,
    %462 = tpu.concatenate %416, %438 in 1 : vector<8x128xf32>, vector<8x128xf32> -> vector<8x256xf32>
    %c0_143 = arith.constant 0 : index
    %c0_144 = arith.constant 0 : index
    %463 = vector.load %arg7[%c0_143, %c0_144] : memref<256x512xf32, #tpu.memory_space<vmem>>, vector<256x512xf32>
    %cst_145 = arith.constant dense<0.000000e+00> : vector<8x512xf32>
    %464 = tpu.matmul %462, %463, %cst_145 {dimension_numbers = #tpu.dot_dimension_numbers<[1], [0], [0], [1], [0, 0, 1, 1], [], []>} : vector<8x256xf32>, vector<256x512xf32>, vector<8x512xf32> -> vector<8x512xf32>
    %c0_146 = arith.constant 0 : index
    %c0_147 = arith.constant 0 : index
    %465 = vector.load %arg8[%c0_146, %c0_147] : memref<1x512xf32, #tpu.memory_space<vmem>>, vector<1x512xf32>
    %466 = vector.broadcast %465 : vector<1x512xf32> to vector<8x512xf32>
    %467 = arith.addf %464, %466 : vector<8x512xf32>
    %468 = vector.extract_strided_slice %467 {offsets = [0, 0], sizes = [8, 384], strides = [1, 1]} : vector<8x512xf32> to vector<8x384xf32>
    %469 = arith.negf %468 : vector<8x384xf32>
    %470 = math.exp %469 : vector<8x384xf32>
    %cst_148 = arith.constant 1.000000e+00 : f32
    %471 = vector.broadcast %cst_148 : f32 to vector<8x384xf32>
    %472 = arith.addf %471, %470 : vector<8x384xf32>
    %473 = arith.divf %471, %472 : vector<8x384xf32>
    %474 = vector.extract_strided_slice %473 {offsets = [0, 0], sizes = [8, 128], strides = [1, 1]} : vector<8x384xf32> to vector<8x128xf32>
    %475 = vector.extract_strided_slice %473 {offsets = [0, 128], sizes = [8, 128], strides = [1, 1]} : vector<8x384xf32> to vector<8x128xf32>
    %476 = vector.extract_strided_slice %473 {offsets = [0, 256], sizes = [8, 128], strides = [1, 1]} : vector<8x384xf32> to vector<8x128xf32>
    %477 = vector.extract_strided_slice %467 {offsets = [0, 384], sizes = [8, 128], strides = [1, 1]} : vector<8x512xf32> to vector<8x128xf32>
    %478 = math.tanh %477 : vector<8x128xf32>
    %479 = arith.mulf %475, %436 : vector<8x128xf32>
    %480 = arith.mulf %474, %478 : vector<8x128xf32>
    %481 = arith.addf %479, %480 : vector<8x128xf32>
    %482 = math.tanh %481 : vector<8x128xf32>
    %483 = arith.mulf %476, %482 : vector<8x128xf32>
    %484 = tpu.concatenate %438, %460 in 1 : vector<8x128xf32>, vector<8x128xf32> -> vector<8x256xf32>
    %c0_149 = arith.constant 0 : index
    %c0_150 = arith.constant 0 : index
    %485 = vector.load %arg9[%c0_149, %c0_150] : memref<256x512xf32, #tpu.memory_space<vmem>>, vector<256x512xf32>
    %cst_151 = arith.constant dense<0.000000e+00> : vector<8x512xf32>
    %486 = tpu.matmul %484, %485, %cst_151 {dimension_numbers = #tpu.dot_dimension_numbers<[1], [0], [0], [1], [0, 0, 1, 1], [], []>} : vector<8x256xf32>, vector<256x512xf32>, vector<8x512xf32> -> vector<8x512xf32>
    %c0_152 = arith.constant 0 : index
    %c0_153 = arith.constant 0 : index
    %487 = vector.load %arg10[%c0_152, %c0_153] : memref<1x512xf32, #tpu.memory_space<vmem>>, vector<1x512xf32>
    %488 = vector.broadcast %487 : vector<1x512xf32> to vector<8x512xf32>
    %489 = arith.addf %486, %488 : vector<8x512xf32>
    %490 = vector.extract_strided_slice %489 {offsets = [0, 0], sizes = [8, 384], strides = [1, 1]} : vector<8x512xf32> to vector<8x384xf32>
    %491 = arith.negf %490 : vector<8x384xf32>
    %492 = math.exp %491 : vector<8x384xf32>
    %cst_154 = arith.constant 1.000000e+00 : f32
    %493 = vector.broadcast %cst_154 : f32 to vector<8x384xf32>
    %494 = arith.addf %493, %492 : vector<8x384xf32>
    %495 = arith.divf %493, %494 : vector<8x384xf32>
    %496 = vector.extract_strided_slice %495 {offsets = [0, 0], sizes = [8, 128], strides = [1, 1]} : vector<8x384xf32> to vector<8x128xf32>
    %497 = vector.extract_strided_slice %495 {offsets = [0, 128], sizes = [8, 128], strides = [1, 1]} : vector<8x384xf32> to vector<8x128xf32>
    %498 = vector.extract_strided_slice %495 {offsets = [0, 256], sizes = [8, 128], strides = [1, 1]} : vector<8x384xf32> to vector<8x128xf32>
    %499 = vector.extract_strided_slice %489 {offsets = [0, 384], sizes = [8, 128], strides = [1, 1]} : vector<8x512xf32> to vector<8x128xf32>
    %500 = math.tanh %499 : vector<8x128xf32>
    %501 = arith.mulf %497, %458 : vector<8x128xf32>
    %502 = arith.mulf %496, %500 : vector<8x128xf32>
    %503 = arith.addf %501, %502 : vector<8x128xf32>
    %504 = math.tanh %503 : vector<8x128xf32>
    %505 = arith.mulf %498, %504 : vector<8x128xf32>
    %c48_155 = arith.constant 48 : index
    %c0_156 = arith.constant 0 : index
    %506 = vector.load %arg15[%c48_155, %c0_156] : memref<64x128xf32, #tpu.memory_space<vmem>>, vector<8x128xf32>
    tpu.vector_store %arg15[%c48_155, %c0_156], %505 {strides = array<i32>} : memref<64x128xf32, #tpu.memory_space<vmem>>, vector<8x128xf32>,
    %507 = tpu.concatenate %483, %505 in 1 : vector<8x128xf32>, vector<8x128xf32> -> vector<8x256xf32>
    %c0_157 = arith.constant 0 : index
    %c0_158 = arith.constant 0 : index
    %508 = vector.load %arg9[%c0_157, %c0_158] : memref<256x512xf32, #tpu.memory_space<vmem>>, vector<256x512xf32>
    %cst_159 = arith.constant dense<0.000000e+00> : vector<8x512xf32>
    %509 = tpu.matmul %507, %508, %cst_159 {dimension_numbers = #tpu.dot_dimension_numbers<[1], [0], [0], [1], [0, 0, 1, 1], [], []>} : vector<8x256xf32>, vector<256x512xf32>, vector<8x512xf32> -> vector<8x512xf32>
    %c0_160 = arith.constant 0 : index
    %c0_161 = arith.constant 0 : index
    %510 = vector.load %arg10[%c0_160, %c0_161] : memref<1x512xf32, #tpu.memory_space<vmem>>, vector<1x512xf32>
    %511 = vector.broadcast %510 : vector<1x512xf32> to vector<8x512xf32>
    %512 = arith.addf %509, %511 : vector<8x512xf32>
    %513 = vector.extract_strided_slice %512 {offsets = [0, 0], sizes = [8, 384], strides = [1, 1]} : vector<8x512xf32> to vector<8x384xf32>
    %514 = arith.negf %513 : vector<8x384xf32>
    %515 = math.exp %514 : vector<8x384xf32>
    %cst_162 = arith.constant 1.000000e+00 : f32
    %516 = vector.broadcast %cst_162 : f32 to vector<8x384xf32>
    %517 = arith.addf %516, %515 : vector<8x384xf32>
    %518 = arith.divf %516, %517 : vector<8x384xf32>
    %519 = vector.extract_strided_slice %518 {offsets = [0, 0], sizes = [8, 128], strides = [1, 1]} : vector<8x384xf32> to vector<8x128xf32>
    %520 = vector.extract_strided_slice %518 {offsets = [0, 128], sizes = [8, 128], strides = [1, 1]} : vector<8x384xf32> to vector<8x128xf32>
    %521 = vector.extract_strided_slice %518 {offsets = [0, 256], sizes = [8, 128], strides = [1, 1]} : vector<8x384xf32> to vector<8x128xf32>
    %522 = vector.extract_strided_slice %512 {offsets = [0, 384], sizes = [8, 128], strides = [1, 1]} : vector<8x512xf32> to vector<8x128xf32>
    %523 = math.tanh %522 : vector<8x128xf32>
    %524 = arith.mulf %520, %503 : vector<8x128xf32>
    %525 = arith.mulf %519, %523 : vector<8x128xf32>
    %526 = arith.addf %524, %525 : vector<8x128xf32>
    %527 = math.tanh %526 : vector<8x128xf32>
    %528 = arith.mulf %521, %527 : vector<8x128xf32>
    %c56_163 = arith.constant 56 : index
    %c0_164 = arith.constant 0 : index
    %529 = vector.load %arg15[%c56_163, %c0_164] : memref<64x128xf32, #tpu.memory_space<vmem>>, vector<8x128xf32>
    tpu.vector_store %arg15[%c56_163, %c0_164], %528 {strides = array<i32>} : memref<64x128xf32, #tpu.memory_space<vmem>>, vector<8x128xf32>,
    %c0_165 = arith.constant 0 : index
    %c0_166 = arith.constant 0 : index
    %530 = vector.load %arg15[%c0_165, %c0_166] : memref<64x128xf32, #tpu.memory_space<vmem>>, vector<64x128xf32>
    %c0_167 = arith.constant 0 : index
    %c0_168 = arith.constant 0 : index
    %531 = vector.load %arg11[%c0_167, %c0_168] : memref<128x128xf32, #tpu.memory_space<vmem>>, vector<128x128xf32>
    %cst_169 = arith.constant dense<0.000000e+00> : vector<64x128xf32>
    %532 = tpu.matmul %530, %531, %cst_169 {dimension_numbers = #tpu.dot_dimension_numbers<[1], [0], [0], [1], [0, 0, 1, 1], [], []>} : vector<64x128xf32>, vector<128x128xf32>, vector<64x128xf32> -> vector<64x128xf32>
    %c0_170 = arith.constant 0 : index
    %c0_171 = arith.constant 0 : index
    %533 = vector.load %arg12[%c0_170, %c0_171] : memref<1x128xf32, #tpu.memory_space<vmem>>, vector<1x128xf32>
    %534 = vector.broadcast %533 : vector<1x128xf32> to vector<64x128xf32>
    %535 = arith.addf %532, %534 : vector<64x128xf32>
    %cst_172 = arith.constant dense<0xFF800000> : vector<64xf32>
    %536 = vector.multi_reduction <maximumf>, %535, %cst_172 [1] : vector<64x128xf32> to vector<64xf32>
    %537 = vector.shape_cast %536 : vector<64xf32> to vector<64x1xf32>
    %538 = vector.broadcast %537 : vector<64x1xf32> to vector<64x128xf32>
    %539 = arith.subf %535, %538 : vector<64x128xf32>
    %540 = math.exp %539 : vector<64x128xf32>
    %cst_173 = arith.constant dense<0.000000e+00> : vector<64xf32>
    %541 = vector.multi_reduction <add>, %540, %cst_173 [1] : vector<64x128xf32> to vector<64xf32>
    %542 = vector.shape_cast %541 : vector<64xf32> to vector<64x1xf32>
    %543 = vector.broadcast %542 : vector<64x1xf32> to vector<64x128xf32>
    %544 = arith.divf %540, %543 : vector<64x128xf32>
    %c0_174 = arith.constant 0 : index
    %c0_175 = arith.constant 0 : index
    %545 = vector.load %arg13[%c0_174, %c0_175] : memref<64x128xf32, #tpu.memory_space<vmem>>, vector<64x128xf32>
    tpu.vector_store %arg13[%c0_174, %c0_175], %544 {strides = array<i32>} : memref<64x128xf32, #tpu.memory_space<vmem>>, vector<64x128xf32>,
    return
  }
  func.func @transform_0(%arg0: i32) -> (i32, i32) {
    %c0_i32 = arith.constant 0 : i32
    %c0_i32_0 = arith.constant 0 : i32
    %c0_i32_1 = arith.constant 0 : i32
    return %c0_i32, %c0_i32_0 : i32, i32
  }
  func.func @transform_1(%arg0: i32) -> (i32, i32) {
    %c0_i32 = arith.constant 0 : i32
    %c0_i32_0 = arith.constant 0 : i32
    %c0_i32_1 = arith.constant 0 : i32
    return %c0_i32, %c0_i32_0 : i32, i32
  }
  func.func @transform_2(%arg0: i32) -> (i32, i32) {
    %c0_i32 = arith.constant 0 : i32
    %c0_i32_0 = arith.constant 0 : i32
    %c0_i32_1 = arith.constant 0 : i32
    return %c0_i32, %c0_i32_0 : i32, i32
  }
  func.func @transform_3(%arg0: i32) -> (i32, i32) {
    %c0_i32 = arith.constant 0 : i32
    %c0_i32_0 = arith.constant 0 : i32
    %c0_i32_1 = arith.constant 0 : i32
    return %c0_i32, %c0_i32_0 : i32, i32
  }
  func.func @transform_4(%arg0: i32) -> (i32, i32) {
    %c0_i32 = arith.constant 0 : i32
    %c0_i32_0 = arith.constant 0 : i32
    %c0_i32_1 = arith.constant 0 : i32
    return %c0_i32, %c0_i32_0 : i32, i32
  }
  func.func @transform_5(%arg0: i32) -> (i32, i32) {
    %c0_i32 = arith.constant 0 : i32
    %c0_i32_0 = arith.constant 0 : i32
    %c0_i32_1 = arith.constant 0 : i32
    return %c0_i32, %c0_i32_0 : i32, i32
  }
  func.func @transform_6(%arg0: i32) -> (i32, i32) {
    %c0_i32 = arith.constant 0 : i32
    %c0_i32_0 = arith.constant 0 : i32
    %c0_i32_1 = arith.constant 0 : i32
    return %c0_i32, %c0_i32_0 : i32, i32
  }
  func.func @transform_7(%arg0: i32) -> (i32, i32) {
    %c0_i32 = arith.constant 0 : i32
    %c0_i32_0 = arith.constant 0 : i32
    %c0_i32_1 = arith.constant 0 : i32
    return %c0_i32, %c0_i32_0 : i32, i32
  }
  func.func @transform_8(%arg0: i32) -> (i32, i32) {
    %c0_i32 = arith.constant 0 : i32
    %c0_i32_0 = arith.constant 0 : i32
    %c0_i32_1 = arith.constant 0 : i32
    return %c0_i32, %c0_i32_0 : i32, i32
  }
  func.func @transform_9(%arg0: i32) -> (i32, i32) {
    %c0_i32 = arith.constant 0 : i32
    %c0_i32_0 = arith.constant 0 : i32
    %c0_i32_1 = arith.constant 0 : i32
    return %c0_i32, %c0_i32_0 : i32, i32
  }
  func.func @transform_10(%arg0: i32) -> (i32, i32) {
    %c0_i32 = arith.constant 0 : i32
    %c0_i32_0 = arith.constant 0 : i32
    %c0_i32_1 = arith.constant 0 : i32
    return %c0_i32, %c0_i32_0 : i32, i32
  }
  func.func @transform_11(%arg0: i32) -> (i32, i32) {
    %c0_i32 = arith.constant 0 : i32
    %c0_i32_0 = arith.constant 0 : i32
    %c0_i32_1 = arith.constant 0 : i32
    return %c0_i32, %c0_i32_0 : i32, i32
  }
  func.func @transform_12(%arg0: i32) -> (i32, i32) {
    %c0_i32 = arith.constant 0 : i32
    %c0_i32_0 = arith.constant 0 : i32
    %c0_i32_1 = arith.constant 0 : i32
    return %c0_i32, %c0_i32_0 : i32, i32
  }
}

</mosaic_0001>

<bundles_post_ra>
// kernel: lstm_model_forward.1
= control target key start
LH: loop header
LB: loop body
LE: loop exit
PB: predicated region body
PF: predicated region fallthrough
CT: control target
= control target key end

     0   :  { %17 = vsyncpa [#allocation5], 0  ;;  %s10184_s0 = inlined_call_operand.vmem [shape: f32[64,4], index: 0, kind: input, shape index: {}]   ;;  %s10185_s1 = inlined_call_operand.vmem [shape: f32[8,128], index: 1, kind: input, shape index: {}]   ;;  %s10186_s2 = inlined_call_operand.vmem [shape: f32[8,128], index: 2, kind: input, shape index: {}]   ;;  %s10187_s3 = inlined_call_operand.vmem [shape: f32[4,512], index: 3, kind: input, shape index: {}]   ;;  %s10188_s4 = inlined_call_operand.hbm [shape: f32[128,512], index: 4, kind: input, shape index: {}]   ;;  %s10189_s5 = inlined_call_operand.hbm [shape: f32[1,512], index: 5, kind: input, shape index: {}]   ;;  %s10190_s6 = inlined_call_operand.hbm [shape: f32[256,512], index: 6, kind: input, shape index: {}]   ;;  %s10191_s7 = inlined_call_operand.hbm [shape: f32[1,512], index: 7, kind: input, shape index: {}]   ;;  %s10192_s8 = inlined_call_operand.hbm [shape: f32[256,512], index: 8, kind: input, shape index: {}]   ;;  %s10193_s9 = inlined_call_operand.hbm [shape: f32[1,512], index: 9, kind: input, shape index: {}]   ;;  %s10194_s10 = inlined_call_operand.vmem [shape: f32[128,128], index: 10, kind: input, shape index: {}]   ;;  %s10195_s11 = inlined_call_operand.vmem [shape: f32[1,128], index: 11, kind: input, shape index: {}]   ;;  %s10196_s12 = inlined_call_operand.vmem [shape: f32[64,128], index: 12, kind: output, shape index: {}]  }
   0x1   :  { %18 = vsyncpa [#allocation7], 0 }
   0x2   :  { %19 = vsyncpa [#allocation10], 0 }
   0x3   :  { %20 = vsyncpa [#allocation13], 0  ;;  %s8109_s21 = smov [#allocation6]   ;;  %s8110_s23 = smov [#allocation9]  }
   0x4   :  { %s47_s22 = sshll.u32 %s8109_s21, 4  ;;  %s69_s24 = sshll.u32 %s8110_s23, 4  ;;  %s48_s22 = int_to_ptr.vmem [resolvable:$true] %s47_s22  ;;  %s70_s24 = int_to_ptr.vmem [resolvable:$true] %s69_s24 }
   0x5   :  { %s7989_s25 = scalar_lea.vmem %s48_s22, 64  ;;  %p7994_p1 = scmp.lt.s32.totalorder %s48_s22, %s48_s22 }
   0x6   :  { %p7990_p0 = scmp.ne.s32.totalorder %s48_s22, %s7989_s25  ;;  %p7995_p2 = scmp.lt.s32.totalorder %s7989_s25, %s7989_s25 }
   0x8   :  { %p7996_p3 = por %p7995_p2, %p7994_p1 }
   0xa   :  { %p7997_p4 = pnand %p7996_p3, %p7990_p0 }
   0xc   :  { %8000 = shalt.err (!%p7997_p4)
}
   0xd   :  { %50 = dma.hbm_to_vmem [thread:$0]  %s10189_s5, 64, %s48_s22, [#allocation7]  }
   0xe   :  { %s8009_s28 = scalar_lea.vmem %s70_s24, 64  ;;  %p8014_p6 = scmp.lt.s32.totalorder %s70_s24, %s70_s24 }
   0xf   :  { %p8010_p5 = scmp.ne.s32.totalorder %s70_s24, %s8009_s28  ;;  %p8015_p7 = scmp.lt.s32.totalorder %s8009_s28, %s8009_s28 }
  0x11   :  { %p8016_p8 = por %p8015_p7, %p8014_p6 }
  0x13   :  { %p8017_p9 = pnand %p8016_p8, %p8010_p5 }
  0x15   :  { %8020 = shalt.err (!%p8017_p9)
}
  0x16   :  { %72 = dma.hbm_to_vmem [thread:$0]  %s10191_s7, 64, %s70_s24, [#allocation10]  }
  0x17   :  { %s8111_s13 = smov [#allocation4]  }
  0x18   :  { %s34_s14 = sshll.u32 %s8111_s13, 4  ;;  %s35_s14 = int_to_ptr.vmem [resolvable:$true] %s34_s14 }
  0x19   :  { %s8029_s15 = scalar_lea.vmem %s35_s14, 8192  ;;  %p8034_p11 = scmp.lt.s32.totalorder %s35_s14, %s35_s14 }
  0x1a   :  { %p8030_p10 = scmp.ne.s32.totalorder %s35_s14, %s8029_s15  ;;  %p8035_p12 = scmp.lt.s32.totalorder %s8029_s15, %s8029_s15 }
  0x1c   :  { %p8036_p13 = por %p8035_p12, %p8034_p11 }
  0x1e   :  { %p8037_p0 = pnand %p8036_p13, %p8030_p10 }
  0x20   :  { %8040 = shalt.err (!%p8037_p0)
}
  0x21   :  { %s8112_s5 = smov 512   ;;  %s8113_s16 = smov 32  }
  0x22   :  { %40 = dma.hbm_to_vmem [thread:$0]  %s10188_s4, 8192, %s35_s14, [#allocation5], %s8112_s5, %s8112_s5, %s8113_s16  }
  0x23   :  { %s8114_s19 = smov [#allocation8]   ;;  %s8115_s7 = smov [#allocation11]  }
  0x24   :  { %s56_s20 = sshll.u32 %s8114_s19, 4  ;;  %s78_s21 = sshll.u32 %s8115_s7, 4  ;;  %s57_s20 = int_to_ptr.vmem [resolvable:$true] %s56_s20  ;;  %s79_s21 = int_to_ptr.vmem [resolvable:$true] %s78_s21 }
  0x25   :  { %s8049_s22 = scalar_lea.vmem %s57_s20, 16384  ;;  %p8054_p2 = scmp.lt.s32.totalorder %s57_s20, %s57_s20 }
  0x26   :  { %p8050_p1 = scmp.ne.s32.totalorder %s57_s20, %s8049_s22  ;;  %p8055_p3 = scmp.lt.s32.totalorder %s8049_s22, %s8049_s22 }
  0x28   :  { %p8056_p4 = por %p8055_p3, %p8054_p2 }
  0x2a   :  { %p8057_p5 = pnand %p8056_p4, %p8050_p1 }
  0x2c   :  { %8060 = shalt.err (!%p8057_p5)
}
  0x2d   :  { %62 = dma.hbm_to_vmem [thread:$0]  %s10190_s6, 16384, %s57_s20, [#allocation7], %s8112_s5, %s8112_s5, %s8113_s16  }
  0x2e   :  { %s8069_s25 = scalar_lea.vmem %s79_s21, 16384  ;;  %p8074_p7 = scmp.lt.s32.totalorder %s79_s21, %s79_s21 }
  0x2f   :  { %p8070_p6 = scmp.ne.s32.totalorder %s79_s21, %s8069_s25  ;;  %p8075_p8 = scmp.lt.s32.totalorder %s8069_s25, %s8069_s25 }
  0x31   :  { %p8076_p9 = por %p8075_p8, %p8074_p7 }
  0x33   :  { %p8077_p10 = pnand %p8076_p9, %p8070_p6 }
  0x35   :  { %8080 = shalt.err (!%p8077_p10)
}
  0x36   :  { %84 = dma.hbm_to_vmem [thread:$0]  %s10192_s8, 16384, %s79_s21, [#allocation10], %s8112_s5, %s8112_s5, %s8113_s16  }
  0x37   :  { %s8116_s27 = smov [#allocation12]  }
  0x38   :  { %s91_s28 = sshll.u32 %s8116_s27, 4  ;;  %s92_s28 = int_to_ptr.vmem [resolvable:$true] %s91_s28 }
  0x39   :  { %s8089_s29 = scalar_lea.vmem %s92_s28, 64  ;;  %p8094_p12 = scmp.lt.s32.totalorder %s92_s28, %s92_s28 }
  0x3a   :  { %p8090_p11 = scmp.ne.s32.totalorder %s92_s28, %s8089_s29  ;;  %p8095_p13 = scmp.lt.s32.totalorder %s8089_s29, %s8089_s29 }
  0x3c   :  { %p8096_p0 = por %p8095_p13, %p8094_p12 }
  0x3e   :  { %p8097_p1 = pnand %p8096_p0, %p8090_p11 }
  0x40   :  { %8100 = shalt.err (!%p8097_p1)
}
  0x41   :  { %94 = dma.hbm_to_vmem [thread:$0]  %s10193_s9, 64, %s92_s28, [#allocation13]  }
  0x42   :  { %8101 = dma.done.wait [#allocation5], 8192  }
  0x43   :  { %8102 = vsyncadd [#allocation5], 4294959104 }
  0x44   :  { %8103 = dma.done.wait [#allocation7], 16448  }
  0x45   :  { %8104 = vsyncadd [#allocation7], 4294950848 }
  0x46   :  { %8105 = dma.done.wait [#allocation10], 16448  }
  0x47   :  { %8106 = vsyncadd [#allocation10], 4294950848 }
  0x48   :  { %8107 = dma.done.wait [#allocation13], 64  }
  0x49   :  { %8108 = vsyncadd [#allocation13], 4294967232  ;;  %v10197_v0 = vmov 0.0   ;;  %v126_v1 = vld [vmem:[%s10187_s3 + $0x8] sm:$0xff]  ;;  %vm178_vm0 = vcmask 1043456   ;;  %v117_v3 = vld [vmem:[%s10184_s0] sm:$0xff] }
  0x4a   :  { %364 = vmatprep.mubr.f32.mxu1 %v10197_v0  ;;  %251 = vmatprep.mubr.f32.mxu0 %v10197_v0  ;;  %v152_v2 = vcombine.high %v126_v1, %v126_v1  ;;  %vm153_vm1 = vcmask 31744   ;;  %v512_v4 = vld [vmem:[#allocation4 + $0x1e8] sm:$0xff]  ;;  %v511_v5 = vld [vmem:[#allocation4 + $0x1e0] sm:$0xff]  ;;  %v8240_v13 = vld [vmem:[%s10184_s0 + $0x10] sm:$0xff] }
  0x4b   :  { %v8211_v6 = vld [vmem:[#allocation4 + $0x1c8] sm:$0xff]  ;;  %v8214_v7 = vld [vmem:[#allocation4 + $0x1c0] sm:$0xff]  ;;  %v8263_v20 = vld [vmem:[%s10184_s0 + $0x18] sm:$0xff] }
  0x4c   :  { %7371 = vmatprep.subr.msk.mxu1 %vm178_vm0, %v152_v2  ;;  %v8220_v8 = vld [vmem:[%s10184_s0 + $0x8] sm:$0xff]  ;;  %v8225_v10 = vld [vmem:[#allocation4 + $0x1a0] sm:$0xff]  ;;  %v8327_v35 = vld [vmem:[%s10184_s0 + $0x30] sm:$0xff] }
  0x4d   :  { %7372 = vmatpush1.msk.msra.mxu1 %vm178_vm0, %v126_v1  ;;  %v8222_v9 = vld [vmem:[#allocation4 + $0x1a8] sm:$0xff]  ;;  %v8233_v12 = vld [vmem:[#allocation4 + $0x180] sm:$0xff]  ;;  %v8350_v40 = vld [vmem:[%s10184_s0 + $0x38] sm:$0xff] }
  0x4e   :  { %7373 = vmatmul.mubr.msk.f32.vlgmr.msra.gmra.mxu1 %vm153_vm1, %v117_v3  ;;  %515 = vmatprep.subr.mxu1 %v512_v4  ;;  %v8228_v11 = vld [vmem:[#allocation4 + $0x188] sm:$0xff]  ;;  %v8245_v15 = vld [vmem:[#allocation4 + $0x160] sm:$0xff]  ;;  %v8374_v46 = vld [vmem:[#allocation4 + $0x1f8] sm:$0xff] }
  0x4f   :  { %516 = vmatpush1.msra.mxu1 %v511_v5  ;;  %370 = vmatprep.mubr.f32.mxu1 %v10197_v0  ;;  %v8242_v14 = vld [vmem:[#allocation4 + $0x168] sm:$0xff]  ;;  %v125_v17 = vld [vmem:[%s10187_s3] sm:$0xff]  ;;  %v8377_v47 = vld [vmem:[#allocation4 + $0x1f0] sm:$0xff] }
  0x50   :  { %517 = vmatprep.subr.mxu1 %v8211_v6  ;;  %v8248_v16 = vld [vmem:[#allocation4 + $0x148] sm:$0xff]  ;;  %v8256_v18 = vld [vmem:[#allocation4 + $0x140] sm:$0xff]  ;;  %v151_v19 = vcombine.high %v125_v17, %v125_v17  ;;  %v8381_v48 = vld [vmem:[#allocation4 + $0x1d8] sm:$0xff] }
  0x51   :  { %518 = vmatpush1.msra.mxu1 %v8214_v7  ;;  %v8265_v21 = vld [vmem:[#allocation4 + $0x128] sm:$0xff]  ;;  %v8268_v22 = vld [vmem:[#allocation4 + $0x120] sm:$0xff]  ;;  %v8386_v49 = vld [vmem:[#allocation4 + $0x1d0] sm:$0xff] }
  0x52   :  { %7374 = vmatmul.mubr.msk.f32.gmra.mxu1 %vm153_vm1, %v8220_v8  ;;  %519 = vmatprep.subr.mxu1 %v8222_v9  ;;  %v8272_v23 = vld [vmem:[#allocation4 + $0x108] sm:$0xff]  ;;  %v8278_v24 = vld [vmem:[#allocation4 + $0x100] sm:$0xff]  ;;  %v8389_v50 = vld [vmem:[#allocation4 + $0x1b8] sm:$0xff] }
  0x53   :  { %520 = vmatpush1.msra.mxu1 %v8225_v10  ;;  %376 = vmatprep.mubr.f32.mxu1 %v10197_v0  ;;  %v8285_v25 = vld [vmem:[%s10184_s0 + $0x20] sm:$0xff]  ;;  %v8287_v26 = vld [vmem:[#allocation4 + $0xe8] sm:$0xff]  ;;  %v8393_v51 = vld [vmem:[#allocation4 + $0x1b0] sm:$0xff] }
  0x54   :  { %521 = vmatprep.subr.mxu1 %v8228_v11  ;;  %7361 = vmatprep.subr.msk.mxu0 %vm178_vm0, %v151_v19  ;;  %v8290_v27 = vld [vmem:[#allocation4 + $0xe0] sm:$0xff]  ;;  %v8294_v28 = vld [vmem:[#allocation4 + $0xc8] sm:$0xff]  ;;  %v8397_v52 = vld [vmem:[#allocation4 + $0x198] sm:$0xff] }
  0x55   :  { %522 = vmatpush1.msra.mxu1 %v8233_v12  ;;  %7362 = vmatpush1.msk.msra.mxu0 %vm178_vm0, %v125_v17  ;;  %v8299_v29 = vld [vmem:[#allocation4 + $0xc0] sm:$0xff]  ;;  %v8306_v30 = vld [vmem:[%s10184_s0 + $0x28] sm:$0xff]  ;;  %v8402_v53 = vld [vmem:[#allocation4 + $0x190] sm:$0xff]  ;;  %v129_v17 = vlaneseq }
  0x56   :  { %7375 = vmatmul.mubr.msk.f32.gmra.mxu1 %vm153_vm1, %v8240_v13  ;;  %523 = vmatprep.subr.mxu1 %v8242_v14  ;;  %v8308_v31 = vld [vmem:[#allocation4 + $0xa8] sm:$0xff]  ;;  %v8311_v32 = vld [vmem:[#allocation4 + $0xa0] sm:$0xff]  ;;  %v8406_v54 = vld [vmem:[#allocation4 + $0x178] sm:$0xff] }
  0x57   :  { %524 = vmatpush1.msra.mxu1 %v8245_v15  ;;  %382 = vmatprep.mubr.f32.mxu1 %v10197_v0  ;;  %v8314_v33 = vld [vmem:[#allocation4 + $0x88] sm:$0xff]  ;;  %v8320_v34 = vld [vmem:[#allocation4 + $0x80] sm:$0xff]  ;;  %v8410_v55 = vld [vmem:[#allocation4 + $0x170] sm:$0xff] }
  0x58   :  { %525 = vmatprep.subr.mxu1 %v8248_v16  ;;  %7363 = vmatmul.mubr.msk.f32.vlgmr.msra.gmra.mxu0 %vm153_vm1, %v117_v3  ;;  %v8329_v36 = vld [vmem:[#allocation4 + $0x68] sm:$0xff]  ;;  %v8332_v37 = vld [vmem:[#allocation4 + $0x60] sm:$0xff]  ;;  %v8414_v56 = vld [vmem:[#allocation4 + $0x158] sm:$0xff] }
  0x59   :  { %526 = vmatpush1.msra.mxu1 %v8256_v18  ;;  %689 = vmatprep.subr.mxu0 %v512_v4  ;;  %v8336_v38 = vld [vmem:[#allocation4 + $0x48] sm:$0xff]  ;;  %v8343_v39 = vld [vmem:[#allocation4 + $0x40] sm:$0xff]  ;;  %v8418_v57 = vld [vmem:[#allocation4 + $0x150] sm:$0xff] }
  0x5a   :  { %7376 = vmatmul.mubr.msk.f32.gmra.mxu1 %vm153_vm1, %v8263_v20  ;;  %527 = vmatprep.subr.mxu1 %v8265_v21  ;;  %v8352_v41 = vld [vmem:[#allocation4 + $0x28] sm:$0xff]  ;;  %v8355_v42 = vld [vmem:[#allocation4 + $0x20] sm:$0xff]  ;;  %v8422_v58 = vld [vmem:[#allocation4 + $0x138] sm:$0xff] }
  0x5b   :  { %528 = vmatpush1.msra.mxu1 %v8268_v22  ;;  %388 = vmatprep.mubr.f32.mxu1 %v10197_v0  ;;  %v8359_v43 = vld [vmem:[#allocation4 + $0x8] sm:$0xff]  ;;  %v8365_v44 = vld [vmem:[#allocation4] sm:$0xff]  ;;  %v8427_v59 = vld [vmem:[#allocation4 + $0x130] sm:$0xff] }
  0x5c   :  { %529 = vmatprep.subr.mxu1 %v8272_v23  ;;  %690 = vmatpush1.msra.mxu0 %v511_v5  ;;  %v8372_v45 = vld [vmem:[%s10185_s1] sm:$0xff]  ;;  %v8431_v60 = vld [vmem:[#allocation4 + $0x118] sm:$0xff]  ;;  %v8435_v61 = vld [vmem:[#allocation4 + $0x110] sm:$0xff] }
  0x5d   :  { %530 = vmatpush1.msra.mxu1 %v8278_v24  ;;  %257 = vmatprep.mubr.f32.mxu0 %v10197_v0  ;;  %v8439_v62 = vld [vmem:[#allocation4 + $0xf8] sm:$0xff]  ;;  %v8443_v63 = vld [vmem:[#allocation4 + $0xf0] sm:$0xff] }
  0x5e   :  { %7377 = vmatmul.mubr.msk.f32.gmra.mxu1 %vm153_vm1, %v8285_v25  ;;  %531 = vmatprep.subr.mxu1 %v8287_v26  ;;  %v8447_v1 = vld [vmem:[#allocation4 + $0xd8] sm:$0xff]  ;;  %v8452_v2 = vld [vmem:[#allocation4 + $0xd0] sm:$0xff] }
  0x5f   :  { %532 = vmatpush1.msra.mxu1 %v8290_v27  ;;  %394 = vmatprep.mubr.f32.mxu1 %v10197_v0  ;;  %v8456_v3 = vld [vmem:[#allocation4 + $0xb8] sm:$0xff]  ;;  %v8460_v4 = vld [vmem:[#allocation4 + $0xb0] sm:$0xff] }
  0x60   :  { %533 = vmatprep.subr.mxu1 %v8294_v28  ;;  %691 = vmatprep.subr.mxu0 %v8211_v6  ;;  %v8464_v5 = vld [vmem:[#allocation4 + $0x98] sm:$0xff]  ;;  %v8468_v6 = vld [vmem:[#allocation4 + $0x90] sm:$0xff] }
  0x61   :  { %534 = vmatpush1.msra.mxu1 %v8299_v29  ;;  %7364 = vmatmul.mubr.msk.f32.gmra.mxu0 %vm153_vm1, %v8220_v8  ;;  %v8477_v8 = vld [vmem:[#allocation4 + $0x70] sm:$0xff] }
  0x62   :  { %7378 = vmatmul.mubr.msk.f32.gmra.mxu1 %vm153_vm1, %v8306_v30  ;;  %535 = vmatprep.subr.mxu1 %v8308_v31 }
  0x63   :  { %536 = vmatpush1.msra.mxu1 %v8311_v32  ;;  %400 = vmatprep.mubr.f32.mxu1 %v10197_v0 }
  0x64   :  { %537 = vmatprep.subr.mxu1 %v8314_v33  ;;  %692 = vmatpush1.msra.mxu0 %v8214_v7  ;;  %v8472_v7 = vld [vmem:[#allocation4 + $0x78] sm:$0xff] }
  0x65   :  { %538 = vmatpush1.msra.mxu1 %v8320_v34  ;;  %693 = vmatprep.subr.mxu0 %v8222_v9  ;;  %v8481_v9 = vld [vmem:[#allocation4 + $0x58] sm:$0xff] }
  0x66   :  { %7379 = vmatmul.mubr.msk.f32.gmra.mxu1 %vm153_vm1, %v8327_v35  ;;  %539 = vmatprep.subr.mxu1 %v8329_v36 }
  0x67   :  { %540 = vmatpush1.msra.mxu1 %v8332_v37  ;;  %406 = vmatprep.mubr.f32.mxu1 %v10197_v0 }
  0x68   :  { %541 = vmatprep.subr.mxu1 %v8336_v38  ;;  %694 = vmatpush1.msra.mxu0 %v8225_v10  ;;  %v8485_v10 = vld [vmem:[#allocation4 + $0x50] sm:$0xff] }
  0x69   :  { %542 = vmatpush1.msra.mxu1 %v8343_v39  ;;  %263 = vmatprep.mubr.f32.mxu0 %v10197_v0 }
  0x6a   :  { %7380 = vmatmul.mubr.msk.f32.gmra.mxu1 %vm153_vm1, %v8350_v40  ;;  %543 = vmatprep.subr.mxu1 %v8352_v41 }
  0x6b   :  { %544 = vmatpush1.msra.mxu1 %v8355_v42  ;;  %579 = vmatprep.mubr.f32.mxu1 %v10197_v0 }
  0x6c   :  { %545 = vmatprep.subr.mxu1 %v8359_v43  ;;  %695 = vmatprep.subr.mxu0 %v8228_v11  ;;  %v8489_v11 = vld [vmem:[#allocation4 + $0x38] sm:$0xff] }
  0x6d   :  { %546 = vmatpush1.msra.mxu1 %v8365_v44  ;;  %7365 = vmatmul.mubr.msk.f32.gmra.mxu0 %vm153_vm1, %v8240_v13  ;;  %v8497_v13 = vld [vmem:[#allocation4 + $0x18] sm:$0xff] }
  0x6e   :  { %580 = vmatmul.mubr.f32.vlgmr.msra.gmra.mxu1 %v8372_v45  ;;  %586 = vmatprep.subr.mxu1 %v8374_v46 }
  0x6f   :  { %587 = vmatpush1.msra.mxu1 %v8377_v47  ;;  %650 = vmatprep.mubr.f32.mxu1 %v10197_v0 }
  0x70   :  { %588 = vmatprep.subr.mxu1 %v8381_v48  ;;  %696 = vmatpush1.msra.mxu0 %v8233_v12  ;;  %v8493_v12 = vld [vmem:[#allocation4 + $0x30] sm:$0xff] }
  0x71   :  { %589 = vmatpush1.msra.mxu1 %v8386_v49  ;;  %697 = vmatprep.subr.mxu0 %v8242_v14  ;;  %v8502_v14 = vld [vmem:[#allocation4 + $0x10] sm:$0xff] }
  0x72   :  { %590 = vmatprep.subr.mxu1 %v8389_v50  ;;  %698 = vmatpush1.msra.mxu0 %v8245_v15  ;;  %v8554_v15 = vld [vmem:[#allocation8 + $0x1e8] sm:$0xff] }
  0x73   :  { %591 = vmatpush1.msra.mxu1 %v8393_v51  ;;  %269 = vmatprep.mubr.f32.mxu0 %v10197_v0 }
  0x74   :  { %592 = vmatprep.subr.mxu1 %v8397_v52  ;;  %699 = vmatprep.subr.mxu0 %v8248_v16  ;;  %v8556_v16 = vld [vmem:[#allocation8 + $0x1f8] sm:$0xff] }
  0x75   :  { %593 = vmatpush1.msra.mxu1 %v8402_v53  ;;  %7366 = vmatmul.mubr.msk.f32.gmra.mxu0 %vm153_vm1, %v8263_v20  ;;  %v127_v20 = vld [vmem:[#allocation6] sm:$0xf] }
  0x76   :  { %594 = vmatprep.subr.mxu1 %v8406_v54  ;;  %700 = vmatpush1.msra.mxu0 %v8256_v18  ;;  %v130_v18 = vshrl.u32 %v129_v17, 7 }
  0x77   :  { %595 = vmatpush1.msra.mxu1 %v8410_v55  ;;  %701 = vmatprep.subr.mxu0 %v8265_v21 }
  0x78   :  { %596 = vmatprep.subr.mxu1 %v8414_v56  ;;  %702 = vmatpush1.msra.mxu0 %v8268_v22  ;;  %v8560_v19 = vsub.s32 2, %v130_v18  ;;  %v8564_v22 = vsub.s32 3, %v130_v18 }
  0x79   :  { %597 = vmatpush1.msra.mxu1 %v8418_v57  ;;  %275 = vmatprep.mubr.f32.mxu0 %v10197_v0 }
  0x7a   :  { %598 = vmatprep.subr.mxu1 %v8422_v58  ;;  %703 = vmatprep.subr.mxu0 %v8272_v23  ;;  %10396 = vst [vmem:[#allocation18_spill] sm:$0xff] %v8560_v19  ;;  %10397 = vst [vmem:[#allocation19_spill] sm:$0xff] %v8564_v22 }
  0x7b   :  { %599 = vmatpush1.msra.mxu1 %v8427_v59  ;;  %7367 = vmatmul.mubr.msk.f32.gmra.mxu0 %vm153_vm1, %v8285_v25 }
  0x7c   :  { %600 = vmatprep.subr.mxu1 %v8431_v60  ;;  %704 = vmatpush1.msra.mxu0 %v8278_v24  ;;  %v8569_v24 = vrot.slane %v127_v20, %v8560_v19  ;;  %v8731_v19 = vld [vmem:[#allocation8 + $0x158] sm:$0xff] }
  0x7d   :  { %601 = vmatpush1.msra.mxu1 %v8435_v61  ;;  %705 = vmatprep.subr.mxu0 %v8287_v26  ;;  %v8572_v26 = vrot.slane %v127_v20, %v8564_v22  ;;  %v8729_v22 = vld [vmem:[#allocation8 + $0x148] sm:$0xff]  ;;  %10432 = vst [vmem:[#allocation54_spill] sm:$0xff] %v8731_v19 }
  0x7e   :  { %602 = vmatprep.subr.mxu1 %v8439_v62  ;;  %706 = vmatpush1.msra.mxu0 %v8290_v27  ;;  %10431 = vst [vmem:[#allocation53_spill] sm:$0xff] %v8729_v22 }
  0x7f   :  { %603 = vmatpush1.msra.mxu1 %v8443_v63  ;;  %281 = vmatprep.mubr.f32.mxu0 %v10197_v0 }
  0x80   :  { %604 = vmatprep.subr.mxu1 %v8447_v1  ;;  %707 = vmatprep.subr.mxu0 %v8294_v28 }
  0x81   :  { %605 = vmatpush1.msra.mxu1 %v8452_v2  ;;  %7368 = vmatmul.mubr.msk.f32.gmra.mxu0 %vm153_vm1, %v8306_v30 }
  0x82   :  { %606 = vmatprep.subr.mxu1 %v8456_v3  ;;  %708 = vmatpush1.msra.mxu0 %v8299_v29 }
  0x83   :  { %607 = vmatpush1.msra.mxu1 %v8460_v4  ;;  %709 = vmatprep.subr.mxu0 %v8308_v31 }
  0x84   :  { %608 = vmatprep.subr.mxu1 %v8464_v5  ;;  %710 = vmatpush1.msra.mxu0 %v8311_v32 }
  0x85   :  { %609 = vmatpush1.msra.mxu1 %v8468_v6  ;;  %287 = vmatprep.mubr.f32.mxu0 %v10197_v0 }
  0x86   :  { %610 = vmatprep.subr.mxu1 %v8472_v7  ;;  %711 = vmatprep.subr.mxu0 %v8314_v33 }
  0x87   :  { %611 = vmatpush1.msra.mxu1 %v8477_v8  ;;  %7369 = vmatmul.mubr.msk.f32.gmra.mxu0 %vm153_vm1, %v8327_v35 }
  0x88   :  { %612 = vmatprep.subr.mxu1 %v8481_v9  ;;  %712 = vmatpush1.msra.mxu0 %v8320_v34 }
  0x89   :  { %613 = vmatpush1.msra.mxu1 %v8485_v10  ;;  %713 = vmatprep.subr.mxu0 %v8329_v36 }
  0x8a   :  { %614 = vmatprep.subr.mxu1 %v8489_v11  ;;  %714 = vmatpush1.msra.mxu0 %v8332_v37 }
  0x8b   :  { %615 = vmatpush1.msra.mxu1 %v8493_v12  ;;  %293 = vmatprep.mubr.f32.mxu0 %v10197_v0 }
  0x8c   :  { %616 = vmatprep.subr.mxu1 %v8497_v13  ;;  %715 = vmatprep.subr.mxu0 %v8336_v38 }
  0x8d   :  { %617 = vmatpush1.msra.mxu1 %v8502_v14  ;;  %7370 = vmatmul.mubr.msk.f32.gmra.mxu0 %vm153_vm1, %v8350_v40 }
  0x8e   :  { %651 = vmatmul.mubr.f32.vlgmr.msra.gmra.mxu1 %v8372_v45  ;;  %760 = vmatprep.subr.mxu1 %v8374_v46 }
  0x8f   :  { %761 = vmatpush1.msra.mxu1 %v8377_v47  ;;  %716 = vmatpush1.msra.mxu0 %v8343_v39 }
  0x90   :  { %762 = vmatprep.subr.mxu1 %v8381_v48  ;;  %717 = vmatprep.subr.mxu0 %v8352_v41 }
  0x91   :  { %763 = vmatpush1.msra.mxu1 %v8386_v49  ;;  %718 = vmatpush1.msra.mxu0 %v8355_v42 }
  0x92   :  { %764 = vmatprep.subr.mxu1 %v8389_v50  ;;  %719 = vmatprep.subr.mxu0 %v8359_v43 }
  0x93   :  { %765 = vmatpush1.msra.mxu1 %v8393_v51  ;;  %720 = vmatpush1.msra.mxu0 %v8365_v44 }
  0x94   :  { %766 = vmatprep.subr.mxu1 %v8397_v52  ;;  %753 = vmatprep.mubr.f32.mxu0 %v10197_v0 }
  0x95   :  { %767 = vmatpush1.msra.mxu1 %v8402_v53  ;;  %824 = vmatprep.mubr.f32.mxu1 %v10197_v0 }
  0x96   :  { %768 = vmatprep.subr.mxu1 %v8406_v54  ;;  %1009 = vmatprep.subr.mxu0 %v8554_v15 }
  0x97   :  { %769 = vmatpush1.msra.mxu1 %v8410_v55 }
  0x98   :  { %770 = vmatprep.subr.mxu1 %v8414_v56 }
  0x99   :  { %771 = vmatpush1.msra.mxu1 %v8418_v57 }
  0x9a   :  { %772 = vmatprep.subr.mxu1 %v8422_v58 }
  0x9b   :  { %773 = vmatpush1.msra.mxu1 %v8427_v59 }
  0x9c   :  { %774 = vmatprep.subr.mxu1 %v8431_v60 }
  0x9d   :  { %775 = vmatpush1.msra.mxu1 %v8435_v61 }
  0x9e   :  { %776 = vmatprep.subr.mxu1 %v8439_v62 }
  0x9f   :  { %777 = vmatpush1.msra.mxu1 %v8443_v63 }
  0xa0   :  { %778 = vmatprep.subr.mxu1 %v8447_v1 }
  0xa1   :  { %779 = vmatpush1.msra.mxu1 %v8452_v2 }
  0xa2   :  { %780 = vmatprep.subr.mxu1 %v8456_v3 }
  0xa3   :  { %781 = vmatpush1.msra.mxu1 %v8460_v4 }
  0xa4   :  { %782 = vmatprep.subr.mxu1 %v8464_v5 }
  0xa5   :  { %783 = vmatpush1.msra.mxu1 %v8468_v6 }
  0xa6   :  { %784 = vmatprep.subr.mxu1 %v8472_v7 }
  0xa7   :  { %785 = vmatpush1.msra.mxu1 %v8477_v8 }
  0xa8   :  { %786 = vmatprep.subr.mxu1 %v8481_v9 }
  0xa9   :  { %787 = vmatpush1.msra.mxu1 %v8485_v10 }
  0xaa   :  { %788 = vmatprep.subr.mxu1 %v8489_v11 }
  0xab   :  { %789 = vmatpush1.msra.mxu1 %v8493_v12 }
  0xac   :  { %790 = vmatprep.subr.mxu1 %v8497_v13 }
  0xad   :  { %791 = vmatpush1.msra.mxu1 %v8502_v14 }
  0xae   :  { %1080 = vmatprep.subr.mxu1 %v8556_v16 }
 0x10e   :  { %v8562_v21 = vpop.f32.mrf.mxu1 }
 0x110   :  { %v8566_v23 = vpop.f32.mrf.mxu1 }
 0x112   :  { %v372_v25 = vpop.f32.mrf.mxu1 }
 0x113   :  { %v8575_v27 = vadd.f32 %v372_v25, %v8569_v24 }
 0x114   :  { %v374_v28 = vpop.f32.mrf.mxu1 }
 0x115   :  { %v8578_v29 = vadd.f32 %v374_v28, %v8572_v26 }
 0x116   :  { %v378_v30 = vpop.f32.mrf.mxu1 }
 0x117   :  { %v8581_v31 = vadd.f32 %v378_v30, %v8569_v24 }
 0x118   :  { %v380_v32 = vpop.f32.mrf.mxu1 }
 0x119   :  { %10398 = vst [vmem:[#allocation20_spill] sm:$0xff] %v8581_v31  ;;  %v8584_v33 = vadd.f32 %v380_v32, %v8572_v26  ;;  %v8610_v32 = vsub.s32 0, %v130_v18 }
 0x11a   :  { %v384_v34 = vpop.f32.mrf.mxu1 }
 0x11b   :  { %10399 = vst [vmem:[#allocation21_spill] sm:$0xff] %v8584_v33  ;;  %v8587_v35 = vadd.f32 %v384_v34, %v8569_v24  ;;  %10408 = vst [vmem:[#allocation30_spill] sm:$0xff] %v8610_v32 }
 0x11c   :  { %v386_v36 = vpop.f32.mrf.mxu1 }
 0x11d   :  { %10400 = vst [vmem:[#allocation22_spill] sm:$0xff] %v8587_v35  ;;  %v8590_v37 = vadd.f32 %v386_v36, %v8572_v26  ;;  %v8612_v36 = vsub.s32 1, %v130_v18 }
 0x11e   :  { %v390_v38 = vpop.f32.mrf.mxu1 }
 0x11f   :  { %10401 = vst [vmem:[#allocation23_spill] sm:$0xff] %v8590_v37  ;;  %v8593_v39 = vadd.f32 %v390_v38, %v8569_v24  ;;  %10409 = vst [vmem:[#allocation31_spill] sm:$0xff] %v8612_v36  ;;  %v8624_v0 = vrot.slane %v127_v20, %v8612_v36  ;;  %v8735_v36 = vld [vmem:[#allocation8 + $0x140] sm:$0xff] }
 0x120   :  { %v392_v40 = vpop.f32.mrf.mxu1  ;;  %10433 = vst [vmem:[#allocation55_spill] sm:$0xff] %v8735_v36 }
 0x121   :  { %10402 = vst [vmem:[#allocation24_spill] sm:$0xff] %v8593_v39  ;;  %v8596_v41 = vadd.f32 %v392_v40, %v8572_v26  ;;  %v253_v40 = vpop.f32.mrf.mxu0 }
 0x122   :  { %v396_v42 = vpop.f32.mrf.mxu1 }
 0x123   :  { %10403 = vst [vmem:[#allocation25_spill] sm:$0xff] %v8596_v41  ;;  %v8599_v43 = vadd.f32 %v396_v42, %v8569_v24 }
 0x124   :  { %v398_v44 = vpop.f32.mrf.mxu1 }
 0x125   :  { %10404 = vst [vmem:[#allocation26_spill] sm:$0xff] %v8599_v43  ;;  %v8602_v45 = vadd.f32 %v398_v44, %v8572_v26  ;;  %v8618_v44 = vrot.slane %v127_v20, %v8610_v32 }
 0x126   :  { %v402_v17 = vpop.f32.mrf.mxu1 }
 0x127   :  { %10405 = vst [vmem:[#allocation27_spill] sm:$0xff] %v8602_v45  ;;  %v8605_v25 = vadd.f32 %v402_v17, %v8569_v24 }
 0x128   :  { %v404_v28 = vpop.f32.mrf.mxu1 }
 0x129   :  { %10406 = vst [vmem:[#allocation28_spill] sm:$0xff] %v8605_v25  ;;  %v8608_v30 = vadd.f32 %v404_v28, %v8572_v26  ;;  %v255_v28 = vpop.f32.mrf.mxu0  ;;  %v254_v25 = vadd.f32 %v253_v40, %v8618_v44 }
 0x12a   :  { %v408_v34 = vpop.f32.mrf.mxu1  ;;  %v256_v18 = vadd.f32 %v255_v28, %v8624_v0 }
 0x12b   :  { %10407 = vst [vmem:[#allocation29_spill] sm:$0xff] %v8608_v30  ;;  %v8615_v38 = vadd.f32 %v408_v34, %v8569_v24  ;;  %v8628_v43 = vpop.f32.mrf.mxu0 }
 0x12c   :  { %v410_v42 = vpop.f32.mrf.mxu1 }
 0x12d   :  { %10410 = vst [vmem:[#allocation32_spill] sm:$0xff] %v8615_v38  ;;  %v8621_v17 = vadd.f32 %v410_v42, %v8572_v26  ;;  %v8630_v39 = vpop.f32.mrf.mxu0 }
 0x12e   :  { %v581_v30 = vpop.f32.mrf.mxu1 }
 0x12f   :  { %10411 = vst [vmem:[#allocation33_spill] sm:$0xff] %v8621_v17  ;;  %v657_v34 = vadd.f32 %v581_v30, %v254_v25  ;;  %v265_v42 = vpop.f32.mrf.mxu0 }
 0x130   :  { %v583_v45 = vpop.f32.mrf.mxu1  ;;  %v8633_v17 = vadd.f32 %v265_v42, %v8618_v44 }
 0x131   :  { %v658_v38 = vadd.f32 %v583_v45, %v256_v18  ;;  %v7381_v41 = vmul.f32 -1.442695, %v657_v34  ;;  %v267_v20 = vpop.f32.mrf.mxu0 }
 0x132   :  { %10412 = vst [vmem:[#allocation34_spill] sm:$0xff] %v8633_v17  ;;  %v8636_v40 = vadd.f32 %v267_v20, %v8624_v0  ;;  %v8725_v17 = vld [vmem:[#allocation8 + $0x170] sm:$0xff] }
 0x133   :  { %v7382_v37 = vmul.f32 -1.442695, %v658_v38  ;;  %7533 = vpow2.f32 %v7381_v41  ;;  %10430 = vst [vmem:[#allocation52_spill] sm:$0xff] %v8725_v17 }
 0x134   :  { %10413 = vst [vmem:[#allocation35_spill] sm:$0xff] %v8636_v40 }
 0x135   :  { %7535 = vpow2.f32 %v7382_v37  ;;  %v271_v28 = vpop.f32.mrf.mxu0 }
 0x136   :  { %v8639_v25 = vadd.f32 %v271_v28, %v8618_v44 }
 0x137   :  { %v273_v45 = vpop.f32.mrf.mxu0 }
 0x138   :  { %10414 = vst [vmem:[#allocation36_spill] sm:$0xff] %v8639_v25  ;;  %v8642_v30 = vadd.f32 %v273_v45, %v8624_v0 }
 0x13a   :  { %10415 = vst [vmem:[#allocation37_spill] sm:$0xff] %v8642_v30 }
 0x13b   :  { %v277_v18 = vpop.f32.mrf.mxu0 }
 0x13c   :  { %v8645_v38 = vadd.f32 %v277_v18, %v8618_v44  ;;  %v367_v18 = vadd.f32 %v8562_v21, %v8569_v24 }
 0x13d   :  { %v279_v34 = vpop.f32.mrf.mxu0 }
 0x13e   :  { %10416 = vst [vmem:[#allocation38_spill] sm:$0xff] %v8645_v38  ;;  %v8648_v41 = vadd.f32 %v279_v34, %v8624_v0 }
 0x140   :  { %10417 = vst [vmem:[#allocation39_spill] sm:$0xff] %v8648_v41  ;;  %v7534_v35 = vpop.eup %7533 }
 0x141   :  { %v283_v37 = vpop.f32.mrf.mxu0  ;;  %v670_v38 = vadd.f32 1.0, %v7534_v35  ;;  %v446_v35 = vld [vmem:[%s10186_s2] sm:$0xff] }
 0x142   :  { %v8651_v42 = vadd.f32 %v283_v37, %v8618_v44  ;;  %v7536_v25 = vpop.eup %7535 }
 0x143   :  { %v285_v20 = vpop.f32.mrf.mxu0  ;;  %v671_v41 = vadd.f32 1.0, %v7536_v25  ;;  %7537 = vrcp.f32 %v670_v38 }
 0x144   :  { %10418 = vst [vmem:[#allocation40_spill] sm:$0xff] %v8651_v42  ;;  %v8654_v28 = vadd.f32 %v285_v20, %v8624_v0  ;;  %v369_v42 = vadd.f32 %v8566_v23, %v8572_v26 }
 0x145   :  { %7539 = vrcp.f32 %v671_v41 }
 0x146   :  { %10419 = vst [vmem:[#allocation41_spill] sm:$0xff] %v8654_v28 }
 0x147   :  { %v289_v45 = vpop.f32.mrf.mxu0 }
 0x148   :  { %v8657_v30 = vadd.f32 %v289_v45, %v8618_v44 }
 0x149   :  { %v291_v34 = vpop.f32.mrf.mxu0 }
 0x14a   :  { %10420 = vst [vmem:[#allocation42_spill] sm:$0xff] %v8657_v30  ;;  %v8662_v37 = vadd.f32 %v291_v34, %v8624_v0  ;;  %v8681_v34 = vld [vmem:[#allocation8 + $0x1c8] sm:$0xff] }
 0x14c   :  { %10421 = vst [vmem:[#allocation43_spill] sm:$0xff] %v8662_v37  ;;  %v8723_v37 = vld [vmem:[#allocation8 + $0x160] sm:$0xff] }
 0x14d   :  { %v295_v31 = vpop.f32.mrf.mxu0  ;;  %10429 = vst [vmem:[#allocation51_spill] sm:$0xff] %v8723_v37 }
 0x14e   :  { %v652_v33 = vpop.f32.mrf.mxu1  ;;  %v8667_v30 = vadd.f32 %v295_v31, %v8618_v44 }
 0x14f   :  { %v659_v20 = vadd.f32 %v652_v33, %v367_v18 }
 0x150   :  { %v654_v28 = vpop.f32.mrf.mxu1  ;;  %10422 = vst [vmem:[#allocation44_spill] sm:$0xff] %v8667_v30  ;;  %v7538_v21 = vpop.eup %7537  ;;  %v8719_v30 = vld [vmem:[#allocation8 + $0x178] sm:$0xff] }
 0x151   :  { %v7383_v40 = vmul.f32 -1.442695, %v659_v20  ;;  %v660_v45 = vadd.f32 %v654_v28, %v369_v42  ;;  %v8677_v42 = vld [vmem:[#allocation8 + $0x1e0] sm:$0xff]  ;;  %v8679_v28 = vld [vmem:[#allocation8 + $0x1f0] sm:$0xff]  ;;  %v8683_v20 = vld [vmem:[#allocation8 + $0x1d8] sm:$0xff]  ;;  %10428 = vst [vmem:[#allocation50_spill] sm:$0xff] %v8719_v30 }
 0x152   :  { %v7540_v24 = vpop.eup %7539 }
 0x153   :  { %7541 = vpow2.f32 %v7383_v40  ;;  %v680_v33 = vmul.f32 %v7540_v24, %v446_v35  ;;  %v8693_v24 = vld [vmem:[#allocation8 + $0x1a8] sm:$0xff]  ;;  %v8695_v35 = vld [vmem:[#allocation8 + $0x1b8] sm:$0xff] }
 0x154   :  { %7543 = vtanh.f32 %v660_v45  ;;  %v8687_v45 = vld [vmem:[#allocation8 + $0x1c0] sm:$0xff] }
 0x160   :  { %v7542_v25 = vpop.eup %7541 }
 0x161   :  { %v7544_v23 = vpop.eup %7543  ;;  %v672_v26 = vadd.f32 1.0, %v7542_v25  ;;  %v8699_v25 = vld [vmem:[#allocation8 + $0x1a0] sm:$0xff] }
 0x162   :  { %v681_v18 = vmul.f32 %v7544_v23, %v7538_v21  ;;  %v8689_v21 = vld [vmem:[#allocation8 + $0x1d0] sm:$0xff] }
 0x163   :  { %7545 = vrcp.f32 %v672_v26  ;;  %v8701_v23 = vld [vmem:[#allocation8 + $0x1b0] sm:$0xff]  ;;  %v8705_v26 = vld [vmem:[#allocation8 + $0x188] sm:$0xff] }
 0x164   :  { %v8672_v38 = vadd.f32 %v681_v18, %v680_v33  ;;  %10423 = vst [vmem:[#allocation45_spill] sm:$0xff] %v8705_v26  ;;  %v8707_v33 = vld [vmem:[#allocation8 + $0x198] sm:$0xff]  ;;  %v8711_v18 = vld [vmem:[#allocation8 + $0x180] sm:$0xff] }
 0x165   :  { %10424 = vst [vmem:[#allocation46_spill] sm:$0xff] %v8707_v33  ;;  %10425 = vst [vmem:[#allocation47_spill] sm:$0xff] %v8711_v18 }
 0x166   :  { %7547 = vtanh.f32 %v8672_v38 }
 0x170   :  { %v7546_v31 = vpop.eup %7545 }
 0x173   :  { %v7548_v41 = vpop.eup %7547 }
 0x174   :  { %v8675_v40 = vmul.f32 %v7548_v41, %v7546_v31  ;;  %v8713_v31 = vld [vmem:[#allocation8 + $0x190] sm:$0xff]  ;;  %v8717_v41 = vld [vmem:[#allocation8 + $0x168] sm:$0xff] }
 0x175   :  { %10426 = vst [vmem:[#allocation48_spill] sm:$0xff] %v8713_v31  ;;  %10427 = vst [vmem:[#allocation49_spill] sm:$0xff] %v8717_v41 }
 0x176   :  { %754 = vmatmul.mubr.f32.vlgmr.msra.gmra.mxu0 %v8675_v40  ;;  %825 = vmatmul.mubr.f32.vlgmr.msra.gmra.mxu1 %v8675_v40 }
 0x177   :  { %1010 = vmatpush1.msra.mxu0 %v8677_v42  ;;  %1081 = vmatpush1.msra.mxu1 %v8679_v28 }
 0x178   :  { %1011 = vmatprep.subr.mxu0 %v8681_v34  ;;  %1082 = vmatprep.subr.mxu1 %v8683_v20 }
 0x179   :  { %1012 = vmatpush1.msra.mxu0 %v8687_v45  ;;  %1083 = vmatpush1.msra.mxu1 %v8689_v21 }
 0x17a   :  { %1013 = vmatprep.subr.mxu0 %v8693_v24  ;;  %1084 = vmatprep.subr.mxu1 %v8695_v35 }
 0x17b   :  { %1014 = vmatpush1.msra.mxu0 %v8699_v25  ;;  %1085 = vmatpush1.msra.mxu1 %v8701_v23 }
 0x17c   :  { %1015 = vmatprep.subr.mxu0 %v8705_v26  ;;  %1086 = vmatprep.subr.mxu1 %v8707_v33  ;;  %v8737_v26 = vld [vmem:[#allocation8 + $0x150] sm:$0xff]  ;;  %v8741_v33 = vld [vmem:[#allocation8 + $0x128] sm:$0xff] }
 0x17d   :  { %1016 = vmatpush1.msra.mxu0 %v8711_v18  ;;  %1087 = vmatpush1.msra.mxu1 %v8713_v31  ;;  %10434 = vst [vmem:[#allocation56_spill] sm:$0xff] %v8737_v26  ;;  %10435 = vst [vmem:[#allocation57_spill] sm:$0xff] %v8741_v33  ;;  %v8743_v18 = vld [vmem:[#allocation8 + $0x138] sm:$0xff]  ;;  %v8747_v31 = vld [vmem:[#allocation8 + $0x120] sm:$0xff] }
 0x17e   :  { %1017 = vmatprep.subr.mxu0 %v8717_v41  ;;  %1088 = vmatprep.subr.mxu1 %v8719_v30  ;;  %10436 = vst [vmem:[#allocation58_spill] sm:$0xff] %v8743_v18  ;;  %10437 = vst [vmem:[#allocation59_spill] sm:$0xff] %v8747_v31  ;;  %v8749_v41 = vld [vmem:[#allocation8 + $0x130] sm:$0xff]  ;;  %v8753_v30 = vld [vmem:[#allocation8 + $0x108] sm:$0xff] }
 0x17f   :  { %1018 = vmatpush1.msra.mxu0 %v8723_v37  ;;  %1089 = vmatpush1.msra.mxu1 %v8725_v17  ;;  %10438 = vst [vmem:[#allocation60_spill] sm:$0xff] %v8749_v41  ;;  %10439 = vst [vmem:[#allocation61_spill] sm:$0xff] %v8753_v30  ;;  %v8755_v37 = vld [vmem:[#allocation8 + $0x118] sm:$0xff]  ;;  %v8759_v17 = vld [vmem:[#allocation8 + $0x100] sm:$0xff] }
 0x180   :  { %1019 = vmatprep.subr.mxu0 %v8729_v22  ;;  %1090 = vmatprep.subr.mxu1 %v8731_v19  ;;  %10440 = vst [vmem:[#allocation62_spill] sm:$0xff] %v8755_v37  ;;  %10441 = vst [vmem:[#allocation63_spill] sm:$0xff] %v8759_v17  ;;  %v8761_v22 = vld [vmem:[#allocation8 + $0x110] sm:$0xff]  ;;  %v8765_v19 = vld [vmem:[#allocation8 + $0xe8] sm:$0xff] }
 0x181   :  { %1020 = vmatpush1.msra.mxu0 %v8735_v36  ;;  %1091 = vmatpush1.msra.mxu1 %v8737_v26  ;;  %10442 = vst [vmem:[#allocation64_spill] sm:$0xff] %v8761_v22  ;;  %10443 = vst [vmem:[#allocation65_spill] sm:$0xff] %v8765_v19  ;;  %v8767_v36 = vld [vmem:[#allocation8 + $0xf8] sm:$0xff]  ;;  %v8771_v26 = vld [vmem:[#allocation8 + $0xe0] sm:$0xff] }
 0x182   :  { %1021 = vmatprep.subr.mxu0 %v8741_v33  ;;  %1092 = vmatprep.subr.mxu1 %v8743_v18  ;;  %10444 = vst [vmem:[#allocation66_spill] sm:$0xff] %v8767_v36  ;;  %10445 = vst [vmem:[#allocation67_spill] sm:$0xff] %v8771_v26  ;;  %v8773_v33 = vld [vmem:[#allocation8 + $0xf0] sm:$0xff]  ;;  %v8777_v18 = vld [vmem:[#allocation8 + $0xc8] sm:$0xff] }
 0x183   :  { %1022 = vmatpush1.msra.mxu0 %v8747_v31  ;;  %1093 = vmatpush1.msra.mxu1 %v8749_v41  ;;  %10446 = vst [vmem:[#allocation68_spill] sm:$0xff] %v8773_v33  ;;  %10447 = vst [vmem:[#allocation69_spill] sm:$0xff] %v8777_v18  ;;  %v8779_v31 = vld [vmem:[#allocation8 + $0xd8] sm:$0xff]  ;;  %v8783_v41 = vld [vmem:[#allocation8 + $0xc0] sm:$0xff] }
 0x184   :  { %1023 = vmatprep.subr.mxu0 %v8753_v30  ;;  %1094 = vmatprep.subr.mxu1 %v8755_v37  ;;  %10448 = vst [vmem:[#allocation70_spill] sm:$0xff] %v8779_v31  ;;  %10449 = vst [vmem:[#allocation71_spill] sm:$0xff] %v8783_v41  ;;  %v8785_v30 = vld [vmem:[#allocation8 + $0xd0] sm:$0xff]  ;;  %v8789_v37 = vld [vmem:[#allocation8 + $0xa8] sm:$0xff] }
 0x185   :  { %1024 = vmatpush1.msra.mxu0 %v8759_v17  ;;  %1095 = vmatpush1.msra.mxu1 %v8761_v22  ;;  %10450 = vst [vmem:[#allocation72_spill] sm:$0xff] %v8785_v30  ;;  %10451 = vst [vmem:[#allocation73_spill] sm:$0xff] %v8789_v37  ;;  %v8791_v17 = vld [vmem:[#allocation8 + $0xb8] sm:$0xff]  ;;  %v8795_v22 = vld [vmem:[#allocation8 + $0xa0] sm:$0xff] }
 0x186   :  { %1025 = vmatprep.subr.mxu0 %v8765_v19  ;;  %1096 = vmatprep.subr.mxu1 %v8767_v36  ;;  %10452 = vst [vmem:[#allocation74_spill] sm:$0xff] %v8791_v17  ;;  %10453 = vst [vmem:[#allocation75_spill] sm:$0xff] %v8795_v22  ;;  %v8797_v19 = vld [vmem:[#allocation8 + $0xb0] sm:$0xff]  ;;  %v8801_v36 = vld [vmem:[#allocation8 + $0x88] sm:$0xff] }
 0x187   :  { %1026 = vmatpush1.msra.mxu0 %v8771_v26  ;;  %1097 = vmatpush1.msra.mxu1 %v8773_v33  ;;  %10454 = vst [vmem:[#allocation76_spill] sm:$0xff] %v8797_v19  ;;  %10455 = vst [vmem:[#allocation77_spill] sm:$0xff] %v8801_v36  ;;  %v8803_v26 = vld [vmem:[#allocation8 + $0x98] sm:$0xff]  ;;  %v8807_v33 = vld [vmem:[#allocation8 + $0x80] sm:$0xff] }
 0x188   :  { %1027 = vmatprep.subr.mxu0 %v8777_v18  ;;  %1098 = vmatprep.subr.mxu1 %v8779_v31  ;;  %10456 = vst [vmem:[#allocation78_spill] sm:$0xff] %v8803_v26  ;;  %10457 = vst [vmem:[#allocation79_spill] sm:$0xff] %v8807_v33  ;;  %v8809_v18 = vld [vmem:[#allocation8 + $0x90] sm:$0xff]  ;;  %v8813_v31 = vld [vmem:[#allocation8 + $0x68] sm:$0xff] }
 0x189   :  { %1028 = vmatpush1.msra.mxu0 %v8783_v41  ;;  %1099 = vmatpush1.msra.mxu1 %v8785_v30  ;;  %10458 = vst [vmem:[#allocation80_spill] sm:$0xff] %v8809_v18  ;;  %10459 = vst [vmem:[#allocation81_spill] sm:$0xff] %v8813_v31  ;;  %v8815_v41 = vld [vmem:[#allocation8 + $0x78] sm:$0xff]  ;;  %v8819_v30 = vld [vmem:[#allocation8 + $0x60] sm:$0xff] }
 0x18a   :  { %1029 = vmatprep.subr.mxu0 %v8789_v37  ;;  %1100 = vmatprep.subr.mxu1 %v8791_v17  ;;  %10460 = vst [vmem:[#allocation82_spill] sm:$0xff] %v8815_v41  ;;  %10461 = vst [vmem:[#allocation83_spill] sm:$0xff] %v8819_v30  ;;  %v8821_v37 = vld [vmem:[#allocation8 + $0x70] sm:$0xff]  ;;  %v8825_v17 = vld [vmem:[#allocation8 + $0x48] sm:$0xff] }
 0x18b   :  { %1030 = vmatpush1.msra.mxu0 %v8795_v22  ;;  %1101 = vmatpush1.msra.mxu1 %v8797_v19  ;;  %10462 = vst [vmem:[#allocation84_spill] sm:$0xff] %v8821_v37  ;;  %10463 = vst [vmem:[#allocation85_spill] sm:$0xff] %v8825_v17  ;;  %v8827_v22 = vld [vmem:[#allocation8 + $0x58] sm:$0xff]  ;;  %v8831_v19 = vld [vmem:[#allocation8 + $0x40] sm:$0xff] }
 0x18c   :  { %1031 = vmatprep.subr.mxu0 %v8801_v36  ;;  %1102 = vmatprep.subr.mxu1 %v8803_v26  ;;  %10464 = vst [vmem:[#allocation86_spill] sm:$0xff] %v8827_v22  ;;  %10465 = vst [vmem:[#allocation87_spill] sm:$0xff] %v8831_v19  ;;  %v8833_v36 = vld [vmem:[#allocation8 + $0x50] sm:$0xff]  ;;  %v8837_v26 = vld [vmem:[#allocation8 + $0x28] sm:$0xff] }
 0x18d   :  { %1032 = vmatpush1.msra.mxu0 %v8807_v33  ;;  %1103 = vmatpush1.msra.mxu1 %v8809_v18  ;;  %10466 = vst [vmem:[#allocation88_spill] sm:$0xff] %v8833_v36  ;;  %10467 = vst [vmem:[#allocation89_spill] sm:$0xff] %v8837_v26  ;;  %v8839_v33 = vld [vmem:[#allocation8 + $0x38] sm:$0xff]  ;;  %v8843_v18 = vld [vmem:[#allocation8 + $0x20] sm:$0xff] }
 0x18e   :  { %1033 = vmatprep.subr.mxu0 %v8813_v31  ;;  %1104 = vmatprep.subr.mxu1 %v8815_v41  ;;  %10468 = vst [vmem:[#allocation90_spill] sm:$0xff] %v8839_v33  ;;  %10469 = vst [vmem:[#allocation91_spill] sm:$0xff] %v8843_v18  ;;  %v8845_v31 = vld [vmem:[#allocation8 + $0x30] sm:$0xff]  ;;  %v8849_v41 = vld [vmem:[#allocation8 + $0x8] sm:$0xff] }
 0x18f   :  { %1034 = vmatpush1.msra.mxu0 %v8819_v30  ;;  %1105 = vmatpush1.msra.mxu1 %v8821_v37  ;;  %10470 = vst [vmem:[#allocation92_spill] sm:$0xff] %v8845_v31  ;;  %10471 = vst [vmem:[#allocation93_spill] sm:$0xff] %v8849_v41  ;;  %v8851_v30 = vld [vmem:[#allocation8 + $0x18] sm:$0xff]  ;;  %v8855_v37 = vld [vmem:[#allocation8] sm:$0xff] }
 0x190   :  { %1035 = vmatprep.subr.mxu0 %v8825_v17  ;;  %1106 = vmatprep.subr.mxu1 %v8827_v22  ;;  %10472 = vst [vmem:[#allocation94_spill] sm:$0xff] %v8851_v30  ;;  %10473 = vst [vmem:[#allocation95_spill] sm:$0xff] %v8855_v37  ;;  %v8857_v17 = vld [vmem:[#allocation8 + $0x10] sm:$0xff]  ;;  %v8861_v22 = vld [vmem:[#allocation8 + $0x3e8] sm:$0xff] }
 0x191   :  { %1036 = vmatpush1.msra.mxu0 %v8831_v19  ;;  %1107 = vmatpush1.msra.mxu1 %v8833_v36  ;;  %10474 = vst [vmem:[#allocation96_spill] sm:$0xff] %v8857_v17  ;;  %10475 = vst [vmem:[#allocation97_spill] sm:$0xff] %v8861_v22  ;;  %v8863_v19 = vld [vmem:[#allocation8 + $0x3f8] sm:$0xff]  ;;  %v8867_v36 = vld [vmem:[#allocation8 + $0x3e0] sm:$0xff] }
 0x192   :  { %1037 = vmatprep.subr.mxu0 %v8837_v26  ;;  %1108 = vmatprep.subr.mxu1 %v8839_v33  ;;  %10476 = vst [vmem:[#allocation98_spill] sm:$0xff] %v8863_v19  ;;  %10477 = vst [vmem:[#allocation99_spill] sm:$0xff] %v8867_v36  ;;  %v8869_v26 = vld [vmem:[#allocation8 + $0x3f0] sm:$0xff]  ;;  %v8873_v33 = vld [vmem:[#allocation8 + $0x3c8] sm:$0xff] }
 0x193   :  { %1038 = vmatpush1.msra.mxu0 %v8843_v18  ;;  %1109 = vmatpush1.msra.mxu1 %v8845_v31  ;;  %10478 = vst [vmem:[#allocation100_spill] sm:$0xff] %v8869_v26  ;;  %10479 = vst [vmem:[#allocation101_spill] sm:$0xff] %v8873_v33  ;;  %v8875_v18 = vld [vmem:[#allocation8 + $0x3d8] sm:$0xff]  ;;  %v8879_v31 = vld [vmem:[#allocation8 + $0x3c0] sm:$0xff] }
 0x194   :  { %1039 = vmatprep.subr.mxu0 %v8849_v41  ;;  %1110 = vmatprep.subr.mxu1 %v8851_v30  ;;  %10480 = vst [vmem:[#allocation102_spill] sm:$0xff] %v8875_v18  ;;  %10481 = vst [vmem:[#allocation103_spill] sm:$0xff] %v8879_v31  ;;  %v8881_v41 = vld [vmem:[#allocation8 + $0x3d0] sm:$0xff]  ;;  %v8885_v30 = vld [vmem:[#allocation8 + $0x3a8] sm:$0xff] }
 0x195   :  { %1040 = vmatpush1.msra.mxu0 %v8855_v37  ;;  %1111 = vmatpush1.msra.mxu1 %v8857_v17  ;;  %10482 = vst [vmem:[#allocation104_spill] sm:$0xff] %v8881_v41  ;;  %10483 = vst [vmem:[#allocation105_spill] sm:$0xff] %v8885_v30  ;;  %v8887_v37 = vld [vmem:[#allocation8 + $0x3b8] sm:$0xff]  ;;  %v8891_v17 = vld [vmem:[#allocation8 + $0x3a0] sm:$0xff] }
 0x196   :  { %1041 = vmatprep.subr.mxu0 %v8861_v22  ;;  %1112 = vmatprep.subr.mxu1 %v8863_v19  ;;  %10484 = vst [vmem:[#allocation106_spill] sm:$0xff] %v8887_v37  ;;  %10485 = vst [vmem:[#allocation107_spill] sm:$0xff] %v8891_v17  ;;  %v8893_v22 = vld [vmem:[#allocation8 + $0x3b0] sm:$0xff]  ;;  %v8897_v19 = vld [vmem:[#allocation8 + $0x388] sm:$0xff] }
 0x197   :  { %1042 = vmatpush2.msra.mxu0 %v8867_v36  ;;  %1113 = vmatpush2.msra.mxu1 %v8869_v26  ;;  %10486 = vst [vmem:[#allocation108_spill] sm:$0xff] %v8893_v22  ;;  %10487 = vst [vmem:[#allocation109_spill] sm:$0xff] %v8897_v19  ;;  %v8899_v36 = vld [vmem:[#allocation8 + $0x398] sm:$0xff]  ;;  %v8903_v26 = vld [vmem:[#allocation8 + $0x380] sm:$0xff] }
 0x198   :  { %1043 = vmatprep.subr.mxu0 %v8873_v33  ;;  %1114 = vmatprep.subr.mxu1 %v8875_v18  ;;  %10488 = vst [vmem:[#allocation110_spill] sm:$0xff] %v8899_v36  ;;  %10489 = vst [vmem:[#allocation111_spill] sm:$0xff] %v8903_v26  ;;  %v8905_v33 = vld [vmem:[#allocation8 + $0x390] sm:$0xff]  ;;  %v8909_v18 = vld [vmem:[#allocation8 + $0x368] sm:$0xff] }
 0x199   :  { %1044 = vmatpush2.msra.mxu0 %v8879_v31  ;;  %1115 = vmatpush2.msra.mxu1 %v8881_v41  ;;  %10490 = vst [vmem:[#allocation112_spill] sm:$0xff] %v8905_v33  ;;  %10491 = vst [vmem:[#allocation113_spill] sm:$0xff] %v8909_v18  ;;  %v8911_v31 = vld [vmem:[#allocation8 + $0x378] sm:$0xff]  ;;  %v8915_v41 = vld [vmem:[#allocation8 + $0x360] sm:$0xff] }
 0x19a   :  { %1045 = vmatprep.subr.mxu0 %v8885_v30  ;;  %1116 = vmatprep.subr.mxu1 %v8887_v37  ;;  %10492 = vst [vmem:[#allocation114_spill] sm:$0xff] %v8911_v31  ;;  %10493 = vst [vmem:[#allocation115_spill] sm:$0xff] %v8915_v41  ;;  %v8917_v30 = vld [vmem:[#allocation8 + $0x370] sm:$0xff]  ;;  %v8921_v37 = vld [vmem:[#allocation8 + $0x348] sm:$0xff] }
 0x19b   :  { %1046 = vmatpush2.msra.mxu0 %v8891_v17  ;;  %1117 = vmatpush2.msra.mxu1 %v8893_v22  ;;  %10494 = vst [vmem:[#allocation116_spill] sm:$0xff] %v8917_v30  ;;  %10495 = vst [vmem:[#allocation117_spill] sm:$0xff] %v8921_v37  ;;  %v8923_v17 = vld [vmem:[#allocation8 + $0x358] sm:$0xff]  ;;  %v8927_v22 = vld [vmem:[#allocation8 + $0x340] sm:$0xff] }
 0x19c   :  { %1047 = vmatprep.subr.mxu0 %v8897_v19  ;;  %1118 = vmatprep.subr.mxu1 %v8899_v36  ;;  %10496 = vst [vmem:[#allocation118_spill] sm:$0xff] %v8923_v17  ;;  %10497 = vst [vmem:[#allocation119_spill] sm:$0xff] %v8927_v22  ;;  %v8929_v19 = vld [vmem:[#allocation8 + $0x350] sm:$0xff]  ;;  %v8933_v36 = vld [vmem:[#allocation8 + $0x328] sm:$0xff] }
 0x19d   :  { %1048 = vmatpush2.msra.mxu0 %v8903_v26  ;;  %1119 = vmatpush2.msra.mxu1 %v8905_v33  ;;  %10498 = vst [vmem:[#allocation120_spill] sm:$0xff] %v8929_v19  ;;  %10499 = vst [vmem:[#allocation121_spill] sm:$0xff] %v8933_v36  ;;  %v8935_v26 = vld [vmem:[#allocation8 + $0x338] sm:$0xff]  ;;  %v8939_v33 = vld [vmem:[#allocation8 + $0x320] sm:$0xff] }
 0x19e   :  { %1049 = vmatprep.subr.mxu0 %v8909_v18  ;;  %1120 = vmatprep.subr.mxu1 %v8911_v31  ;;  %10500 = vst [vmem:[#allocation122_spill] sm:$0xff] %v8935_v26  ;;  %10501 = vst [vmem:[#allocation123_spill] sm:$0xff] %v8939_v33  ;;  %v8941_v18 = vld [vmem:[#allocation8 + $0x330] sm:$0xff]  ;;  %v8945_v31 = vld [vmem:[#allocation8 + $0x308] sm:$0xff] }
 0x19f   :  { %1050 = vmatpush2.msra.mxu0 %v8915_v41  ;;  %1121 = vmatpush2.msra.mxu1 %v8917_v30  ;;  %10502 = vst [vmem:[#allocation124_spill] sm:$0xff] %v8941_v18  ;;  %10503 = vst [vmem:[#allocation125_spill] sm:$0xff] %v8945_v31  ;;  %v8947_v41 = vld [vmem:[#allocation8 + $0x318] sm:$0xff]  ;;  %v8951_v30 = vld [vmem:[#allocation8 + $0x300] sm:$0xff] }
 0x1a0   :  { %1051 = vmatprep.subr.mxu0 %v8921_v37  ;;  %1122 = vmatprep.subr.mxu1 %v8923_v17  ;;  %10504 = vst [vmem:[#allocation126_spill] sm:$0xff] %v8947_v41  ;;  %10505 = vst [vmem:[#allocation127_spill] sm:$0xff] %v8951_v30  ;;  %v8953_v37 = vld [vmem:[#allocation8 + $0x310] sm:$0xff]  ;;  %v8957_v17 = vld [vmem:[#allocation8 + $0x2e8] sm:$0xff] }
 0x1a1   :  { %1052 = vmatpush2.msra.mxu0 %v8927_v22  ;;  %1123 = vmatpush2.msra.mxu1 %v8929_v19  ;;  %10506 = vst [vmem:[#allocation128_spill] sm:$0xff] %v8953_v37  ;;  %10507 = vst [vmem:[#allocation129_spill] sm:$0xff] %v8957_v17  ;;  %v8959_v22 = vld [vmem:[#allocation8 + $0x2f8] sm:$0xff]  ;;  %v8963_v19 = vld [vmem:[#allocation8 + $0x2e0] sm:$0xff] }
 0x1a2   :  { %1053 = vmatprep.subr.mxu0 %v8933_v36  ;;  %1124 = vmatprep.subr.mxu1 %v8935_v26  ;;  %10508 = vst [vmem:[#allocation130_spill] sm:$0xff] %v8959_v22  ;;  %10509 = vst [vmem:[#allocation131_spill] sm:$0xff] %v8963_v19  ;;  %v8965_v36 = vld [vmem:[#allocation8 + $0x2f0] sm:$0xff]  ;;  %v8969_v26 = vld [vmem:[#allocation8 + $0x2c8] sm:$0xff] }
 0x1a3   :  { %1054 = vmatpush2.msra.mxu0 %v8939_v33  ;;  %1125 = vmatpush2.msra.mxu1 %v8941_v18  ;;  %10510 = vst [vmem:[#allocation132_spill] sm:$0xff] %v8965_v36  ;;  %10511 = vst [vmem:[#allocation133_spill] sm:$0xff] %v8969_v26  ;;  %v8971_v33 = vld [vmem:[#allocation8 + $0x2d8] sm:$0xff]  ;;  %v8975_v18 = vld [vmem:[#allocation8 + $0x2c0] sm:$0xff] }
 0x1a4   :  { %1055 = vmatprep.subr.mxu0 %v8945_v31  ;;  %1126 = vmatprep.subr.mxu1 %v8947_v41  ;;  %10512 = vst [vmem:[#allocation134_spill] sm:$0xff] %v8971_v33  ;;  %10513 = vst [vmem:[#allocation135_spill] sm:$0xff] %v8975_v18  ;;  %v8977_v31 = vld [vmem:[#allocation8 + $0x2d0] sm:$0xff]  ;;  %v8981_v41 = vld [vmem:[#allocation8 + $0x2a8] sm:$0xff] }
 0x1a5   :  { %1056 = vmatpush2.msra.mxu0 %v8951_v30  ;;  %1127 = vmatpush2.msra.mxu1 %v8953_v37  ;;  %10514 = vst [vmem:[#allocation136_spill] sm:$0xff] %v8977_v31  ;;  %10515 = vst [vmem:[#allocation137_spill] sm:$0xff] %v8981_v41  ;;  %v8983_v30 = vld [vmem:[#allocation8 + $0x2b8] sm:$0xff]  ;;  %v8987_v37 = vld [vmem:[#allocation8 + $0x2a0] sm:$0xff] }
 0x1a6   :  { %1057 = vmatprep.subr.mxu0 %v8957_v17  ;;  %1128 = vmatprep.subr.mxu1 %v8959_v22  ;;  %10516 = vst [vmem:[#allocation138_spill] sm:$0xff] %v8983_v30  ;;  %10517 = vst [vmem:[#allocation139_spill] sm:$0xff] %v8987_v37  ;;  %v8989_v17 = vld [vmem:[#allocation8 + $0x2b0] sm:$0xff]  ;;  %v8993_v22 = vld [vmem:[#allocation8 + $0x288] sm:$0xff] }
 0x1a7   :  { %1058 = vmatpush2.msra.mxu0 %v8963_v19  ;;  %1129 = vmatpush2.msra.mxu1 %v8965_v36  ;;  %10518 = vst [vmem:[#allocation140_spill] sm:$0xff] %v8989_v17  ;;  %10519 = vst [vmem:[#allocation141_spill] sm:$0xff] %v8993_v22  ;;  %v8995_v19 = vld [vmem:[#allocation8 + $0x298] sm:$0xff]  ;;  %v8999_v36 = vld [vmem:[#allocation8 + $0x280] sm:$0xff] }
 0x1a8   :  { %1059 = vmatprep.subr.mxu0 %v8969_v26  ;;  %1130 = vmatprep.subr.mxu1 %v8971_v33  ;;  %10520 = vst [vmem:[#allocation142_spill] sm:$0xff] %v8995_v19  ;;  %10521 = vst [vmem:[#allocation143_spill] sm:$0xff] %v8999_v36  ;;  %v9001_v26 = vld [vmem:[#allocation8 + $0x290] sm:$0xff]  ;;  %v9005_v33 = vld [vmem:[#allocation8 + $0x268] sm:$0xff] }
 0x1a9   :  { %1060 = vmatpush2.msra.mxu0 %v8975_v18  ;;  %1131 = vmatpush2.msra.mxu1 %v8977_v31  ;;  %10522 = vst [vmem:[#allocation144_spill] sm:$0xff] %v9001_v26  ;;  %10523 = vst [vmem:[#allocation145_spill] sm:$0xff] %v9005_v33  ;;  %v9007_v18 = vld [vmem:[#allocation8 + $0x278] sm:$0xff]  ;;  %v9011_v31 = vld [vmem:[#allocation8 + $0x260] sm:$0xff] }
 0x1aa   :  { %1061 = vmatprep.subr.mxu0 %v8981_v41  ;;  %1132 = vmatprep.subr.mxu1 %v8983_v30  ;;  %10524 = vst [vmem:[#allocation146_spill] sm:$0xff] %v9007_v18  ;;  %10525 = vst [vmem:[#allocation147_spill] sm:$0xff] %v9011_v31  ;;  %v9013_v41 = vld [vmem:[#allocation8 + $0x270] sm:$0xff]  ;;  %v9017_v30 = vld [vmem:[#allocation8 + $0x248] sm:$0xff] }
 0x1ab   :  { %1062 = vmatpush2.msra.mxu0 %v8987_v37  ;;  %1133 = vmatpush2.msra.mxu1 %v8989_v17  ;;  %10526 = vst [vmem:[#allocation148_spill] sm:$0xff] %v9013_v41  ;;  %v9019_v37 = vld [vmem:[#allocation8 + $0x258] sm:$0xff]  ;;  %v9023_v17 = vld [vmem:[#allocation8 + $0x240] sm:$0xff] }
 0x1ac   :  { %1063 = vmatprep.subr.mxu0 %v8993_v22  ;;  %1134 = vmatprep.subr.mxu1 %v8995_v19  ;;  %10527 = vst [vmem:[#allocation149_spill] sm:$0xff] %v9019_v37  ;;  %v9025_v22 = vld [vmem:[#allocation8 + $0x250] sm:$0xff]  ;;  %v9029_v19 = vld [vmem:[#allocation8 + $0x228] sm:$0xff] }
 0x1ad   :  { %1064 = vmatpush2.msra.mxu0 %v8999_v36  ;;  %1135 = vmatpush2.msra.mxu1 %v9001_v26  ;;  %10528 = vst [vmem:[#allocation150_spill] sm:$0xff] %v9025_v22  ;;  %v9031_v36 = vld [vmem:[#allocation8 + $0x238] sm:$0xff]  ;;  %v9035_v26 = vld [vmem:[#allocation8 + $0x220] sm:$0xff] }
 0x1ae   :  { %1065 = vmatprep.subr.mxu0 %v9005_v33  ;;  %1136 = vmatprep.subr.mxu1 %v9007_v18  ;;  %10529 = vst [vmem:[#allocation151_spill] sm:$0xff] %v9035_v26  ;;  %v9037_v33 = vld [vmem:[#allocation8 + $0x230] sm:$0xff]  ;;  %v9041_v18 = vld [vmem:[#allocation8 + $0x208] sm:$0xff] }
 0x1af   :  { %1066 = vmatpush2.msra.mxu0 %v9011_v31  ;;  %1137 = vmatpush2.msra.mxu1 %v9013_v41  ;;  %10530 = vst [vmem:[#allocation152_spill] sm:$0xff] %v9037_v33  ;;  %v9043_v31 = vld [vmem:[#allocation8 + $0x218] sm:$0xff]  ;;  %v9047_v41 = vld [vmem:[#allocation8 + $0x200] sm:$0xff] }
 0x1b0   :  { %1067 = vmatprep.subr.mxu0 %v9017_v30  ;;  %1138 = vmatprep.subr.mxu1 %v9019_v37  ;;  %10531 = vst [vmem:[#allocation153_spill] sm:$0xff] %v9043_v31  ;;  %10532 = vst [vmem:[#allocation154_spill] sm:$0xff] %v9047_v41  ;;  %v9051_v37 = vld [vmem:[#allocation8 + $0x210] sm:$0xff] }
 0x1b1   :  { %1068 = vmatpush2.msra.mxu0 %v9023_v17  ;;  %1139 = vmatpush2.msra.mxu1 %v9025_v22  ;;  %10533 = vst [vmem:[#allocation155_spill] sm:$0xff] %v9051_v37  ;;  %v10534_v22 = vmov 0.0  }
 0x1b2   :  { %1069 = vmatprep.subr.mxu0 %v9029_v19  ;;  %1140 = vmatprep.subr.mxu1 %v9031_v36 }
 0x1b3   :  { %1070 = vmatpush2.msra.mxu0 %v9035_v26  ;;  %1141 = vmatpush2.msra.mxu1 %v9037_v33  ;;  %v7949_v26 = vld [vmem:[#allocation4 + $0x1e8] sm:$0xff]  ;;  %v7950_v33 = vld [vmem:[#allocation4 + $0x1e0] sm:$0xff] }
 0x1b4   :  { %1071 = vmatprep.subr.mxu0 %v9041_v18  ;;  %1142 = vmatprep.subr.mxu1 %v9043_v31  ;;  %v7951_v31 = vld [vmem:[#allocation4 + $0x1c8] sm:$0xff] }
 0x1b5   :  { %1072 = vmatpush2.msra.mxu0 %v9047_v41  ;;  %1073 = vmatprep.mubr.f32.mxu0 %v10534_v22  ;;  %v7952_v41 = vld [vmem:[#allocation4 + $0x1c0] sm:$0xff] }
 0x1b6   :  { %1143 = vmatpush2.msra.mxu1 %v9051_v37  ;;  %1144 = vmatprep.mubr.f32.mxu1 %v10534_v22  ;;  %v7953_v37 = vld [vmem:[#allocation4 + $0x1a8] sm:$0xff] }
 0x1b7   :  { %1074 = vmatmul.mubr.f32.vlgmr.msra.gmra.mxu0 %v8675_v40  ;;  %1145 = vmatmul.mubr.f32.vlgmr.msra.gmra.mxu1 %v8675_v40  ;;  %v7954_v40 = vld [vmem:[#allocation4 + $0x1a0] sm:$0xff] }
 0x1b8   :  { %1179 = vmatprep.subr.mxu0 %v7949_v26  ;;  %1250 = vmatprep.subr.mxu1 %v8374_v46  ;;  %v7955_v46 = vld [vmem:[#allocation4 + $0x188] sm:$0xff] }
 0x1b9   :  { %1180 = vmatpush1.msra.mxu0 %v7950_v33  ;;  %1251 = vmatpush1.msra.mxu1 %v8377_v47  ;;  %v7956_v47 = vld [vmem:[#allocation4 + $0x180] sm:$0xff] }
 0x1ba   :  { %1181 = vmatprep.subr.mxu0 %v7951_v31  ;;  %1252 = vmatprep.subr.mxu1 %v8381_v48  ;;  %v7957_v48 = vld [vmem:[#allocation4 + $0x168] sm:$0xff] }
 0x1bb   :  { %1182 = vmatpush1.msra.mxu0 %v7952_v41  ;;  %1253 = vmatpush1.msra.mxu1 %v8386_v49  ;;  %v7958_v49 = vld [vmem:[#allocation4 + $0x160] sm:$0xff] }
 0x1bc   :  { %1183 = vmatprep.subr.mxu0 %v7953_v37  ;;  %1254 = vmatprep.subr.mxu1 %v8389_v50  ;;  %v7959_v50 = vld [vmem:[#allocation4 + $0x148] sm:$0xff] }
 0x1bd   :  { %1184 = vmatpush1.msra.mxu0 %v7954_v40  ;;  %1255 = vmatpush1.msra.mxu1 %v8393_v51  ;;  %v7960_v51 = vld [vmem:[#allocation4 + $0x140] sm:$0xff] }
 0x1be   :  { %1185 = vmatprep.subr.mxu0 %v7955_v46  ;;  %1256 = vmatprep.subr.mxu1 %v8397_v52  ;;  %v7961_v52 = vld [vmem:[#allocation4 + $0x128] sm:$0xff] }
 0x1bf   :  { %1186 = vmatpush1.msra.mxu0 %v7956_v47  ;;  %1257 = vmatpush1.msra.mxu1 %v8402_v53  ;;  %v7962_v53 = vld [vmem:[#allocation4 + $0x120] sm:$0xff] }
 0x1c0   :  { %1187 = vmatprep.subr.mxu0 %v7957_v48  ;;  %1258 = vmatprep.subr.mxu1 %v8406_v54  ;;  %v7963_v54 = vld [vmem:[#allocation4 + $0x108] sm:$0xff] }
 0x1c1   :  { %1188 = vmatpush1.msra.mxu0 %v7958_v49  ;;  %1259 = vmatpush1.msra.mxu1 %v8410_v55  ;;  %v7964_v55 = vld [vmem:[#allocation4 + $0x100] sm:$0xff] }
 0x1c2   :  { %1189 = vmatprep.subr.mxu0 %v7959_v50  ;;  %1260 = vmatprep.subr.mxu1 %v8414_v56  ;;  %v7965_v56 = vld [vmem:[#allocation4 + $0xe8] sm:$0xff] }
 0x1c3   :  { %1190 = vmatpush1.msra.mxu0 %v7960_v51  ;;  %1261 = vmatpush1.msra.mxu1 %v8418_v57  ;;  %v7966_v57 = vld [vmem:[#allocation4 + $0xe0] sm:$0xff] }
 0x1c4   :  { %1191 = vmatprep.subr.mxu0 %v7961_v52  ;;  %1262 = vmatprep.subr.mxu1 %v8422_v58  ;;  %v7967_v58 = vld [vmem:[#allocation4 + $0xc8] sm:$0xff] }
 0x1c5   :  { %1192 = vmatpush1.msra.mxu0 %v7962_v53  ;;  %1263 = vmatpush1.msra.mxu1 %v8427_v59  ;;  %v7968_v59 = vld [vmem:[#allocation4 + $0xc0] sm:$0xff] }
 0x1c6   :  { %1193 = vmatprep.subr.mxu0 %v7963_v54  ;;  %1264 = vmatprep.subr.mxu1 %v8431_v60  ;;  %v7969_v60 = vld [vmem:[#allocation4 + $0xa8] sm:$0xff] }
 0x1c7   :  { %1194 = vmatpush1.msra.mxu0 %v7964_v55  ;;  %1265 = vmatpush1.msra.mxu1 %v8435_v61  ;;  %v7970_v61 = vld [vmem:[#allocation4 + $0xa0] sm:$0xff] }
 0x1c8   :  { %1195 = vmatprep.subr.mxu0 %v7965_v56  ;;  %1266 = vmatprep.subr.mxu1 %v8439_v62  ;;  %v7971_v62 = vld [vmem:[#allocation4 + $0x88] sm:$0xff] }
 0x1c9   :  { %1196 = vmatpush1.msra.mxu0 %v7966_v57  ;;  %1267 = vmatpush1.msra.mxu1 %v8443_v63  ;;  %v7972_v63 = vld [vmem:[#allocation4 + $0x80] sm:$0xff]  ;;  %v10542_v57 = vld [vmem:[#allocation51_spill] sm:$0xff] }
 0x1ca   :  { %1197 = vmatprep.subr.mxu0 %v7967_v58  ;;  %1268 = vmatprep.subr.mxu1 %v8447_v1  ;;  %v7973_v1 = vld [vmem:[#allocation4 + $0x68] sm:$0xff]  ;;  %v10543_v58 = vld [vmem:[#allocation52_spill] sm:$0xff] }
 0x1cb   :  { %1198 = vmatpush1.msra.mxu0 %v7968_v59  ;;  %1269 = vmatpush1.msra.mxu1 %v8452_v2  ;;  %v7974_v2 = vld [vmem:[#allocation4 + $0x60] sm:$0xff] }
 0x1cc   :  { %1199 = vmatprep.subr.mxu0 %v7969_v60  ;;  %1270 = vmatprep.subr.mxu1 %v8456_v3  ;;  %v7975_v3 = vld [vmem:[#allocation4 + $0x48] sm:$0xff] }
 0x1cd   :  { %1200 = vmatpush1.msra.mxu0 %v7970_v61  ;;  %1271 = vmatpush1.msra.mxu1 %v8460_v4  ;;  %v7976_v4 = vld [vmem:[#allocation4 + $0x40] sm:$0xff]  ;;  %v10545_v61 = vld [vmem:[#allocation54_spill] sm:$0xff] }
 0x1ce   :  { %1201 = vmatprep.subr.mxu0 %v7971_v62  ;;  %1272 = vmatprep.subr.mxu1 %v8464_v5  ;;  %v7977_v5 = vld [vmem:[#allocation4 + $0x28] sm:$0xff] }
 0x1cf   :  { %1202 = vmatpush1.msra.mxu0 %v7972_v63  ;;  %1273 = vmatpush1.msra.mxu1 %v8468_v6  ;;  %v7978_v6 = vld [vmem:[#allocation4 + $0x20] sm:$0xff] }
 0x1d0   :  { %1203 = vmatprep.subr.mxu0 %v7973_v1  ;;  %1274 = vmatprep.subr.mxu1 %v8472_v7  ;;  %v7979_v7 = vld [vmem:[#allocation4 + $0x8] sm:$0xff]  ;;  %v10546_v1 = vld [vmem:[#allocation55_spill] sm:$0xff] }
 0x1d1   :  { %1204 = vmatpush1.msra.mxu0 %v7974_v2  ;;  %1275 = vmatpush1.msra.mxu1 %v8477_v8  ;;  %v7980_v8 = vld [vmem:[#allocation4] sm:$0xff] }
 0x1d2   :  { %1205 = vmatprep.subr.mxu0 %v7975_v3  ;;  %1276 = vmatprep.subr.mxu1 %v8481_v9  ;;  %v9097_v9 = vpop.f32.mrf.mxu0  ;;  %v10544_v60 = vld [vmem:[#allocation53_spill] sm:$0xff]  ;;  %v10547_v2 = vld [vmem:[#allocation56_spill] sm:$0xff] }
 0x1d3   :  { %1206 = vmatpush1.msra.mxu0 %v7976_v4  ;;  %1277 = vmatpush1.msra.mxu1 %v8485_v10  ;;  %v260_v10 = vadd.f32 %v8628_v43, %v8618_v44  ;;  %v10548_v3 = vld [vmem:[#allocation57_spill] sm:$0xff]  ;;  %v10549_v4 = vld [vmem:[#allocation58_spill] sm:$0xff] }
 0x1d4   :  { %1207 = vmatprep.subr.mxu0 %v7977_v5  ;;  %1278 = vmatprep.subr.mxu1 %v8489_v11 }
 0x1d5   :  { %1208 = vmatpush1.msra.mxu0 %v7978_v6  ;;  %1279 = vmatpush1.msra.mxu1 %v8493_v12  ;;  %v262_v12 = vadd.f32 %v8630_v39, %v8624_v0  ;;  %v10550_v6 = vld [vmem:[#allocation59_spill] sm:$0xff] }
 0x1d6   :  { %1209 = vmatprep.subr.mxu0 %v7979_v7  ;;  %1280 = vmatprep.subr.mxu1 %v8497_v13  ;;  %v10551_v7 = vld [vmem:[#allocation60_spill] sm:$0xff] }
 0x1d7   :  { %1210 = vmatpush1.msra.mxu0 %v7980_v8  ;;  %1281 = vmatpush1.msra.mxu1 %v8502_v14  ;;  %v10552_v8 = vld [vmem:[#allocation61_spill] sm:$0xff] }
 0x1d8   :  { %1243 = vmatprep.mubr.f32.mxu0 %v10534_v22  ;;  %1314 = vmatprep.mubr.f32.mxu1 %v10534_v22 }
 0x1d9   :  { %1349 = vmatprep.subr.mxu0 %v8554_v15  ;;  %1420 = vmatprep.subr.mxu1 %v8556_v16 }
 0x236   :  { %v755_v11 = vpop.f32.mrf.mxu0  ;;  %v826_v31 = vpop.f32.mrf.mxu1 }
 0x237   :  { %v831_v13 = vadd.f32 %v755_v11, %v260_v10  ;;  %v833_v15 = vadd.f32 %v826_v31, %v8575_v27  ;;  %v10553_v10 = vld [vmem:[#allocation62_spill] sm:$0xff]  ;;  %v10554_v11 = vld [vmem:[#allocation63_spill] sm:$0xff] }
 0x238   :  { %v757_v37 = vpop.f32.mrf.mxu0  ;;  %v828_v16 = vpop.f32.mrf.mxu1  ;;  %v10559_v31 = vld [vmem:[#allocation67_spill] sm:$0xff] }
 0x239   :  { %v7384_v14 = vmul.f32 -1.442695, %v831_v13  ;;  %v832_v26 = vadd.f32 %v757_v37, %v262_v12  ;;  %v7386_v41 = vmul.f32 -1.442695, %v833_v15  ;;  %v834_v40 = vadd.f32 %v828_v16, %v8578_v29  ;;  %v10555_v12 = vld [vmem:[#allocation64_spill] sm:$0xff]  ;;  %v10556_v13 = vld [vmem:[#allocation18_spill] sm:$0xff] }
 0x23a   :  { %v10560_v15 = vld [vmem:[#allocation68_spill] sm:$0xff]  ;;  %v10561_v16 = vld [vmem:[#allocation69_spill] sm:$0xff] }
 0x23b   :  { %7549 = vpow2.f32 %v7384_v14  ;;  %v7385_v33 = vmul.f32 -1.442695, %v832_v26  ;;  %v10557_v14 = vld [vmem:[#allocation65_spill] sm:$0xff]  ;;  %v10558_v26 = vld [vmem:[#allocation66_spill] sm:$0xff] }
 0x23d   :  { %7551 = vpow2.f32 %v7385_v33 }
 0x23e   :  { %7553 = vpow2.f32 %v7386_v41  ;;  %v10562_v41 = vld [vmem:[#allocation70_spill] sm:$0xff] }
 0x23f   :  { %7555 = vtanh.f32 %v834_v40  ;;  %v10563_v40 = vld [vmem:[#allocation71_spill] sm:$0xff] }
 0x248   :  { %v7550_v46 = vpop.eup %7549 }
 0x249   :  { %v844_v43 = vadd.f32 1.0, %v7550_v46  ;;  %v10564_v46 = vld [vmem:[#allocation72_spill] sm:$0xff] }
 0x24a   :  { %v7552_v44 = vpop.eup %7551 }
 0x24b   :  { %7557 = vrcp.f32 %v844_v43  ;;  %v845_v39 = vadd.f32 1.0, %v7552_v44  ;;  %v7554_v47 = vpop.eup %7553  ;;  %v10565_v44 = vld [vmem:[#allocation73_spill] sm:$0xff] }
 0x24c   :  { %v7556_v48 = vpop.eup %7555  ;;  %v846_v52 = vadd.f32 1.0, %v7554_v47  ;;  %v10567_v47 = vld [vmem:[#allocation75_spill] sm:$0xff] }
 0x24d   :  { %7559 = vrcp.f32 %v845_v39  ;;  %v10566_v39 = vld [vmem:[#allocation74_spill] sm:$0xff] }
 0x24e   :  { %7561 = vrcp.f32 %v846_v52  ;;  %v10571_v52 = vld [vmem:[#allocation78_spill] sm:$0xff] }
 0x258   :  { %v7558_v49 = vpop.eup %7557 }
 0x259   :  { %v855_v50 = vmul.f32 %v7558_v49, %v7556_v48  ;;  %v10568_v48 = vld [vmem:[#allocation76_spill] sm:$0xff]  ;;  %v10569_v49 = vld [vmem:[#allocation19_spill] sm:$0xff] }
 0x25a   :  { %v7560_v51 = vpop.eup %7559 }
 0x25b   :  { %v854_v27 = vmul.f32 %v7560_v51, %v8672_v38  ;;  %v7562_v29 = vpop.eup %7561  ;;  %v987_v38 = vld [vmem:[#allocation9] sm:$0xf] }
 0x25c   :  { %v9152_v37 = vrot.slane %v987_v38, %v10556_v13  ;;  %v10570_v51 = vld [vmem:[#allocation77_spill] sm:$0xff] }
 0x25d   :  { %v9106_v53 = vadd.f32 %v855_v50, %v854_v27  ;;  %v9168_v50 = vrot.slane %v987_v38, %v10569_v49 }
 0x25f   :  { %7563 = vtanh.f32 %v9106_v53 }
 0x26c   :  { %v7564_v54 = vpop.eup %7563 }
 0x26d   :  { %v9109_v55 = vmul.f32 %v7564_v54, %v7562_v29  ;;  %v10572_v29 = vld [vmem:[#allocation79_spill] sm:$0xff]  ;;  %v10573_v54 = vld [vmem:[#allocation80_spill] sm:$0xff] }
 0x26f   :  { %1244 = vmatmul.mubr.f32.vlgmr.msra.gmra.mxu0 %v9109_v55  ;;  %1315 = vmatmul.mubr.f32.vlgmr.msra.gmra.mxu1 %v9109_v55 }
 0x270   :  { %1350 = vmatpush1.msra.mxu0 %v8677_v42  ;;  %1421 = vmatpush1.msra.mxu1 %v8679_v28  ;;  %v9124_v42 = vrot.slane %v987_v38, %v8610_v32  ;;  %v10535_v28 = vld [vmem:[#allocation45_spill] sm:$0xff] }
 0x271   :  { %1351 = vmatprep.subr.mxu0 %v8681_v34  ;;  %1422 = vmatprep.subr.mxu1 %v8683_v20  ;;  %v10536_v34 = vld [vmem:[#allocation46_spill] sm:$0xff]  ;;  %v10537_v20 = vld [vmem:[#allocation47_spill] sm:$0xff] }
 0x272   :  { %1352 = vmatpush1.msra.mxu0 %v8687_v45  ;;  %1423 = vmatpush1.msra.mxu1 %v8689_v21  ;;  %v10538_v45 = vld [vmem:[#allocation48_spill] sm:$0xff]  ;;  %v10539_v21 = vld [vmem:[#allocation31_spill] sm:$0xff] }
 0x273   :  { %1353 = vmatprep.subr.mxu0 %v8693_v24  ;;  %1424 = vmatprep.subr.mxu1 %v8695_v35  ;;  %v9131_v56 = vrot.slane %v987_v38, %v10539_v21  ;;  %v10540_v35 = vld [vmem:[#allocation49_spill] sm:$0xff] }
 0x274   :  { %1354 = vmatpush1.msra.mxu0 %v8699_v25  ;;  %1425 = vmatpush1.msra.mxu1 %v8701_v23  ;;  %v10541_v25 = vld [vmem:[#allocation50_spill] sm:$0xff] }
 0x275   :  { %1355 = vmatprep.subr.mxu0 %v10535_v28  ;;  %1426 = vmatprep.subr.mxu1 %v10536_v34  ;;  %v10574_v34 = vld [vmem:[#allocation81_spill] sm:$0xff] }
 0x276   :  { %1356 = vmatpush1.msra.mxu0 %v10537_v20  ;;  %1427 = vmatpush1.msra.mxu1 %v10538_v45  ;;  %v10575_v20 = vld [vmem:[#allocation82_spill] sm:$0xff]  ;;  %v10576_v45 = vld [vmem:[#allocation83_spill] sm:$0xff] }
 0x277   :  { %v1075_v24 = vpop.f32.mrf.mxu0  ;;  %1357 = vmatprep.subr.mxu0 %v10540_v35  ;;  %1428 = vmatprep.subr.mxu1 %v10541_v25  ;;  %v1146_v33 = vpop.f32.mrf.mxu1  ;;  %v10578_v25 = vld [vmem:[#allocation85_spill] sm:$0xff] }
 0x278   :  { %v1076_v23 = vadd.f32 %v1075_v24, %v9124_v42  ;;  %1358 = vmatpush1.msra.mxu0 %v10542_v57  ;;  %1429 = vmatpush1.msra.mxu1 %v10543_v58  ;;  %v1147_v43 = vadd.f32 %v1146_v33, %v9152_v37  ;;  %v10577_v24 = vld [vmem:[#allocation84_spill] sm:$0xff]  ;;  %v10580_v58 = vld [vmem:[#allocation87_spill] sm:$0xff] }
 0x279   :  { %v1077_v59 = vpop.f32.mrf.mxu0  ;;  %1359 = vmatprep.subr.mxu0 %v10544_v60  ;;  %1430 = vmatprep.subr.mxu1 %v10545_v61  ;;  %v1148_v27 = vpop.f32.mrf.mxu1  ;;  %v10582_v61 = vld [vmem:[#allocation89_spill] sm:$0xff]  ;;  %v10597_v33 = vld [vmem:[#allocation104_spill] sm:$0xff] }
 0x27a   :  { %v7387_v62 = vmul.f32 -1.442695, %v1076_v23  ;;  %v1078_v63 = vadd.f32 %v1077_v59, %v9131_v56  ;;  %1360 = vmatpush1.msra.mxu0 %v10546_v1  ;;  %1431 = vmatpush1.msra.mxu1 %v10547_v2  ;;  %v7389_v28 = vmul.f32 -1.442695, %v1147_v43  ;;  %v1149_v35 = vadd.f32 %v1148_v27, %v9168_v50  ;;  %v10579_v23 = vld [vmem:[#allocation86_spill] sm:$0xff]  ;;  %v10581_v59 = vld [vmem:[#allocation88_spill] sm:$0xff] }
 0x27b   :  { %1361 = vmatprep.subr.mxu0 %v10548_v3  ;;  %1432 = vmatprep.subr.mxu1 %v10549_v4  ;;  %v10584_v1 = vld [vmem:[#allocation91_spill] sm:$0xff]  ;;  %v10585_v2 = vld [vmem:[#allocation92_spill] sm:$0xff]  ;;  %v10586_v3 = vld [vmem:[#allocation93_spill] sm:$0xff] }
 0x27c   :  { %7565 = vpow2.f32 %v7387_v62  ;;  %v7388_v5 = vmul.f32 -1.442695, %v1078_v63  ;;  %1362 = vmatpush1.msra.mxu0 %v10550_v6  ;;  %1433 = vmatpush1.msra.mxu1 %v10551_v7  ;;  %v10583_v62 = vld [vmem:[#allocation90_spill] sm:$0xff]  ;;  %v10589_v6 = vld [vmem:[#allocation96_spill] sm:$0xff]  ;;  %v10590_v7 = vld [vmem:[#allocation97_spill] sm:$0xff] }
 0x27d   :  { %1363 = vmatprep.subr.mxu0 %v10552_v8  ;;  %1434 = vmatprep.subr.mxu1 %v10553_v10  ;;  %v10587_v4 = vld [vmem:[#allocation94_spill] sm:$0xff]  ;;  %v10592_v10 = vld [vmem:[#allocation99_spill] sm:$0xff] }
 0x27e   :  { %7567 = vpow2.f32 %v7388_v5  ;;  %1364 = vmatpush1.msra.mxu0 %v10554_v11  ;;  %1435 = vmatpush1.msra.mxu1 %v10555_v12  ;;  %v10588_v5 = vld [vmem:[#allocation95_spill] sm:$0xff]  ;;  %v10591_v8 = vld [vmem:[#allocation98_spill] sm:$0xff]  ;;  %v10593_v11 = vld [vmem:[#allocation100_spill] sm:$0xff] }
 0x27f   :  { %1365 = vmatprep.subr.mxu0 %v10557_v14  ;;  %1436 = vmatprep.subr.mxu1 %v10558_v26  ;;  %7569 = vpow2.f32 %v7389_v28  ;;  %v10594_v12 = vld [vmem:[#allocation101_spill] sm:$0xff]  ;;  %v10595_v14 = vld [vmem:[#allocation102_spill] sm:$0xff]  ;;  %v10596_v26 = vld [vmem:[#allocation103_spill] sm:$0xff] }
 0x280   :  { %1366 = vmatpush1.msra.mxu0 %v10559_v31  ;;  %1437 = vmatpush1.msra.mxu1 %v10560_v15  ;;  %v10598_v31 = vld [vmem:[#allocation105_spill] sm:$0xff]  ;;  %v10599_v15 = vld [vmem:[#allocation106_spill] sm:$0xff]  ;;  %v10604_v43 = vld [vmem:[#allocation111_spill] sm:$0xff] }
 0x281   :  { %1367 = vmatprep.subr.mxu0 %v10561_v16  ;;  %1438 = vmatprep.subr.mxu1 %v10562_v41  ;;  %v10600_v16 = vld [vmem:[#allocation107_spill] sm:$0xff]  ;;  %v10601_v41 = vld [vmem:[#allocation108_spill] sm:$0xff] }
 0x282   :  { %1368 = vmatpush1.msra.mxu0 %v10563_v40  ;;  %1439 = vmatpush1.msra.mxu1 %v10564_v46  ;;  %v10602_v40 = vld [vmem:[#allocation109_spill] sm:$0xff]  ;;  %v10603_v46 = vld [vmem:[#allocation110_spill] sm:$0xff] }
 0x283   :  { %1369 = vmatprep.subr.mxu0 %v10565_v44  ;;  %1440 = vmatprep.subr.mxu1 %v10566_v39  ;;  %v10605_v44 = vld [vmem:[#allocation112_spill] sm:$0xff]  ;;  %v10606_v39 = vld [vmem:[#allocation113_spill] sm:$0xff] }
 0x284   :  { %1370 = vmatpush1.msra.mxu0 %v10567_v47  ;;  %1441 = vmatpush1.msra.mxu1 %v10568_v48  ;;  %v10607_v47 = vld [vmem:[#allocation114_spill] sm:$0xff] }
 0x285   :  { %1371 = vmatprep.subr.mxu0 %v10570_v51  ;;  %1442 = vmatprep.subr.mxu1 %v10571_v52  ;;  %v10608_v51 = vld [vmem:[#allocation115_spill] sm:$0xff]  ;;  %v10609_v52 = vld [vmem:[#allocation116_spill] sm:$0xff] }
 0x286   :  { %1372 = vmatpush1.msra.mxu0 %v10572_v29  ;;  %1443 = vmatpush1.msra.mxu1 %v10573_v54  ;;  %v10610_v29 = vld [vmem:[#allocation117_spill] sm:$0xff]  ;;  %v10611_v54 = vld [vmem:[#allocation118_spill] sm:$0xff] }
 0x287   :  { %1373 = vmatprep.subr.mxu0 %v10574_v34  ;;  %1444 = vmatprep.subr.mxu1 %v10575_v20  ;;  %v10612_v34 = vld [vmem:[#allocation119_spill] sm:$0xff]  ;;  %v10613_v20 = vld [vmem:[#allocation120_spill] sm:$0xff] }
 0x288   :  { %1374 = vmatpush1.msra.mxu0 %v10576_v45  ;;  %1445 = vmatpush1.msra.mxu1 %v10577_v24 }
 0x289   :  { %v7566_v38 = vpop.eup %7565  ;;  %1375 = vmatprep.subr.mxu0 %v10578_v25  ;;  %1446 = vmatprep.subr.mxu1 %v10579_v23 }
 0x28a   :  { %v1160_v57 = vadd.f32 1.0, %v7566_v38  ;;  %1376 = vmatpush1.msra.mxu0 %v10580_v58  ;;  %1447 = vmatpush1.msra.mxu1 %v10581_v59  ;;  %v10614_v38 = vld [vmem:[#allocation121_spill] sm:$0xff]  ;;  %v10617_v58 = vld [vmem:[#allocation124_spill] sm:$0xff] }
 0x28b   :  { %v7568_v60 = vpop.eup %7567  ;;  %1377 = vmatprep.subr.mxu0 %v10582_v61  ;;  %1448 = vmatprep.subr.mxu1 %v10583_v62  ;;  %v10618_v59 = vld [vmem:[#allocation125_spill] sm:$0xff]  ;;  %v10620_v62 = vld [vmem:[#allocation127_spill] sm:$0xff] }
 0x28c   :  { %7571 = vrcp.f32 %v1160_v57  ;;  %v1161_v63 = vadd.f32 1.0, %v7568_v60  ;;  %1378 = vmatpush1.msra.mxu0 %v10584_v1  ;;  %1449 = vmatpush1.msra.mxu1 %v10585_v2  ;;  %v7570_v48 = vpop.eup %7569  ;;  %v10616_v57 = vld [vmem:[#allocation123_spill] sm:$0xff]  ;;  %v10619_v60 = vld [vmem:[#allocation126_spill] sm:$0xff]  ;;  %v10622_v1 = vld [vmem:[#allocation129_spill] sm:$0xff] }
 0x28d   :  { %7573 = vtanh.f32 %v1149_v35  ;;  %1379 = vmatprep.subr.mxu0 %v10586_v3  ;;  %1450 = vmatprep.subr.mxu1 %v10587_v4  ;;  %v1162_v24 = vadd.f32 1.0, %v7570_v48  ;;  %v10615_v35 = vld [vmem:[#allocation122_spill] sm:$0xff]  ;;  %v10624_v3 = vld [vmem:[#allocation131_spill] sm:$0xff]  ;;  %v10625_v4 = vld [vmem:[#allocation132_spill] sm:$0xff] }
 0x28e   :  { %7575 = vrcp.f32 %v1161_v63  ;;  %1380 = vmatpush1.msra.mxu0 %v10588_v5  ;;  %1451 = vmatpush1.msra.mxu1 %v10589_v6  ;;  %v10621_v63 = vld [vmem:[#allocation128_spill] sm:$0xff]  ;;  %v10623_v2 = vld [vmem:[#allocation130_spill] sm:$0xff]  ;;  %v10626_v5 = vld [vmem:[#allocation133_spill] sm:$0xff] }
 0x28f   :  { %1381 = vmatprep.subr.mxu0 %v10590_v7  ;;  %1452 = vmatprep.subr.mxu1 %v10591_v8  ;;  %7577 = vrcp.f32 %v1162_v24  ;;  %v10627_v6 = vld [vmem:[#allocation134_spill] sm:$0xff]  ;;  %v10628_v7 = vld [vmem:[#allocation135_spill] sm:$0xff]  ;;  %v10629_v8 = vld [vmem:[#allocation136_spill] sm:$0xff] }
 0x290   :  { %1382 = vmatpush2.msra.mxu0 %v10592_v10  ;;  %1453 = vmatpush2.msra.mxu1 %v10593_v11  ;;  %v10630_v10 = vld [vmem:[#allocation137_spill] sm:$0xff]  ;;  %v10631_v11 = vld [vmem:[#allocation138_spill] sm:$0xff]  ;;  %v10645_v48 = vld [vmem:[#allocation152_spill] sm:$0xff] }
 0x291   :  { %1383 = vmatprep.subr.mxu0 %v10594_v12  ;;  %1454 = vmatprep.subr.mxu1 %v10595_v14  ;;  %v10632_v12 = vld [vmem:[#allocation139_spill] sm:$0xff]  ;;  %v10633_v14 = vld [vmem:[#allocation140_spill] sm:$0xff] }
 0x292   :  { %1384 = vmatpush2.msra.mxu0 %v10596_v26  ;;  %1455 = vmatpush2.msra.mxu1 %v10597_v33  ;;  %v10634_v26 = vld [vmem:[#allocation141_spill] sm:$0xff]  ;;  %v10635_v33 = vld [vmem:[#allocation142_spill] sm:$0xff] }
 0x293   :  { %1385 = vmatprep.subr.mxu0 %v10598_v31  ;;  %1456 = vmatprep.subr.mxu1 %v10599_v15  ;;  %v10636_v31 = vld [vmem:[#allocation143_spill] sm:$0xff]  ;;  %v10637_v15 = vld [vmem:[#allocation144_spill] sm:$0xff] }
 0x294   :  { %1386 = vmatpush2.msra.mxu0 %v10600_v16  ;;  %1457 = vmatpush2.msra.mxu1 %v10601_v41  ;;  %v10638_v16 = vld [vmem:[#allocation145_spill] sm:$0xff]  ;;  %v10639_v41 = vld [vmem:[#allocation146_spill] sm:$0xff] }
 0x295   :  { %1387 = vmatprep.subr.mxu0 %v10602_v40  ;;  %1458 = vmatprep.subr.mxu1 %v10603_v46  ;;  %v10640_v40 = vld [vmem:[#allocation147_spill] sm:$0xff]  ;;  %v10641_v46 = vld [vmem:[#allocation148_spill] sm:$0xff] }
 0x296   :  { %1388 = vmatpush2.msra.mxu0 %v10604_v43  ;;  %1459 = vmatpush2.msra.mxu1 %v10605_v44  ;;  %v10642_v43 = vld [vmem:[#allocation149_spill] sm:$0xff]  ;;  %v10643_v44 = vld [vmem:[#allocation150_spill] sm:$0xff] }
 0x297   :  { %1389 = vmatprep.subr.mxu0 %v10606_v39  ;;  %1460 = vmatprep.subr.mxu1 %v10607_v47  ;;  %v10644_v47 = vld [vmem:[#allocation151_spill] sm:$0xff]  ;;  %v1570_v24 = vld [vmem:[#allocation11 + $0x1b8] sm:$0xff] }
 0x298   :  { %1390 = vmatpush2.msra.mxu0 %v10608_v51  ;;  %1461 = vmatpush2.msra.mxu1 %v10609_v52  ;;  %v1576_v51 = vld [vmem:[#allocation11 + $0x1e8] sm:$0xff]  ;;  %v1578_v52 = vld [vmem:[#allocation11 + $0x1f8] sm:$0xff] }
 0x299   :  { %v7572_v27 = vpop.eup %7571  ;;  %1391 = vmatprep.subr.mxu0 %v10610_v29  ;;  %1462 = vmatprep.subr.mxu1 %v10611_v54  ;;  %v10647_v29 = vld [vmem:[#allocation154_spill] sm:$0xff] }
 0x29a   :  { %v7574_v28 = vpop.eup %7573  ;;  %1392 = vmatpush2.msra.mxu0 %v10612_v34  ;;  %1463 = vmatpush2.msra.mxu1 %v10613_v20  ;;  %v1574_v34 = vld [vmem:[#allocation11 + $0x1d8] sm:$0xff]  ;;  %v1573_v20 = vld [vmem:[#allocation11 + $0x1d0] sm:$0xff] }
 0x29b   :  { %v7576_v45 = vpop.eup %7575  ;;  %1393 = vmatprep.subr.mxu0 %v10614_v38  ;;  %1464 = vmatprep.subr.mxu1 %v10615_v35  ;;  %v1171_v23 = vmul.f32 %v7574_v28, %v7572_v27  ;;  %v1572_v28 = vld [vmem:[#allocation11 + $0x1c8] sm:$0xff]  ;;  %v1567_v38 = vld [vmem:[#allocation11 + $0x1a0] sm:$0xff]  ;;  %v1569_v35 = vld [vmem:[#allocation11 + $0x1b0] sm:$0xff] }
 0x29c   :  { %v1170_v25 = vmul.f32 0.0, %v7576_v45  ;;  %1394 = vmatpush2.msra.mxu0 %v10616_v57  ;;  %1465 = vmatpush2.msra.mxu1 %v10617_v58  ;;  %v7578_v39 = vpop.eup %7577  ;;  %v1568_v45 = vld [vmem:[#allocation11 + $0x1a8] sm:$0xff]  ;;  %v1563_v57 = vld [vmem:[#allocation11 + $0x180] sm:$0xff]  ;;  %v1565_v58 = vld [vmem:[#allocation11 + $0x190] sm:$0xff] }
 0x29d   :  { %1395 = vmatprep.subr.mxu0 %v10618_v59  ;;  %1466 = vmatprep.subr.mxu1 %v10619_v60  ;;  %v1562_v59 = vld [vmem:[#allocation11 + $0x178] sm:$0xff]  ;;  %v1559_v60 = vld [vmem:[#allocation11 + $0x160] sm:$0xff] }
 0x29e   :  { %v9221_v61 = vadd.f32 %v1171_v23, %v1170_v25  ;;  %1396 = vmatpush2.msra.mxu0 %v10620_v62  ;;  %1467 = vmatpush2.msra.mxu1 %v10621_v63  ;;  %v1564_v25 = vld [vmem:[#allocation11 + $0x188] sm:$0xff]  ;;  %v1566_v23 = vld [vmem:[#allocation11 + $0x198] sm:$0xff]  ;;  %v1561_v62 = vld [vmem:[#allocation11 + $0x170] sm:$0xff] }
 0x29f   :  { %1397 = vmatprep.subr.mxu0 %v10622_v1  ;;  %1468 = vmatprep.subr.mxu1 %v10623_v2  ;;  %v1556_v63 = vld [vmem:[#allocation11 + $0x148] sm:$0xff]  ;;  %v1558_v1 = vld [vmem:[#allocation11 + $0x158] sm:$0xff]  ;;  %v1555_v2 = vld [vmem:[#allocation11 + $0x140] sm:$0xff] }
 0x2a0   :  { %7579 = vtanh.f32 %v9221_v61  ;;  %1398 = vmatpush2.msra.mxu0 %v10624_v3  ;;  %1469 = vmatpush2.msra.mxu1 %v10625_v4  ;;  %v1557_v3 = vld [vmem:[#allocation11 + $0x150] sm:$0xff]  ;;  %v1552_v4 = vld [vmem:[#allocation11 + $0x128] sm:$0xff] }
 0x2a1   :  { %1399 = vmatprep.subr.mxu0 %v10626_v5  ;;  %1470 = vmatprep.subr.mxu1 %v10627_v6  ;;  %v1554_v5 = vld [vmem:[#allocation11 + $0x138] sm:$0xff]  ;;  %v1551_v6 = vld [vmem:[#allocation11 + $0x120] sm:$0xff] }
 0x2a2   :  { %1400 = vmatpush2.msra.mxu0 %v10628_v7  ;;  %1471 = vmatpush2.msra.mxu1 %v10629_v8  ;;  %v1553_v7 = vld [vmem:[#allocation11 + $0x130] sm:$0xff]  ;;  %v1548_v8 = vld [vmem:[#allocation11 + $0x108] sm:$0xff] }
 0x2a3   :  { %1401 = vmatprep.subr.mxu0 %v10630_v10  ;;  %1472 = vmatprep.subr.mxu1 %v10631_v11  ;;  %v1550_v10 = vld [vmem:[#allocation11 + $0x118] sm:$0xff]  ;;  %v1547_v11 = vld [vmem:[#allocation11 + $0x100] sm:$0xff] }
 0x2a4   :  { %1402 = vmatpush2.msra.mxu0 %v10632_v12  ;;  %1473 = vmatpush2.msra.mxu1 %v10633_v14  ;;  %v1549_v12 = vld [vmem:[#allocation11 + $0x110] sm:$0xff]  ;;  %v1544_v14 = vld [vmem:[#allocation11 + $0xe8] sm:$0xff] }
 0x2a5   :  { %1403 = vmatprep.subr.mxu0 %v10634_v26  ;;  %1474 = vmatprep.subr.mxu1 %v10635_v33  ;;  %v1546_v26 = vld [vmem:[#allocation11 + $0xf8] sm:$0xff]  ;;  %v1543_v33 = vld [vmem:[#allocation11 + $0xe0] sm:$0xff] }
 0x2a6   :  { %1404 = vmatpush2.msra.mxu0 %v10636_v31  ;;  %1475 = vmatpush2.msra.mxu1 %v10637_v15  ;;  %v1545_v31 = vld [vmem:[#allocation11 + $0xf0] sm:$0xff]  ;;  %v1540_v15 = vld [vmem:[#allocation11 + $0xc8] sm:$0xff] }
 0x2a7   :  { %1405 = vmatprep.subr.mxu0 %v10638_v16  ;;  %1476 = vmatprep.subr.mxu1 %v10639_v41  ;;  %v1542_v16 = vld [vmem:[#allocation11 + $0xd8] sm:$0xff]  ;;  %v1539_v41 = vld [vmem:[#allocation11 + $0xc0] sm:$0xff] }
 0x2a8   :  { %1406 = vmatpush2.msra.mxu0 %v10640_v40  ;;  %1477 = vmatpush2.msra.mxu1 %v10641_v46  ;;  %v1541_v40 = vld [vmem:[#allocation11 + $0xd0] sm:$0xff]  ;;  %v1536_v46 = vld [vmem:[#allocation11 + $0xa8] sm:$0xff] }
 0x2a9   :  { %1407 = vmatprep.subr.mxu0 %v9017_v30  ;;  %1478 = vmatprep.subr.mxu1 %v10642_v43  ;;  %v10646_v30 = vld [vmem:[#allocation153_spill] sm:$0xff] }
 0x2aa   :  { %1408 = vmatpush2.msra.mxu0 %v9023_v17  ;;  %1479 = vmatpush2.msra.mxu1 %v10643_v44  ;;  %v10648_v17 = vld [vmem:[#allocation155_spill] sm:$0xff]  ;;  %v1538_v43 = vld [vmem:[#allocation11 + $0xb8] sm:$0xff]  ;;  %v1535_v44 = vld [vmem:[#allocation11 + $0xa0] sm:$0xff] }
 0x2ab   :  { %1409 = vmatprep.subr.mxu0 %v9029_v19  ;;  %1480 = vmatprep.subr.mxu1 %v9031_v36  ;;  %v1575_v19 = vld [vmem:[#allocation11 + $0x1e0] sm:$0xff]  ;;  %v1577_v36 = vld [vmem:[#allocation11 + $0x1f0] sm:$0xff] }
 0x2ac   :  { %1410 = vmatpush2.msra.mxu0 %v10644_v47  ;;  %1481 = vmatpush2.msra.mxu1 %v10645_v48  ;;  %v1532_v47 = vld [vmem:[#allocation11 + $0x88] sm:$0xff]  ;;  %v1534_v48 = vld [vmem:[#allocation11 + $0x98] sm:$0xff] }
 0x2ad   :  { %v7580_v27 = vpop.eup %7579  ;;  %1411 = vmatprep.subr.mxu0 %v9041_v18  ;;  %1482 = vmatprep.subr.mxu1 %v10646_v30  ;;  %v1571_v18 = vld [vmem:[#allocation11 + $0x1c0] sm:$0xff]  ;;  %v1530_v30 = vld [vmem:[#allocation11 + $0x78] sm:$0xff] }
 0x2ae   :  { %1412 = vmatpush2.msra.mxu0 %v10647_v29  ;;  %1483 = vmatpush2.msra.mxu1 %v10648_v17  ;;  %v9258_v54 = vmul.f32 %v7580_v27, %v7578_v39  ;;  %v1537_v39 = vld [vmem:[#allocation11 + $0xb0] sm:$0xff]  ;;  %v1528_v27 = vld [vmem:[#allocation11 + $0x68] sm:$0xff]  ;;  %v1527_v29 = vld [vmem:[#allocation11 + $0x60] sm:$0xff] }
 0x2af   :  { %1665 = vmatprep.subr.mxu0 %v1576_v51  ;;  %1736 = vmatprep.subr.mxu1 %v1578_v52  ;;  %v1531_v51 = vld [vmem:[#allocation11 + $0x80] sm:$0xff]  ;;  %v1533_v52 = vld [vmem:[#allocation11 + $0x90] sm:$0xff] }
 0x2b0   :  { %1413 = vmatprep.mubr.f32.mxu0 %v9258_v54  ;;  %1484 = vmatprep.mubr.f32.mxu1 %v9258_v54  ;;  %v1529_v17 = vld [vmem:[#allocation11 + $0x70] sm:$0xff] }
 0x2b1   :  { %1414 = vmatmul.mubr.f32.vlgmr.msra.gmra.mxu0 %v9109_v55  ;;  %1485 = vmatmul.mubr.f32.vlgmr.msra.gmra.mxu1 %v9109_v55  ;;  %v1560_v55 = vld [vmem:[#allocation11 + $0x168] sm:$0xff] }
 0x2b2   :  { %1666 = vmatpush1.msra.mxu0 %v1575_v19  ;;  %1737 = vmatpush1.msra.mxu1 %v1577_v36  ;;  %v1524_v19 = vld [vmem:[#allocation11 + $0x48] sm:$0xff]  ;;  %v1526_v36 = vld [vmem:[#allocation11 + $0x58] sm:$0xff] }
 0x2b3   :  { %1667 = vmatprep.subr.mxu0 %v1572_v28  ;;  %1738 = vmatprep.subr.mxu1 %v1574_v34  ;;  %v1523_v28 = vld [vmem:[#allocation11 + $0x40] sm:$0xff]  ;;  %v1525_v34 = vld [vmem:[#allocation11 + $0x50] sm:$0xff] }
 0x2b4   :  { %1668 = vmatpush1.msra.mxu0 %v1571_v18  ;;  %1739 = vmatpush1.msra.mxu1 %v1573_v20  ;;  %v1520_v18 = vld [vmem:[#allocation11 + $0x28] sm:$0xff]  ;;  %v1522_v20 = vld [vmem:[#allocation11 + $0x38] sm:$0xff] }
 0x2b5   :  { %1669 = vmatprep.subr.mxu0 %v1568_v45  ;;  %1740 = vmatprep.subr.mxu1 %v1570_v24  ;;  %v1519_v45 = vld [vmem:[#allocation11 + $0x20] sm:$0xff]  ;;  %v1521_v24 = vld [vmem:[#allocation11 + $0x30] sm:$0xff] }
 0x2b6   :  { %1670 = vmatpush1.msra.mxu0 %v1567_v38  ;;  %1741 = vmatpush1.msra.mxu1 %v1569_v35  ;;  %v1516_v38 = vld [vmem:[#allocation11 + $0x8] sm:$0xff]  ;;  %v1518_v35 = vld [vmem:[#allocation11 + $0x18] sm:$0xff] }
 0x2b7   :  { %1671 = vmatprep.subr.mxu0 %v1564_v25  ;;  %1742 = vmatprep.subr.mxu1 %v1566_v23  ;;  %v1515_v25 = vld [vmem:[#allocation11] sm:$0xff]  ;;  %v1517_v23 = vld [vmem:[#allocation11 + $0x10] sm:$0xff] }
 0x2b8   :  { %1672 = vmatpush1.msra.mxu0 %v1563_v57  ;;  %1743 = vmatpush1.msra.mxu1 %v1565_v58  ;;  %v1640_v57 = vld [vmem:[#allocation11 + $0x3e8] sm:$0xff]  ;;  %v1642_v58 = vld [vmem:[#allocation11 + $0x3f8] sm:$0xff] }
 0x2b9   :  { %1673 = vmatprep.subr.mxu0 %v1560_v55  ;;  %1744 = vmatprep.subr.mxu1 %v1562_v59  ;;  %v1639_v55 = vld [vmem:[#allocation11 + $0x3e0] sm:$0xff]  ;;  %v1641_v59 = vld [vmem:[#allocation11 + $0x3f0] sm:$0xff] }
 0x2ba   :  { %1674 = vmatpush1.msra.mxu0 %v1559_v60  ;;  %1745 = vmatpush1.msra.mxu1 %v1561_v62  ;;  %v1636_v60 = vld [vmem:[#allocation11 + $0x3c8] sm:$0xff]  ;;  %v1638_v62 = vld [vmem:[#allocation11 + $0x3d8] sm:$0xff] }
 0x2bb   :  { %1675 = vmatprep.subr.mxu0 %v1556_v63  ;;  %1746 = vmatprep.subr.mxu1 %v1558_v1  ;;  %v1635_v63 = vld [vmem:[#allocation11 + $0x3c0] sm:$0xff]  ;;  %v1637_v1 = vld [vmem:[#allocation11 + $0x3d0] sm:$0xff] }
 0x2bc   :  { %1676 = vmatpush1.msra.mxu0 %v1555_v2  ;;  %1747 = vmatpush1.msra.mxu1 %v1557_v3  ;;  %v1632_v2 = vld [vmem:[#allocation11 + $0x3a8] sm:$0xff]  ;;  %v1634_v3 = vld [vmem:[#allocation11 + $0x3b8] sm:$0xff] }
 0x2bd   :  { %1677 = vmatprep.subr.mxu0 %v1552_v4  ;;  %1748 = vmatprep.subr.mxu1 %v1554_v5  ;;  %v1631_v4 = vld [vmem:[#allocation11 + $0x3a0] sm:$0xff]  ;;  %v1633_v5 = vld [vmem:[#allocation11 + $0x3b0] sm:$0xff] }
 0x2be   :  { %1678 = vmatpush1.msra.mxu0 %v1551_v6  ;;  %1749 = vmatpush1.msra.mxu1 %v1553_v7  ;;  %v1628_v6 = vld [vmem:[#allocation11 + $0x388] sm:$0xff]  ;;  %v1630_v7 = vld [vmem:[#allocation11 + $0x398] sm:$0xff] }
 0x2bf   :  { %1679 = vmatprep.subr.mxu0 %v1548_v8  ;;  %1750 = vmatprep.subr.mxu1 %v1550_v10  ;;  %v1627_v8 = vld [vmem:[#allocation11 + $0x380] sm:$0xff]  ;;  %v1629_v10 = vld [vmem:[#allocation11 + $0x390] sm:$0xff] }
 0x2c0   :  { %1680 = vmatpush1.msra.mxu0 %v1547_v11  ;;  %1751 = vmatpush1.msra.mxu1 %v1549_v12  ;;  %v1624_v11 = vld [vmem:[#allocation11 + $0x368] sm:$0xff]  ;;  %v1626_v12 = vld [vmem:[#allocation11 + $0x378] sm:$0xff] }
 0x2c1   :  { %1681 = vmatprep.subr.mxu0 %v1544_v14  ;;  %1752 = vmatprep.subr.mxu1 %v1546_v26  ;;  %v1623_v14 = vld [vmem:[#allocation11 + $0x360] sm:$0xff]  ;;  %v1625_v26 = vld [vmem:[#allocation11 + $0x370] sm:$0xff] }
 0x2c2   :  { %1682 = vmatpush1.msra.mxu0 %v1543_v33  ;;  %1753 = vmatpush1.msra.mxu1 %v1545_v31  ;;  %v1620_v33 = vld [vmem:[#allocation11 + $0x348] sm:$0xff]  ;;  %v1622_v31 = vld [vmem:[#allocation11 + $0x358] sm:$0xff] }
 0x2c3   :  { %1683 = vmatprep.subr.mxu0 %v1540_v15  ;;  %1754 = vmatprep.subr.mxu1 %v1542_v16  ;;  %v1619_v15 = vld [vmem:[#allocation11 + $0x340] sm:$0xff]  ;;  %v1621_v16 = vld [vmem:[#allocation11 + $0x350] sm:$0xff] }
 0x2c4   :  { %1684 = vmatpush1.msra.mxu0 %v1539_v41  ;;  %1755 = vmatpush1.msra.mxu1 %v1541_v40  ;;  %v1616_v41 = vld [vmem:[#allocation11 + $0x328] sm:$0xff]  ;;  %v1618_v40 = vld [vmem:[#allocation11 + $0x338] sm:$0xff] }
 0x2c5   :  { %1685 = vmatprep.subr.mxu0 %v1536_v46  ;;  %1756 = vmatprep.subr.mxu1 %v1538_v43  ;;  %v1615_v46 = vld [vmem:[#allocation11 + $0x320] sm:$0xff]  ;;  %v1617_v43 = vld [vmem:[#allocation11 + $0x330] sm:$0xff] }
 0x2c6   :  { %1686 = vmatpush1.msra.mxu0 %v1535_v44  ;;  %1757 = vmatpush1.msra.mxu1 %v1537_v39  ;;  %v1612_v44 = vld [vmem:[#allocation11 + $0x308] sm:$0xff]  ;;  %v1614_v39 = vld [vmem:[#allocation11 + $0x318] sm:$0xff] }
 0x2c7   :  { %1687 = vmatprep.subr.mxu0 %v1532_v47  ;;  %1758 = vmatprep.subr.mxu1 %v1534_v48  ;;  %v1611_v47 = vld [vmem:[#allocation11 + $0x300] sm:$0xff]  ;;  %v1613_v48 = vld [vmem:[#allocation11 + $0x310] sm:$0xff] }
 0x2c8   :  { %1688 = vmatpush1.msra.mxu0 %v1531_v51  ;;  %1759 = vmatpush1.msra.mxu1 %v1533_v52  ;;  %v1608_v51 = vld [vmem:[#allocation11 + $0x2e8] sm:$0xff]  ;;  %v1610_v52 = vld [vmem:[#allocation11 + $0x2f8] sm:$0xff] }
 0x2c9   :  { %1689 = vmatprep.subr.mxu0 %v1528_v27  ;;  %1760 = vmatprep.subr.mxu1 %v1530_v30  ;;  %v1607_v27 = vld [vmem:[#allocation11 + $0x2e0] sm:$0xff]  ;;  %v1609_v30 = vld [vmem:[#allocation11 + $0x2f0] sm:$0xff] }
 0x2ca   :  { %1690 = vmatpush1.msra.mxu0 %v1527_v29  ;;  %1761 = vmatpush1.msra.mxu1 %v1529_v17  ;;  %v1604_v29 = vld [vmem:[#allocation11 + $0x2c8] sm:$0xff]  ;;  %v1606_v17 = vld [vmem:[#allocation11 + $0x2d8] sm:$0xff] }
 0x2cb   :  { %1691 = vmatprep.subr.mxu0 %v1524_v19  ;;  %1762 = vmatprep.subr.mxu1 %v1526_v36  ;;  %v1603_v19 = vld [vmem:[#allocation11 + $0x2c0] sm:$0xff]  ;;  %v1605_v36 = vld [vmem:[#allocation11 + $0x2d0] sm:$0xff] }
 0x2cc   :  { %1692 = vmatpush1.msra.mxu0 %v1523_v28  ;;  %1763 = vmatpush1.msra.mxu1 %v1525_v34  ;;  %v1600_v28 = vld [vmem:[#allocation11 + $0x2a8] sm:$0xff]  ;;  %v1602_v34 = vld [vmem:[#allocation11 + $0x2b8] sm:$0xff] }
 0x2cd   :  { %1693 = vmatprep.subr.mxu0 %v1520_v18  ;;  %1764 = vmatprep.subr.mxu1 %v1522_v20  ;;  %v1599_v18 = vld [vmem:[#allocation11 + $0x2a0] sm:$0xff]  ;;  %v1601_v20 = vld [vmem:[#allocation11 + $0x2b0] sm:$0xff] }
 0x2ce   :  { %1694 = vmatpush1.msra.mxu0 %v1519_v45  ;;  %1765 = vmatpush1.msra.mxu1 %v1521_v24  ;;  %v1596_v45 = vld [vmem:[#allocation11 + $0x288] sm:$0xff]  ;;  %v1598_v24 = vld [vmem:[#allocation11 + $0x298] sm:$0xff] }
 0x2cf   :  { %1695 = vmatprep.subr.mxu0 %v1516_v38  ;;  %1766 = vmatprep.subr.mxu1 %v1518_v35  ;;  %v1595_v38 = vld [vmem:[#allocation11 + $0x280] sm:$0xff]  ;;  %v1597_v35 = vld [vmem:[#allocation11 + $0x290] sm:$0xff] }
 0x2d0   :  { %1696 = vmatpush1.msra.mxu0 %v1515_v25  ;;  %1767 = vmatpush1.msra.mxu1 %v1517_v23  ;;  %v1592_v25 = vld [vmem:[#allocation11 + $0x268] sm:$0xff]  ;;  %v1594_v23 = vld [vmem:[#allocation11 + $0x278] sm:$0xff] }
 0x2d1   :  { %1697 = vmatprep.subr.mxu0 %v1640_v57  ;;  %1768 = vmatprep.subr.mxu1 %v1642_v58  ;;  %v1591_v57 = vld [vmem:[#allocation11 + $0x260] sm:$0xff]  ;;  %v1593_v58 = vld [vmem:[#allocation11 + $0x270] sm:$0xff] }
 0x2d2   :  { %1698 = vmatpush2.msra.mxu0 %v1639_v55  ;;  %1769 = vmatpush2.msra.mxu1 %v1641_v59  ;;  %v1588_v55 = vld [vmem:[#allocation11 + $0x248] sm:$0xff]  ;;  %v1590_v59 = vld [vmem:[#allocation11 + $0x258] sm:$0xff] }
 0x2d3   :  { %1699 = vmatprep.subr.mxu0 %v1636_v60  ;;  %1770 = vmatprep.subr.mxu1 %v1638_v62  ;;  %v1587_v60 = vld [vmem:[#allocation11 + $0x240] sm:$0xff]  ;;  %v1589_v62 = vld [vmem:[#allocation11 + $0x250] sm:$0xff] }
 0x2d4   :  { %1700 = vmatpush2.msra.mxu0 %v1635_v63  ;;  %1771 = vmatpush2.msra.mxu1 %v1637_v1  ;;  %v1584_v63 = vld [vmem:[#allocation11 + $0x228] sm:$0xff]  ;;  %v1586_v1 = vld [vmem:[#allocation11 + $0x238] sm:$0xff] }
 0x2d5   :  { %1701 = vmatprep.subr.mxu0 %v1632_v2  ;;  %1772 = vmatprep.subr.mxu1 %v1634_v3  ;;  %v1583_v2 = vld [vmem:[#allocation11 + $0x220] sm:$0xff]  ;;  %v1585_v3 = vld [vmem:[#allocation11 + $0x230] sm:$0xff] }
 0x2d6   :  { %1702 = vmatpush2.msra.mxu0 %v1631_v4  ;;  %1773 = vmatpush2.msra.mxu1 %v1633_v5  ;;  %v1580_v4 = vld [vmem:[#allocation11 + $0x208] sm:$0xff]  ;;  %v1582_v5 = vld [vmem:[#allocation11 + $0x218] sm:$0xff] }
 0x2d7   :  { %1703 = vmatprep.subr.mxu0 %v1628_v6  ;;  %1774 = vmatprep.subr.mxu1 %v1630_v7  ;;  %v1579_v6 = vld [vmem:[#allocation11 + $0x200] sm:$0xff]  ;;  %v1581_v7 = vld [vmem:[#allocation11 + $0x210] sm:$0xff] }
 0x2d8   :  { %1704 = vmatpush2.msra.mxu0 %v1627_v8  ;;  %1775 = vmatpush2.msra.mxu1 %v1629_v10  ;;  %v1897_v8 = vld [vmem:[#allocation4 + $0x1e8] sm:$0xff]  ;;  %v1899_v10 = vld [vmem:[#allocation4 + $0x1f8] sm:$0xff] }
 0x2d9   :  { %1705 = vmatprep.subr.mxu0 %v1624_v11  ;;  %1776 = vmatprep.subr.mxu1 %v1626_v12  ;;  %v1896_v11 = vld [vmem:[#allocation4 + $0x1e0] sm:$0xff]  ;;  %v1898_v12 = vld [vmem:[#allocation4 + $0x1f0] sm:$0xff] }
 0x2da   :  { %1706 = vmatpush2.msra.mxu0 %v1623_v14  ;;  %1777 = vmatpush2.msra.mxu1 %v1625_v26  ;;  %v1893_v14 = vld [vmem:[#allocation4 + $0x1c8] sm:$0xff]  ;;  %v1895_v26 = vld [vmem:[#allocation4 + $0x1d8] sm:$0xff] }
 0x2db   :  { %1707 = vmatprep.subr.mxu0 %v1620_v33  ;;  %1778 = vmatprep.subr.mxu1 %v1622_v31  ;;  %v1892_v33 = vld [vmem:[#allocation4 + $0x1c0] sm:$0xff]  ;;  %v1894_v31 = vld [vmem:[#allocation4 + $0x1d0] sm:$0xff] }
 0x2dc   :  { %1708 = vmatpush2.msra.mxu0 %v1619_v15  ;;  %1779 = vmatpush2.msra.mxu1 %v1621_v16  ;;  %v1889_v15 = vld [vmem:[#allocation4 + $0x1a8] sm:$0xff]  ;;  %v1891_v16 = vld [vmem:[#allocation4 + $0x1b8] sm:$0xff] }
 0x2dd   :  { %1709 = vmatprep.subr.mxu0 %v1616_v41  ;;  %1780 = vmatprep.subr.mxu1 %v1618_v40  ;;  %v1888_v41 = vld [vmem:[#allocation4 + $0x1a0] sm:$0xff]  ;;  %v1890_v40 = vld [vmem:[#allocation4 + $0x1b0] sm:$0xff] }
 0x2de   :  { %1710 = vmatpush2.msra.mxu0 %v1615_v46  ;;  %1781 = vmatpush2.msra.mxu1 %v1617_v43  ;;  %v1885_v46 = vld [vmem:[#allocation4 + $0x188] sm:$0xff]  ;;  %v1887_v43 = vld [vmem:[#allocation4 + $0x198] sm:$0xff] }
 0x2df   :  { %1711 = vmatprep.subr.mxu0 %v1612_v44  ;;  %1782 = vmatprep.subr.mxu1 %v1614_v39  ;;  %v1886_v44 = vld [vmem:[#allocation4 + $0x190] sm:$0xff]  ;;  %v1881_v39 = vld [vmem:[#allocation4 + $0x168] sm:$0xff] }
 0x2e0   :  { %1712 = vmatpush2.msra.mxu0 %v1611_v47  ;;  %1783 = vmatpush2.msra.mxu1 %v1613_v48  ;;  %v1883_v47 = vld [vmem:[#allocation4 + $0x178] sm:$0xff]  ;;  %v1880_v48 = vld [vmem:[#allocation4 + $0x160] sm:$0xff] }
 0x2e1   :  { %1713 = vmatprep.subr.mxu0 %v1608_v51  ;;  %1784 = vmatprep.subr.mxu1 %v1610_v52  ;;  %v1882_v51 = vld [vmem:[#allocation4 + $0x170] sm:$0xff]  ;;  %v1877_v52 = vld [vmem:[#allocation4 + $0x148] sm:$0xff] }
 0x2e2   :  { %1714 = vmatpush2.msra.mxu0 %v1607_v27  ;;  %1785 = vmatpush2.msra.mxu1 %v1609_v30  ;;  %v1879_v27 = vld [vmem:[#allocation4 + $0x158] sm:$0xff]  ;;  %v1876_v30 = vld [vmem:[#allocation4 + $0x140] sm:$0xff] }
 0x2e3   :  { %1715 = vmatprep.subr.mxu0 %v1604_v29  ;;  %1786 = vmatprep.subr.mxu1 %v1606_v17  ;;  %v1878_v29 = vld [vmem:[#allocation4 + $0x150] sm:$0xff]  ;;  %v1873_v17 = vld [vmem:[#allocation4 + $0x128] sm:$0xff] }
 0x2e4   :  { %1716 = vmatpush2.msra.mxu0 %v1603_v19  ;;  %1787 = vmatpush2.msra.mxu1 %v1605_v36  ;;  %v1875_v19 = vld [vmem:[#allocation4 + $0x138] sm:$0xff]  ;;  %v1872_v36 = vld [vmem:[#allocation4 + $0x120] sm:$0xff] }
 0x2e5   :  { %1717 = vmatprep.subr.mxu0 %v1600_v28  ;;  %1788 = vmatprep.subr.mxu1 %v1602_v34  ;;  %v1874_v28 = vld [vmem:[#allocation4 + $0x130] sm:$0xff]  ;;  %v1869_v34 = vld [vmem:[#allocation4 + $0x108] sm:$0xff] }
 0x2e6   :  { %1718 = vmatpush2.msra.mxu0 %v1599_v18  ;;  %1789 = vmatpush2.msra.mxu1 %v1601_v20  ;;  %v1871_v18 = vld [vmem:[#allocation4 + $0x118] sm:$0xff]  ;;  %v1868_v20 = vld [vmem:[#allocation4 + $0x100] sm:$0xff] }
 0x2e7   :  { %1719 = vmatprep.subr.mxu0 %v1596_v45  ;;  %1790 = vmatprep.subr.mxu1 %v1598_v24  ;;  %v1870_v45 = vld [vmem:[#allocation4 + $0x110] sm:$0xff]  ;;  %v1865_v24 = vld [vmem:[#allocation4 + $0xe8] sm:$0xff] }
 0x2e8   :  { %1720 = vmatpush2.msra.mxu0 %v1595_v38  ;;  %1791 = vmatpush2.msra.mxu1 %v1597_v35  ;;  %v1867_v38 = vld [vmem:[#allocation4 + $0xf8] sm:$0xff]  ;;  %v1864_v35 = vld [vmem:[#allocation4 + $0xe0] sm:$0xff] }
 0x2e9   :  { %1721 = vmatprep.subr.mxu0 %v1592_v25  ;;  %1792 = vmatprep.subr.mxu1 %v1594_v23  ;;  %v1866_v25 = vld [vmem:[#allocation4 + $0xf0] sm:$0xff]  ;;  %v1861_v23 = vld [vmem:[#allocation4 + $0xc8] sm:$0xff] }
 0x2ea   :  { %1722 = vmatpush2.msra.mxu0 %v1591_v57  ;;  %1793 = vmatpush2.msra.mxu1 %v1593_v58  ;;  %v1863_v57 = vld [vmem:[#allocation4 + $0xd8] sm:$0xff]  ;;  %v1860_v58 = vld [vmem:[#allocation4 + $0xc0] sm:$0xff] }
 0x2eb   :  { %1723 = vmatprep.subr.mxu0 %v1588_v55  ;;  %1794 = vmatprep.subr.mxu1 %v1590_v59  ;;  %v1862_v55 = vld [vmem:[#allocation4 + $0xd0] sm:$0xff]  ;;  %v1857_v59 = vld [vmem:[#allocation4 + $0xa8] sm:$0xff] }
 0x2ec   :  { %1724 = vmatpush2.msra.mxu0 %v1587_v60  ;;  %1795 = vmatpush2.msra.mxu1 %v1589_v62  ;;  %v1859_v60 = vld [vmem:[#allocation4 + $0xb8] sm:$0xff]  ;;  %v1856_v62 = vld [vmem:[#allocation4 + $0xa0] sm:$0xff] }
 0x2ed   :  { %1725 = vmatprep.subr.mxu0 %v1584_v63  ;;  %1796 = vmatprep.subr.mxu1 %v1586_v1  ;;  %v1858_v63 = vld [vmem:[#allocation4 + $0xb0] sm:$0xff]  ;;  %v1853_v1 = vld [vmem:[#allocation4 + $0x88] sm:$0xff] }
 0x2ee   :  { %1726 = vmatpush2.msra.mxu0 %v1583_v2  ;;  %1797 = vmatpush2.msra.mxu1 %v1585_v3  ;;  %v1855_v2 = vld [vmem:[#allocation4 + $0x98] sm:$0xff]  ;;  %v1852_v3 = vld [vmem:[#allocation4 + $0x80] sm:$0xff] }
 0x2ef   :  { %1727 = vmatprep.subr.mxu0 %v1580_v4  ;;  %1798 = vmatprep.subr.mxu1 %v1582_v5  ;;  %v1854_v4 = vld [vmem:[#allocation4 + $0x90] sm:$0xff]  ;;  %v1849_v5 = vld [vmem:[#allocation4 + $0x68] sm:$0xff] }
 0x2f0   :  { %1728 = vmatpush2.msra.mxu0 %v1579_v6  ;;  %1729 = vmatprep.mubr.f32.mxu0 %v10534_v22  ;;  %v1851_v6 = vld [vmem:[#allocation4 + $0x78] sm:$0xff] }
 0x2f1   :  { %1799 = vmatpush2.msra.mxu1 %v1581_v7  ;;  %1800 = vmatprep.mubr.f32.mxu1 %v10534_v22  ;;  %v1848_v7 = vld [vmem:[#allocation4 + $0x60] sm:$0xff] }
 0x2f2   :  { %1730 = vmatmul.mubr.f32.vlgmr.msra.gmra.mxu0 %v9258_v54  ;;  %1801 = vmatmul.mubr.f32.vlgmr.msra.gmra.mxu1 %v9258_v54  ;;  %v1884_v54 = vld [vmem:[#allocation4 + $0x180] sm:$0xff] }
 0x2f3   :  { %1900 = vmatprep.subr.mxu0 %v1897_v8  ;;  %1971 = vmatprep.subr.mxu1 %v1899_v10  ;;  %v1850_v8 = vld [vmem:[#allocation4 + $0x70] sm:$0xff]  ;;  %v1845_v10 = vld [vmem:[#allocation4 + $0x48] sm:$0xff] }
 0x2f4   :  { %1901 = vmatpush1.msra.mxu0 %v1896_v11  ;;  %1972 = vmatpush1.msra.mxu1 %v1898_v12  ;;  %v1847_v11 = vld [vmem:[#allocation4 + $0x58] sm:$0xff]  ;;  %v1844_v12 = vld [vmem:[#allocation4 + $0x40] sm:$0xff] }
 0x2f5   :  { %1902 = vmatprep.subr.mxu0 %v1893_v14  ;;  %1973 = vmatprep.subr.mxu1 %v1895_v26  ;;  %v1846_v14 = vld [vmem:[#allocation4 + $0x50] sm:$0xff]  ;;  %v1841_v26 = vld [vmem:[#allocation4 + $0x28] sm:$0xff] }
 0x2f6   :  { %1903 = vmatpush1.msra.mxu0 %v1892_v33  ;;  %1974 = vmatpush1.msra.mxu1 %v1894_v31  ;;  %v1843_v33 = vld [vmem:[#allocation4 + $0x38] sm:$0xff]  ;;  %v1840_v31 = vld [vmem:[#allocation4 + $0x20] sm:$0xff] }
 0x2f7   :  { %1904 = vmatprep.subr.mxu0 %v1889_v15  ;;  %1975 = vmatprep.subr.mxu1 %v1891_v16  ;;  %v1842_v15 = vld [vmem:[#allocation4 + $0x30] sm:$0xff]  ;;  %v1837_v16 = vld [vmem:[#allocation4 + $0x8] sm:$0xff] }
 0x2f8   :  { %1905 = vmatpush1.msra.mxu0 %v1888_v41  ;;  %1976 = vmatpush1.msra.mxu1 %v1890_v40  ;;  %v1839_v41 = vld [vmem:[#allocation4 + $0x18] sm:$0xff]  ;;  %v1836_v40 = vld [vmem:[#allocation4] sm:$0xff] }
 0x2f9   :  { %1906 = vmatprep.subr.mxu0 %v1885_v46  ;;  %1977 = vmatprep.subr.mxu1 %v1887_v43  ;;  %v1838_v46 = vld [vmem:[#allocation4 + $0x10] sm:$0xff] }
 0x2fa   :  { %1907 = vmatpush1.msra.mxu0 %v1884_v54  ;;  %1978 = vmatpush1.msra.mxu1 %v1886_v44  ;;  %v2131_v43 = vld [vmem:[#allocation8 + $0x1e8] sm:$0xff]  ;;  %v2133_v54 = vld [vmem:[#allocation8 + $0x1f8] sm:$0xff] }
 0x2fb   :  { %1908 = vmatprep.subr.mxu0 %v1881_v39  ;;  %1979 = vmatprep.subr.mxu1 %v1883_v47  ;;  %v10649_v39 = vld [vmem:[#allocation34_spill] sm:$0xff] }
 0x2fc   :  { %1909 = vmatpush1.msra.mxu0 %v1880_v48  ;;  %1980 = vmatpush1.msra.mxu1 %v1882_v51 }
 0x2fd   :  { %1910 = vmatprep.subr.mxu0 %v1877_v52  ;;  %1981 = vmatprep.subr.mxu1 %v1879_v27  ;;  %v10650_v52 = vld [vmem:[#allocation35_spill] sm:$0xff] }
 0x2fe   :  { %1911 = vmatpush1.msra.mxu0 %v1876_v30  ;;  %1982 = vmatpush1.msra.mxu1 %v1878_v29 }
 0x2ff   :  { %1912 = vmatprep.subr.mxu0 %v1873_v17  ;;  %1983 = vmatprep.subr.mxu1 %v1875_v19  ;;  %v10651_v17 = vld [vmem:[#allocation20_spill] sm:$0xff] }
 0x300   :  { %1913 = vmatpush1.msra.mxu0 %v1872_v36  ;;  %1984 = vmatpush1.msra.mxu1 %v1874_v28 }
 0x301   :  { %1914 = vmatprep.subr.mxu0 %v1869_v34  ;;  %1985 = vmatprep.subr.mxu1 %v1871_v18  ;;  %v10652_v34 = vld [vmem:[#allocation21_spill] sm:$0xff] }
 0x302   :  { %1915 = vmatpush1.msra.mxu0 %v1868_v20  ;;  %1986 = vmatpush1.msra.mxu1 %v1870_v45 }
 0x303   :  { %1916 = vmatprep.subr.mxu0 %v1865_v24  ;;  %1987 = vmatprep.subr.mxu1 %v1867_v38 }
 0x304   :  { %1917 = vmatpush1.msra.mxu0 %v1864_v35  ;;  %1988 = vmatpush1.msra.mxu1 %v1866_v25 }
 0x305   :  { %1918 = vmatprep.subr.mxu0 %v1861_v23  ;;  %1989 = vmatprep.subr.mxu1 %v1863_v57 }
 0x306   :  { %1919 = vmatpush1.msra.mxu0 %v1860_v58  ;;  %1990 = vmatpush1.msra.mxu1 %v1862_v55 }
 0x307   :  { %1920 = vmatprep.subr.mxu0 %v1857_v59  ;;  %1991 = vmatprep.subr.mxu1 %v1859_v60 }
 0x308   :  { %1921 = vmatpush1.msra.mxu0 %v1856_v62  ;;  %1992 = vmatpush1.msra.mxu1 %v1858_v63 }
 0x309   :  { %1922 = vmatprep.subr.mxu0 %v1853_v1  ;;  %1993 = vmatprep.subr.mxu1 %v1855_v2  ;;  %v2130_v2 = vld [vmem:[#allocation8 + $0x1e0] sm:$0xff] }
 0x30a   :  { %1923 = vmatpush1.msra.mxu0 %v1852_v3  ;;  %1994 = vmatpush1.msra.mxu1 %v1854_v4  ;;  %v2132_v3 = vld [vmem:[#allocation8 + $0x1f0] sm:$0xff]  ;;  %v2127_v4 = vld [vmem:[#allocation8 + $0x1c8] sm:$0xff] }
 0x30b   :  { %1924 = vmatprep.subr.mxu0 %v1849_v5  ;;  %1995 = vmatprep.subr.mxu1 %v1851_v6  ;;  %v2129_v5 = vld [vmem:[#allocation8 + $0x1d8] sm:$0xff]  ;;  %v2126_v6 = vld [vmem:[#allocation8 + $0x1c0] sm:$0xff] }
 0x30c   :  { %1925 = vmatpush1.msra.mxu0 %v1848_v7  ;;  %1996 = vmatpush1.msra.mxu1 %v1850_v8  ;;  %v2128_v7 = vld [vmem:[#allocation8 + $0x1d0] sm:$0xff]  ;;  %v2125_v8 = vld [vmem:[#allocation8 + $0x1b8] sm:$0xff] }
 0x30d   :  { %1926 = vmatprep.subr.mxu0 %v1845_v10  ;;  %1997 = vmatprep.subr.mxu1 %v1847_v11  ;;  %v2122_v10 = vld [vmem:[#allocation8 + $0x1a0] sm:$0xff]  ;;  %v2124_v11 = vld [vmem:[#allocation8 + $0x1b0] sm:$0xff] }
 0x30e   :  { %1927 = vmatpush1.msra.mxu0 %v1844_v12  ;;  %1998 = vmatpush1.msra.mxu1 %v1846_v14  ;;  %v2119_v12 = vld [vmem:[#allocation8 + $0x188] sm:$0xff]  ;;  %v2121_v14 = vld [vmem:[#allocation8 + $0x198] sm:$0xff] }
 0x30f   :  { %1928 = vmatprep.subr.mxu0 %v1841_v26  ;;  %1999 = vmatprep.subr.mxu1 %v1843_v33  ;;  %v2118_v26 = vld [vmem:[#allocation8 + $0x180] sm:$0xff]  ;;  %v2120_v33 = vld [vmem:[#allocation8 + $0x190] sm:$0xff] }
 0x310   :  { %1929 = vmatpush1.msra.mxu0 %v1840_v31  ;;  %2000 = vmatpush1.msra.mxu1 %v1842_v15  ;;  %v2115_v31 = vld [vmem:[#allocation8 + $0x168] sm:$0xff]  ;;  %v2117_v15 = vld [vmem:[#allocation8 + $0x178] sm:$0xff] }
 0x311   :  { %1930 = vmatprep.subr.mxu0 %v1837_v16  ;;  %2001 = vmatprep.subr.mxu1 %v1839_v41  ;;  %v2114_v16 = vld [vmem:[#allocation8 + $0x160] sm:$0xff]  ;;  %v2116_v41 = vld [vmem:[#allocation8 + $0x170] sm:$0xff] }
 0x312   :  { %1931 = vmatpush1.msra.mxu0 %v1836_v40  ;;  %1964 = vmatprep.mubr.f32.mxu0 %v10534_v22  ;;  %v2111_v40 = vld [vmem:[#allocation8 + $0x148] sm:$0xff] }
 0x313   :  { %2002 = vmatpush1.msra.mxu1 %v1838_v46  ;;  %2035 = vmatprep.mubr.f32.mxu1 %v10534_v22  ;;  %v2113_v46 = vld [vmem:[#allocation8 + $0x158] sm:$0xff] }
 0x314   :  { %2220 = vmatprep.subr.mxu0 %v2131_v43  ;;  %2291 = vmatprep.subr.mxu1 %v2133_v54  ;;  %v2110_v43 = vld [vmem:[#allocation8 + $0x140] sm:$0xff]  ;;  %v2112_v54 = vld [vmem:[#allocation8 + $0x150] sm:$0xff] }
 0x32f   :  { %v1245_v44 = vpop.f32.mrf.mxu0  ;;  %v1316_v29 = vpop.f32.mrf.mxu1 }
 0x330   :  { %v1321_v47 = vadd.f32 %v1245_v44, %v10649_v39  ;;  %v1323_v19 = vadd.f32 %v1316_v29, %v10651_v17  ;;  %v2107_v39 = vld [vmem:[#allocation8 + $0x128] sm:$0xff]  ;;  %v2105_v29 = vld [vmem:[#allocation8 + $0x118] sm:$0xff] }
 0x331   :  { %v1247_v48 = vpop.f32.mrf.mxu0  ;;  %v1318_v36 = vpop.f32.mrf.mxu1 }
 0x332   :  { %v7390_v51 = vmul.f32 -1.442695, %v1321_v47  ;;  %v1322_v27 = vadd.f32 %v1247_v48, %v10650_v52  ;;  %v7392_v28 = vmul.f32 -1.442695, %v1323_v19  ;;  %v1324_v18 = vadd.f32 %v1318_v36, %v10652_v34  ;;  %v2109_v47 = vld [vmem:[#allocation8 + $0x138] sm:$0xff]  ;;  %v2108_v52 = vld [vmem:[#allocation8 + $0x130] sm:$0xff] }
 0x333   :  { %v2102_v36 = vld [vmem:[#allocation8 + $0x100] sm:$0xff]  ;;  %v2099_v34 = vld [vmem:[#allocation8 + $0xe8] sm:$0xff] }
 0x334   :  { %7581 = vpow2.f32 %v7390_v51  ;;  %v7391_v30 = vmul.f32 -1.442695, %v1322_v27  ;;  %v2106_v51 = vld [vmem:[#allocation8 + $0x120] sm:$0xff] }
 0x336   :  { %7583 = vpow2.f32 %v7391_v30  ;;  %v2103_v30 = vld [vmem:[#allocation8 + $0x108] sm:$0xff] }
 0x337   :  { %7585 = vpow2.f32 %v7392_v28  ;;  %v2104_v28 = vld [vmem:[#allocation8 + $0x110] sm:$0xff] }
 0x338   :  { %7587 = vtanh.f32 %v1324_v18 }
 0x341   :  { %v7582_v20 = vpop.eup %7581 }
 0x342   :  { %v1334_v45 = vadd.f32 1.0, %v7582_v20  ;;  %v2098_v20 = vld [vmem:[#allocation8 + $0xe0] sm:$0xff] }
 0x343   :  { %v7584_v24 = vpop.eup %7583 }
 0x344   :  { %7589 = vrcp.f32 %v1334_v45  ;;  %v1335_v38 = vadd.f32 1.0, %v7584_v24  ;;  %v7586_v35 = vpop.eup %7585  ;;  %v2100_v45 = vld [vmem:[#allocation8 + $0xf0] sm:$0xff]  ;;  %v2095_v24 = vld [vmem:[#allocation8 + $0xc8] sm:$0xff] }
 0x345   :  { %v7588_v25 = vpop.eup %7587  ;;  %v1336_v55 = vadd.f32 1.0, %v7586_v35  ;;  %v2096_v35 = vld [vmem:[#allocation8 + $0xd0] sm:$0xff] }
 0x346   :  { %7591 = vrcp.f32 %v1335_v38  ;;  %v2097_v38 = vld [vmem:[#allocation8 + $0xd8] sm:$0xff] }
 0x347   :  { %7593 = vrcp.f32 %v1336_v55  ;;  %v2092_v55 = vld [vmem:[#allocation8 + $0xb0] sm:$0xff] }
 0x351   :  { %v7590_v23 = vpop.eup %7589 }
 0x352   :  { %v1345_v57 = vmul.f32 %v7590_v23, %v7588_v25  ;;  %v2091_v25 = vld [vmem:[#allocation8 + $0xa8] sm:$0xff]  ;;  %v2093_v23 = vld [vmem:[#allocation8 + $0xb8] sm:$0xff] }
 0x353   :  { %v7592_v58 = vpop.eup %7591 }
 0x354   :  { %v1344_v59 = vmul.f32 %v7592_v58, %v9106_v53  ;;  %v7594_v62 = vpop.eup %7593  ;;  %v2123_v53 = vld [vmem:[#allocation8 + $0x1a8] sm:$0xff]  ;;  %v2090_v58 = vld [vmem:[#allocation8 + $0xa0] sm:$0xff] }
 0x356   :  { %v9275_v60 = vadd.f32 %v1345_v57, %v1344_v59  ;;  %v2087_v59 = vld [vmem:[#allocation8 + $0x88] sm:$0xff] }
 0x358   :  { %7595 = vtanh.f32 %v9275_v60 }
 0x365   :  { %v7596_v63 = vpop.eup %7595 }
 0x366   :  { %v9278_v1 = vmul.f32 %v7596_v63, %v7594_v62  ;;  %v2089_v62 = vld [vmem:[#allocation8 + $0x98] sm:$0xff]  ;;  %v2086_v63 = vld [vmem:[#allocation8 + $0x80] sm:$0xff] }
 0x368   :  { %1965 = vmatmul.mubr.f32.vlgmr.msra.gmra.mxu0 %v9278_v1  ;;  %2036 = vmatmul.mubr.f32.vlgmr.msra.gmra.mxu1 %v9278_v1 }
 0x369   :  { %2221 = vmatpush1.msra.mxu0 %v2130_v2  ;;  %2292 = vmatpush1.msra.mxu1 %v2132_v3  ;;  %v2088_v2 = vld [vmem:[#allocation8 + $0x90] sm:$0xff] }
 0x36a   :  { %2222 = vmatprep.subr.mxu0 %v2127_v4  ;;  %2293 = vmatprep.subr.mxu1 %v2129_v5  ;;  %v2083_v4 = vld [vmem:[#allocation8 + $0x68] sm:$0xff]  ;;  %v2085_v5 = vld [vmem:[#allocation8 + $0x78] sm:$0xff] }
 0x36b   :  { %2223 = vmatpush1.msra.mxu0 %v2126_v6  ;;  %2294 = vmatpush1.msra.mxu1 %v2128_v7  ;;  %v2082_v6 = vld [vmem:[#allocation8 + $0x60] sm:$0xff]  ;;  %v2084_v7 = vld [vmem:[#allocation8 + $0x70] sm:$0xff] }
 0x36c   :  { %2224 = vmatprep.subr.mxu0 %v2123_v53  ;;  %2295 = vmatprep.subr.mxu1 %v2125_v8  ;;  %v2079_v53 = vld [vmem:[#allocation8 + $0x48] sm:$0xff]  ;;  %v2081_v8 = vld [vmem:[#allocation8 + $0x58] sm:$0xff] }
 0x36d   :  { %2225 = vmatpush1.msra.mxu0 %v2122_v10  ;;  %2296 = vmatpush1.msra.mxu1 %v2124_v11  ;;  %v2078_v11 = vld [vmem:[#allocation8 + $0x40] sm:$0xff] }
 0x36e   :  { %2226 = vmatprep.subr.mxu0 %v2119_v12  ;;  %2297 = vmatprep.subr.mxu1 %v2121_v14  ;;  %v2080_v12 = vld [vmem:[#allocation8 + $0x50] sm:$0xff] }
 0x36f   :  { %2227 = vmatpush1.msra.mxu0 %v2118_v26  ;;  %2298 = vmatpush1.msra.mxu1 %v2120_v33  ;;  %v2077_v26 = vld [vmem:[#allocation8 + $0x38] sm:$0xff]  ;;  %v2074_v33 = vld [vmem:[#allocation8 + $0x20] sm:$0xff] }
 0x370   :  { %2228 = vmatprep.subr.mxu0 %v2115_v31  ;;  %2299 = vmatprep.subr.mxu1 %v2117_v15  ;;  %v2076_v31 = vld [vmem:[#allocation8 + $0x30] sm:$0xff] }
 0x371   :  { %v1415_v44 = vpop.f32.mrf.mxu0  ;;  %2229 = vmatpush1.msra.mxu0 %v2114_v16  ;;  %2300 = vmatpush1.msra.mxu1 %v2116_v41  ;;  %v1486_v57 = vpop.f32.mrf.mxu1  ;;  %v2071_v41 = vld [vmem:[#allocation8 + $0x8] sm:$0xff] }
 0x372   :  { %v1416_v48 = vadd.f32 %v1415_v44, %v9124_v42  ;;  %2230 = vmatprep.subr.mxu0 %v2111_v40  ;;  %2301 = vmatprep.subr.mxu1 %v2113_v46  ;;  %v2101_v42 = vld [vmem:[#allocation8 + $0xf8] sm:$0xff]  ;;  %v1487_v3 = vadd.f32 %v1486_v57, %v9152_v37  ;;  %v2075_v37 = vld [vmem:[#allocation8 + $0x28] sm:$0xff]  ;;  %v2176_v57 = vld [vmem:[#allocation8 + $0x350] sm:$0xff] }
 0x373   :  { %v1417_v27 = vpop.f32.mrf.mxu0  ;;  %2231 = vmatpush1.msra.mxu0 %v2110_v43  ;;  %2302 = vmatpush1.msra.mxu1 %v2112_v54  ;;  %v1488_v10 = vpop.f32.mrf.mxu1  ;;  %v2073_v40 = vld [vmem:[#allocation8 + $0x18] sm:$0xff]  ;;  %v2070_v43 = vld [vmem:[#allocation8] sm:$0xff]  ;;  %v2072_v54 = vld [vmem:[#allocation8 + $0x10] sm:$0xff] }
 0x374   :  { %v7393_v17 = vmul.f32 -1.442695, %v1416_v48  ;;  %v1418_v19 = vadd.f32 %v1417_v27, %v9131_v56  ;;  %2232 = vmatprep.subr.mxu0 %v2107_v39  ;;  %2303 = vmatprep.subr.mxu1 %v2109_v47  ;;  %v2094_v56 = vld [vmem:[#allocation8 + $0xc0] sm:$0xff]  ;;  %v7395_v14 = vmul.f32 -1.442695, %v1487_v3  ;;  %v1489_v16 = vadd.f32 %v1488_v10, %v9168_v50  ;;  %v2195_v39 = vld [vmem:[#allocation8 + $0x3e8] sm:$0xff] }
 0x375   :  { %2233 = vmatpush1.msra.mxu0 %v2106_v51  ;;  %2304 = vmatpush1.msra.mxu1 %v2108_v52  ;;  %v2197_v47 = vld [vmem:[#allocation8 + $0x3f8] sm:$0xff]  ;;  %v2194_v50 = vld [vmem:[#allocation8 + $0x3e0] sm:$0xff]  ;;  %v2196_v51 = vld [vmem:[#allocation8 + $0x3f0] sm:$0xff] }
 0x376   :  { %7597 = vpow2.f32 %v7393_v17  ;;  %v7394_v18 = vmul.f32 -1.442695, %v1418_v19  ;;  %2234 = vmatprep.subr.mxu0 %v2103_v30  ;;  %2305 = vmatprep.subr.mxu1 %v2105_v29  ;;  %v2191_v52 = vld [vmem:[#allocation8 + $0x3c8] sm:$0xff]  ;;  %v2193_v27 = vld [vmem:[#allocation8 + $0x3d8] sm:$0xff]  ;;  %v2190_v30 = vld [vmem:[#allocation8 + $0x3c0] sm:$0xff] }
 0x377   :  { %2235 = vmatpush1.msra.mxu0 %v2102_v36  ;;  %2306 = vmatpush1.msra.mxu1 %v2104_v28  ;;  %v2192_v29 = vld [vmem:[#allocation8 + $0x3d0] sm:$0xff]  ;;  %v2187_v17 = vld [vmem:[#allocation8 + $0x3a8] sm:$0xff]  ;;  %v2189_v19 = vld [vmem:[#allocation8 + $0x3b8] sm:$0xff] }
 0x378   :  { %7599 = vpow2.f32 %v7394_v18  ;;  %2236 = vmatprep.subr.mxu0 %v2099_v34  ;;  %2307 = vmatprep.subr.mxu1 %v2101_v42  ;;  %v2186_v36 = vld [vmem:[#allocation8 + $0x3a0] sm:$0xff]  ;;  %v2188_v28 = vld [vmem:[#allocation8 + $0x3b0] sm:$0xff]  ;;  %v2183_v34 = vld [vmem:[#allocation8 + $0x388] sm:$0xff] }
 0x379   :  { %2237 = vmatpush1.msra.mxu0 %v2098_v20  ;;  %2308 = vmatpush1.msra.mxu1 %v2100_v45  ;;  %7601 = vpow2.f32 %v7395_v14  ;;  %v2185_v42 = vld [vmem:[#allocation8 + $0x398] sm:$0xff]  ;;  %v2182_v18 = vld [vmem:[#allocation8 + $0x380] sm:$0xff]  ;;  %v2184_v20 = vld [vmem:[#allocation8 + $0x390] sm:$0xff] }
 0x37a   :  { %2238 = vmatprep.subr.mxu0 %v2095_v24  ;;  %2309 = vmatprep.subr.mxu1 %v2097_v38  ;;  %v2179_v45 = vld [vmem:[#allocation8 + $0x368] sm:$0xff]  ;;  %v2181_v24 = vld [vmem:[#allocation8 + $0x378] sm:$0xff]  ;;  %v2178_v38 = vld [vmem:[#allocation8 + $0x360] sm:$0xff] }
 0x37b   :  { %2239 = vmatpush1.msra.mxu0 %v2094_v56  ;;  %2310 = vmatpush1.msra.mxu1 %v2096_v35  ;;  %v2180_v56 = vld [vmem:[#allocation8 + $0x370] sm:$0xff]  ;;  %v2175_v35 = vld [vmem:[#allocation8 + $0x348] sm:$0xff] }
 0x37c   :  { %2240 = vmatprep.subr.mxu0 %v2091_v25  ;;  %2311 = vmatprep.subr.mxu1 %v2093_v23  ;;  %v2177_v25 = vld [vmem:[#allocation8 + $0x358] sm:$0xff]  ;;  %v2174_v23 = vld [vmem:[#allocation8 + $0x340] sm:$0xff]  ;;  %v2167_v3 = vld [vmem:[#allocation8 + $0x308] sm:$0xff] }
 0x37d   :  { %2241 = vmatpush1.msra.mxu0 %v2090_v58  ;;  %2312 = vmatpush1.msra.mxu1 %v2092_v55  ;;  %v2171_v58 = vld [vmem:[#allocation8 + $0x328] sm:$0xff]  ;;  %v2173_v55 = vld [vmem:[#allocation8 + $0x338] sm:$0xff] }
 0x37e   :  { %2242 = vmatprep.subr.mxu0 %v2087_v59  ;;  %2313 = vmatprep.subr.mxu1 %v2089_v62  ;;  %v2170_v62 = vld [vmem:[#allocation8 + $0x320] sm:$0xff]  ;;  %v2163_v10 = vld [vmem:[#allocation8 + $0x2e8] sm:$0xff] }
 0x37f   :  { %2243 = vmatpush1.msra.mxu0 %v2086_v63  ;;  %2314 = vmatpush1.msra.mxu1 %v2088_v2  ;;  %v2172_v63 = vld [vmem:[#allocation8 + $0x330] sm:$0xff] }
 0x380   :  { %2244 = vmatprep.subr.mxu0 %v2083_v4  ;;  %2315 = vmatprep.subr.mxu1 %v2085_v5  ;;  %v2169_v4 = vld [vmem:[#allocation8 + $0x318] sm:$0xff] }
 0x381   :  { %2245 = vmatpush1.msra.mxu0 %v2082_v6  ;;  %2316 = vmatpush1.msra.mxu1 %v2084_v7  ;;  %v2166_v6 = vld [vmem:[#allocation8 + $0x300] sm:$0xff]  ;;  %v2168_v7 = vld [vmem:[#allocation8 + $0x310] sm:$0xff] }
 0x382   :  { %2246 = vmatprep.subr.mxu0 %v2079_v53  ;;  %2317 = vmatprep.subr.mxu1 %v2081_v8 }
 0x383   :  { %v7598_v15 = vpop.eup %7597  ;;  %2247 = vmatpush1.msra.mxu0 %v2078_v11  ;;  %2318 = vmatpush1.msra.mxu1 %v2080_v12  ;;  %v2165_v11 = vld [vmem:[#allocation8 + $0x2f8] sm:$0xff] }
 0x384   :  { %v1500_v46 = vadd.f32 1.0, %v7598_v15  ;;  %2248 = vmatprep.subr.mxu0 %v2075_v37  ;;  %2319 = vmatprep.subr.mxu1 %v2077_v26  ;;  %v2162_v37 = vld [vmem:[#allocation8 + $0x2e0] sm:$0xff]  ;;  %v2164_v26 = vld [vmem:[#allocation8 + $0x2f0] sm:$0xff] }
 0x385   :  { %v7600_v44 = vpop.eup %7599  ;;  %2249 = vmatpush1.msra.mxu0 %v2074_v33  ;;  %2320 = vmatpush1.msra.mxu1 %v2076_v31  ;;  %v2159_v33 = vld [vmem:[#allocation8 + $0x2c8] sm:$0xff]  ;;  %v2161_v31 = vld [vmem:[#allocation8 + $0x2d8] sm:$0xff] }
 0x386   :  { %7603 = vrcp.f32 %v1500_v46  ;;  %v1501_v48 = vadd.f32 1.0, %v7600_v44  ;;  %2250 = vmatprep.subr.mxu0 %v2071_v41  ;;  %2321 = vmatprep.subr.mxu1 %v2073_v40  ;;  %v7602_v59 = vpop.eup %7601  ;;  %v2160_v41 = vld [vmem:[#allocation8 + $0x2d0] sm:$0xff]  ;;  %v2155_v40 = vld [vmem:[#allocation8 + $0x2a8] sm:$0xff]  ;;  %v2154_v46 = vld [vmem:[#allocation8 + $0x2a0] sm:$0xff] }
 0x387   :  { %7605 = vtanh.f32 %v1489_v16  ;;  %2251 = vmatpush1.msra.mxu0 %v2070_v43  ;;  %2322 = vmatpush1.msra.mxu1 %v2072_v54  ;;  %v1502_v8 = vadd.f32 1.0, %v7602_v59  ;;  %v2158_v16 = vld [vmem:[#allocation8 + $0x2c0] sm:$0xff]  ;;  %v2156_v43 = vld [vmem:[#allocation8 + $0x2b0] sm:$0xff]  ;;  %v2151_v54 = vld [vmem:[#allocation8 + $0x288] sm:$0xff] }
 0x388   :  { %7607 = vrcp.f32 %v1501_v48  ;;  %2252 = vmatprep.subr.mxu0 %v2195_v39  ;;  %2323 = vmatprep.subr.mxu1 %v2197_v47  ;;  %v2153_v44 = vld [vmem:[#allocation8 + $0x298] sm:$0xff]  ;;  %v2150_v39 = vld [vmem:[#allocation8 + $0x280] sm:$0xff]  ;;  %v2152_v47 = vld [vmem:[#allocation8 + $0x290] sm:$0xff] }
 0x389   :  { %2253 = vmatpush2.msra.mxu0 %v2194_v50  ;;  %2324 = vmatpush2.msra.mxu1 %v2196_v51  ;;  %7609 = vrcp.f32 %v1502_v8  ;;  %v2147_v48 = vld [vmem:[#allocation8 + $0x268] sm:$0xff]  ;;  %v2149_v50 = vld [vmem:[#allocation8 + $0x278] sm:$0xff]  ;;  %v2146_v51 = vld [vmem:[#allocation8 + $0x260] sm:$0xff] }
 0x38a   :  { %2254 = vmatprep.subr.mxu0 %v2191_v52  ;;  %2325 = vmatprep.subr.mxu1 %v2193_v27  ;;  %v2148_v52 = vld [vmem:[#allocation8 + $0x270] sm:$0xff]  ;;  %v2143_v27 = vld [vmem:[#allocation8 + $0x248] sm:$0xff] }
 0x38b   :  { %2255 = vmatpush2.msra.mxu0 %v2190_v30  ;;  %2326 = vmatpush2.msra.mxu1 %v2192_v29  ;;  %v2145_v30 = vld [vmem:[#allocation8 + $0x258] sm:$0xff]  ;;  %v2142_v29 = vld [vmem:[#allocation8 + $0x240] sm:$0xff] }
 0x38c   :  { %2256 = vmatprep.subr.mxu0 %v2187_v17  ;;  %2327 = vmatprep.subr.mxu1 %v2189_v19  ;;  %v2144_v17 = vld [vmem:[#allocation8 + $0x250] sm:$0xff]  ;;  %v2139_v19 = vld [vmem:[#allocation8 + $0x228] sm:$0xff] }
 0x38d   :  { %2257 = vmatpush2.msra.mxu0 %v2186_v36  ;;  %2328 = vmatpush2.msra.mxu1 %v2188_v28  ;;  %v2141_v36 = vld [vmem:[#allocation8 + $0x238] sm:$0xff]  ;;  %v2138_v28 = vld [vmem:[#allocation8 + $0x220] sm:$0xff] }
 0x38e   :  { %2258 = vmatprep.subr.mxu0 %v2183_v34  ;;  %2329 = vmatprep.subr.mxu1 %v2185_v42  ;;  %v2140_v34 = vld [vmem:[#allocation8 + $0x230] sm:$0xff]  ;;  %v2135_v42 = vld [vmem:[#allocation8 + $0x208] sm:$0xff] }
 0x38f   :  { %2259 = vmatpush2.msra.mxu0 %v2182_v18  ;;  %2330 = vmatpush2.msra.mxu1 %v2184_v20  ;;  %v2137_v18 = vld [vmem:[#allocation8 + $0x218] sm:$0xff]  ;;  %v2134_v20 = vld [vmem:[#allocation8 + $0x200] sm:$0xff] }
 0x390   :  { %2260 = vmatprep.subr.mxu0 %v2179_v45  ;;  %2331 = vmatprep.subr.mxu1 %v2181_v24  ;;  %v2136_v45 = vld [vmem:[#allocation8 + $0x210] sm:$0xff]  ;;  %v2442_v59 = vld [vmem:[#allocation11 + $0x1c0] sm:$0xff] }
 0x391   :  { %2261 = vmatpush2.msra.mxu0 %v2178_v38  ;;  %2332 = vmatpush2.msra.mxu1 %v2180_v56  ;;  %v2447_v24 = vld [vmem:[#allocation11 + $0x1e8] sm:$0xff]  ;;  %v2449_v38 = vld [vmem:[#allocation11 + $0x1f8] sm:$0xff]  ;;  %v2436_v8 = vld [vmem:[#allocation11 + $0x190] sm:$0xff] }
 0x392   :  { %2262 = vmatprep.subr.mxu0 %v2175_v35  ;;  %2333 = vmatprep.subr.mxu1 %v2177_v25 }
 0x393   :  { %v7604_v2 = vpop.eup %7603  ;;  %2263 = vmatpush2.msra.mxu0 %v2174_v23  ;;  %2334 = vmatpush2.msra.mxu1 %v2176_v57  ;;  %v2446_v23 = vld [vmem:[#allocation11 + $0x1e0] sm:$0xff]  ;;  %v2448_v57 = vld [vmem:[#allocation11 + $0x1f0] sm:$0xff] }
 0x394   :  { %v7606_v5 = vpop.eup %7605  ;;  %2264 = vmatprep.subr.mxu0 %v2171_v58  ;;  %2335 = vmatprep.subr.mxu1 %v2173_v55  ;;  %v2443_v58 = vld [vmem:[#allocation11 + $0x1c8] sm:$0xff]  ;;  %v2445_v55 = vld [vmem:[#allocation11 + $0x1d8] sm:$0xff] }
 0x395   :  { %v7608_v53 = vpop.eup %7607  ;;  %2265 = vmatpush2.msra.mxu0 %v2170_v62  ;;  %2336 = vmatpush2.msra.mxu1 %v2172_v63  ;;  %v1511_v14 = vmul.f32 %v7606_v5, %v7604_v2  ;;  %v2444_v62 = vld [vmem:[#allocation11 + $0x1d0] sm:$0xff]  ;;  %v2439_v63 = vld [vmem:[#allocation11 + $0x1a8] sm:$0xff]  ;;  %v2441_v2 = vld [vmem:[#allocation11 + $0x1b8] sm:$0xff] }
 0x396   :  { %v1510_v12 = vmul.f32 %v7608_v53, %v9221_v61  ;;  %2266 = vmatprep.subr.mxu0 %v2167_v3  ;;  %2337 = vmatprep.subr.mxu1 %v2169_v4  ;;  %v2157_v61 = vld [vmem:[#allocation8 + $0x2b8] sm:$0xff]  ;;  %v7610_v56 = vpop.eup %7609  ;;  %v9296_v3 = vld [vmem:[#allocation12] sm:$0xf] }
 0x397   :  { %2267 = vmatpush2.msra.mxu0 %v2166_v6  ;;  %2338 = vmatpush2.msra.mxu1 %v2168_v7  ;;  %v2438_v4 = vld [vmem:[#allocation11 + $0x1a0] sm:$0xff]  ;;  %v2440_v5 = vld [vmem:[#allocation11 + $0x1b0] sm:$0xff]  ;;  %v2435_v6 = vld [vmem:[#allocation11 + $0x188] sm:$0xff] }
 0x398   :  { %v9287_v15 = vadd.f32 %v1511_v14, %v1510_v12  ;;  %2268 = vmatprep.subr.mxu0 %v2163_v10  ;;  %2339 = vmatprep.subr.mxu1 %v2165_v11  ;;  %v2437_v7 = vld [vmem:[#allocation11 + $0x198] sm:$0xff]  ;;  %v2434_v53 = vld [vmem:[#allocation11 + $0x180] sm:$0xff]  ;;  %v2431_v10 = vld [vmem:[#allocation11 + $0x168] sm:$0xff]  ;;  %v1652_v12 = vrot.slane %v9296_v3, %v10539_v21 }
 0x399   :  { %2269 = vmatpush2.msra.mxu0 %v2162_v37  ;;  %2340 = vmatpush2.msra.mxu1 %v2164_v26  ;;  %v2433_v11 = vld [vmem:[#allocation11 + $0x178] sm:$0xff]  ;;  %v2430_v14 = vld [vmem:[#allocation11 + $0x160] sm:$0xff]  ;;  %v2432_v37 = vld [vmem:[#allocation11 + $0x170] sm:$0xff] }
 0x39a   :  { %7611 = vtanh.f32 %v9287_v15  ;;  %2270 = vmatprep.subr.mxu0 %v2159_v33  ;;  %2341 = vmatprep.subr.mxu1 %v2161_v31  ;;  %v2427_v33 = vld [vmem:[#allocation11 + $0x148] sm:$0xff]  ;;  %v2429_v31 = vld [vmem:[#allocation11 + $0x158] sm:$0xff] }
 0x39b   :  { %2271 = vmatpush2.msra.mxu0 %v2158_v16  ;;  %2342 = vmatpush2.msra.mxu1 %v2160_v41  ;;  %v2426_v41 = vld [vmem:[#allocation11 + $0x140] sm:$0xff] }
 0x39c   :  { %2272 = vmatprep.subr.mxu0 %v2155_v40  ;;  %2343 = vmatprep.subr.mxu1 %v2157_v61  ;;  %v2428_v40 = vld [vmem:[#allocation11 + $0x150] sm:$0xff] }
 0x39d   :  { %2273 = vmatpush2.msra.mxu0 %v2154_v46  ;;  %2344 = vmatpush2.msra.mxu1 %v2156_v43  ;;  %v2423_v46 = vld [vmem:[#allocation11 + $0x128] sm:$0xff]  ;;  %v2425_v43 = vld [vmem:[#allocation11 + $0x138] sm:$0xff] }
 0x39e   :  { %2274 = vmatprep.subr.mxu0 %v2151_v54  ;;  %2345 = vmatprep.subr.mxu1 %v2153_v44 }
 0x39f   :  { %2275 = vmatpush2.msra.mxu0 %v2150_v39  ;;  %2346 = vmatpush2.msra.mxu1 %v2152_v47  ;;  %v2422_v39 = vld [vmem:[#allocation11 + $0x120] sm:$0xff]  ;;  %v2424_v47 = vld [vmem:[#allocation11 + $0x130] sm:$0xff] }
 0x3a0   :  { %2276 = vmatprep.subr.mxu0 %v2147_v48  ;;  %2347 = vmatprep.subr.mxu1 %v2149_v50  ;;  %v2419_v48 = vld [vmem:[#allocation11 + $0x108] sm:$0xff]  ;;  %v2421_v50 = vld [vmem:[#allocation11 + $0x118] sm:$0xff] }
 0x3a1   :  { %2277 = vmatpush2.msra.mxu0 %v2146_v51  ;;  %2348 = vmatpush2.msra.mxu1 %v2148_v52  ;;  %v2418_v52 = vld [vmem:[#allocation11 + $0x100] sm:$0xff] }
 0x3a2   :  { %2278 = vmatprep.subr.mxu0 %v2143_v27  ;;  %2349 = vmatprep.subr.mxu1 %v2145_v30  ;;  %v2420_v27 = vld [vmem:[#allocation11 + $0x110] sm:$0xff]  ;;  %v2415_v30 = vld [vmem:[#allocation11 + $0xe8] sm:$0xff] }
 0x3a3   :  { %2279 = vmatpush2.msra.mxu0 %v2142_v29  ;;  %2350 = vmatpush2.msra.mxu1 %v2144_v17  ;;  %v2417_v29 = vld [vmem:[#allocation11 + $0xf8] sm:$0xff]  ;;  %v2414_v17 = vld [vmem:[#allocation11 + $0xe0] sm:$0xff] }
 0x3a4   :  { %2280 = vmatprep.subr.mxu0 %v2139_v19  ;;  %2351 = vmatprep.subr.mxu1 %v2141_v36  ;;  %v2416_v19 = vld [vmem:[#allocation11 + $0xf0] sm:$0xff]  ;;  %v1656_v36 = vrot.slane %v9296_v3, %v10556_v13 }
 0x3a5   :  { %2281 = vmatpush2.msra.mxu0 %v2138_v28  ;;  %2352 = vmatpush2.msra.mxu1 %v2140_v34  ;;  %v2411_v28 = vld [vmem:[#allocation11 + $0xc8] sm:$0xff]  ;;  %v2413_v34 = vld [vmem:[#allocation11 + $0xd8] sm:$0xff] }
 0x3a6   :  { %2282 = vmatprep.subr.mxu0 %v2135_v42  ;;  %2353 = vmatprep.subr.mxu1 %v2137_v18  ;;  %v2410_v18 = vld [vmem:[#allocation11 + $0xc0] sm:$0xff] }
 0x3a7   :  { %v7612_v35 = vpop.eup %7611  ;;  %2283 = vmatpush2.msra.mxu0 %v2134_v20  ;;  %2354 = vmatpush2.msra.mxu1 %v2136_v45  ;;  %v2412_v20 = vld [vmem:[#allocation11 + $0xd0] sm:$0xff]  ;;  %v2407_v45 = vld [vmem:[#allocation11 + $0xa8] sm:$0xff] }
 0x3a8   :  { %v9290_v25 = vmul.f32 %v7612_v35, %v7610_v56  ;;  %2536 = vmatprep.subr.mxu0 %v2447_v24  ;;  %2607 = vmatprep.subr.mxu1 %v2449_v38  ;;  %v2409_v24 = vld [vmem:[#allocation11 + $0xb8] sm:$0xff]  ;;  %v2406_v38 = vld [vmem:[#allocation11 + $0xa0] sm:$0xff]  ;;  %v2408_v56 = vld [vmem:[#allocation11 + $0xb0] sm:$0xff] }
 0x3aa   :  { %2284 = vmatprep.mubr.f32.mxu0 %v9290_v25  ;;  %2355 = vmatprep.mubr.f32.mxu1 %v9290_v25 }
 0x3ab   :  { %2285 = vmatmul.mubr.f32.vlgmr.msra.gmra.mxu0 %v9278_v1  ;;  %2356 = vmatmul.mubr.f32.vlgmr.msra.gmra.mxu1 %v9278_v1  ;;  %v1648_v1 = vrot.slane %v9296_v3, %v8610_v32 }
 0x3ac   :  { %2537 = vmatpush1.msra.mxu0 %v2446_v23  ;;  %2608 = vmatpush1.msra.mxu1 %v2448_v57  ;;  %v2403_v23 = vld [vmem:[#allocation11 + $0x88] sm:$0xff]  ;;  %v2405_v57 = vld [vmem:[#allocation11 + $0x98] sm:$0xff] }
 0x3ad   :  { %2538 = vmatprep.subr.mxu0 %v2443_v58  ;;  %2609 = vmatprep.subr.mxu1 %v2445_v55  ;;  %v2402_v58 = vld [vmem:[#allocation11 + $0x80] sm:$0xff]  ;;  %v2404_v55 = vld [vmem:[#allocation11 + $0x90] sm:$0xff] }
 0x3ae   :  { %2539 = vmatpush1.msra.mxu0 %v2442_v59  ;;  %2610 = vmatpush1.msra.mxu1 %v2444_v62  ;;  %v1660_v59 = vrot.slane %v9296_v3, %v10569_v49  ;;  %v2399_v62 = vld [vmem:[#allocation11 + $0x68] sm:$0xff] }
 0x3af   :  { %2540 = vmatprep.subr.mxu0 %v2439_v63  ;;  %2611 = vmatprep.subr.mxu1 %v2441_v2  ;;  %v2401_v63 = vld [vmem:[#allocation11 + $0x78] sm:$0xff] }
 0x3b0   :  { %2541 = vmatpush1.msra.mxu0 %v2438_v4  ;;  %2612 = vmatpush1.msra.mxu1 %v2440_v5  ;;  %v2398_v4 = vld [vmem:[#allocation11 + $0x60] sm:$0xff]  ;;  %v2400_v5 = vld [vmem:[#allocation11 + $0x70] sm:$0xff] }
 0x3b1   :  { %2542 = vmatprep.subr.mxu0 %v2435_v6  ;;  %2613 = vmatprep.subr.mxu1 %v2437_v7  ;;  %v2395_v7 = vld [vmem:[#allocation11 + $0x48] sm:$0xff] }
 0x3b2   :  { %v1731_v26 = vpop.f32.mrf.mxu0  ;;  %2543 = vmatpush1.msra.mxu0 %v2434_v53  ;;  %2614 = vmatpush1.msra.mxu1 %v2436_v8  ;;  %v1802_v42 = vpop.f32.mrf.mxu1  ;;  %v2394_v53 = vld [vmem:[#allocation11 + $0x40] sm:$0xff]  ;;  %v2396_v8 = vld [vmem:[#allocation11 + $0x50] sm:$0xff] }
 0x3b3   :  { %v1732_v16 = vadd.f32 %v1731_v26, %v1648_v1  ;;  %2544 = vmatprep.subr.mxu0 %v2431_v10  ;;  %2615 = vmatprep.subr.mxu1 %v2433_v11  ;;  %v1803_v35 = vadd.f32 %v1802_v42, %v1656_v36  ;;  %v2397_v1 = vld [vmem:[#allocation11 + $0x58] sm:$0xff]  ;;  %v2391_v11 = vld [vmem:[#allocation11 + $0x28] sm:$0xff]  ;;  %v2392_v26 = vld [vmem:[#allocation11 + $0x30] sm:$0xff] }
 0x3b4   :  { %v1733_v61 = vpop.f32.mrf.mxu0  ;;  %2545 = vmatpush1.msra.mxu0 %v2430_v14  ;;  %2616 = vmatpush1.msra.mxu1 %v2432_v37  ;;  %v1804_v2 = vpop.f32.mrf.mxu1  ;;  %v2390_v37 = vld [vmem:[#allocation11 + $0x20] sm:$0xff]  ;;  %v2500_v36 = vld [vmem:[#allocation11 + $0x390] sm:$0xff] }
 0x3b5   :  { %v7396_v54 = vmul.f32 -1.442695, %v1732_v16  ;;  %v1734_v44 = vadd.f32 %v1733_v61, %v1652_v12  ;;  %2546 = vmatprep.subr.mxu0 %v2427_v33  ;;  %2617 = vmatprep.subr.mxu1 %v2429_v31  ;;  %v7398_v6 = vmul.f32 -1.442695, %v1803_v35  ;;  %v1805_v3 = vadd.f32 %v1804_v2, %v1660_v59  ;;  %v2393_v12 = vld [vmem:[#allocation11 + $0x38] sm:$0xff]  ;;  %v2387_v31 = vld [vmem:[#allocation11 + $0x8] sm:$0xff] }
 0x3b6   :  { %2547 = vmatpush1.msra.mxu0 %v2426_v41  ;;  %2618 = vmatpush1.msra.mxu1 %v2428_v40  ;;  %v2389_v16 = vld [vmem:[#allocation11 + $0x18] sm:$0xff]  ;;  %v2386_v40 = vld [vmem:[#allocation11] sm:$0xff]  ;;  %v2388_v61 = vld [vmem:[#allocation11 + $0x10] sm:$0xff] }
 0x3b7   :  { %7613 = vpow2.f32 %v7396_v54  ;;  %v7397_v51 = vmul.f32 -1.442695, %v1734_v44  ;;  %2548 = vmatprep.subr.mxu0 %v2423_v46  ;;  %2619 = vmatprep.subr.mxu1 %v2425_v43  ;;  %v2511_v46 = vld [vmem:[#allocation11 + $0x3e8] sm:$0xff]  ;;  %v2513_v43 = vld [vmem:[#allocation11 + $0x3f8] sm:$0xff]  ;;  %v2510_v54 = vld [vmem:[#allocation11 + $0x3e0] sm:$0xff] }
 0x3b8   :  { %2549 = vmatpush1.msra.mxu0 %v2422_v39  ;;  %2620 = vmatpush1.msra.mxu1 %v2424_v47  ;;  %v2512_v44 = vld [vmem:[#allocation11 + $0x3f0] sm:$0xff]  ;;  %v2507_v39 = vld [vmem:[#allocation11 + $0x3c8] sm:$0xff]  ;;  %v2509_v47 = vld [vmem:[#allocation11 + $0x3d8] sm:$0xff] }
 0x3b9   :  { %7615 = vpow2.f32 %v7397_v51  ;;  %2550 = vmatprep.subr.mxu0 %v2419_v48  ;;  %2621 = vmatprep.subr.mxu1 %v2421_v50  ;;  %v2506_v48 = vld [vmem:[#allocation11 + $0x3c0] sm:$0xff]  ;;  %v2508_v50 = vld [vmem:[#allocation11 + $0x3d0] sm:$0xff]  ;;  %v2503_v51 = vld [vmem:[#allocation11 + $0x3a8] sm:$0xff] }
 0x3ba   :  { %2551 = vmatpush1.msra.mxu0 %v2418_v52  ;;  %2622 = vmatpush1.msra.mxu1 %v2420_v27  ;;  %7617 = vpow2.f32 %v7398_v6  ;;  %v2505_v52 = vld [vmem:[#allocation11 + $0x3b8] sm:$0xff]  ;;  %v2502_v27 = vld [vmem:[#allocation11 + $0x3a0] sm:$0xff]  ;;  %v2488_v59 = vld [vmem:[#allocation11 + $0x330] sm:$0xff] }
 0x3bb   :  { %2552 = vmatprep.subr.mxu0 %v2415_v30  ;;  %2623 = vmatprep.subr.mxu1 %v2417_v29  ;;  %v2504_v30 = vld [vmem:[#allocation11 + $0x3b0] sm:$0xff]  ;;  %v2499_v29 = vld [vmem:[#allocation11 + $0x388] sm:$0xff]  ;;  %v2494_v42 = vld [vmem:[#allocation11 + $0x360] sm:$0xff] }
 0x3bc   :  { %2553 = vmatpush1.msra.mxu0 %v2414_v17  ;;  %2624 = vmatpush1.msra.mxu1 %v2416_v19  ;;  %v2501_v17 = vld [vmem:[#allocation11 + $0x398] sm:$0xff]  ;;  %v2498_v19 = vld [vmem:[#allocation11 + $0x380] sm:$0xff]  ;;  %v2483_v2 = vld [vmem:[#allocation11 + $0x308] sm:$0xff] }
 0x3bd   :  { %2554 = vmatprep.subr.mxu0 %v2411_v28  ;;  %2625 = vmatprep.subr.mxu1 %v2413_v34  ;;  %v2495_v28 = vld [vmem:[#allocation11 + $0x368] sm:$0xff]  ;;  %v2497_v34 = vld [vmem:[#allocation11 + $0x378] sm:$0xff] }
 0x3be   :  { %2555 = vmatpush1.msra.mxu0 %v2410_v18  ;;  %2626 = vmatpush1.msra.mxu1 %v2412_v20  ;;  %v2496_v18 = vld [vmem:[#allocation11 + $0x370] sm:$0xff]  ;;  %v2491_v20 = vld [vmem:[#allocation11 + $0x348] sm:$0xff] }
 0x3bf   :  { %2556 = vmatprep.subr.mxu0 %v2407_v45  ;;  %2627 = vmatprep.subr.mxu1 %v2409_v24  ;;  %v2493_v45 = vld [vmem:[#allocation11 + $0x358] sm:$0xff] }
 0x3c0   :  { %2557 = vmatpush1.msra.mxu0 %v2406_v38  ;;  %2628 = vmatpush1.msra.mxu1 %v2408_v56  ;;  %v2490_v38 = vld [vmem:[#allocation11 + $0x340] sm:$0xff]  ;;  %v2492_v56 = vld [vmem:[#allocation11 + $0x350] sm:$0xff] }
 0x3c1   :  { %2558 = vmatprep.subr.mxu0 %v2403_v23  ;;  %2629 = vmatprep.subr.mxu1 %v2405_v57  ;;  %v2487_v23 = vld [vmem:[#allocation11 + $0x328] sm:$0xff]  ;;  %v2489_v57 = vld [vmem:[#allocation11 + $0x338] sm:$0xff] }
 0x3c2   :  { %2559 = vmatpush1.msra.mxu0 %v2402_v58  ;;  %2630 = vmatpush1.msra.mxu1 %v2404_v55  ;;  %v2486_v55 = vld [vmem:[#allocation11 + $0x320] sm:$0xff] }
 0x3c3   :  { %2560 = vmatprep.subr.mxu0 %v2399_v62  ;;  %2631 = vmatprep.subr.mxu1 %v2401_v63 }
 0x3c4   :  { %v7614_v10 = vpop.eup %7613  ;;  %2561 = vmatpush1.msra.mxu0 %v2398_v4  ;;  %2632 = vmatpush1.msra.mxu1 %v2400_v5  ;;  %v2485_v4 = vld [vmem:[#allocation11 + $0x318] sm:$0xff] }
 0x3c5   :  { %v1816_v14 = vadd.f32 1.0, %v7614_v10  ;;  %2562 = vmatprep.subr.mxu0 %v2395_v7  ;;  %2633 = vmatprep.subr.mxu1 %v2397_v1  ;;  %v2482_v7 = vld [vmem:[#allocation11 + $0x300] sm:$0xff]  ;;  %v2484_v1 = vld [vmem:[#allocation11 + $0x310] sm:$0xff] }
 0x3c6   :  { %v7616_v33 = vpop.eup %7615  ;;  %2563 = vmatpush1.msra.mxu0 %v2394_v53  ;;  %2634 = vmatpush1.msra.mxu1 %v2396_v8  ;;  %v2479_v53 = vld [vmem:[#allocation11 + $0x2e8] sm:$0xff]  ;;  %v2481_v8 = vld [vmem:[#allocation11 + $0x2f8] sm:$0xff] }
 0x3c7   :  { %7619 = vrcp.f32 %v1816_v14  ;;  %v1817_v41 = vadd.f32 1.0, %v7616_v33  ;;  %2564 = vmatprep.subr.mxu0 %v2391_v11  ;;  %2635 = vmatprep.subr.mxu1 %v2393_v12  ;;  %v7618_v24 = vpop.eup %7617  ;;  %v2480_v11 = vld [vmem:[#allocation11 + $0x2f0] sm:$0xff]  ;;  %v2475_v12 = vld [vmem:[#allocation11 + $0x2c8] sm:$0xff]  ;;  %v2477_v14 = vld [vmem:[#allocation11 + $0x2d8] sm:$0xff] }
 0x3c8   :  { %7621 = vtanh.f32 %v1805_v3  ;;  %2565 = vmatpush1.msra.mxu0 %v2390_v37  ;;  %2636 = vmatpush1.msra.mxu1 %v2392_v26  ;;  %v1818_v63 = vadd.f32 1.0, %v7618_v24  ;;  %v2478_v3 = vld [vmem:[#allocation11 + $0x2e0] sm:$0xff]  ;;  %v2476_v26 = vld [vmem:[#allocation11 + $0x2d0] sm:$0xff]  ;;  %v2471_v33 = vld [vmem:[#allocation11 + $0x2a8] sm:$0xff] }
 0x3c9   :  { %7623 = vrcp.f32 %v1817_v41  ;;  %2566 = vmatprep.subr.mxu0 %v2387_v31  ;;  %2637 = vmatprep.subr.mxu1 %v2389_v16  ;;  %v2474_v37 = vld [vmem:[#allocation11 + $0x2c0] sm:$0xff]  ;;  %v2473_v31 = vld [vmem:[#allocation11 + $0x2b8] sm:$0xff]  ;;  %v2472_v41 = vld [vmem:[#allocation11 + $0x2b0] sm:$0xff] }
 0x3ca   :  { %2567 = vmatpush1.msra.mxu0 %v2386_v40  ;;  %2638 = vmatpush1.msra.mxu1 %v2388_v61  ;;  %7625 = vrcp.f32 %v1818_v63  ;;  %v2470_v16 = vld [vmem:[#allocation11 + $0x2a0] sm:$0xff]  ;;  %v2467_v40 = vld [vmem:[#allocation11 + $0x288] sm:$0xff]  ;;  %v2469_v61 = vld [vmem:[#allocation11 + $0x298] sm:$0xff] }
 0x3cb   :  { %2568 = vmatprep.subr.mxu0 %v2511_v46  ;;  %2639 = vmatprep.subr.mxu1 %v2513_v43  ;;  %v2466_v46 = vld [vmem:[#allocation11 + $0x280] sm:$0xff]  ;;  %v2468_v43 = vld [vmem:[#allocation11 + $0x290] sm:$0xff]  ;;  %v2761_v63 = vld [vmem:[#allocation4 + $0x1b0] sm:$0xff] }
 0x3cc   :  { %2569 = vmatpush2.msra.mxu0 %v2510_v54  ;;  %2640 = vmatpush2.msra.mxu1 %v2512_v44  ;;  %v2463_v54 = vld [vmem:[#allocation11 + $0x268] sm:$0xff]  ;;  %v2465_v44 = vld [vmem:[#allocation11 + $0x278] sm:$0xff]  ;;  %v2770_v24 = vld [vmem:[#allocation4 + $0x1f8] sm:$0xff] }
 0x3cd   :  { %2570 = vmatprep.subr.mxu0 %v2507_v39  ;;  %2641 = vmatprep.subr.mxu1 %v2509_v47  ;;  %v2462_v39 = vld [vmem:[#allocation11 + $0x260] sm:$0xff]  ;;  %v2464_v47 = vld [vmem:[#allocation11 + $0x270] sm:$0xff] }
 0x3ce   :  { %2571 = vmatpush2.msra.mxu0 %v2506_v48  ;;  %2642 = vmatpush2.msra.mxu1 %v2508_v50  ;;  %v2459_v48 = vld [vmem:[#allocation11 + $0x248] sm:$0xff]  ;;  %v2461_v50 = vld [vmem:[#allocation11 + $0x258] sm:$0xff] }
 0x3cf   :  { %2572 = vmatprep.subr.mxu0 %v2503_v51  ;;  %2643 = vmatprep.subr.mxu1 %v2505_v52  ;;  %v2458_v51 = vld [vmem:[#allocation11 + $0x240] sm:$0xff]  ;;  %v2460_v52 = vld [vmem:[#allocation11 + $0x250] sm:$0xff] }
 0x3d0   :  { %2573 = vmatpush2.msra.mxu0 %v2502_v27  ;;  %2644 = vmatpush2.msra.mxu1 %v2504_v30  ;;  %v2455_v27 = vld [vmem:[#allocation11 + $0x228] sm:$0xff]  ;;  %v2457_v30 = vld [vmem:[#allocation11 + $0x238] sm:$0xff] }
 0x3d1   :  { %2574 = vmatprep.subr.mxu0 %v2499_v29  ;;  %2645 = vmatprep.subr.mxu1 %v2501_v17  ;;  %v2454_v29 = vld [vmem:[#allocation11 + $0x220] sm:$0xff]  ;;  %v2456_v17 = vld [vmem:[#allocation11 + $0x230] sm:$0xff] }
 0x3d2   :  { %2575 = vmatpush2.msra.mxu0 %v2498_v19  ;;  %2646 = vmatpush2.msra.mxu1 %v2500_v36  ;;  %v2451_v19 = vld [vmem:[#allocation11 + $0x208] sm:$0xff]  ;;  %v2453_v36 = vld [vmem:[#allocation11 + $0x218] sm:$0xff] }
 0x3d3   :  { %2576 = vmatprep.subr.mxu0 %v2495_v28  ;;  %2647 = vmatprep.subr.mxu1 %v2497_v34  ;;  %v2450_v34 = vld [vmem:[#allocation11 + $0x200] sm:$0xff] }
 0x3d4   :  { %v7620_v35 = vpop.eup %7619  ;;  %2577 = vmatpush2.msra.mxu0 %v2494_v42  ;;  %2648 = vmatpush2.msra.mxu1 %v2496_v18  ;;  %v2452_v42 = vld [vmem:[#allocation11 + $0x210] sm:$0xff] }
 0x3d5   :  { %v7622_v58 = vpop.eup %7621  ;;  %2578 = vmatprep.subr.mxu0 %v2491_v20  ;;  %2649 = vmatprep.subr.mxu1 %v2493_v45  ;;  %v2768_v45 = vld [vmem:[#allocation4 + $0x1e8] sm:$0xff] }
 0x3d6   :  { %v7624_v62 = vpop.eup %7623  ;;  %2579 = vmatpush2.msra.mxu0 %v2490_v38  ;;  %2650 = vmatpush2.msra.mxu1 %v2492_v56  ;;  %v1827_v6 = vmul.f32 %v7622_v58, %v7620_v35  ;;  %v2767_v38 = vld [vmem:[#allocation4 + $0x1e0] sm:$0xff]  ;;  %v2769_v56 = vld [vmem:[#allocation4 + $0x1f0] sm:$0xff]  ;;  %v2764_v35 = vld [vmem:[#allocation4 + $0x1c8] sm:$0xff] }
 0x3d7   :  { %v1826_v5 = vmul.f32 0.0, %v7624_v62  ;;  %2580 = vmatprep.subr.mxu0 %v2487_v23  ;;  %2651 = vmatprep.subr.mxu1 %v2489_v57  ;;  %v7626_v28 = vpop.eup %7625  ;;  %v2766_v23 = vld [vmem:[#allocation4 + $0x1d8] sm:$0xff]  ;;  %v2763_v57 = vld [vmem:[#allocation4 + $0x1c0] sm:$0xff]  ;;  %v2765_v58 = vld [vmem:[#allocation4 + $0x1d0] sm:$0xff] }
 0x3d8   :  { %2581 = vmatpush2.msra.mxu0 %v2486_v55  ;;  %2652 = vmatpush2.msra.mxu1 %v2488_v59  ;;  %v2760_v55 = vld [vmem:[#allocation4 + $0x1a8] sm:$0xff]  ;;  %v2762_v59 = vld [vmem:[#allocation4 + $0x1b8] sm:$0xff]  ;;  %v2759_v62 = vld [vmem:[#allocation4 + $0x1a0] sm:$0xff] }
 0x3d9   :  { %v9306_v10 = vadd.f32 %v1827_v6, %v1826_v5  ;;  %2582 = vmatprep.subr.mxu0 %v2483_v2  ;;  %2653 = vmatprep.subr.mxu1 %v2485_v4  ;;  %v2756_v2 = vld [vmem:[#allocation4 + $0x188] sm:$0xff]  ;;  %v2758_v4 = vld [vmem:[#allocation4 + $0x198] sm:$0xff]  ;;  %v2757_v5 = vld [vmem:[#allocation4 + $0x190] sm:$0xff] }
 0x3da   :  { %2583 = vmatpush2.msra.mxu0 %v2482_v7  ;;  %2654 = vmatpush2.msra.mxu1 %v2484_v1  ;;  %v2752_v6 = vld [vmem:[#allocation4 + $0x168] sm:$0xff]  ;;  %v2754_v7 = vld [vmem:[#allocation4 + $0x178] sm:$0xff]  ;;  %v2751_v1 = vld [vmem:[#allocation4 + $0x160] sm:$0xff] }
 0x3db   :  { %2584 = vmatprep.subr.mxu0 %v2479_v53  ;;  %2655 = vmatprep.subr.mxu1 %v2481_v8  ;;  %7627 = vtanh.f32 %v9306_v10  ;;  %v2753_v53 = vld [vmem:[#allocation4 + $0x170] sm:$0xff]  ;;  %v2748_v8 = vld [vmem:[#allocation4 + $0x148] sm:$0xff] }
 0x3dc   :  { %2585 = vmatpush2.msra.mxu0 %v2478_v3  ;;  %2656 = vmatpush2.msra.mxu1 %v2480_v11  ;;  %v2750_v3 = vld [vmem:[#allocation4 + $0x158] sm:$0xff]  ;;  %v2747_v11 = vld [vmem:[#allocation4 + $0x140] sm:$0xff] }
 0x3dd   :  { %2586 = vmatprep.subr.mxu0 %v2475_v12  ;;  %2657 = vmatprep.subr.mxu1 %v2477_v14  ;;  %v2749_v12 = vld [vmem:[#allocation4 + $0x150] sm:$0xff]  ;;  %v2744_v14 = vld [vmem:[#allocation4 + $0x128] sm:$0xff] }
 0x3de   :  { %2587 = vmatpush2.msra.mxu0 %v2474_v37  ;;  %2658 = vmatpush2.msra.mxu1 %v2476_v26  ;;  %v2746_v37 = vld [vmem:[#allocation4 + $0x138] sm:$0xff]  ;;  %v2743_v26 = vld [vmem:[#allocation4 + $0x120] sm:$0xff] }
 0x3df   :  { %2588 = vmatprep.subr.mxu0 %v2471_v33  ;;  %2659 = vmatprep.subr.mxu1 %v2473_v31  ;;  %v2745_v33 = vld [vmem:[#allocation4 + $0x130] sm:$0xff]  ;;  %v2740_v31 = vld [vmem:[#allocation4 + $0x108] sm:$0xff] }
 0x3e0   :  { %2589 = vmatpush2.msra.mxu0 %v2470_v16  ;;  %2660 = vmatpush2.msra.mxu1 %v2472_v41  ;;  %v2742_v16 = vld [vmem:[#allocation4 + $0x118] sm:$0xff]  ;;  %v2739_v41 = vld [vmem:[#allocation4 + $0x100] sm:$0xff] }
 0x3e1   :  { %2590 = vmatprep.subr.mxu0 %v2467_v40  ;;  %2661 = vmatprep.subr.mxu1 %v2469_v61  ;;  %v2741_v40 = vld [vmem:[#allocation4 + $0x110] sm:$0xff]  ;;  %v2736_v61 = vld [vmem:[#allocation4 + $0xe8] sm:$0xff] }
 0x3e2   :  { %2591 = vmatpush2.msra.mxu0 %v2466_v46  ;;  %2662 = vmatpush2.msra.mxu1 %v2468_v43  ;;  %v2738_v46 = vld [vmem:[#allocation4 + $0xf8] sm:$0xff]  ;;  %v2735_v43 = vld [vmem:[#allocation4 + $0xe0] sm:$0xff] }
 0x3e3   :  { %2592 = vmatprep.subr.mxu0 %v2463_v54  ;;  %2663 = vmatprep.subr.mxu1 %v2465_v44  ;;  %v2737_v54 = vld [vmem:[#allocation4 + $0xf0] sm:$0xff]  ;;  %v2732_v44 = vld [vmem:[#allocation4 + $0xc8] sm:$0xff] }
 0x3e4   :  { %2593 = vmatpush2.msra.mxu0 %v2462_v39  ;;  %2664 = vmatpush2.msra.mxu1 %v2464_v47  ;;  %v2734_v39 = vld [vmem:[#allocation4 + $0xd8] sm:$0xff]  ;;  %v2731_v47 = vld [vmem:[#allocation4 + $0xc0] sm:$0xff] }
 0x3e5   :  { %2594 = vmatprep.subr.mxu0 %v2459_v48  ;;  %2665 = vmatprep.subr.mxu1 %v2461_v50  ;;  %v2733_v48 = vld [vmem:[#allocation4 + $0xd0] sm:$0xff]  ;;  %v2728_v50 = vld [vmem:[#allocation4 + $0xa8] sm:$0xff] }
 0x3e6   :  { %2595 = vmatpush2.msra.mxu0 %v2458_v51  ;;  %2666 = vmatpush2.msra.mxu1 %v2460_v52  ;;  %v2730_v51 = vld [vmem:[#allocation4 + $0xb8] sm:$0xff]  ;;  %v2727_v52 = vld [vmem:[#allocation4 + $0xa0] sm:$0xff] }
 0x3e7   :  { %2596 = vmatprep.subr.mxu0 %v2455_v27  ;;  %2667 = vmatprep.subr.mxu1 %v2457_v30  ;;  %v2729_v27 = vld [vmem:[#allocation4 + $0xb0] sm:$0xff]  ;;  %v2724_v30 = vld [vmem:[#allocation4 + $0x88] sm:$0xff] }
 0x3e8   :  { %v7628_v18 = vpop.eup %7627  ;;  %2597 = vmatpush2.msra.mxu0 %v2454_v29  ;;  %2668 = vmatpush2.msra.mxu1 %v2456_v17  ;;  %v2726_v29 = vld [vmem:[#allocation4 + $0x98] sm:$0xff]  ;;  %v2723_v17 = vld [vmem:[#allocation4 + $0x80] sm:$0xff] }
 0x3e9   :  { %2598 = vmatprep.subr.mxu0 %v2451_v19  ;;  %2669 = vmatprep.subr.mxu1 %v2453_v36  ;;  %v9309_v20 = vmul.f32 %v7628_v18, %v7626_v28  ;;  %v2725_v19 = vld [vmem:[#allocation4 + $0x90] sm:$0xff]  ;;  %v2720_v36 = vld [vmem:[#allocation4 + $0x68] sm:$0xff]  ;;  %v2722_v28 = vld [vmem:[#allocation4 + $0x78] sm:$0xff] }
 0x3ea   :  { %2599 = vmatpush2.msra.mxu0 %v2450_v34  ;;  %2670 = vmatpush2.msra.mxu1 %v2452_v42  ;;  %v2719_v34 = vld [vmem:[#allocation4 + $0x60] sm:$0xff]  ;;  %v2721_v42 = vld [vmem:[#allocation4 + $0x70] sm:$0xff]  ;;  %v2716_v18 = vld [vmem:[#allocation4 + $0x48] sm:$0xff] }
 0x3eb   :  { %10653 = vst [vmem:[#allocation45_spill] sm:$0xff] %v9309_v20  ;;  %2600 = vmatprep.mubr.f32.mxu0 %v9309_v20  ;;  %2671 = vmatprep.mubr.f32.mxu1 %v9309_v20 }
 0x3ec   :  { %2601 = vmatmul.mubr.f32.vlgmr.msra.gmra.mxu0 %v9290_v25  ;;  %2672 = vmatmul.mubr.f32.vlgmr.msra.gmra.mxu1 %v9290_v25  ;;  %v2755_v25 = vld [vmem:[#allocation4 + $0x180] sm:$0xff] }
 0x3ed   :  { %2771 = vmatprep.subr.mxu0 %v2768_v45  ;;  %2842 = vmatprep.subr.mxu1 %v2770_v24  ;;  %v2718_v45 = vld [vmem:[#allocation4 + $0x58] sm:$0xff]  ;;  %v2715_v24 = vld [vmem:[#allocation4 + $0x40] sm:$0xff] }
 0x3ee   :  { %2772 = vmatpush1.msra.mxu0 %v2767_v38  ;;  %2843 = vmatpush1.msra.mxu1 %v2769_v56  ;;  %v2717_v38 = vld [vmem:[#allocation4 + $0x50] sm:$0xff]  ;;  %v2712_v56 = vld [vmem:[#allocation4 + $0x28] sm:$0xff] }
 0x3ef   :  { %2773 = vmatprep.subr.mxu0 %v2764_v35  ;;  %2844 = vmatprep.subr.mxu1 %v2766_v23  ;;  %v2714_v35 = vld [vmem:[#allocation4 + $0x38] sm:$0xff]  ;;  %v2711_v23 = vld [vmem:[#allocation4 + $0x20] sm:$0xff] }
 0x3f0   :  { %2774 = vmatpush1.msra.mxu0 %v2763_v57  ;;  %2845 = vmatpush1.msra.mxu1 %v2765_v58  ;;  %v2713_v57 = vld [vmem:[#allocation4 + $0x30] sm:$0xff]  ;;  %v2708_v58 = vld [vmem:[#allocation4 + $0x8] sm:$0xff] }
 0x3f1   :  { %2775 = vmatprep.subr.mxu0 %v2760_v55  ;;  %2846 = vmatprep.subr.mxu1 %v2762_v59  ;;  %v2710_v55 = vld [vmem:[#allocation4 + $0x18] sm:$0xff]  ;;  %v2707_v59 = vld [vmem:[#allocation4] sm:$0xff] }
 0x3f2   :  { %2776 = vmatpush1.msra.mxu0 %v2759_v62  ;;  %2847 = vmatpush1.msra.mxu1 %v2761_v63  ;;  %v2709_v62 = vld [vmem:[#allocation4 + $0x10] sm:$0xff] }
 0x3f3   :  { %2777 = vmatprep.subr.mxu0 %v2756_v2  ;;  %2848 = vmatprep.subr.mxu1 %v2758_v4  ;;  %v3002_v63 = vld [vmem:[#allocation8 + $0x1e8] sm:$0xff]  ;;  %v3004_v2 = vld [vmem:[#allocation8 + $0x1f8] sm:$0xff] }
 0x3f4   :  { %2778 = vmatpush1.msra.mxu0 %v2755_v25  ;;  %2849 = vmatpush1.msra.mxu1 %v2757_v5  ;;  %v10654_v25 = vld [vmem:[#allocation36_spill] sm:$0xff] }
 0x3f5   :  { %2779 = vmatprep.subr.mxu0 %v2752_v6  ;;  %2850 = vmatprep.subr.mxu1 %v2754_v7 }
 0x3f6   :  { %2780 = vmatpush1.msra.mxu0 %v2751_v1  ;;  %2851 = vmatpush1.msra.mxu1 %v2753_v53  ;;  %v10655_v1 = vld [vmem:[#allocation37_spill] sm:$0xff] }
 0x3f7   :  { %2781 = vmatprep.subr.mxu0 %v2748_v8  ;;  %2852 = vmatprep.subr.mxu1 %v2750_v3 }
 0x3f8   :  { %2782 = vmatpush1.msra.mxu0 %v2747_v11  ;;  %2853 = vmatpush1.msra.mxu1 %v2749_v12  ;;  %v10656_v11 = vld [vmem:[#allocation22_spill] sm:$0xff] }
 0x3f9   :  { %2783 = vmatprep.subr.mxu0 %v2744_v14  ;;  %2854 = vmatprep.subr.mxu1 %v2746_v37 }
 0x3fa   :  { %2784 = vmatpush1.msra.mxu0 %v2743_v26  ;;  %2855 = vmatpush1.msra.mxu1 %v2745_v33  ;;  %v10657_v26 = vld [vmem:[#allocation23_spill] sm:$0xff] }
 0x3fb   :  { %2785 = vmatprep.subr.mxu0 %v2740_v31  ;;  %2856 = vmatprep.subr.mxu1 %v2742_v16 }
 0x3fc   :  { %2786 = vmatpush1.msra.mxu0 %v2739_v41  ;;  %2857 = vmatpush1.msra.mxu1 %v2741_v40 }
 0x3fd   :  { %2787 = vmatprep.subr.mxu0 %v2736_v61  ;;  %2858 = vmatprep.subr.mxu1 %v2738_v46 }
 0x3fe   :  { %2788 = vmatpush1.msra.mxu0 %v2735_v43  ;;  %2859 = vmatpush1.msra.mxu1 %v2737_v54 }
 0x3ff   :  { %2789 = vmatprep.subr.mxu0 %v2732_v44  ;;  %2860 = vmatprep.subr.mxu1 %v2734_v39 }
 0x400   :  { %2790 = vmatpush1.msra.mxu0 %v2731_v47  ;;  %2861 = vmatpush1.msra.mxu1 %v2733_v48 }
 0x401   :  { %2791 = vmatprep.subr.mxu0 %v2728_v50  ;;  %2862 = vmatprep.subr.mxu1 %v2730_v51 }
 0x402   :  { %2792 = vmatpush1.msra.mxu0 %v2727_v52  ;;  %2863 = vmatpush1.msra.mxu1 %v2729_v27  ;;  %v3001_v27 = vld [vmem:[#allocation8 + $0x1e0] sm:$0xff] }
 0x403   :  { %2793 = vmatprep.subr.mxu0 %v2724_v30  ;;  %2864 = vmatprep.subr.mxu1 %v2726_v29  ;;  %v3003_v30 = vld [vmem:[#allocation8 + $0x1f0] sm:$0xff]  ;;  %v2998_v29 = vld [vmem:[#allocation8 + $0x1c8] sm:$0xff] }
 0x404   :  { %2794 = vmatpush1.msra.mxu0 %v2723_v17  ;;  %2865 = vmatpush1.msra.mxu1 %v2725_v19  ;;  %v3000_v17 = vld [vmem:[#allocation8 + $0x1d8] sm:$0xff]  ;;  %v2997_v19 = vld [vmem:[#allocation8 + $0x1c0] sm:$0xff] }
 0x405   :  { %2795 = vmatprep.subr.mxu0 %v2720_v36  ;;  %2866 = vmatprep.subr.mxu1 %v2722_v28  ;;  %v2999_v36 = vld [vmem:[#allocation8 + $0x1d0] sm:$0xff]  ;;  %v2996_v28 = vld [vmem:[#allocation8 + $0x1b8] sm:$0xff] }
 0x406   :  { %2796 = vmatpush1.msra.mxu0 %v2719_v34  ;;  %2867 = vmatpush1.msra.mxu1 %v2721_v42  ;;  %v2993_v34 = vld [vmem:[#allocation8 + $0x1a0] sm:$0xff]  ;;  %v2995_v42 = vld [vmem:[#allocation8 + $0x1b0] sm:$0xff] }
 0x407   :  { %2797 = vmatprep.subr.mxu0 %v2716_v18  ;;  %2868 = vmatprep.subr.mxu1 %v2718_v45  ;;  %v2990_v18 = vld [vmem:[#allocation8 + $0x188] sm:$0xff]  ;;  %v2992_v45 = vld [vmem:[#allocation8 + $0x198] sm:$0xff] }
 0x408   :  { %2798 = vmatpush1.msra.mxu0 %v2715_v24  ;;  %2869 = vmatpush1.msra.mxu1 %v2717_v38  ;;  %v9329_v24 = vld [vmem:[#allocation9] sm:$0xf] }
 0x409   :  { %2799 = vmatprep.subr.mxu0 %v2712_v56  ;;  %2870 = vmatprep.subr.mxu1 %v2714_v35  ;;  %v2989_v38 = vld [vmem:[#allocation8 + $0x180] sm:$0xff]  ;;  %v2991_v56 = vld [vmem:[#allocation8 + $0x190] sm:$0xff]  ;;  %v2986_v35 = vld [vmem:[#allocation8 + $0x168] sm:$0xff] }
 0x40a   :  { %2800 = vmatpush1.msra.mxu0 %v2711_v23  ;;  %2871 = vmatpush1.msra.mxu1 %v2713_v57  ;;  %v2988_v23 = vld [vmem:[#allocation8 + $0x178] sm:$0xff]  ;;  %v2985_v57 = vld [vmem:[#allocation8 + $0x160] sm:$0xff] }
 0x40b   :  { %2801 = vmatprep.subr.mxu0 %v2708_v58  ;;  %2872 = vmatprep.subr.mxu1 %v2710_v55  ;;  %v2987_v58 = vld [vmem:[#allocation8 + $0x170] sm:$0xff]  ;;  %v2203_v55 = vrot.slane %v9329_v24, %v8610_v32 }
 0x40c   :  { %2802 = vmatpush1.msra.mxu0 %v2707_v59  ;;  %2835 = vmatprep.mubr.f32.mxu0 %v10534_v22  ;;  %v2982_v59 = vld [vmem:[#allocation8 + $0x148] sm:$0xff] }
 0x40d   :  { %2873 = vmatpush1.msra.mxu1 %v2709_v62  ;;  %2906 = vmatprep.mubr.f32.mxu1 %v10534_v22  ;;  %v2984_v62 = vld [vmem:[#allocation8 + $0x158] sm:$0xff] }
 0x40e   :  { %3091 = vmatprep.subr.mxu0 %v3002_v63  ;;  %3162 = vmatprep.subr.mxu1 %v3004_v2  ;;  %v2981_v63 = vld [vmem:[#allocation8 + $0x140] sm:$0xff]  ;;  %v2983_v2 = vld [vmem:[#allocation8 + $0x150] sm:$0xff] }
 0x428   :  { %v1966_v4 = vpop.f32.mrf.mxu0  ;;  %v2037_v3 = vpop.f32.mrf.mxu1 }
 0x429   :  { %v2042_v5 = vadd.f32 %v1966_v4, %v10654_v25  ;;  %v2044_v12 = vadd.f32 %v2037_v3, %v10656_v11  ;;  %v2207_v4 = vrot.slane %v9329_v24, %v10539_v21  ;;  %v2978_v25 = vld [vmem:[#allocation8 + $0x128] sm:$0xff]  ;;  %v2976_v3 = vld [vmem:[#allocation8 + $0x118] sm:$0xff] }
 0x42a   :  { %v1968_v6 = vpop.f32.mrf.mxu0  ;;  %v2039_v14 = vpop.f32.mrf.mxu1 }
 0x42b   :  { %v7399_v7 = vmul.f32 -1.442695, %v2042_v5  ;;  %v2043_v53 = vadd.f32 %v1968_v6, %v10655_v1  ;;  %v7401_v37 = vmul.f32 -1.442695, %v2044_v12  ;;  %v2045_v33 = vadd.f32 %v2039_v14, %v10657_v26  ;;  %v2980_v5 = vld [vmem:[#allocation8 + $0x138] sm:$0xff]  ;;  %v2979_v1 = vld [vmem:[#allocation8 + $0x130] sm:$0xff] }
 0x42c   :  { %v2973_v12 = vld [vmem:[#allocation8 + $0x100] sm:$0xff]  ;;  %v2975_v14 = vld [vmem:[#allocation8 + $0x110] sm:$0xff] }
 0x42d   :  { %7629 = vpow2.f32 %v7399_v7  ;;  %v7400_v8 = vmul.f32 -1.442695, %v2043_v53  ;;  %v2977_v7 = vld [vmem:[#allocation8 + $0x120] sm:$0xff] }
 0x42f   :  { %7631 = vpow2.f32 %v7400_v8  ;;  %v2974_v8 = vld [vmem:[#allocation8 + $0x108] sm:$0xff] }
 0x430   :  { %7633 = vpow2.f32 %v7401_v37 }
 0x431   :  { %7635 = vtanh.f32 %v2045_v33  ;;  %v2970_v33 = vld [vmem:[#allocation8 + $0xe8] sm:$0xff] }
 0x43a   :  { %v7630_v31 = vpop.eup %7629 }
 0x43b   :  { %v2055_v16 = vadd.f32 1.0, %v7630_v31  ;;  %v2972_v31 = vld [vmem:[#allocation8 + $0xf8] sm:$0xff] }
 0x43c   :  { %v7632_v41 = vpop.eup %7631 }
 0x43d   :  { %7637 = vrcp.f32 %v2055_v16  ;;  %v2056_v40 = vadd.f32 1.0, %v7632_v41  ;;  %v7634_v61 = vpop.eup %7633  ;;  %v2969_v16 = vld [vmem:[#allocation8 + $0xe0] sm:$0xff]  ;;  %v2971_v41 = vld [vmem:[#allocation8 + $0xf0] sm:$0xff] }
 0x43e   :  { %v7636_v46 = vpop.eup %7635  ;;  %v2057_v39 = vadd.f32 1.0, %v7634_v61  ;;  %v2966_v61 = vld [vmem:[#allocation8 + $0xc8] sm:$0xff] }
 0x43f   :  { %7639 = vrcp.f32 %v2056_v40 }
 0x440   :  { %7641 = vrcp.f32 %v2057_v39  ;;  %v2964_v39 = vld [vmem:[#allocation8 + $0xb8] sm:$0xff] }
 0x44a   :  { %v7638_v43 = vpop.eup %7637 }
 0x44b   :  { %v2066_v54 = vmul.f32 %v7638_v43, %v7636_v46  ;;  %v2968_v46 = vld [vmem:[#allocation8 + $0xd8] sm:$0xff]  ;;  %v2965_v43 = vld [vmem:[#allocation8 + $0xc0] sm:$0xff] }
 0x44c   :  { %v7640_v44 = vpop.eup %7639 }
 0x44d   :  { %v2065_v47 = vmul.f32 %v7640_v44, %v9275_v60  ;;  %v7642_v50 = vpop.eup %7641  ;;  %v2994_v60 = vld [vmem:[#allocation8 + $0x1a8] sm:$0xff] }
 0x44e   :  { %v2962_v44 = vld [vmem:[#allocation8 + $0xa8] sm:$0xff] }
 0x44f   :  { %v9322_v48 = vadd.f32 %v2066_v54, %v2065_v47  ;;  %v2967_v54 = vld [vmem:[#allocation8 + $0xd0] sm:$0xff]  ;;  %v2211_v47 = vrot.slane %v9329_v24, %v10556_v13 }
 0x451   :  { %7643 = vtanh.f32 %v9322_v48 }
 0x45e   :  { %v7644_v51 = vpop.eup %7643 }
 0x45f   :  { %v9325_v52 = vmul.f32 %v7644_v51, %v7642_v50  ;;  %v2961_v50 = vld [vmem:[#allocation8 + $0xa0] sm:$0xff]  ;;  %v2963_v51 = vld [vmem:[#allocation8 + $0xb0] sm:$0xff] }
 0x461   :  { %2836 = vmatmul.mubr.f32.vlgmr.msra.gmra.mxu0 %v9325_v52  ;;  %2907 = vmatmul.mubr.f32.vlgmr.msra.gmra.mxu1 %v9325_v52 }
 0x462   :  { %3092 = vmatpush1.msra.mxu0 %v3001_v27  ;;  %3163 = vmatpush1.msra.mxu1 %v3003_v30  ;;  %v2958_v30 = vld [vmem:[#allocation8 + $0x88] sm:$0xff] }
 0x463   :  { %3093 = vmatprep.subr.mxu0 %v2998_v29  ;;  %3164 = vmatprep.subr.mxu1 %v3000_v17  ;;  %v2960_v29 = vld [vmem:[#allocation8 + $0x98] sm:$0xff]  ;;  %v2957_v17 = vld [vmem:[#allocation8 + $0x80] sm:$0xff] }
 0x464   :  { %3094 = vmatpush1.msra.mxu0 %v2997_v19  ;;  %3165 = vmatpush1.msra.mxu1 %v2999_v36  ;;  %v2959_v19 = vld [vmem:[#allocation8 + $0x90] sm:$0xff]  ;;  %v2954_v36 = vld [vmem:[#allocation8 + $0x68] sm:$0xff] }
 0x465   :  { %3095 = vmatprep.subr.mxu0 %v2994_v60  ;;  %3166 = vmatprep.subr.mxu1 %v2996_v28  ;;  %v2956_v60 = vld [vmem:[#allocation8 + $0x78] sm:$0xff] }
 0x466   :  { %3096 = vmatpush1.msra.mxu0 %v2993_v34  ;;  %3167 = vmatpush1.msra.mxu1 %v2995_v42  ;;  %v2953_v34 = vld [vmem:[#allocation8 + $0x60] sm:$0xff]  ;;  %v2955_v42 = vld [vmem:[#allocation8 + $0x70] sm:$0xff] }
 0x467   :  { %3097 = vmatprep.subr.mxu0 %v2990_v18  ;;  %3168 = vmatprep.subr.mxu1 %v2992_v45  ;;  %v2950_v18 = vld [vmem:[#allocation8 + $0x48] sm:$0xff]  ;;  %v2952_v45 = vld [vmem:[#allocation8 + $0x58] sm:$0xff] }
 0x468   :  { %3098 = vmatpush1.msra.mxu0 %v2989_v38  ;;  %3169 = vmatpush1.msra.mxu1 %v2991_v56  ;;  %v2215_v38 = vrot.slane %v9329_v24, %v10569_v49  ;;  %v2949_v56 = vld [vmem:[#allocation8 + $0x40] sm:$0xff] }
 0x469   :  { %3099 = vmatprep.subr.mxu0 %v2986_v35  ;;  %3170 = vmatprep.subr.mxu1 %v2988_v23  ;;  %v2951_v35 = vld [vmem:[#allocation8 + $0x50] sm:$0xff] }
 0x46a   :  { %3100 = vmatpush1.msra.mxu0 %v2985_v57  ;;  %3171 = vmatpush1.msra.mxu1 %v2987_v58  ;;  %v2946_v57 = vld [vmem:[#allocation8 + $0x28] sm:$0xff]  ;;  %v2948_v58 = vld [vmem:[#allocation8 + $0x38] sm:$0xff] }
 0x46b   :  { %v2286_v6 = vpop.f32.mrf.mxu0  ;;  %3101 = vmatprep.subr.mxu0 %v2982_v59  ;;  %3172 = vmatprep.subr.mxu1 %v2984_v62  ;;  %v2357_v27 = vpop.f32.mrf.mxu1  ;;  %v2945_v59 = vld [vmem:[#allocation8 + $0x20] sm:$0xff]  ;;  %v2947_v62 = vld [vmem:[#allocation8 + $0x30] sm:$0xff] }
 0x46c   :  { %v2287_v53 = vadd.f32 %v2286_v6, %v2203_v55  ;;  %3102 = vmatpush1.msra.mxu0 %v2981_v63  ;;  %3173 = vmatpush1.msra.mxu1 %v2983_v2  ;;  %v2358_v28 = vadd.f32 %v2357_v27, %v2211_v47  ;;  %v2942_v63 = vld [vmem:[#allocation8 + $0x8] sm:$0xff]  ;;  %v2944_v2 = vld [vmem:[#allocation8 + $0x18] sm:$0xff]  ;;  %v3051_v47 = vld [vmem:[#allocation8 + $0x370] sm:$0xff] }
 0x46d   :  { %v2288_v11 = vpop.f32.mrf.mxu0  ;;  %3103 = vmatprep.subr.mxu0 %v2978_v25  ;;  %3174 = vmatprep.subr.mxu1 %v2980_v5  ;;  %v2359_v23 = vpop.f32.mrf.mxu1  ;;  %v2941_v25 = vld [vmem:[#allocation8] sm:$0xff]  ;;  %v2943_v5 = vld [vmem:[#allocation8 + $0x10] sm:$0xff] }
 0x46e   :  { %v7402_v37 = vmul.f32 -1.442695, %v2287_v53  ;;  %v2289_v26 = vadd.f32 %v2288_v11, %v2207_v4  ;;  %3104 = vmatpush1.msra.mxu0 %v2977_v7  ;;  %3175 = vmatpush1.msra.mxu1 %v2979_v1  ;;  %v7404_v55 = vmul.f32 -1.442695, %v2358_v28  ;;  %v2360_v24 = vadd.f32 %v2359_v23, %v2215_v38  ;;  %v3066_v7 = vld [vmem:[#allocation8 + $0x3e8] sm:$0xff]  ;;  %v3068_v1 = vld [vmem:[#allocation8 + $0x3f8] sm:$0xff] }
 0x46f   :  { %3105 = vmatprep.subr.mxu0 %v2974_v8  ;;  %3176 = vmatprep.subr.mxu1 %v2976_v3  ;;  %v3065_v8 = vld [vmem:[#allocation8 + $0x3e0] sm:$0xff]  ;;  %v3067_v3 = vld [vmem:[#allocation8 + $0x3f0] sm:$0xff]  ;;  %v3038_v28 = vld [vmem:[#allocation8 + $0x308] sm:$0xff] }
 0x470   :  { %7645 = vpow2.f32 %v7402_v37  ;;  %v7403_v40 = vmul.f32 -1.442695, %v2289_v26  ;;  %3106 = vmatpush1.msra.mxu0 %v2973_v12  ;;  %3177 = vmatpush1.msra.mxu1 %v2975_v14  ;;  %v3062_v12 = vld [vmem:[#allocation8 + $0x3c8] sm:$0xff]  ;;  %v3064_v14 = vld [vmem:[#allocation8 + $0x3d8] sm:$0xff]  ;;  %v3061_v37 = vld [vmem:[#allocation8 + $0x3c0] sm:$0xff] }
 0x471   :  { %3107 = vmatprep.subr.mxu0 %v2970_v33  ;;  %3178 = vmatprep.subr.mxu1 %v2972_v31  ;;  %v3063_v26 = vld [vmem:[#allocation8 + $0x3d0] sm:$0xff]  ;;  %v3058_v33 = vld [vmem:[#allocation8 + $0x3a8] sm:$0xff]  ;;  %v3060_v31 = vld [vmem:[#allocation8 + $0x3b8] sm:$0xff] }
 0x472   :  { %7647 = vpow2.f32 %v7403_v40  ;;  %3108 = vmatpush1.msra.mxu0 %v2969_v16  ;;  %3179 = vmatpush1.msra.mxu1 %v2971_v41  ;;  %v3057_v16 = vld [vmem:[#allocation8 + $0x3a0] sm:$0xff]  ;;  %v3059_v41 = vld [vmem:[#allocation8 + $0x3b0] sm:$0xff]  ;;  %v3054_v40 = vld [vmem:[#allocation8 + $0x388] sm:$0xff] }
 0x473   :  { %3109 = vmatprep.subr.mxu0 %v2966_v61  ;;  %3180 = vmatprep.subr.mxu1 %v2968_v46  ;;  %7649 = vpow2.f32 %v7404_v55  ;;  %v3056_v61 = vld [vmem:[#allocation8 + $0x398] sm:$0xff]  ;;  %v3053_v46 = vld [vmem:[#allocation8 + $0x380] sm:$0xff]  ;;  %v3035_v55 = vld [vmem:[#allocation8 + $0x2f0] sm:$0xff] }
 0x474   :  { %3110 = vmatpush1.msra.mxu0 %v2965_v43  ;;  %3181 = vmatpush1.msra.mxu1 %v2967_v54  ;;  %v3055_v43 = vld [vmem:[#allocation8 + $0x390] sm:$0xff]  ;;  %v3050_v54 = vld [vmem:[#allocation8 + $0x368] sm:$0xff]  ;;  %v3045_v27 = vld [vmem:[#allocation8 + $0x340] sm:$0xff] }
 0x475   :  { %3111 = vmatprep.subr.mxu0 %v2962_v44  ;;  %3182 = vmatprep.subr.mxu1 %v2964_v39  ;;  %v3052_v44 = vld [vmem:[#allocation8 + $0x378] sm:$0xff]  ;;  %v3049_v39 = vld [vmem:[#allocation8 + $0x360] sm:$0xff] }
 0x476   :  { %3112 = vmatpush1.msra.mxu0 %v2961_v50  ;;  %3183 = vmatpush1.msra.mxu1 %v2963_v51  ;;  %v3046_v50 = vld [vmem:[#allocation8 + $0x348] sm:$0xff]  ;;  %v3048_v51 = vld [vmem:[#allocation8 + $0x358] sm:$0xff] }
 0x477   :  { %3113 = vmatprep.subr.mxu0 %v2958_v30  ;;  %3184 = vmatprep.subr.mxu1 %v2960_v29  ;;  %v3047_v30 = vld [vmem:[#allocation8 + $0x350] sm:$0xff]  ;;  %v3042_v29 = vld [vmem:[#allocation8 + $0x328] sm:$0xff] }
 0x478   :  { %3114 = vmatpush1.msra.mxu0 %v2957_v17  ;;  %3185 = vmatpush1.msra.mxu1 %v2959_v19  ;;  %v3044_v17 = vld [vmem:[#allocation8 + $0x338] sm:$0xff]  ;;  %v3041_v19 = vld [vmem:[#allocation8 + $0x320] sm:$0xff] }
 0x479   :  { %3115 = vmatprep.subr.mxu0 %v2954_v36  ;;  %3186 = vmatprep.subr.mxu1 %v2956_v60  ;;  %v3043_v36 = vld [vmem:[#allocation8 + $0x330] sm:$0xff] }
 0x47a   :  { %3116 = vmatpush1.msra.mxu0 %v2953_v34  ;;  %3187 = vmatpush1.msra.mxu1 %v2955_v42  ;;  %v3040_v34 = vld [vmem:[#allocation8 + $0x318] sm:$0xff] }
 0x47b   :  { %3117 = vmatprep.subr.mxu0 %v2950_v18  ;;  %3188 = vmatprep.subr.mxu1 %v2952_v45  ;;  %v3037_v18 = vld [vmem:[#allocation8 + $0x300] sm:$0xff]  ;;  %v3039_v45 = vld [vmem:[#allocation8 + $0x310] sm:$0xff] }
 0x47c   :  { %3118 = vmatpush1.msra.mxu0 %v2949_v56  ;;  %3189 = vmatpush1.msra.mxu1 %v2951_v35  ;;  %v3034_v56 = vld [vmem:[#allocation8 + $0x2e8] sm:$0xff]  ;;  %v3036_v35 = vld [vmem:[#allocation8 + $0x2f8] sm:$0xff] }
 0x47d   :  { %v7646_v4 = vpop.eup %7645  ;;  %3119 = vmatprep.subr.mxu0 %v2946_v57  ;;  %3190 = vmatprep.subr.mxu1 %v2948_v58  ;;  %v3033_v58 = vld [vmem:[#allocation8 + $0x2e0] sm:$0xff] }
 0x47e   :  { %v2371_v6 = vadd.f32 1.0, %v7646_v4  ;;  %3120 = vmatpush1.msra.mxu0 %v2945_v59  ;;  %3191 = vmatpush1.msra.mxu1 %v2947_v62  ;;  %v3029_v4 = vld [vmem:[#allocation8 + $0x2c0] sm:$0xff] }
 0x47f   :  { %v7648_v53 = vpop.eup %7647  ;;  %3121 = vmatprep.subr.mxu0 %v2942_v63  ;;  %3192 = vmatprep.subr.mxu1 %v2944_v2  ;;  %v3030_v63 = vld [vmem:[#allocation8 + $0x2c8] sm:$0xff]  ;;  %v3032_v2 = vld [vmem:[#allocation8 + $0x2d8] sm:$0xff] }
 0x480   :  { %7651 = vrcp.f32 %v2371_v6  ;;  %v2372_v11 = vadd.f32 1.0, %v7648_v53  ;;  %3122 = vmatpush1.msra.mxu0 %v2941_v25  ;;  %3193 = vmatpush1.msra.mxu1 %v2943_v5  ;;  %v7650_v60 = vpop.eup %7649  ;;  %v3026_v5 = vld [vmem:[#allocation8 + $0x2a8] sm:$0xff]  ;;  %v3028_v6 = vld [vmem:[#allocation8 + $0x2b8] sm:$0xff] }
 0x481   :  { %7653 = vtanh.f32 %v2360_v24  ;;  %3123 = vmatprep.subr.mxu0 %v3066_v7  ;;  %3194 = vmatprep.subr.mxu1 %v3068_v1  ;;  %v2373_v57 = vadd.f32 1.0, %v7650_v60  ;;  %v3031_v24 = vld [vmem:[#allocation8 + $0x2d0] sm:$0xff]  ;;  %v3025_v7 = vld [vmem:[#allocation8 + $0x2a0] sm:$0xff]  ;;  %v3022_v1 = vld [vmem:[#allocation8 + $0x288] sm:$0xff] }
 0x482   :  { %7655 = vrcp.f32 %v2372_v11  ;;  %3124 = vmatpush2.msra.mxu0 %v3065_v8  ;;  %3195 = vmatpush2.msra.mxu1 %v3067_v3  ;;  %v3024_v53 = vld [vmem:[#allocation8 + $0x298] sm:$0xff]  ;;  %v3021_v8 = vld [vmem:[#allocation8 + $0x280] sm:$0xff]  ;;  %v3023_v3 = vld [vmem:[#allocation8 + $0x290] sm:$0xff] }
 0x483   :  { %3125 = vmatprep.subr.mxu0 %v3062_v12  ;;  %3196 = vmatprep.subr.mxu1 %v3064_v14  ;;  %7657 = vrcp.f32 %v2373_v57  ;;  %v3018_v11 = vld [vmem:[#allocation8 + $0x268] sm:$0xff]  ;;  %v3020_v12 = vld [vmem:[#allocation8 + $0x278] sm:$0xff]  ;;  %v3017_v14 = vld [vmem:[#allocation8 + $0x260] sm:$0xff] }
 0x484   :  { %3126 = vmatpush2.msra.mxu0 %v3061_v37  ;;  %3197 = vmatpush2.msra.mxu1 %v3063_v26  ;;  %v3019_v37 = vld [vmem:[#allocation8 + $0x270] sm:$0xff]  ;;  %v3014_v26 = vld [vmem:[#allocation8 + $0x248] sm:$0xff] }
 0x485   :  { %3127 = vmatprep.subr.mxu0 %v3058_v33  ;;  %3198 = vmatprep.subr.mxu1 %v3060_v31  ;;  %v3016_v33 = vld [vmem:[#allocation8 + $0x258] sm:$0xff]  ;;  %v3013_v31 = vld [vmem:[#allocation8 + $0x240] sm:$0xff] }
 0x486   :  { %3128 = vmatpush2.msra.mxu0 %v3057_v16  ;;  %3199 = vmatpush2.msra.mxu1 %v3059_v41  ;;  %v3015_v16 = vld [vmem:[#allocation8 + $0x250] sm:$0xff]  ;;  %v3010_v41 = vld [vmem:[#allocation8 + $0x228] sm:$0xff] }
 0x487   :  { %3129 = vmatprep.subr.mxu0 %v3054_v40  ;;  %3200 = vmatprep.subr.mxu1 %v3056_v61  ;;  %v3012_v40 = vld [vmem:[#allocation8 + $0x238] sm:$0xff]  ;;  %v3009_v61 = vld [vmem:[#allocation8 + $0x220] sm:$0xff] }
 0x488   :  { %3130 = vmatpush2.msra.mxu0 %v3053_v46  ;;  %3201 = vmatpush2.msra.mxu1 %v3055_v43  ;;  %v3011_v46 = vld [vmem:[#allocation8 + $0x230] sm:$0xff]  ;;  %v3006_v43 = vld [vmem:[#allocation8 + $0x208] sm:$0xff] }
 0x489   :  { %3131 = vmatprep.subr.mxu0 %v3050_v54  ;;  %3202 = vmatprep.subr.mxu1 %v3052_v44  ;;  %v3008_v54 = vld [vmem:[#allocation8 + $0x218] sm:$0xff]  ;;  %v3005_v44 = vld [vmem:[#allocation8 + $0x200] sm:$0xff] }
 0x48a   :  { %3132 = vmatpush2.msra.mxu0 %v3049_v39  ;;  %3203 = vmatpush2.msra.mxu1 %v3051_v47  ;;  %v3007_v39 = vld [vmem:[#allocation8 + $0x210] sm:$0xff]  ;;  %v3313_v60 = vld [vmem:[#allocation11 + $0x1c0] sm:$0xff] }
 0x48b   :  { %3133 = vmatprep.subr.mxu0 %v3046_v50  ;;  %3204 = vmatprep.subr.mxu1 %v3048_v51  ;;  %v3318_v47 = vld [vmem:[#allocation11 + $0x1e8] sm:$0xff]  ;;  %v3320_v50 = vld [vmem:[#allocation11 + $0x1f8] sm:$0xff]  ;;  %v3307_v57 = vld [vmem:[#allocation11 + $0x190] sm:$0xff] }
 0x48c   :  { %3134 = vmatpush2.msra.mxu0 %v3045_v27  ;;  %3205 = vmatpush2.msra.mxu1 %v3047_v30 }
 0x48d   :  { %v7652_v42 = vpop.eup %7651  ;;  %3135 = vmatprep.subr.mxu0 %v3042_v29  ;;  %3206 = vmatprep.subr.mxu1 %v3044_v17  ;;  %v3317_v29 = vld [vmem:[#allocation11 + $0x1e0] sm:$0xff]  ;;  %v3319_v17 = vld [vmem:[#allocation11 + $0x1f0] sm:$0xff] }
 0x48e   :  { %v7654_v38 = vpop.eup %7653  ;;  %3136 = vmatpush2.msra.mxu0 %v3041_v19  ;;  %3207 = vmatpush2.msra.mxu1 %v3043_v36  ;;  %v3314_v19 = vld [vmem:[#allocation11 + $0x1c8] sm:$0xff]  ;;  %v3316_v36 = vld [vmem:[#allocation11 + $0x1d8] sm:$0xff] }
 0x48f   :  { %v7656_v23 = vpop.eup %7655  ;;  %3137 = vmatprep.subr.mxu0 %v3038_v28  ;;  %3208 = vmatprep.subr.mxu1 %v3040_v34  ;;  %v2382_v62 = vmul.f32 %v7654_v38, %v7652_v42  ;;  %v3315_v28 = vld [vmem:[#allocation11 + $0x1d0] sm:$0xff]  ;;  %v3310_v34 = vld [vmem:[#allocation11 + $0x1a8] sm:$0xff]  ;;  %v3312_v42 = vld [vmem:[#allocation11 + $0x1b8] sm:$0xff] }
 0x490   :  { %v2381_v59 = vmul.f32 %v7656_v23, %v9287_v15  ;;  %3138 = vmatpush2.msra.mxu0 %v3037_v18  ;;  %3209 = vmatpush2.msra.mxu1 %v3039_v45  ;;  %v3027_v15 = vld [vmem:[#allocation8 + $0x2b0] sm:$0xff]  ;;  %v7658_v51 = vpop.eup %7657  ;;  %v9349_v18 = vld [vmem:[#allocation12] sm:$0xf] }
 0x491   :  { %3139 = vmatprep.subr.mxu0 %v3034_v56  ;;  %3210 = vmatprep.subr.mxu1 %v3036_v35  ;;  %v3309_v45 = vld [vmem:[#allocation11 + $0x1a0] sm:$0xff]  ;;  %v3311_v38 = vld [vmem:[#allocation11 + $0x1b0] sm:$0xff]  ;;  %v3306_v56 = vld [vmem:[#allocation11 + $0x188] sm:$0xff] }
 0x492   :  { %v9340_v25 = vadd.f32 %v2382_v62, %v2381_v59  ;;  %3140 = vmatpush2.msra.mxu0 %v3033_v58  ;;  %3211 = vmatpush2.msra.mxu1 %v3035_v55  ;;  %v3308_v35 = vld [vmem:[#allocation11 + $0x198] sm:$0xff]  ;;  %v3305_v23 = vld [vmem:[#allocation11 + $0x180] sm:$0xff]  ;;  %v3302_v58 = vld [vmem:[#allocation11 + $0x168] sm:$0xff]  ;;  %v2523_v59 = vrot.slane %v9349_v18, %v10539_v21 }
 0x493   :  { %3141 = vmatprep.subr.mxu0 %v3030_v63  ;;  %3212 = vmatprep.subr.mxu1 %v3032_v2  ;;  %v3304_v55 = vld [vmem:[#allocation11 + $0x178] sm:$0xff]  ;;  %v3301_v62 = vld [vmem:[#allocation11 + $0x160] sm:$0xff]  ;;  %v3303_v63 = vld [vmem:[#allocation11 + $0x170] sm:$0xff] }
 0x494   :  { %7659 = vtanh.f32 %v9340_v25  ;;  %3142 = vmatpush2.msra.mxu0 %v3029_v4  ;;  %3213 = vmatpush2.msra.mxu1 %v3031_v24  ;;  %v3298_v4 = vld [vmem:[#allocation11 + $0x148] sm:$0xff]  ;;  %v3300_v24 = vld [vmem:[#allocation11 + $0x158] sm:$0xff] }
 0x495   :  { %3143 = vmatprep.subr.mxu0 %v3026_v5  ;;  %3214 = vmatprep.subr.mxu1 %v3028_v6  ;;  %v3297_v6 = vld [vmem:[#allocation11 + $0x140] sm:$0xff] }
 0x496   :  { %3144 = vmatpush2.msra.mxu0 %v3025_v7  ;;  %3215 = vmatpush2.msra.mxu1 %v3027_v15  ;;  %v3299_v7 = vld [vmem:[#allocation11 + $0x150] sm:$0xff] }
 0x497   :  { %3145 = vmatprep.subr.mxu0 %v3022_v1  ;;  %3216 = vmatprep.subr.mxu1 %v3024_v53  ;;  %v3294_v1 = vld [vmem:[#allocation11 + $0x128] sm:$0xff]  ;;  %v3296_v53 = vld [vmem:[#allocation11 + $0x138] sm:$0xff] }
 0x498   :  { %3146 = vmatpush2.msra.mxu0 %v3021_v8  ;;  %3217 = vmatpush2.msra.mxu1 %v3023_v3 }
 0x499   :  { %3147 = vmatprep.subr.mxu0 %v3018_v11  ;;  %3218 = vmatprep.subr.mxu1 %v3020_v12  ;;  %v3293_v11 = vld [vmem:[#allocation11 + $0x120] sm:$0xff]  ;;  %v3295_v12 = vld [vmem:[#allocation11 + $0x130] sm:$0xff] }
 0x49a   :  { %3148 = vmatpush2.msra.mxu0 %v3017_v14  ;;  %3219 = vmatpush2.msra.mxu1 %v3019_v37  ;;  %v3290_v14 = vld [vmem:[#allocation11 + $0x108] sm:$0xff]  ;;  %v3292_v37 = vld [vmem:[#allocation11 + $0x118] sm:$0xff] }
 0x49b   :  { %3149 = vmatprep.subr.mxu0 %v3014_v26  ;;  %3220 = vmatprep.subr.mxu1 %v3016_v33  ;;  %v3289_v33 = vld [vmem:[#allocation11 + $0x100] sm:$0xff] }
 0x49c   :  { %3150 = vmatpush2.msra.mxu0 %v3013_v31  ;;  %3221 = vmatpush2.msra.mxu1 %v3015_v16  ;;  %v3291_v31 = vld [vmem:[#allocation11 + $0x110] sm:$0xff]  ;;  %v3286_v16 = vld [vmem:[#allocation11 + $0xe8] sm:$0xff] }
 0x49d   :  { %3151 = vmatprep.subr.mxu0 %v3010_v41  ;;  %3222 = vmatprep.subr.mxu1 %v3012_v40  ;;  %v3288_v41 = vld [vmem:[#allocation11 + $0xf8] sm:$0xff]  ;;  %v3285_v40 = vld [vmem:[#allocation11 + $0xe0] sm:$0xff] }
 0x49e   :  { %3152 = vmatpush2.msra.mxu0 %v3009_v61  ;;  %3223 = vmatpush2.msra.mxu1 %v3011_v46  ;;  %v3287_v61 = vld [vmem:[#allocation11 + $0xf0] sm:$0xff]  ;;  %v2527_v46 = vrot.slane %v9349_v18, %v10556_v13 }
 0x49f   :  { %3153 = vmatprep.subr.mxu0 %v3006_v43  ;;  %3224 = vmatprep.subr.mxu1 %v3008_v54  ;;  %v3282_v43 = vld [vmem:[#allocation11 + $0xc8] sm:$0xff]  ;;  %v3284_v54 = vld [vmem:[#allocation11 + $0xd8] sm:$0xff] }
 0x4a0   :  { %3154 = vmatpush2.msra.mxu0 %v3005_v44  ;;  %3225 = vmatpush2.msra.mxu1 %v3007_v39  ;;  %v3281_v39 = vld [vmem:[#allocation11 + $0xc0] sm:$0xff] }
 0x4a1   :  { %v7660_v27 = vpop.eup %7659  ;;  %3407 = vmatprep.subr.mxu0 %v3318_v47  ;;  %3478 = vmatprep.subr.mxu1 %v3320_v50  ;;  %v3283_v47 = vld [vmem:[#allocation11 + $0xd0] sm:$0xff]  ;;  %v3278_v50 = vld [vmem:[#allocation11 + $0xa8] sm:$0xff] }
 0x4a2   :  { %v9343_v30 = vmul.f32 %v7660_v27, %v7658_v51  ;;  %v3280_v51 = vld [vmem:[#allocation11 + $0xb8] sm:$0xff]  ;;  %v3277_v27 = vld [vmem:[#allocation11 + $0xa0] sm:$0xff] }
 0x4a4   :  { %3155 = vmatprep.mubr.f32.mxu0 %v9343_v30  ;;  %3226 = vmatprep.mubr.f32.mxu1 %v9343_v30 }
 0x4a5   :  { %3156 = vmatmul.mubr.f32.vlgmr.msra.gmra.mxu0 %v9325_v52  ;;  %3227 = vmatmul.mubr.f32.vlgmr.msra.gmra.mxu1 %v9325_v52  ;;  %v2519_v52 = vrot.slane %v9349_v18, %v8610_v32 }
 0x4a6   :  { %3408 = vmatpush1.msra.mxu0 %v3317_v29  ;;  %3479 = vmatpush1.msra.mxu1 %v3319_v17  ;;  %v3279_v29 = vld [vmem:[#allocation11 + $0xb0] sm:$0xff] }
 0x4a7   :  { %3409 = vmatprep.subr.mxu0 %v3314_v19  ;;  %3480 = vmatprep.subr.mxu1 %v3316_v36  ;;  %v3274_v19 = vld [vmem:[#allocation11 + $0x88] sm:$0xff]  ;;  %v3276_v36 = vld [vmem:[#allocation11 + $0x98] sm:$0xff] }
 0x4a8   :  { %3410 = vmatpush1.msra.mxu0 %v3313_v60  ;;  %3481 = vmatpush1.msra.mxu1 %v3315_v28  ;;  %v3273_v60 = vld [vmem:[#allocation11 + $0x80] sm:$0xff]  ;;  %v3275_v28 = vld [vmem:[#allocation11 + $0x90] sm:$0xff] }
 0x4a9   :  { %3411 = vmatprep.subr.mxu0 %v3310_v34  ;;  %3482 = vmatprep.subr.mxu1 %v3312_v42  ;;  %v2531_v34 = vrot.slane %v9349_v18, %v10569_v49  ;;  %v3270_v42 = vld [vmem:[#allocation11 + $0x68] sm:$0xff] }
 0x4aa   :  { %3412 = vmatpush1.msra.mxu0 %v3309_v45  ;;  %3483 = vmatpush1.msra.mxu1 %v3311_v38  ;;  %v3272_v45 = vld [vmem:[#allocation11 + $0x78] sm:$0xff] }
 0x4ab   :  { %3413 = vmatprep.subr.mxu0 %v3306_v56  ;;  %3484 = vmatprep.subr.mxu1 %v3308_v35  ;;  %v3269_v56 = vld [vmem:[#allocation11 + $0x60] sm:$0xff]  ;;  %v3271_v35 = vld [vmem:[#allocation11 + $0x70] sm:$0xff] }
 0x4ac   :  { %v2602_v2 = vpop.f32.mrf.mxu0  ;;  %3414 = vmatpush1.msra.mxu0 %v3305_v23  ;;  %3485 = vmatpush1.msra.mxu1 %v3307_v57  ;;  %v2673_v44 = vpop.f32.mrf.mxu1  ;;  %v3266_v23 = vld [vmem:[#allocation11 + $0x48] sm:$0xff]  ;;  %v3268_v57 = vld [vmem:[#allocation11 + $0x58] sm:$0xff] }
 0x4ad   :  { %v2603_v5 = vadd.f32 %v2602_v2, %v2519_v52  ;;  %3415 = vmatprep.subr.mxu0 %v3302_v58  ;;  %3486 = vmatprep.subr.mxu1 %v3304_v55  ;;  %v2674_v17 = vadd.f32 %v2673_v44, %v2527_v46  ;;  %v3265_v58 = vld [vmem:[#allocation11 + $0x40] sm:$0xff]  ;;  %v3267_v55 = vld [vmem:[#allocation11 + $0x50] sm:$0xff]  ;;  %v3372_v46 = vld [vmem:[#allocation11 + $0x398] sm:$0xff] }
 0x4ae   :  { %v2604_v15 = vpop.f32.mrf.mxu0  ;;  %3416 = vmatpush1.msra.mxu0 %v3301_v62  ;;  %3487 = vmatpush1.msra.mxu1 %v3303_v63  ;;  %v2675_v38 = vpop.f32.mrf.mxu1  ;;  %v3262_v62 = vld [vmem:[#allocation11 + $0x28] sm:$0xff]  ;;  %v3264_v63 = vld [vmem:[#allocation11 + $0x38] sm:$0xff] }
 0x4af   :  { %v7405_v8 = vmul.f32 -1.442695, %v2603_v5  ;;  %v2605_v3 = vadd.f32 %v2604_v15, %v2523_v59  ;;  %3417 = vmatprep.subr.mxu0 %v3298_v4  ;;  %3488 = vmatprep.subr.mxu1 %v3300_v24  ;;  %v7407_v52 = vmul.f32 -1.442695, %v2674_v17  ;;  %v2676_v18 = vadd.f32 %v2675_v38, %v2531_v34  ;;  %v3261_v4 = vld [vmem:[#allocation11 + $0x20] sm:$0xff]  ;;  %v3263_v24 = vld [vmem:[#allocation11 + $0x30] sm:$0xff] }
 0x4b0   :  { %3418 = vmatpush1.msra.mxu0 %v3297_v6  ;;  %3489 = vmatpush1.msra.mxu1 %v3299_v7  ;;  %v3258_v6 = vld [vmem:[#allocation11 + $0x8] sm:$0xff]  ;;  %v3260_v7 = vld [vmem:[#allocation11 + $0x18] sm:$0xff]  ;;  %v3361_v17 = vld [vmem:[#allocation11 + $0x340] sm:$0xff] }
 0x4b1   :  { %7661 = vpow2.f32 %v7405_v8  ;;  %v7406_v26 = vmul.f32 -1.442695, %v2605_v3  ;;  %3419 = vmatprep.subr.mxu0 %v3294_v1  ;;  %3490 = vmatprep.subr.mxu1 %v3296_v53  ;;  %v3257_v1 = vld [vmem:[#allocation11] sm:$0xff]  ;;  %v3259_v53 = vld [vmem:[#allocation11 + $0x10] sm:$0xff]  ;;  %v3382_v8 = vld [vmem:[#allocation11 + $0x3e8] sm:$0xff] }
 0x4b2   :  { %3420 = vmatpush1.msra.mxu0 %v3293_v11  ;;  %3491 = vmatpush1.msra.mxu1 %v3295_v12  ;;  %v3384_v3 = vld [vmem:[#allocation11 + $0x3f8] sm:$0xff]  ;;  %v3381_v11 = vld [vmem:[#allocation11 + $0x3e0] sm:$0xff]  ;;  %v3383_v12 = vld [vmem:[#allocation11 + $0x3f0] sm:$0xff] }
 0x4b3   :  { %7663 = vpow2.f32 %v7406_v26  ;;  %3421 = vmatprep.subr.mxu0 %v3290_v14  ;;  %3492 = vmatprep.subr.mxu1 %v3292_v37  ;;  %v3378_v14 = vld [vmem:[#allocation11 + $0x3c8] sm:$0xff]  ;;  %v3380_v37 = vld [vmem:[#allocation11 + $0x3d8] sm:$0xff]  ;;  %v3377_v26 = vld [vmem:[#allocation11 + $0x3c0] sm:$0xff] }
 0x4b4   :  { %3422 = vmatpush1.msra.mxu0 %v3289_v33  ;;  %3493 = vmatpush1.msra.mxu1 %v3291_v31  ;;  %7665 = vpow2.f32 %v7407_v52  ;;  %v3379_v33 = vld [vmem:[#allocation11 + $0x3d0] sm:$0xff]  ;;  %v3374_v31 = vld [vmem:[#allocation11 + $0x3a8] sm:$0xff]  ;;  %v3356_v52 = vld [vmem:[#allocation11 + $0x318] sm:$0xff] }
 0x4b5   :  { %3423 = vmatprep.subr.mxu0 %v3286_v16  ;;  %3494 = vmatprep.subr.mxu1 %v3288_v41  ;;  %v3376_v16 = vld [vmem:[#allocation11 + $0x3b8] sm:$0xff]  ;;  %v3373_v41 = vld [vmem:[#allocation11 + $0x3a0] sm:$0xff]  ;;  %v3366_v44 = vld [vmem:[#allocation11 + $0x368] sm:$0xff] }
 0x4b6   :  { %3424 = vmatpush1.msra.mxu0 %v3285_v40  ;;  %3495 = vmatpush1.msra.mxu1 %v3287_v61  ;;  %v3375_v40 = vld [vmem:[#allocation11 + $0x3b0] sm:$0xff]  ;;  %v3370_v61 = vld [vmem:[#allocation11 + $0x388] sm:$0xff] }
 0x4b7   :  { %3425 = vmatprep.subr.mxu0 %v3282_v43  ;;  %3496 = vmatprep.subr.mxu1 %v3284_v54  ;;  %v3369_v43 = vld [vmem:[#allocation11 + $0x380] sm:$0xff]  ;;  %v3371_v54 = vld [vmem:[#allocation11 + $0x390] sm:$0xff] }
 0x4b8   :  { %3426 = vmatpush1.msra.mxu0 %v3281_v39  ;;  %3497 = vmatpush1.msra.mxu1 %v3283_v47  ;;  %v3368_v39 = vld [vmem:[#allocation11 + $0x378] sm:$0xff]  ;;  %v3365_v47 = vld [vmem:[#allocation11 + $0x360] sm:$0xff] }
 0x4b9   :  { %3427 = vmatprep.subr.mxu0 %v3278_v50  ;;  %3498 = vmatprep.subr.mxu1 %v3280_v51  ;;  %v3367_v50 = vld [vmem:[#allocation11 + $0x370] sm:$0xff]  ;;  %v3362_v51 = vld [vmem:[#allocation11 + $0x348] sm:$0xff] }
 0x4ba   :  { %3428 = vmatpush1.msra.mxu0 %v3277_v27  ;;  %3499 = vmatpush1.msra.mxu1 %v3279_v29  ;;  %v3364_v27 = vld [vmem:[#allocation11 + $0x358] sm:$0xff] }
 0x4bb   :  { %3429 = vmatprep.subr.mxu0 %v3274_v19  ;;  %3500 = vmatprep.subr.mxu1 %v3276_v36  ;;  %v3363_v19 = vld [vmem:[#allocation11 + $0x350] sm:$0xff] }
 0x4bc   :  { %3430 = vmatpush1.msra.mxu0 %v3273_v60  ;;  %3501 = vmatpush1.msra.mxu1 %v3275_v28  ;;  %v3358_v60 = vld [vmem:[#allocation11 + $0x328] sm:$0xff]  ;;  %v3360_v28 = vld [vmem:[#allocation11 + $0x338] sm:$0xff] }
 0x4bd   :  { %3431 = vmatprep.subr.mxu0 %v3270_v42  ;;  %3502 = vmatprep.subr.mxu1 %v3272_v45  ;;  %v3357_v42 = vld [vmem:[#allocation11 + $0x320] sm:$0xff]  ;;  %v3359_v45 = vld [vmem:[#allocation11 + $0x330] sm:$0xff] }
 0x4be   :  { %v7662_v59 = vpop.eup %7661  ;;  %3432 = vmatpush1.msra.mxu0 %v3269_v56  ;;  %3503 = vmatpush1.msra.mxu1 %v3271_v35  ;;  %v3354_v35 = vld [vmem:[#allocation11 + $0x308] sm:$0xff] }
 0x4bf   :  { %v2687_v2 = vadd.f32 1.0, %v7662_v59  ;;  %3433 = vmatprep.subr.mxu0 %v3266_v23  ;;  %3504 = vmatprep.subr.mxu1 %v3268_v57  ;;  %v3350_v59 = vld [vmem:[#allocation11 + $0x2e8] sm:$0xff] }
 0x4c0   :  { %v7664_v5 = vpop.eup %7663  ;;  %3434 = vmatpush1.msra.mxu0 %v3265_v58  ;;  %3505 = vmatpush1.msra.mxu1 %v3267_v55  ;;  %v3353_v58 = vld [vmem:[#allocation11 + $0x300] sm:$0xff]  ;;  %v3355_v55 = vld [vmem:[#allocation11 + $0x310] sm:$0xff] }
 0x4c1   :  { %7667 = vrcp.f32 %v2687_v2  ;;  %v2688_v15 = vadd.f32 1.0, %v7664_v5  ;;  %3435 = vmatprep.subr.mxu0 %v3262_v62  ;;  %3506 = vmatprep.subr.mxu1 %v3264_v63  ;;  %v7666_v29 = vpop.eup %7665  ;;  %v3349_v63 = vld [vmem:[#allocation11 + $0x2e0] sm:$0xff]  ;;  %v3351_v2 = vld [vmem:[#allocation11 + $0x2f0] sm:$0xff] }
 0x4c2   :  { %7669 = vtanh.f32 %v2676_v18  ;;  %3436 = vmatpush1.msra.mxu0 %v3261_v4  ;;  %3507 = vmatpush1.msra.mxu1 %v3263_v24  ;;  %v2689_v56 = vadd.f32 1.0, %v7666_v29  ;;  %v3352_v18 = vld [vmem:[#allocation11 + $0x2f8] sm:$0xff]  ;;  %v3346_v4 = vld [vmem:[#allocation11 + $0x2c8] sm:$0xff]  ;;  %v3345_v24 = vld [vmem:[#allocation11 + $0x2c0] sm:$0xff] }
 0x4c3   :  { %7671 = vrcp.f32 %v2688_v15  ;;  %3437 = vmatprep.subr.mxu0 %v3258_v6  ;;  %3508 = vmatprep.subr.mxu1 %v3260_v7  ;;  %v3347_v5 = vld [vmem:[#allocation11 + $0x2d0] sm:$0xff]  ;;  %v3342_v6 = vld [vmem:[#allocation11 + $0x2a8] sm:$0xff]  ;;  %v3344_v7 = vld [vmem:[#allocation11 + $0x2b8] sm:$0xff] }
 0x4c4   :  { %3438 = vmatpush1.msra.mxu0 %v3257_v1  ;;  %3509 = vmatpush1.msra.mxu1 %v3259_v53  ;;  %7673 = vrcp.f32 %v2689_v56  ;;  %v3341_v15 = vld [vmem:[#allocation11 + $0x2a0] sm:$0xff]  ;;  %v3343_v1 = vld [vmem:[#allocation11 + $0x2b0] sm:$0xff]  ;;  %v3338_v53 = vld [vmem:[#allocation11 + $0x288] sm:$0xff] }
 0x4c5   :  { %3439 = vmatprep.subr.mxu0 %v3382_v8  ;;  %3510 = vmatprep.subr.mxu1 %v3384_v3  ;;  %v3340_v8 = vld [vmem:[#allocation11 + $0x298] sm:$0xff]  ;;  %v3337_v3 = vld [vmem:[#allocation11 + $0x280] sm:$0xff] }
 0x4c6   :  { %3440 = vmatpush2.msra.mxu0 %v3381_v11  ;;  %3511 = vmatpush2.msra.mxu1 %v3383_v12  ;;  %v3339_v11 = vld [vmem:[#allocation11 + $0x290] sm:$0xff]  ;;  %v3334_v12 = vld [vmem:[#allocation11 + $0x268] sm:$0xff]  ;;  %v3639_v29 = vld [vmem:[#allocation4 + $0x1e8] sm:$0xff] }
 0x4c7   :  { %3441 = vmatprep.subr.mxu0 %v3378_v14  ;;  %3512 = vmatprep.subr.mxu1 %v3380_v37  ;;  %v3336_v14 = vld [vmem:[#allocation11 + $0x278] sm:$0xff]  ;;  %v3333_v37 = vld [vmem:[#allocation11 + $0x260] sm:$0xff] }
 0x4c8   :  { %3442 = vmatpush2.msra.mxu0 %v3377_v26  ;;  %3513 = vmatpush2.msra.mxu1 %v3379_v33  ;;  %v3335_v26 = vld [vmem:[#allocation11 + $0x270] sm:$0xff]  ;;  %v3330_v33 = vld [vmem:[#allocation11 + $0x248] sm:$0xff]  ;;  %v3630_v56 = vld [vmem:[#allocation4 + $0x1a0] sm:$0xff] }
 0x4c9   :  { %3443 = vmatprep.subr.mxu0 %v3374_v31  ;;  %3514 = vmatprep.subr.mxu1 %v3376_v16  ;;  %v3332_v31 = vld [vmem:[#allocation11 + $0x258] sm:$0xff]  ;;  %v3329_v16 = vld [vmem:[#allocation11 + $0x240] sm:$0xff] }
 0x4ca   :  { %3444 = vmatpush2.msra.mxu0 %v3373_v41  ;;  %3515 = vmatpush2.msra.mxu1 %v3375_v40  ;;  %v3331_v41 = vld [vmem:[#allocation11 + $0x250] sm:$0xff]  ;;  %v3326_v40 = vld [vmem:[#allocation11 + $0x228] sm:$0xff] }
 0x4cb   :  { %3445 = vmatprep.subr.mxu0 %v3370_v61  ;;  %3516 = vmatprep.subr.mxu1 %v3372_v46  ;;  %v3328_v61 = vld [vmem:[#allocation11 + $0x238] sm:$0xff]  ;;  %v3325_v46 = vld [vmem:[#allocation11 + $0x220] sm:$0xff] }
 0x4cc   :  { %3446 = vmatpush2.msra.mxu0 %v3369_v43  ;;  %3517 = vmatpush2.msra.mxu1 %v3371_v54  ;;  %v3327_v43 = vld [vmem:[#allocation11 + $0x230] sm:$0xff]  ;;  %v3322_v54 = vld [vmem:[#allocation11 + $0x208] sm:$0xff] }
 0x4cd   :  { %3447 = vmatprep.subr.mxu0 %v3366_v44  ;;  %3518 = vmatprep.subr.mxu1 %v3368_v39  ;;  %v3324_v44 = vld [vmem:[#allocation11 + $0x218] sm:$0xff] }
 0x4ce   :  { %v7668_v36 = vpop.eup %7667  ;;  %3448 = vmatpush2.msra.mxu0 %v3365_v47  ;;  %3519 = vmatpush2.msra.mxu1 %v3367_v50  ;;  %v3321_v47 = vld [vmem:[#allocation11 + $0x200] sm:$0xff]  ;;  %v3323_v50 = vld [vmem:[#allocation11 + $0x210] sm:$0xff] }
 0x4cf   :  { %v7670_v34 = vpop.eup %7669  ;;  %3449 = vmatprep.subr.mxu0 %v3362_v51  ;;  %3520 = vmatprep.subr.mxu1 %v3364_v27 }
 0x4d0   :  { %v7672_v38 = vpop.eup %7671  ;;  %3450 = vmatpush2.msra.mxu0 %v3361_v17  ;;  %3521 = vmatpush2.msra.mxu1 %v3363_v19  ;;  %v2698_v57 = vmul.f32 %v7670_v34, %v7668_v36  ;;  %v3641_v17 = vld [vmem:[#allocation4 + $0x1f8] sm:$0xff]  ;;  %v3638_v19 = vld [vmem:[#allocation4 + $0x1e0] sm:$0xff]  ;;  %v3640_v36 = vld [vmem:[#allocation4 + $0x1f0] sm:$0xff] }
 0x4d1   :  { %v2697_v23 = vmul.f32 %v7672_v38, %v9306_v10  ;;  %3451 = vmatprep.subr.mxu0 %v3358_v60  ;;  %3522 = vmatprep.subr.mxu1 %v3360_v28  ;;  %v3348_v10 = vld [vmem:[#allocation11 + $0x2d8] sm:$0xff]  ;;  %v7674_v39 = vpop.eup %7673  ;;  %v3635_v60 = vld [vmem:[#allocation4 + $0x1c8] sm:$0xff]  ;;  %v3637_v28 = vld [vmem:[#allocation4 + $0x1d8] sm:$0xff] }
 0x4d2   :  { %3452 = vmatpush2.msra.mxu0 %v3357_v42  ;;  %3523 = vmatpush2.msra.mxu1 %v3359_v45  ;;  %v3634_v34 = vld [vmem:[#allocation4 + $0x1c0] sm:$0xff]  ;;  %v3636_v42 = vld [vmem:[#allocation4 + $0x1d0] sm:$0xff]  ;;  %v3631_v45 = vld [vmem:[#allocation4 + $0x1a8] sm:$0xff] }
 0x4d3   :  { %v9360_v62 = vadd.f32 %v2698_v57, %v2697_v23  ;;  %3453 = vmatprep.subr.mxu0 %v3354_v35  ;;  %3524 = vmatprep.subr.mxu1 %v3356_v52  ;;  %v3633_v38 = vld [vmem:[#allocation4 + $0x1b8] sm:$0xff]  ;;  %v3632_v35 = vld [vmem:[#allocation4 + $0x1b0] sm:$0xff]  ;;  %v3627_v52 = vld [vmem:[#allocation4 + $0x188] sm:$0xff] }
 0x4d4   :  { %3454 = vmatpush2.msra.mxu0 %v3353_v58  ;;  %3525 = vmatpush2.msra.mxu1 %v3355_v55  ;;  %v3629_v23 = vld [vmem:[#allocation4 + $0x198] sm:$0xff]  ;;  %v3628_v57 = vld [vmem:[#allocation4 + $0x190] sm:$0xff]  ;;  %v3623_v58 = vld [vmem:[#allocation4 + $0x168] sm:$0xff] }
 0x4d5   :  { %3455 = vmatprep.subr.mxu0 %v3350_v59  ;;  %3526 = vmatprep.subr.mxu1 %v3352_v18  ;;  %7675 = vtanh.f32 %v9360_v62  ;;  %v3625_v55 = vld [vmem:[#allocation4 + $0x178] sm:$0xff]  ;;  %v3622_v59 = vld [vmem:[#allocation4 + $0x160] sm:$0xff]  ;;  %v3624_v18 = vld [vmem:[#allocation4 + $0x170] sm:$0xff] }
 0x4d6   :  { %3456 = vmatpush2.msra.mxu0 %v3349_v63  ;;  %3527 = vmatpush2.msra.mxu1 %v3351_v2  ;;  %v3619_v63 = vld [vmem:[#allocation4 + $0x148] sm:$0xff]  ;;  %v3621_v2 = vld [vmem:[#allocation4 + $0x158] sm:$0xff] }
 0x4d7   :  { %3457 = vmatprep.subr.mxu0 %v3346_v4  ;;  %3528 = vmatprep.subr.mxu1 %v3348_v10  ;;  %v3618_v4 = vld [vmem:[#allocation4 + $0x140] sm:$0xff]  ;;  %v3620_v10 = vld [vmem:[#allocation4 + $0x150] sm:$0xff] }
 0x4d8   :  { %3458 = vmatpush2.msra.mxu0 %v3345_v24  ;;  %3529 = vmatpush2.msra.mxu1 %v3347_v5  ;;  %v3615_v24 = vld [vmem:[#allocation4 + $0x128] sm:$0xff]  ;;  %v3617_v5 = vld [vmem:[#allocation4 + $0x138] sm:$0xff] }
 0x4d9   :  { %3459 = vmatprep.subr.mxu0 %v3342_v6  ;;  %3530 = vmatprep.subr.mxu1 %v3344_v7  ;;  %v3614_v6 = vld [vmem:[#allocation4 + $0x120] sm:$0xff]  ;;  %v3616_v7 = vld [vmem:[#allocation4 + $0x130] sm:$0xff] }
 0x4da   :  { %3460 = vmatpush2.msra.mxu0 %v3341_v15  ;;  %3531 = vmatpush2.msra.mxu1 %v3343_v1  ;;  %v3611_v15 = vld [vmem:[#allocation4 + $0x108] sm:$0xff]  ;;  %v3613_v1 = vld [vmem:[#allocation4 + $0x118] sm:$0xff] }
 0x4db   :  { %3461 = vmatprep.subr.mxu0 %v3338_v53  ;;  %3532 = vmatprep.subr.mxu1 %v3340_v8  ;;  %v3610_v53 = vld [vmem:[#allocation4 + $0x100] sm:$0xff]  ;;  %v3612_v8 = vld [vmem:[#allocation4 + $0x110] sm:$0xff] }
 0x4dc   :  { %3462 = vmatpush2.msra.mxu0 %v3337_v3  ;;  %3533 = vmatpush2.msra.mxu1 %v3339_v11  ;;  %v3607_v3 = vld [vmem:[#allocation4 + $0xe8] sm:$0xff]  ;;  %v3609_v11 = vld [vmem:[#allocation4 + $0xf8] sm:$0xff] }
 0x4dd   :  { %3463 = vmatprep.subr.mxu0 %v3334_v12  ;;  %3534 = vmatprep.subr.mxu1 %v3336_v14  ;;  %v3606_v12 = vld [vmem:[#allocation4 + $0xe0] sm:$0xff]  ;;  %v3608_v14 = vld [vmem:[#allocation4 + $0xf0] sm:$0xff] }
 0x4de   :  { %3464 = vmatpush2.msra.mxu0 %v3333_v37  ;;  %3535 = vmatpush2.msra.mxu1 %v3335_v26  ;;  %v3603_v37 = vld [vmem:[#allocation4 + $0xc8] sm:$0xff]  ;;  %v3605_v26 = vld [vmem:[#allocation4 + $0xd8] sm:$0xff] }
 0x4df   :  { %3465 = vmatprep.subr.mxu0 %v3330_v33  ;;  %3536 = vmatprep.subr.mxu1 %v3332_v31  ;;  %v3602_v33 = vld [vmem:[#allocation4 + $0xc0] sm:$0xff]  ;;  %v3604_v31 = vld [vmem:[#allocation4 + $0xd0] sm:$0xff] }
 0x4e0   :  { %3466 = vmatpush2.msra.mxu0 %v3329_v16  ;;  %3537 = vmatpush2.msra.mxu1 %v3331_v41  ;;  %v3599_v16 = vld [vmem:[#allocation4 + $0xa8] sm:$0xff]  ;;  %v3601_v41 = vld [vmem:[#allocation4 + $0xb8] sm:$0xff] }
 0x4e1   :  { %3467 = vmatprep.subr.mxu0 %v3326_v40  ;;  %3538 = vmatprep.subr.mxu1 %v3328_v61  ;;  %v3598_v40 = vld [vmem:[#allocation4 + $0xa0] sm:$0xff]  ;;  %v3600_v61 = vld [vmem:[#allocation4 + $0xb0] sm:$0xff] }
 0x4e2   :  { %v7676_v51 = vpop.eup %7675  ;;  %3468 = vmatpush2.msra.mxu0 %v3325_v46  ;;  %3539 = vmatpush2.msra.mxu1 %v3327_v43  ;;  %v3595_v46 = vld [vmem:[#allocation4 + $0x88] sm:$0xff]  ;;  %v3597_v43 = vld [vmem:[#allocation4 + $0x98] sm:$0xff] }
 0x4e3   :  { %3469 = vmatprep.subr.mxu0 %v3322_v54  ;;  %3540 = vmatprep.subr.mxu1 %v3324_v44  ;;  %v9363_v27 = vmul.f32 %v7676_v51, %v7674_v39  ;;  %v3594_v54 = vld [vmem:[#allocation4 + $0x80] sm:$0xff]  ;;  %v3596_v44 = vld [vmem:[#allocation4 + $0x90] sm:$0xff]  ;;  %v3591_v39 = vld [vmem:[#allocation4 + $0x68] sm:$0xff] }
 0x4e4   :  { %3470 = vmatpush2.msra.mxu0 %v3321_v47  ;;  %3541 = vmatpush2.msra.mxu1 %v3323_v50  ;;  %v3593_v47 = vld [vmem:[#allocation4 + $0x78] sm:$0xff]  ;;  %v3590_v50 = vld [vmem:[#allocation4 + $0x60] sm:$0xff]  ;;  %v3592_v51 = vld [vmem:[#allocation4 + $0x70] sm:$0xff] }
 0x4e5   :  { %10658 = vst [vmem:[#allocation46_spill] sm:$0xff] %v9363_v27  ;;  %3471 = vmatprep.mubr.f32.mxu0 %v9363_v27  ;;  %3542 = vmatprep.mubr.f32.mxu1 %v9363_v27  ;;  %v9707_v27 = vld [vmem:[#allocation11 + $0x70] sm:$0xff] }
 0x4e6   :  { %3472 = vmatmul.mubr.f32.vlgmr.msra.gmra.mxu0 %v9343_v30  ;;  %3543 = vmatmul.mubr.f32.vlgmr.msra.gmra.mxu1 %v9343_v30  ;;  %v3626_v30 = vld [vmem:[#allocation4 + $0x180] sm:$0xff]  ;;  %10684 = vst [vmem:[#allocation57_spill] sm:$0xff] %v9707_v27 }
 0x4e7   :  { %3642 = vmatprep.subr.mxu0 %v3639_v29  ;;  %3713 = vmatprep.subr.mxu1 %v3641_v17  ;;  %v3587_v29 = vld [vmem:[#allocation4 + $0x48] sm:$0xff]  ;;  %v3589_v17 = vld [vmem:[#allocation4 + $0x58] sm:$0xff] }
 0x4e8   :  { %3643 = vmatpush1.msra.mxu0 %v3638_v19  ;;  %3714 = vmatpush1.msra.mxu1 %v3640_v36  ;;  %v3586_v19 = vld [vmem:[#allocation4 + $0x40] sm:$0xff]  ;;  %v3588_v36 = vld [vmem:[#allocation4 + $0x50] sm:$0xff] }
 0x4e9   :  { %3644 = vmatprep.subr.mxu0 %v3635_v60  ;;  %3715 = vmatprep.subr.mxu1 %v3637_v28  ;;  %v3583_v60 = vld [vmem:[#allocation4 + $0x28] sm:$0xff]  ;;  %v3585_v28 = vld [vmem:[#allocation4 + $0x38] sm:$0xff] }
 0x4ea   :  { %3645 = vmatpush1.msra.mxu0 %v3634_v34  ;;  %3716 = vmatpush1.msra.mxu1 %v3636_v42  ;;  %v3582_v34 = vld [vmem:[#allocation4 + $0x20] sm:$0xff]  ;;  %v3584_v42 = vld [vmem:[#allocation4 + $0x30] sm:$0xff] }
 0x4eb   :  { %3646 = vmatprep.subr.mxu0 %v3631_v45  ;;  %3717 = vmatprep.subr.mxu1 %v3633_v38  ;;  %v3579_v45 = vld [vmem:[#allocation4 + $0x8] sm:$0xff]  ;;  %v3581_v38 = vld [vmem:[#allocation4 + $0x18] sm:$0xff] }
 0x4ec   :  { %3647 = vmatpush1.msra.mxu0 %v3630_v56  ;;  %3718 = vmatpush1.msra.mxu1 %v3632_v35  ;;  %v3578_v56 = vld [vmem:[#allocation4] sm:$0xff]  ;;  %v3580_v35 = vld [vmem:[#allocation4 + $0x10] sm:$0xff] }
 0x4ed   :  { %3648 = vmatprep.subr.mxu0 %v3627_v52  ;;  %3719 = vmatprep.subr.mxu1 %v3629_v23  ;;  %v3873_v52 = vld [vmem:[#allocation8 + $0x1e8] sm:$0xff]  ;;  %v3875_v23 = vld [vmem:[#allocation8 + $0x1f8] sm:$0xff] }
 0x4ee   :  { %3649 = vmatpush1.msra.mxu0 %v3626_v30  ;;  %3720 = vmatpush1.msra.mxu1 %v3628_v57  ;;  %v10659_v57 = vld [vmem:[#allocation38_spill] sm:$0xff] }
 0x4ef   :  { %3650 = vmatprep.subr.mxu0 %v3623_v58  ;;  %3721 = vmatprep.subr.mxu1 %v3625_v55 }
 0x4f0   :  { %3651 = vmatpush1.msra.mxu0 %v3622_v59  ;;  %3722 = vmatpush1.msra.mxu1 %v3624_v18  ;;  %v10660_v18 = vld [vmem:[#allocation39_spill] sm:$0xff] }
 0x4f1   :  { %3652 = vmatprep.subr.mxu0 %v3619_v63  ;;  %3723 = vmatprep.subr.mxu1 %v3621_v2 }
 0x4f2   :  { %3653 = vmatpush1.msra.mxu0 %v3618_v4  ;;  %3724 = vmatpush1.msra.mxu1 %v3620_v10  ;;  %v10661_v10 = vld [vmem:[#allocation24_spill] sm:$0xff] }
 0x4f3   :  { %3654 = vmatprep.subr.mxu0 %v3615_v24  ;;  %3725 = vmatprep.subr.mxu1 %v3617_v5 }
 0x4f4   :  { %3655 = vmatpush1.msra.mxu0 %v3614_v6  ;;  %3726 = vmatpush1.msra.mxu1 %v3616_v7  ;;  %v10662_v7 = vld [vmem:[#allocation25_spill] sm:$0xff] }
 0x4f5   :  { %3656 = vmatprep.subr.mxu0 %v3611_v15  ;;  %3727 = vmatprep.subr.mxu1 %v3613_v1 }
 0x4f6   :  { %3657 = vmatpush1.msra.mxu0 %v3610_v53  ;;  %3728 = vmatpush1.msra.mxu1 %v3612_v8 }
 0x4f7   :  { %3658 = vmatprep.subr.mxu0 %v3607_v3  ;;  %3729 = vmatprep.subr.mxu1 %v3609_v11 }
 0x4f8   :  { %3659 = vmatpush1.msra.mxu0 %v3606_v12  ;;  %3730 = vmatpush1.msra.mxu1 %v3608_v14 }
 0x4f9   :  { %3660 = vmatprep.subr.mxu0 %v3603_v37  ;;  %3731 = vmatprep.subr.mxu1 %v3605_v26 }
 0x4fa   :  { %3661 = vmatpush1.msra.mxu0 %v3602_v33  ;;  %3732 = vmatpush1.msra.mxu1 %v3604_v31 }
 0x4fb   :  { %3662 = vmatprep.subr.mxu0 %v3599_v16  ;;  %3733 = vmatprep.subr.mxu1 %v3601_v41 }
 0x4fc   :  { %3663 = vmatpush1.msra.mxu0 %v3598_v40  ;;  %3734 = vmatpush1.msra.mxu1 %v3600_v61 }
 0x4fd   :  { %3664 = vmatprep.subr.mxu0 %v3595_v46  ;;  %3735 = vmatprep.subr.mxu1 %v3597_v43  ;;  %v3872_v46 = vld [vmem:[#allocation8 + $0x1e0] sm:$0xff]  ;;  %v3874_v43 = vld [vmem:[#allocation8 + $0x1f0] sm:$0xff] }
 0x4fe   :  { %3665 = vmatpush1.msra.mxu0 %v3594_v54  ;;  %3736 = vmatpush1.msra.mxu1 %v3596_v44  ;;  %v3869_v54 = vld [vmem:[#allocation8 + $0x1c8] sm:$0xff]  ;;  %v3871_v44 = vld [vmem:[#allocation8 + $0x1d8] sm:$0xff] }
 0x4ff   :  { %3666 = vmatprep.subr.mxu0 %v3591_v39  ;;  %3737 = vmatprep.subr.mxu1 %v3593_v47  ;;  %v3868_v39 = vld [vmem:[#allocation8 + $0x1c0] sm:$0xff]  ;;  %v3870_v47 = vld [vmem:[#allocation8 + $0x1d0] sm:$0xff] }
 0x500   :  { %3667 = vmatpush1.msra.mxu0 %v3590_v50  ;;  %3738 = vmatpush1.msra.mxu1 %v3592_v51  ;;  %v3867_v50 = vld [vmem:[#allocation8 + $0x1b8] sm:$0xff]  ;;  %v3864_v51 = vld [vmem:[#allocation8 + $0x1a0] sm:$0xff] }
 0x501   :  { %3668 = vmatprep.subr.mxu0 %v3587_v29  ;;  %3739 = vmatprep.subr.mxu1 %v3589_v17  ;;  %v3866_v29 = vld [vmem:[#allocation8 + $0x1b0] sm:$0xff]  ;;  %v3861_v17 = vld [vmem:[#allocation8 + $0x188] sm:$0xff] }
 0x502   :  { %3669 = vmatpush1.msra.mxu0 %v3586_v19  ;;  %3740 = vmatpush1.msra.mxu1 %v3588_v36  ;;  %v3863_v19 = vld [vmem:[#allocation8 + $0x198] sm:$0xff]  ;;  %v3860_v36 = vld [vmem:[#allocation8 + $0x180] sm:$0xff] }
 0x503   :  { %3670 = vmatprep.subr.mxu0 %v3583_v60  ;;  %3741 = vmatprep.subr.mxu1 %v3585_v28  ;;  %v3862_v60 = vld [vmem:[#allocation8 + $0x190] sm:$0xff]  ;;  %v9383_v28 = vld [vmem:[#allocation9] sm:$0xf] }
 0x504   :  { %3671 = vmatpush1.msra.mxu0 %v3582_v34  ;;  %3742 = vmatpush1.msra.mxu1 %v3584_v42  ;;  %v3857_v34 = vld [vmem:[#allocation8 + $0x168] sm:$0xff]  ;;  %v3859_v42 = vld [vmem:[#allocation8 + $0x178] sm:$0xff] }
 0x505   :  { %3672 = vmatprep.subr.mxu0 %v3579_v45  ;;  %3743 = vmatprep.subr.mxu1 %v3581_v38  ;;  %v3856_v45 = vld [vmem:[#allocation8 + $0x160] sm:$0xff]  ;;  %v3858_v38 = vld [vmem:[#allocation8 + $0x170] sm:$0xff] }
 0x506   :  { %3673 = vmatpush1.msra.mxu0 %v3578_v56  ;;  %3706 = vmatprep.mubr.f32.mxu0 %v10534_v22  ;;  %v3853_v56 = vld [vmem:[#allocation8 + $0x148] sm:$0xff] }
 0x507   :  { %3744 = vmatpush1.msra.mxu1 %v3580_v35  ;;  %3777 = vmatprep.mubr.f32.mxu1 %v10534_v22  ;;  %v3855_v35 = vld [vmem:[#allocation8 + $0x158] sm:$0xff] }
 0x508   :  { %3962 = vmatprep.subr.mxu0 %v3873_v52  ;;  %4033 = vmatprep.subr.mxu1 %v3875_v23  ;;  %v3074_v52 = vrot.slane %v9383_v28, %v8610_v32  ;;  %v3852_v23 = vld [vmem:[#allocation8 + $0x140] sm:$0xff] }
 0x521   :  { %v2837_v30 = vpop.f32.mrf.mxu0  ;;  %v2908_v4 = vpop.f32.mrf.mxu1 }
 0x522   :  { %v2913_v58 = vadd.f32 %v2837_v30, %v10659_v57  ;;  %v2915_v24 = vadd.f32 %v2908_v4, %v10661_v10  ;;  %v3854_v30 = vld [vmem:[#allocation8 + $0x150] sm:$0xff]  ;;  %v3849_v57 = vld [vmem:[#allocation8 + $0x128] sm:$0xff]  ;;  %v3847_v4 = vld [vmem:[#allocation8 + $0x118] sm:$0xff] }
 0x523   :  { %v2839_v55 = vpop.f32.mrf.mxu0  ;;  %v2910_v5 = vpop.f32.mrf.mxu1 }
 0x524   :  { %v7408_v59 = vmul.f32 -1.442695, %v2913_v58  ;;  %v2914_v63 = vadd.f32 %v2839_v55, %v10660_v18  ;;  %v7410_v6 = vmul.f32 -1.442695, %v2915_v24  ;;  %v2916_v15 = vadd.f32 %v2910_v5, %v10662_v7  ;;  %v3851_v58 = vld [vmem:[#allocation8 + $0x138] sm:$0xff]  ;;  %v3850_v18 = vld [vmem:[#allocation8 + $0x130] sm:$0xff] }
 0x525   :  { %v3078_v55 = vrot.slane %v9383_v28, %v10539_v21  ;;  %v3844_v24 = vld [vmem:[#allocation8 + $0x100] sm:$0xff]  ;;  %v3846_v5 = vld [vmem:[#allocation8 + $0x110] sm:$0xff]  ;;  %v3841_v7 = vld [vmem:[#allocation8 + $0xe8] sm:$0xff] }
 0x526   :  { %7677 = vpow2.f32 %v7408_v59  ;;  %v7409_v2 = vmul.f32 -1.442695, %v2914_v63  ;;  %v3848_v59 = vld [vmem:[#allocation8 + $0x120] sm:$0xff] }
 0x528   :  { %7679 = vpow2.f32 %v7409_v2  ;;  %v3845_v2 = vld [vmem:[#allocation8 + $0x108] sm:$0xff] }
 0x529   :  { %7681 = vpow2.f32 %v7410_v6 }
 0x52a   :  { %7683 = vtanh.f32 %v2916_v15  ;;  %v3843_v15 = vld [vmem:[#allocation8 + $0xf8] sm:$0xff] }
 0x533   :  { %v7678_v1 = vpop.eup %7677 }
 0x534   :  { %v2926_v53 = vadd.f32 1.0, %v7678_v1 }
 0x535   :  { %v7680_v8 = vpop.eup %7679 }
 0x536   :  { %7685 = vrcp.f32 %v2926_v53  ;;  %v2927_v3 = vadd.f32 1.0, %v7680_v8  ;;  %v7682_v11 = vpop.eup %7681  ;;  %v3840_v8 = vld [vmem:[#allocation8 + $0xe0] sm:$0xff] }
 0x537   :  { %v7684_v12 = vpop.eup %7683  ;;  %v2928_v33 = vadd.f32 1.0, %v7682_v11  ;;  %v3837_v11 = vld [vmem:[#allocation8 + $0xc8] sm:$0xff] }
 0x538   :  { %7687 = vrcp.f32 %v2927_v3  ;;  %v3842_v3 = vld [vmem:[#allocation8 + $0xf0] sm:$0xff] }
 0x539   :  { %7689 = vrcp.f32 %v2928_v33  ;;  %v3833_v33 = vld [vmem:[#allocation8 + $0xa8] sm:$0xff] }
 0x543   :  { %v7686_v14 = vpop.eup %7685 }
 0x544   :  { %v2937_v37 = vmul.f32 %v7686_v14, %v7684_v12  ;;  %v3839_v12 = vld [vmem:[#allocation8 + $0xd8] sm:$0xff] }
 0x545   :  { %v7688_v26 = vpop.eup %7687 }
 0x546   :  { %v2936_v31 = vmul.f32 %v7688_v26, %v9322_v48  ;;  %v7690_v41 = vpop.eup %7689  ;;  %v3865_v48 = vld [vmem:[#allocation8 + $0x1a8] sm:$0xff]  ;;  %v3838_v26 = vld [vmem:[#allocation8 + $0xd0] sm:$0xff] }
 0x548   :  { %v9376_v16 = vadd.f32 %v2937_v37, %v2936_v31  ;;  %v3836_v37 = vld [vmem:[#allocation8 + $0xc0] sm:$0xff]  ;;  %v3835_v31 = vld [vmem:[#allocation8 + $0xb8] sm:$0xff] }
 0x54a   :  { %7691 = vtanh.f32 %v9376_v16 }
 0x557   :  { %v7692_v40 = vpop.eup %7691 }
 0x558   :  { %v9379_v61 = vmul.f32 %v7692_v40, %v7690_v41  ;;  %v3832_v41 = vld [vmem:[#allocation8 + $0xa0] sm:$0xff]  ;;  %v3834_v40 = vld [vmem:[#allocation8 + $0xb0] sm:$0xff] }
 0x55a   :  { %3707 = vmatmul.mubr.f32.vlgmr.msra.gmra.mxu0 %v9379_v61  ;;  %3778 = vmatmul.mubr.f32.vlgmr.msra.gmra.mxu1 %v9379_v61 }
 0x55b   :  { %3963 = vmatpush1.msra.mxu0 %v3872_v46  ;;  %4034 = vmatpush1.msra.mxu1 %v3874_v43  ;;  %v3082_v46 = vrot.slane %v9383_v28, %v10556_v13  ;;  %v3829_v43 = vld [vmem:[#allocation8 + $0x88] sm:$0xff] }
 0x55c   :  { %3964 = vmatprep.subr.mxu0 %v3869_v54  ;;  %4035 = vmatprep.subr.mxu1 %v3871_v44  ;;  %v3831_v54 = vld [vmem:[#allocation8 + $0x98] sm:$0xff] }
 0x55d   :  { %3965 = vmatpush1.msra.mxu0 %v3868_v39  ;;  %4036 = vmatpush1.msra.mxu1 %v3870_v47  ;;  %v3828_v39 = vld [vmem:[#allocation8 + $0x80] sm:$0xff]  ;;  %v3830_v47 = vld [vmem:[#allocation8 + $0x90] sm:$0xff] }
 0x55e   :  { %3966 = vmatprep.subr.mxu0 %v3865_v48  ;;  %4037 = vmatprep.subr.mxu1 %v3867_v50  ;;  %v3825_v48 = vld [vmem:[#allocation8 + $0x68] sm:$0xff]  ;;  %v3827_v50 = vld [vmem:[#allocation8 + $0x78] sm:$0xff] }
 0x55f   :  { %3967 = vmatpush1.msra.mxu0 %v3864_v51  ;;  %4038 = vmatpush1.msra.mxu1 %v3866_v29  ;;  %v3824_v51 = vld [vmem:[#allocation8 + $0x60] sm:$0xff]  ;;  %v3826_v29 = vld [vmem:[#allocation8 + $0x70] sm:$0xff] }
 0x560   :  { %3968 = vmatprep.subr.mxu0 %v3861_v17  ;;  %4039 = vmatprep.subr.mxu1 %v3863_v19  ;;  %v3821_v19 = vld [vmem:[#allocation8 + $0x48] sm:$0xff] }
 0x561   :  { %3969 = vmatpush1.msra.mxu0 %v3860_v36  ;;  %4040 = vmatpush1.msra.mxu1 %v3862_v60  ;;  %v3823_v36 = vld [vmem:[#allocation8 + $0x58] sm:$0xff]  ;;  %v3820_v60 = vld [vmem:[#allocation8 + $0x40] sm:$0xff] }
 0x562   :  { %3970 = vmatprep.subr.mxu0 %v3857_v34  ;;  %4041 = vmatprep.subr.mxu1 %v3859_v42  ;;  %v3822_v34 = vld [vmem:[#allocation8 + $0x50] sm:$0xff]  ;;  %v3086_v42 = vrot.slane %v9383_v28, %v10569_v49 }
 0x563   :  { %3971 = vmatpush1.msra.mxu0 %v3856_v45  ;;  %4042 = vmatpush1.msra.mxu1 %v3858_v38  ;;  %v3817_v45 = vld [vmem:[#allocation8 + $0x28] sm:$0xff]  ;;  %v3819_v38 = vld [vmem:[#allocation8 + $0x38] sm:$0xff] }
 0x564   :  { %3972 = vmatprep.subr.mxu0 %v3853_v56  ;;  %4043 = vmatprep.subr.mxu1 %v3855_v35  ;;  %v3816_v35 = vld [vmem:[#allocation8 + $0x20] sm:$0xff] }
 0x565   :  { %v3157_v63 = vpop.f32.mrf.mxu0  ;;  %3973 = vmatpush1.msra.mxu0 %v3852_v23  ;;  %4044 = vmatpush1.msra.mxu1 %v3854_v30  ;;  %v3228_v44 = vpop.f32.mrf.mxu1  ;;  %v3813_v30 = vld [vmem:[#allocation8 + $0x8] sm:$0xff] }
 0x566   :  { %v3158_v10 = vadd.f32 %v3157_v63, %v3074_v52  ;;  %3974 = vmatprep.subr.mxu0 %v3849_v57  ;;  %4045 = vmatprep.subr.mxu1 %v3851_v58  ;;  %v3229_v17 = vadd.f32 %v3228_v44, %v3082_v46  ;;  %v3818_v52 = vld [vmem:[#allocation8 + $0x30] sm:$0xff]  ;;  %v3815_v57 = vld [vmem:[#allocation8 + $0x18] sm:$0xff]  ;;  %v3812_v58 = vld [vmem:[#allocation8] sm:$0xff] }
 0x567   :  { %v3159_v6 = vpop.f32.mrf.mxu0  ;;  %3975 = vmatpush1.msra.mxu0 %v3848_v59  ;;  %4046 = vmatpush1.msra.mxu1 %v3850_v18  ;;  %v3230_v56 = vpop.f32.mrf.mxu1  ;;  %v3937_v18 = vld [vmem:[#allocation8 + $0x3e8] sm:$0xff]  ;;  %v3939_v63 = vld [vmem:[#allocation8 + $0x3f8] sm:$0xff]  ;;  %v3918_v44 = vld [vmem:[#allocation8 + $0x350] sm:$0xff] }
 0x568   :  { %v7411_v1 = vmul.f32 -1.442695, %v3158_v10  ;;  %v3160_v53 = vadd.f32 %v3159_v6, %v3078_v55  ;;  %3976 = vmatprep.subr.mxu0 %v3845_v2  ;;  %4047 = vmatprep.subr.mxu1 %v3847_v4  ;;  %v7413_v23 = vmul.f32 -1.442695, %v3229_v17  ;;  %v3814_v55 = vld [vmem:[#allocation8 + $0x10] sm:$0xff]  ;;  %v3231_v28 = vadd.f32 %v3230_v56, %v3086_v42  ;;  %v3936_v4 = vld [vmem:[#allocation8 + $0x3e0] sm:$0xff] }
 0x569   :  { %3977 = vmatpush1.msra.mxu0 %v3844_v24  ;;  %4048 = vmatpush1.msra.mxu1 %v3846_v5  ;;  %v3938_v10 = vld [vmem:[#allocation8 + $0x3f0] sm:$0xff]  ;;  %v3933_v5 = vld [vmem:[#allocation8 + $0x3c8] sm:$0xff]  ;;  %v3935_v6 = vld [vmem:[#allocation8 + $0x3d8] sm:$0xff] }
 0x56a   :  { %7693 = vpow2.f32 %v7411_v1  ;;  %v7412_v14 = vmul.f32 -1.442695, %v3160_v53  ;;  %3978 = vmatprep.subr.mxu0 %v3841_v7  ;;  %4049 = vmatprep.subr.mxu1 %v3843_v15  ;;  %v3932_v15 = vld [vmem:[#allocation8 + $0x3c0] sm:$0xff]  ;;  %v3934_v1 = vld [vmem:[#allocation8 + $0x3d0] sm:$0xff]  ;;  %v3929_v53 = vld [vmem:[#allocation8 + $0x3a8] sm:$0xff] }
 0x56b   :  { %3979 = vmatpush1.msra.mxu0 %v3840_v8  ;;  %4050 = vmatpush1.msra.mxu1 %v3842_v3  ;;  %v3931_v8 = vld [vmem:[#allocation8 + $0x3b8] sm:$0xff]  ;;  %v3928_v3 = vld [vmem:[#allocation8 + $0x3a0] sm:$0xff]  ;;  %v3917_v46 = vld [vmem:[#allocation8 + $0x348] sm:$0xff] }
 0x56c   :  { %7695 = vpow2.f32 %v7412_v14  ;;  %3980 = vmatprep.subr.mxu0 %v3837_v11  ;;  %4051 = vmatprep.subr.mxu1 %v3839_v12  ;;  %v3930_v11 = vld [vmem:[#allocation8 + $0x3b0] sm:$0xff]  ;;  %v3925_v12 = vld [vmem:[#allocation8 + $0x388] sm:$0xff]  ;;  %v3927_v14 = vld [vmem:[#allocation8 + $0x398] sm:$0xff] }
 0x56d   :  { %3981 = vmatpush1.msra.mxu0 %v3836_v37  ;;  %4052 = vmatpush1.msra.mxu1 %v3838_v26  ;;  %7697 = vpow2.f32 %v7413_v23  ;;  %v3924_v37 = vld [vmem:[#allocation8 + $0x380] sm:$0xff]  ;;  %v3926_v26 = vld [vmem:[#allocation8 + $0x390] sm:$0xff]  ;;  %v3907_v42 = vld [vmem:[#allocation8 + $0x2f8] sm:$0xff] }
 0x56e   :  { %3982 = vmatprep.subr.mxu0 %v3833_v33  ;;  %4053 = vmatprep.subr.mxu1 %v3835_v31  ;;  %v3921_v33 = vld [vmem:[#allocation8 + $0x368] sm:$0xff]  ;;  %v3923_v31 = vld [vmem:[#allocation8 + $0x378] sm:$0xff]  ;;  %v3906_v56 = vld [vmem:[#allocation8 + $0x2f0] sm:$0xff] }
 0x56f   :  { %3983 = vmatpush1.msra.mxu0 %v3832_v41  ;;  %4054 = vmatpush1.msra.mxu1 %v3834_v40  ;;  %v3920_v41 = vld [vmem:[#allocation8 + $0x360] sm:$0xff]  ;;  %v3922_v40 = vld [vmem:[#allocation8 + $0x370] sm:$0xff]  ;;  %v3901_v23 = vld [vmem:[#allocation8 + $0x2c8] sm:$0xff] }
 0x570   :  { %3984 = vmatprep.subr.mxu0 %v3829_v43  ;;  %4055 = vmatprep.subr.mxu1 %v3831_v54  ;;  %v3919_v43 = vld [vmem:[#allocation8 + $0x358] sm:$0xff]  ;;  %v3916_v54 = vld [vmem:[#allocation8 + $0x340] sm:$0xff] }
 0x571   :  { %3985 = vmatpush1.msra.mxu0 %v3828_v39  ;;  %4056 = vmatpush1.msra.mxu1 %v3830_v47  ;;  %v3913_v39 = vld [vmem:[#allocation8 + $0x328] sm:$0xff]  ;;  %v3915_v47 = vld [vmem:[#allocation8 + $0x338] sm:$0xff] }
 0x572   :  { %3986 = vmatprep.subr.mxu0 %v3825_v48  ;;  %4057 = vmatprep.subr.mxu1 %v3827_v50  ;;  %v3912_v48 = vld [vmem:[#allocation8 + $0x320] sm:$0xff]  ;;  %v3914_v50 = vld [vmem:[#allocation8 + $0x330] sm:$0xff] }
 0x573   :  { %3987 = vmatpush1.msra.mxu0 %v3824_v51  ;;  %4058 = vmatpush1.msra.mxu1 %v3826_v29  ;;  %v3909_v51 = vld [vmem:[#allocation8 + $0x308] sm:$0xff]  ;;  %v3911_v29 = vld [vmem:[#allocation8 + $0x318] sm:$0xff] }
 0x574   :  { %3988 = vmatprep.subr.mxu0 %v3821_v19  ;;  %4059 = vmatprep.subr.mxu1 %v3823_v36  ;;  %v3908_v19 = vld [vmem:[#allocation8 + $0x300] sm:$0xff]  ;;  %v3910_v36 = vld [vmem:[#allocation8 + $0x310] sm:$0xff] }
 0x575   :  { %3989 = vmatpush1.msra.mxu0 %v3820_v60  ;;  %4060 = vmatpush1.msra.mxu1 %v3822_v34  ;;  %v3905_v34 = vld [vmem:[#allocation8 + $0x2e8] sm:$0xff] }
 0x576   :  { %3990 = vmatprep.subr.mxu0 %v3817_v45  ;;  %4061 = vmatprep.subr.mxu1 %v3819_v38  ;;  %v3904_v38 = vld [vmem:[#allocation8 + $0x2e0] sm:$0xff] }
 0x577   :  { %v7694_v59 = vpop.eup %7693  ;;  %3991 = vmatpush1.msra.mxu0 %v3816_v35  ;;  %4062 = vmatpush1.msra.mxu1 %v3818_v52 }
 0x578   :  { %v3242_v2 = vadd.f32 1.0, %v7694_v59  ;;  %3992 = vmatprep.subr.mxu0 %v3813_v30  ;;  %4063 = vmatprep.subr.mxu1 %v3815_v57  ;;  %v3903_v30 = vld [vmem:[#allocation8 + $0x2d8] sm:$0xff]  ;;  %v3902_v59 = vld [vmem:[#allocation8 + $0x2d0] sm:$0xff] }
 0x579   :  { %v7696_v24 = vpop.eup %7695  ;;  %3993 = vmatpush1.msra.mxu0 %v3812_v58  ;;  %4064 = vmatpush1.msra.mxu1 %v3814_v55  ;;  %v3900_v55 = vld [vmem:[#allocation8 + $0x2c0] sm:$0xff] }
 0x57a   :  { %7699 = vrcp.f32 %v3242_v2  ;;  %v3243_v7 = vadd.f32 1.0, %v7696_v24  ;;  %3994 = vmatprep.subr.mxu0 %v3937_v18  ;;  %4065 = vmatprep.subr.mxu1 %v3939_v63  ;;  %v7698_v17 = vpop.eup %7697  ;;  %v3899_v18 = vld [vmem:[#allocation8 + $0x2b8] sm:$0xff]  ;;  %v3896_v2 = vld [vmem:[#allocation8 + $0x2a0] sm:$0xff] }
 0x57b   :  { %7701 = vtanh.f32 %v3231_v28  ;;  %3995 = vmatpush2.msra.mxu0 %v3936_v4  ;;  %4066 = vmatpush2.msra.mxu1 %v3938_v10  ;;  %v3244_v52 = vadd.f32 1.0, %v7698_v17  ;;  %v3897_v28 = vld [vmem:[#allocation8 + $0x2a8] sm:$0xff]  ;;  %v3898_v4 = vld [vmem:[#allocation8 + $0x2b0] sm:$0xff]  ;;  %v3892_v24 = vld [vmem:[#allocation8 + $0x280] sm:$0xff] }
 0x57c   :  { %7703 = vrcp.f32 %v3243_v7  ;;  %3996 = vmatprep.subr.mxu0 %v3933_v5  ;;  %4067 = vmatprep.subr.mxu1 %v3935_v6  ;;  %v3893_v10 = vld [vmem:[#allocation8 + $0x288] sm:$0xff]  ;;  %v3894_v5 = vld [vmem:[#allocation8 + $0x290] sm:$0xff]  ;;  %v3891_v7 = vld [vmem:[#allocation8 + $0x278] sm:$0xff] }
 0x57d   :  { %3997 = vmatpush2.msra.mxu0 %v3932_v15  ;;  %4068 = vmatpush2.msra.mxu1 %v3934_v1  ;;  %7705 = vrcp.f32 %v3244_v52  ;;  %v3889_v6 = vld [vmem:[#allocation8 + $0x268] sm:$0xff]  ;;  %v3888_v15 = vld [vmem:[#allocation8 + $0x260] sm:$0xff]  ;;  %v3890_v1 = vld [vmem:[#allocation8 + $0x270] sm:$0xff] }
 0x57e   :  { %3998 = vmatprep.subr.mxu0 %v3929_v53  ;;  %4069 = vmatprep.subr.mxu1 %v3931_v8  ;;  %v3885_v53 = vld [vmem:[#allocation8 + $0x248] sm:$0xff]  ;;  %v3887_v8 = vld [vmem:[#allocation8 + $0x258] sm:$0xff] }
 0x57f   :  { %3999 = vmatpush2.msra.mxu0 %v3928_v3  ;;  %4070 = vmatpush2.msra.mxu1 %v3930_v11  ;;  %v3884_v3 = vld [vmem:[#allocation8 + $0x240] sm:$0xff]  ;;  %v3886_v11 = vld [vmem:[#allocation8 + $0x250] sm:$0xff] }
 0x580   :  { %4000 = vmatprep.subr.mxu0 %v3925_v12  ;;  %4071 = vmatprep.subr.mxu1 %v3927_v14  ;;  %v3881_v12 = vld [vmem:[#allocation8 + $0x228] sm:$0xff]  ;;  %v3883_v14 = vld [vmem:[#allocation8 + $0x238] sm:$0xff] }
 0x581   :  { %4001 = vmatpush2.msra.mxu0 %v3924_v37  ;;  %4072 = vmatpush2.msra.mxu1 %v3926_v26  ;;  %v3880_v37 = vld [vmem:[#allocation8 + $0x220] sm:$0xff]  ;;  %v3882_v26 = vld [vmem:[#allocation8 + $0x230] sm:$0xff] }
 0x582   :  { %4002 = vmatprep.subr.mxu0 %v3921_v33  ;;  %4073 = vmatprep.subr.mxu1 %v3923_v31  ;;  %v3877_v33 = vld [vmem:[#allocation8 + $0x208] sm:$0xff]  ;;  %v3879_v31 = vld [vmem:[#allocation8 + $0x218] sm:$0xff] }
 0x583   :  { %4003 = vmatpush2.msra.mxu0 %v3920_v41  ;;  %4074 = vmatpush2.msra.mxu1 %v3922_v40  ;;  %v3876_v41 = vld [vmem:[#allocation8 + $0x200] sm:$0xff]  ;;  %v3878_v40 = vld [vmem:[#allocation8 + $0x210] sm:$0xff] }
 0x584   :  { %4004 = vmatprep.subr.mxu0 %v3917_v46  ;;  %4075 = vmatprep.subr.mxu1 %v3919_v43  ;;  %v4189_v46 = vld [vmem:[#allocation11 + $0x1e8] sm:$0xff]  ;;  %v4191_v43 = vld [vmem:[#allocation11 + $0x1f8] sm:$0xff]  ;;  %v4186_v17 = vld [vmem:[#allocation11 + $0x1d0] sm:$0xff] }
 0x585   :  { %4005 = vmatpush2.msra.mxu0 %v3916_v54  ;;  %4076 = vmatpush2.msra.mxu1 %v3918_v44  ;;  %v4173_v52 = vld [vmem:[#allocation11 + $0x168] sm:$0xff] }
 0x586   :  { %4006 = vmatprep.subr.mxu0 %v3913_v39  ;;  %4077 = vmatprep.subr.mxu1 %v3915_v47  ;;  %v4188_v47 = vld [vmem:[#allocation11 + $0x1e0] sm:$0xff] }
 0x587   :  { %v7700_v60 = vpop.eup %7699  ;;  %4007 = vmatpush2.msra.mxu0 %v3912_v48  ;;  %4078 = vmatpush2.msra.mxu1 %v3914_v50  ;;  %v4190_v48 = vld [vmem:[#allocation11 + $0x1f0] sm:$0xff]  ;;  %v4185_v50 = vld [vmem:[#allocation11 + $0x1c8] sm:$0xff] }
 0x588   :  { %v7702_v45 = vpop.eup %7701  ;;  %4008 = vmatprep.subr.mxu0 %v3909_v51  ;;  %4079 = vmatprep.subr.mxu1 %v3911_v29  ;;  %v4187_v51 = vld [vmem:[#allocation11 + $0x1d8] sm:$0xff]  ;;  %v4184_v29 = vld [vmem:[#allocation11 + $0x1c0] sm:$0xff] }
 0x589   :  { %v7704_v35 = vpop.eup %7703  ;;  %4009 = vmatpush2.msra.mxu0 %v3908_v19  ;;  %4080 = vmatpush2.msra.mxu1 %v3910_v36  ;;  %v3253_v58 = vmul.f32 %v7702_v45, %v7700_v60  ;;  %v4181_v19 = vld [vmem:[#allocation11 + $0x1a8] sm:$0xff]  ;;  %v4183_v36 = vld [vmem:[#allocation11 + $0x1b8] sm:$0xff]  ;;  %v9403_v60 = vld [vmem:[#allocation12] sm:$0xf] }
 0x58a   :  { %v3252_v57 = vmul.f32 %v7704_v35, %v9340_v25  ;;  %4010 = vmatprep.subr.mxu0 %v3905_v34  ;;  %4081 = vmatprep.subr.mxu1 %v3907_v42  ;;  %v3895_v25 = vld [vmem:[#allocation8 + $0x298] sm:$0xff]  ;;  %v7706_v54 = vpop.eup %7705  ;;  %v4180_v34 = vld [vmem:[#allocation11 + $0x1a0] sm:$0xff]  ;;  %v4177_v45 = vld [vmem:[#allocation11 + $0x188] sm:$0xff] }
 0x58b   :  { %4011 = vmatpush2.msra.mxu0 %v3904_v38  ;;  %4082 = vmatpush2.msra.mxu1 %v3906_v56  ;;  %v4182_v42 = vld [vmem:[#allocation11 + $0x1b0] sm:$0xff]  ;;  %v4179_v38 = vld [vmem:[#allocation11 + $0x198] sm:$0xff]  ;;  %v4176_v56 = vld [vmem:[#allocation11 + $0x180] sm:$0xff] }
 0x58c   :  { %v9394_v63 = vadd.f32 %v3253_v58, %v3252_v57  ;;  %4012 = vmatprep.subr.mxu0 %v3901_v23  ;;  %4083 = vmatprep.subr.mxu1 %v3903_v30  ;;  %v4178_v35 = vld [vmem:[#allocation11 + $0x190] sm:$0xff]  ;;  %v4175_v23 = vld [vmem:[#allocation11 + $0x178] sm:$0xff]  ;;  %v3394_v30 = vrot.slane %v9403_v60, %v10539_v21  ;;  %v4172_v57 = vld [vmem:[#allocation11 + $0x160] sm:$0xff] }
 0x58d   :  { %4013 = vmatpush2.msra.mxu0 %v3900_v55  ;;  %4084 = vmatpush2.msra.mxu1 %v3902_v59  ;;  %v4174_v58 = vld [vmem:[#allocation11 + $0x170] sm:$0xff]  ;;  %v4169_v59 = vld [vmem:[#allocation11 + $0x148] sm:$0xff] }
 0x58e   :  { %7707 = vtanh.f32 %v9394_v63  ;;  %4014 = vmatprep.subr.mxu0 %v3897_v28  ;;  %4085 = vmatprep.subr.mxu1 %v3899_v18  ;;  %v4171_v28 = vld [vmem:[#allocation11 + $0x158] sm:$0xff] }
 0x58f   :  { %4015 = vmatpush2.msra.mxu0 %v3896_v2  ;;  %4086 = vmatpush2.msra.mxu1 %v3898_v4  ;;  %v4168_v2 = vld [vmem:[#allocation11 + $0x140] sm:$0xff]  ;;  %v4170_v4 = vld [vmem:[#allocation11 + $0x150] sm:$0xff] }
 0x590   :  { %4016 = vmatprep.subr.mxu0 %v3893_v10  ;;  %4087 = vmatprep.subr.mxu1 %v3895_v25  ;;  %v4165_v25 = vld [vmem:[#allocation11 + $0x128] sm:$0xff] }
 0x591   :  { %4017 = vmatpush2.msra.mxu0 %v3892_v24  ;;  %4088 = vmatpush2.msra.mxu1 %v3894_v5  ;;  %v4167_v24 = vld [vmem:[#allocation11 + $0x138] sm:$0xff] }
 0x592   :  { %4018 = vmatprep.subr.mxu0 %v3889_v6  ;;  %4089 = vmatprep.subr.mxu1 %v3891_v7  ;;  %v4164_v7 = vld [vmem:[#allocation11 + $0x120] sm:$0xff] }
 0x593   :  { %4019 = vmatpush2.msra.mxu0 %v3888_v15  ;;  %4090 = vmatpush2.msra.mxu1 %v3890_v1  ;;  %v4166_v15 = vld [vmem:[#allocation11 + $0x130] sm:$0xff]  ;;  %v4161_v1 = vld [vmem:[#allocation11 + $0x108] sm:$0xff] }
 0x594   :  { %4020 = vmatprep.subr.mxu0 %v3885_v53  ;;  %4091 = vmatprep.subr.mxu1 %v3887_v8  ;;  %v4163_v53 = vld [vmem:[#allocation11 + $0x118] sm:$0xff] }
 0x595   :  { %4021 = vmatpush2.msra.mxu0 %v3884_v3  ;;  %4092 = vmatpush2.msra.mxu1 %v3886_v11  ;;  %v4160_v3 = vld [vmem:[#allocation11 + $0x100] sm:$0xff]  ;;  %v4162_v11 = vld [vmem:[#allocation11 + $0x110] sm:$0xff] }
 0x596   :  { %4022 = vmatprep.subr.mxu0 %v3881_v12  ;;  %4093 = vmatprep.subr.mxu1 %v3883_v14  ;;  %v4157_v12 = vld [vmem:[#allocation11 + $0xe8] sm:$0xff]  ;;  %v4159_v14 = vld [vmem:[#allocation11 + $0xf8] sm:$0xff] }
 0x597   :  { %4023 = vmatpush2.msra.mxu0 %v3880_v37  ;;  %4094 = vmatpush2.msra.mxu1 %v3882_v26  ;;  %v4156_v37 = vld [vmem:[#allocation11 + $0xe0] sm:$0xff]  ;;  %v4158_v26 = vld [vmem:[#allocation11 + $0xf0] sm:$0xff] }
 0x598   :  { %4024 = vmatprep.subr.mxu0 %v3877_v33  ;;  %4095 = vmatprep.subr.mxu1 %v3879_v31  ;;  %v3398_v33 = vrot.slane %v9403_v60, %v10556_v13  ;;  %v4153_v31 = vld [vmem:[#allocation11 + $0xc8] sm:$0xff] }
 0x599   :  { %4025 = vmatpush2.msra.mxu0 %v3876_v41  ;;  %4096 = vmatpush2.msra.mxu1 %v3878_v40  ;;  %v4155_v41 = vld [vmem:[#allocation11 + $0xd8] sm:$0xff] }
 0x59a   :  { %4278 = vmatprep.subr.mxu0 %v4189_v46  ;;  %4349 = vmatprep.subr.mxu1 %v4191_v43  ;;  %v4152_v46 = vld [vmem:[#allocation11 + $0xc0] sm:$0xff]  ;;  %v4154_v43 = vld [vmem:[#allocation11 + $0xd0] sm:$0xff] }
 0x59b   :  { %v7708_v44 = vpop.eup %7707 }
 0x59c   :  { %v9397_v39 = vmul.f32 %v7708_v44, %v7706_v54  ;;  %v4149_v54 = vld [vmem:[#allocation11 + $0xa8] sm:$0xff]  ;;  %v4151_v44 = vld [vmem:[#allocation11 + $0xb8] sm:$0xff] }
 0x59e   :  { %4026 = vmatprep.mubr.f32.mxu0 %v9397_v39  ;;  %4097 = vmatprep.mubr.f32.mxu1 %v9397_v39 }
 0x59f   :  { %4027 = vmatmul.mubr.f32.vlgmr.msra.gmra.mxu0 %v9379_v61  ;;  %4098 = vmatmul.mubr.f32.vlgmr.msra.gmra.mxu1 %v9379_v61  ;;  %v3390_v61 = vrot.slane %v9403_v60, %v8610_v32 }
 0x5a0   :  { %4279 = vmatpush1.msra.mxu0 %v4188_v47  ;;  %4350 = vmatpush1.msra.mxu1 %v4190_v48  ;;  %v4148_v47 = vld [vmem:[#allocation11 + $0xa0] sm:$0xff]  ;;  %v4150_v48 = vld [vmem:[#allocation11 + $0xb0] sm:$0xff] }
 0x5a1   :  { %4280 = vmatprep.subr.mxu0 %v4185_v50  ;;  %4351 = vmatprep.subr.mxu1 %v4187_v51  ;;  %v4145_v51 = vld [vmem:[#allocation11 + $0x88] sm:$0xff] }
 0x5a2   :  { %4281 = vmatpush1.msra.mxu0 %v4184_v29  ;;  %4352 = vmatpush1.msra.mxu1 %v4186_v17  ;;  %v4147_v29 = vld [vmem:[#allocation11 + $0x98] sm:$0xff]  ;;  %v4144_v17 = vld [vmem:[#allocation11 + $0x80] sm:$0xff] }
 0x5a3   :  { %4282 = vmatprep.subr.mxu0 %v4181_v19  ;;  %4353 = vmatprep.subr.mxu1 %v4183_v36  ;;  %v4146_v19 = vld [vmem:[#allocation11 + $0x90] sm:$0xff]  ;;  %v3402_v36 = vrot.slane %v9403_v60, %v10569_v49 }
 0x5a4   :  { %4283 = vmatpush1.msra.mxu0 %v4180_v34  ;;  %4354 = vmatpush1.msra.mxu1 %v4182_v42  ;;  %v4141_v34 = vld [vmem:[#allocation11 + $0x68] sm:$0xff]  ;;  %v4143_v42 = vld [vmem:[#allocation11 + $0x78] sm:$0xff] }
 0x5a5   :  { %4284 = vmatprep.subr.mxu0 %v4177_v45  ;;  %4355 = vmatprep.subr.mxu1 %v4179_v38  ;;  %v4140_v38 = vld [vmem:[#allocation11 + $0x60] sm:$0xff] }
 0x5a6   :  { %v3473_v55 = vpop.f32.mrf.mxu0  ;;  %4285 = vmatpush1.msra.mxu0 %v4176_v56  ;;  %4356 = vmatpush1.msra.mxu1 %v4178_v35  ;;  %v3544_v40 = vpop.f32.mrf.mxu1  ;;  %v4137_v35 = vld [vmem:[#allocation11 + $0x48] sm:$0xff] }
 0x5a7   :  { %v3474_v18 = vadd.f32 %v3473_v55, %v3390_v61  ;;  %4286 = vmatprep.subr.mxu0 %v4173_v52  ;;  %4357 = vmatprep.subr.mxu1 %v4175_v23  ;;  %v3545_v50 = vadd.f32 %v3544_v40, %v3398_v33  ;;  %v4142_v61 = vld [vmem:[#allocation11 + $0x70] sm:$0xff]  ;;  %v4139_v52 = vld [vmem:[#allocation11 + $0x58] sm:$0xff]  ;;  %v4136_v23 = vld [vmem:[#allocation11 + $0x40] sm:$0xff] }
 0x5a8   :  { %v3475_v10 = vpop.f32.mrf.mxu0  ;;  %4287 = vmatpush1.msra.mxu0 %v4172_v57  ;;  %4358 = vmatpush1.msra.mxu1 %v4174_v58  ;;  %v3546_v45 = vpop.f32.mrf.mxu1  ;;  %v4133_v58 = vld [vmem:[#allocation11 + $0x28] sm:$0xff]  ;;  %v4135_v55 = vld [vmem:[#allocation11 + $0x38] sm:$0xff]  ;;  %v4242_v40 = vld [vmem:[#allocation11 + $0x390] sm:$0xff] }
 0x5a9   :  { %v7414_v5 = vmul.f32 -1.442695, %v3474_v18  ;;  %v3476_v6 = vadd.f32 %v3475_v10, %v3394_v30  ;;  %4288 = vmatprep.subr.mxu0 %v4169_v59  ;;  %4359 = vmatprep.subr.mxu1 %v4171_v28  ;;  %v7416_v56 = vmul.f32 -1.442695, %v3545_v50  ;;  %v4138_v30 = vld [vmem:[#allocation11 + $0x50] sm:$0xff]  ;;  %v3547_v60 = vadd.f32 %v3546_v45, %v3402_v36  ;;  %v4132_v28 = vld [vmem:[#allocation11 + $0x20] sm:$0xff] }
 0x5aa   :  { %4289 = vmatpush1.msra.mxu0 %v4168_v2  ;;  %4360 = vmatpush1.msra.mxu1 %v4170_v4  ;;  %v4134_v18 = vld [vmem:[#allocation11 + $0x30] sm:$0xff]  ;;  %v4129_v4 = vld [vmem:[#allocation11 + $0x8] sm:$0xff]  ;;  %v4131_v10 = vld [vmem:[#allocation11 + $0x18] sm:$0xff] }
 0x5ab   :  { %7709 = vpow2.f32 %v7414_v5  ;;  %v7415_v8 = vmul.f32 -1.442695, %v3476_v6  ;;  %4290 = vmatprep.subr.mxu0 %v4165_v25  ;;  %4361 = vmatprep.subr.mxu1 %v4167_v24  ;;  %v4128_v24 = vld [vmem:[#allocation11] sm:$0xff]  ;;  %v4130_v5 = vld [vmem:[#allocation11 + $0x10] sm:$0xff]  ;;  %v4253_v6 = vld [vmem:[#allocation11 + $0x3e8] sm:$0xff] }
 0x5ac   :  { %4291 = vmatpush1.msra.mxu0 %v4164_v7  ;;  %4362 = vmatpush1.msra.mxu1 %v4166_v15  ;;  %v4255_v7 = vld [vmem:[#allocation11 + $0x3f8] sm:$0xff]  ;;  %v4252_v15 = vld [vmem:[#allocation11 + $0x3e0] sm:$0xff]  ;;  %v4241_v33 = vld [vmem:[#allocation11 + $0x388] sm:$0xff] }
 0x5ad   :  { %7711 = vpow2.f32 %v7415_v8  ;;  %4292 = vmatprep.subr.mxu0 %v4161_v1  ;;  %4363 = vmatprep.subr.mxu1 %v4163_v53  ;;  %v4254_v1 = vld [vmem:[#allocation11 + $0x3f0] sm:$0xff]  ;;  %v4249_v53 = vld [vmem:[#allocation11 + $0x3c8] sm:$0xff]  ;;  %v4251_v8 = vld [vmem:[#allocation11 + $0x3d8] sm:$0xff] }
 0x5ae   :  { %4293 = vmatpush1.msra.mxu0 %v4160_v3  ;;  %4364 = vmatpush1.msra.mxu1 %v4162_v11  ;;  %7713 = vpow2.f32 %v7416_v56  ;;  %v4248_v3 = vld [vmem:[#allocation11 + $0x3c0] sm:$0xff]  ;;  %v4250_v11 = vld [vmem:[#allocation11 + $0x3d0] sm:$0xff]  ;;  %v4231_v36 = vld [vmem:[#allocation11 + $0x338] sm:$0xff] }
 0x5af   :  { %4294 = vmatprep.subr.mxu0 %v4157_v12  ;;  %4365 = vmatprep.subr.mxu1 %v4159_v14  ;;  %v4245_v12 = vld [vmem:[#allocation11 + $0x3a8] sm:$0xff]  ;;  %v4247_v14 = vld [vmem:[#allocation11 + $0x3b8] sm:$0xff]  ;;  %v4230_v45 = vld [vmem:[#allocation11 + $0x330] sm:$0xff] }
 0x5b0   :  { %4295 = vmatpush1.msra.mxu0 %v4156_v37  ;;  %4366 = vmatpush1.msra.mxu1 %v4158_v26  ;;  %v4244_v37 = vld [vmem:[#allocation11 + $0x3a0] sm:$0xff]  ;;  %v4246_v26 = vld [vmem:[#allocation11 + $0x3b0] sm:$0xff]  ;;  %v4225_v56 = vld [vmem:[#allocation11 + $0x308] sm:$0xff] }
 0x5b1   :  { %4296 = vmatprep.subr.mxu0 %v4153_v31  ;;  %4367 = vmatprep.subr.mxu1 %v4155_v41  ;;  %v4243_v31 = vld [vmem:[#allocation11 + $0x398] sm:$0xff]  ;;  %v4240_v41 = vld [vmem:[#allocation11 + $0x380] sm:$0xff] }
 0x5b2   :  { %4297 = vmatpush1.msra.mxu0 %v4152_v46  ;;  %4368 = vmatpush1.msra.mxu1 %v4154_v43  ;;  %v4237_v46 = vld [vmem:[#allocation11 + $0x368] sm:$0xff]  ;;  %v4239_v43 = vld [vmem:[#allocation11 + $0x378] sm:$0xff] }
 0x5b3   :  { %4298 = vmatprep.subr.mxu0 %v4149_v54  ;;  %4369 = vmatprep.subr.mxu1 %v4151_v44  ;;  %v4236_v54 = vld [vmem:[#allocation11 + $0x360] sm:$0xff]  ;;  %v4238_v44 = vld [vmem:[#allocation11 + $0x370] sm:$0xff] }
 0x5b4   :  { %4299 = vmatpush1.msra.mxu0 %v4148_v47  ;;  %4370 = vmatpush1.msra.mxu1 %v4150_v48  ;;  %v4233_v47 = vld [vmem:[#allocation11 + $0x348] sm:$0xff]  ;;  %v4235_v48 = vld [vmem:[#allocation11 + $0x358] sm:$0xff] }
 0x5b5   :  { %4300 = vmatprep.subr.mxu0 %v4145_v51  ;;  %4371 = vmatprep.subr.mxu1 %v4147_v29  ;;  %v4232_v51 = vld [vmem:[#allocation11 + $0x340] sm:$0xff]  ;;  %v4234_v29 = vld [vmem:[#allocation11 + $0x350] sm:$0xff] }
 0x5b6   :  { %4301 = vmatpush1.msra.mxu0 %v4144_v17  ;;  %4372 = vmatpush1.msra.mxu1 %v4146_v19  ;;  %v4229_v19 = vld [vmem:[#allocation11 + $0x328] sm:$0xff] }
 0x5b7   :  { %4302 = vmatprep.subr.mxu0 %v4141_v34  ;;  %4373 = vmatprep.subr.mxu1 %v4143_v42  ;;  %v4228_v42 = vld [vmem:[#allocation11 + $0x320] sm:$0xff] }
 0x5b8   :  { %v7710_v57 = vpop.eup %7709  ;;  %4303 = vmatpush1.msra.mxu0 %v4140_v38  ;;  %4374 = vmatpush1.msra.mxu1 %v4142_v61 }
 0x5b9   :  { %v3558_v59 = vadd.f32 1.0, %v7710_v57  ;;  %4304 = vmatprep.subr.mxu0 %v4137_v35  ;;  %4375 = vmatprep.subr.mxu1 %v4139_v52  ;;  %v4227_v35 = vld [vmem:[#allocation11 + $0x318] sm:$0xff]  ;;  %v4226_v57 = vld [vmem:[#allocation11 + $0x310] sm:$0xff] }
 0x5ba   :  { %v7712_v2 = vpop.eup %7711  ;;  %4305 = vmatpush1.msra.mxu0 %v4136_v23  ;;  %4376 = vmatpush1.msra.mxu1 %v4138_v30  ;;  %v4224_v30 = vld [vmem:[#allocation11 + $0x300] sm:$0xff] }
 0x5bb   :  { %7715 = vrcp.f32 %v3558_v59  ;;  %v3559_v25 = vadd.f32 1.0, %v7712_v2  ;;  %4306 = vmatprep.subr.mxu0 %v4133_v58  ;;  %4377 = vmatprep.subr.mxu1 %v4135_v55  ;;  %v7714_v50 = vpop.eup %7713  ;;  %v4223_v58 = vld [vmem:[#allocation11 + $0x2f8] sm:$0xff]  ;;  %v4220_v59 = vld [vmem:[#allocation11 + $0x2e0] sm:$0xff] }
 0x5bc   :  { %7717 = vtanh.f32 %v3547_v60  ;;  %4307 = vmatpush1.msra.mxu0 %v4132_v28  ;;  %4378 = vmatpush1.msra.mxu1 %v4134_v18  ;;  %v3560_v61 = vadd.f32 1.0, %v7714_v50  ;;  %v4221_v60 = vld [vmem:[#allocation11 + $0x2e8] sm:$0xff]  ;;  %v4222_v28 = vld [vmem:[#allocation11 + $0x2f0] sm:$0xff]  ;;  %v4216_v2 = vld [vmem:[#allocation11 + $0x2c0] sm:$0xff] }
 0x5bd   :  { %7719 = vrcp.f32 %v3559_v25  ;;  %4308 = vmatprep.subr.mxu0 %v4129_v4  ;;  %4379 = vmatprep.subr.mxu1 %v4131_v10  ;;  %v4217_v18 = vld [vmem:[#allocation11 + $0x2c8] sm:$0xff]  ;;  %v4218_v4 = vld [vmem:[#allocation11 + $0x2d0] sm:$0xff]  ;;  %v4215_v25 = vld [vmem:[#allocation11 + $0x2b8] sm:$0xff] }
 0x5be   :  { %4309 = vmatpush1.msra.mxu0 %v4128_v24  ;;  %4380 = vmatpush1.msra.mxu1 %v4130_v5  ;;  %7721 = vrcp.f32 %v3560_v61  ;;  %v4213_v10 = vld [vmem:[#allocation11 + $0x2a8] sm:$0xff]  ;;  %v4212_v24 = vld [vmem:[#allocation11 + $0x2a0] sm:$0xff]  ;;  %v4214_v5 = vld [vmem:[#allocation11 + $0x2b0] sm:$0xff] }
 0x5bf   :  { %4310 = vmatprep.subr.mxu0 %v4253_v6  ;;  %4381 = vmatprep.subr.mxu1 %v4255_v7  ;;  %v4209_v6 = vld [vmem:[#allocation11 + $0x288] sm:$0xff]  ;;  %v4211_v7 = vld [vmem:[#allocation11 + $0x298] sm:$0xff]  ;;  %v4504_v61 = vld [vmem:[#allocation4 + $0x1b8] sm:$0xff] }
 0x5c0   :  { %4311 = vmatpush2.msra.mxu0 %v4252_v15  ;;  %4382 = vmatpush2.msra.mxu1 %v4254_v1  ;;  %v4208_v15 = vld [vmem:[#allocation11 + $0x280] sm:$0xff]  ;;  %v4210_v1 = vld [vmem:[#allocation11 + $0x290] sm:$0xff] }
 0x5c1   :  { %4312 = vmatprep.subr.mxu0 %v4249_v53  ;;  %4383 = vmatprep.subr.mxu1 %v4251_v8  ;;  %v4205_v53 = vld [vmem:[#allocation11 + $0x268] sm:$0xff]  ;;  %v4207_v8 = vld [vmem:[#allocation11 + $0x278] sm:$0xff] }
 0x5c2   :  { %4313 = vmatpush2.msra.mxu0 %v4248_v3  ;;  %4384 = vmatpush2.msra.mxu1 %v4250_v11  ;;  %v4204_v3 = vld [vmem:[#allocation11 + $0x260] sm:$0xff]  ;;  %v4206_v11 = vld [vmem:[#allocation11 + $0x270] sm:$0xff] }
 0x5c3   :  { %4314 = vmatprep.subr.mxu0 %v4245_v12  ;;  %4385 = vmatprep.subr.mxu1 %v4247_v14  ;;  %v4201_v12 = vld [vmem:[#allocation11 + $0x248] sm:$0xff]  ;;  %v4203_v14 = vld [vmem:[#allocation11 + $0x258] sm:$0xff] }
 0x5c4   :  { %4315 = vmatpush2.msra.mxu0 %v4244_v37  ;;  %4386 = vmatpush2.msra.mxu1 %v4246_v26  ;;  %v4200_v37 = vld [vmem:[#allocation11 + $0x240] sm:$0xff]  ;;  %v4202_v26 = vld [vmem:[#allocation11 + $0x250] sm:$0xff] }
 0x5c5   :  { %4316 = vmatprep.subr.mxu0 %v4241_v33  ;;  %4387 = vmatprep.subr.mxu1 %v4243_v31  ;;  %v4197_v33 = vld [vmem:[#allocation11 + $0x228] sm:$0xff]  ;;  %v4199_v31 = vld [vmem:[#allocation11 + $0x238] sm:$0xff] }
 0x5c6   :  { %4317 = vmatpush2.msra.mxu0 %v4240_v41  ;;  %4388 = vmatpush2.msra.mxu1 %v4242_v40  ;;  %v4196_v41 = vld [vmem:[#allocation11 + $0x220] sm:$0xff]  ;;  %v4198_v40 = vld [vmem:[#allocation11 + $0x230] sm:$0xff] }
 0x5c7   :  { %4318 = vmatprep.subr.mxu0 %v4237_v46  ;;  %4389 = vmatprep.subr.mxu1 %v4239_v43  ;;  %v4193_v46 = vld [vmem:[#allocation11 + $0x208] sm:$0xff]  ;;  %v4195_v43 = vld [vmem:[#allocation11 + $0x218] sm:$0xff] }
 0x5c8   :  { %v7716_v17 = vpop.eup %7715  ;;  %4319 = vmatpush2.msra.mxu0 %v4236_v54  ;;  %4390 = vmatpush2.msra.mxu1 %v4238_v44  ;;  %v4192_v44 = vld [vmem:[#allocation11 + $0x200] sm:$0xff] }
 0x5c9   :  { %v7718_v34 = vpop.eup %7717  ;;  %4320 = vmatprep.subr.mxu0 %v4233_v47  ;;  %4391 = vmatprep.subr.mxu1 %v4235_v48  ;;  %v4194_v47 = vld [vmem:[#allocation11 + $0x210] sm:$0xff] }
 0x5ca   :  { %v7720_v38 = vpop.eup %7719  ;;  %4321 = vmatpush2.msra.mxu0 %v4232_v51  ;;  %4392 = vmatpush2.msra.mxu1 %v4234_v29  ;;  %v3569_v23 = vmul.f32 %v7718_v34, %v7716_v17  ;;  %v4510_v51 = vld [vmem:[#allocation4 + $0x1e8] sm:$0xff]  ;;  %v4512_v29 = vld [vmem:[#allocation4 + $0x1f8] sm:$0xff]  ;;  %v4509_v17 = vld [vmem:[#allocation4 + $0x1e0] sm:$0xff] }
 0x5cb   :  { %v3568_v52 = vmul.f32 %v7720_v38, %v9360_v62  ;;  %4322 = vmatprep.subr.mxu0 %v4229_v19  ;;  %4393 = vmatprep.subr.mxu1 %v4231_v36  ;;  %v4219_v62 = vld [vmem:[#allocation11 + $0x2d8] sm:$0xff]  ;;  %v7722_v54 = vpop.eup %7721  ;;  %v4511_v19 = vld [vmem:[#allocation4 + $0x1f0] sm:$0xff]  ;;  %v4506_v36 = vld [vmem:[#allocation4 + $0x1c8] sm:$0xff] }
 0x5cc   :  { %4323 = vmatpush2.msra.mxu0 %v4228_v42  ;;  %4394 = vmatpush2.msra.mxu1 %v4230_v45  ;;  %v4508_v34 = vld [vmem:[#allocation4 + $0x1d8] sm:$0xff]  ;;  %v4505_v42 = vld [vmem:[#allocation4 + $0x1c0] sm:$0xff]  ;;  %v4507_v45 = vld [vmem:[#allocation4 + $0x1d0] sm:$0xff] }
 0x5cd   :  { %v9414_v55 = vadd.f32 %v3569_v23, %v3568_v52  ;;  %4324 = vmatprep.subr.mxu0 %v4225_v56  ;;  %4395 = vmatprep.subr.mxu1 %v4227_v35  ;;  %v4502_v38 = vld [vmem:[#allocation4 + $0x1a8] sm:$0xff]  ;;  %v4501_v56 = vld [vmem:[#allocation4 + $0x1a0] sm:$0xff]  ;;  %v4503_v35 = vld [vmem:[#allocation4 + $0x1b0] sm:$0xff] }
 0x5ce   :  { %4325 = vmatpush2.msra.mxu0 %v4224_v30  ;;  %4396 = vmatpush2.msra.mxu1 %v4226_v57  ;;  %v4498_v52 = vld [vmem:[#allocation4 + $0x188] sm:$0xff]  ;;  %v4500_v23 = vld [vmem:[#allocation4 + $0x198] sm:$0xff]  ;;  %v4499_v30 = vld [vmem:[#allocation4 + $0x190] sm:$0xff] }
 0x5cf   :  { %4326 = vmatprep.subr.mxu0 %v4221_v60  ;;  %4397 = vmatprep.subr.mxu1 %v4223_v58  ;;  %7723 = vtanh.f32 %v9414_v55  ;;  %v4494_v57 = vld [vmem:[#allocation4 + $0x168] sm:$0xff]  ;;  %v4496_v60 = vld [vmem:[#allocation4 + $0x178] sm:$0xff]  ;;  %v4493_v58 = vld [vmem:[#allocation4 + $0x160] sm:$0xff] }
 0x5d0   :  { %4327 = vmatpush2.msra.mxu0 %v4220_v59  ;;  %4398 = vmatpush2.msra.mxu1 %v4222_v28  ;;  %v4495_v59 = vld [vmem:[#allocation4 + $0x170] sm:$0xff]  ;;  %v4490_v28 = vld [vmem:[#allocation4 + $0x148] sm:$0xff] }
 0x5d1   :  { %4328 = vmatprep.subr.mxu0 %v4217_v18  ;;  %4399 = vmatprep.subr.mxu1 %v4219_v62  ;;  %v4492_v18 = vld [vmem:[#allocation4 + $0x158] sm:$0xff]  ;;  %v4489_v62 = vld [vmem:[#allocation4 + $0x140] sm:$0xff] }
 0x5d2   :  { %4329 = vmatpush2.msra.mxu0 %v4216_v2  ;;  %4400 = vmatpush2.msra.mxu1 %v4218_v4  ;;  %v4491_v2 = vld [vmem:[#allocation4 + $0x150] sm:$0xff]  ;;  %v4486_v4 = vld [vmem:[#allocation4 + $0x128] sm:$0xff] }
 0x5d3   :  { %4330 = vmatprep.subr.mxu0 %v4213_v10  ;;  %4401 = vmatprep.subr.mxu1 %v4215_v25  ;;  %v4488_v10 = vld [vmem:[#allocation4 + $0x138] sm:$0xff]  ;;  %v4485_v25 = vld [vmem:[#allocation4 + $0x120] sm:$0xff] }
 0x5d4   :  { %4331 = vmatpush2.msra.mxu0 %v4212_v24  ;;  %4402 = vmatpush2.msra.mxu1 %v4214_v5  ;;  %v4487_v24 = vld [vmem:[#allocation4 + $0x130] sm:$0xff]  ;;  %v4482_v5 = vld [vmem:[#allocation4 + $0x108] sm:$0xff] }
 0x5d5   :  { %4332 = vmatprep.subr.mxu0 %v4209_v6  ;;  %4403 = vmatprep.subr.mxu1 %v4211_v7  ;;  %v4484_v6 = vld [vmem:[#allocation4 + $0x118] sm:$0xff]  ;;  %v4481_v7 = vld [vmem:[#allocation4 + $0x100] sm:$0xff] }
 0x5d6   :  { %4333 = vmatpush2.msra.mxu0 %v4208_v15  ;;  %4404 = vmatpush2.msra.mxu1 %v4210_v1  ;;  %v4483_v15 = vld [vmem:[#allocation4 + $0x110] sm:$0xff]  ;;  %v4478_v1 = vld [vmem:[#allocation4 + $0xe8] sm:$0xff] }
 0x5d7   :  { %4334 = vmatprep.subr.mxu0 %v4205_v53  ;;  %4405 = vmatprep.subr.mxu1 %v4207_v8  ;;  %v4480_v53 = vld [vmem:[#allocation4 + $0xf8] sm:$0xff]  ;;  %v4477_v8 = vld [vmem:[#allocation4 + $0xe0] sm:$0xff] }
 0x5d8   :  { %4335 = vmatpush2.msra.mxu0 %v4204_v3  ;;  %4406 = vmatpush2.msra.mxu1 %v4206_v11  ;;  %v4479_v3 = vld [vmem:[#allocation4 + $0xf0] sm:$0xff]  ;;  %v4474_v11 = vld [vmem:[#allocation4 + $0xc8] sm:$0xff] }
 0x5d9   :  { %4336 = vmatprep.subr.mxu0 %v4201_v12  ;;  %4407 = vmatprep.subr.mxu1 %v4203_v14  ;;  %v4476_v12 = vld [vmem:[#allocation4 + $0xd8] sm:$0xff]  ;;  %v4473_v14 = vld [vmem:[#allocation4 + $0xc0] sm:$0xff] }
 0x5da   :  { %4337 = vmatpush2.msra.mxu0 %v4200_v37  ;;  %4408 = vmatpush2.msra.mxu1 %v4202_v26  ;;  %v4475_v37 = vld [vmem:[#allocation4 + $0xd0] sm:$0xff]  ;;  %v4470_v26 = vld [vmem:[#allocation4 + $0xa8] sm:$0xff] }
 0x5db   :  { %4338 = vmatprep.subr.mxu0 %v4197_v33  ;;  %4409 = vmatprep.subr.mxu1 %v4199_v31  ;;  %v4472_v33 = vld [vmem:[#allocation4 + $0xb8] sm:$0xff]  ;;  %v4469_v31 = vld [vmem:[#allocation4 + $0xa0] sm:$0xff] }
 0x5dc   :  { %v7724_v48 = vpop.eup %7723  ;;  %4339 = vmatpush2.msra.mxu0 %v4196_v41  ;;  %4410 = vmatpush2.msra.mxu1 %v4198_v40  ;;  %v4471_v41 = vld [vmem:[#allocation4 + $0xb0] sm:$0xff]  ;;  %v4466_v40 = vld [vmem:[#allocation4 + $0x88] sm:$0xff] }
 0x5dd   :  { %4340 = vmatprep.subr.mxu0 %v4193_v46  ;;  %4411 = vmatprep.subr.mxu1 %v4195_v43  ;;  %v9417_v50 = vmul.f32 %v7724_v48, %v7722_v54  ;;  %v4468_v46 = vld [vmem:[#allocation4 + $0x98] sm:$0xff]  ;;  %v4465_v43 = vld [vmem:[#allocation4 + $0x80] sm:$0xff]  ;;  %v4467_v54 = vld [vmem:[#allocation4 + $0x90] sm:$0xff] }
 0x5de   :  { %4341 = vmatpush2.msra.mxu0 %v4192_v44  ;;  %4412 = vmatpush2.msra.mxu1 %v4194_v47  ;;  %v4462_v44 = vld [vmem:[#allocation4 + $0x68] sm:$0xff]  ;;  %v4464_v47 = vld [vmem:[#allocation4 + $0x78] sm:$0xff]  ;;  %v4461_v48 = vld [vmem:[#allocation4 + $0x60] sm:$0xff] }
 0x5df   :  { %10663 = vst [vmem:[#allocation47_spill] sm:$0xff] %v9417_v50  ;;  %4342 = vmatprep.mubr.f32.mxu0 %v9417_v50  ;;  %4413 = vmatprep.mubr.f32.mxu1 %v9417_v50  ;;  %v9705_v50 = vld [vmem:[#allocation11 + $0x60] sm:$0xff] }
 0x5e0   :  { %4343 = vmatmul.mubr.f32.vlgmr.msra.gmra.mxu0 %v9397_v39  ;;  %4414 = vmatmul.mubr.f32.vlgmr.msra.gmra.mxu1 %v9397_v39  ;;  %v4497_v39 = vld [vmem:[#allocation4 + $0x180] sm:$0xff]  ;;  %10683 = vst [vmem:[#allocation56_spill] sm:$0xff] %v9705_v50 }
 0x5e1   :  { %4513 = vmatprep.subr.mxu0 %v4510_v51  ;;  %4584 = vmatprep.subr.mxu1 %v4512_v29  ;;  %v4463_v51 = vld [vmem:[#allocation4 + $0x70] sm:$0xff]  ;;  %v4458_v29 = vld [vmem:[#allocation4 + $0x48] sm:$0xff] }
 0x5e2   :  { %4514 = vmatpush1.msra.mxu0 %v4509_v17  ;;  %4585 = vmatpush1.msra.mxu1 %v4511_v19  ;;  %v4460_v17 = vld [vmem:[#allocation4 + $0x58] sm:$0xff]  ;;  %v4457_v19 = vld [vmem:[#allocation4 + $0x40] sm:$0xff] }
 0x5e3   :  { %4515 = vmatprep.subr.mxu0 %v4506_v36  ;;  %4586 = vmatprep.subr.mxu1 %v4508_v34  ;;  %v4459_v36 = vld [vmem:[#allocation4 + $0x50] sm:$0xff]  ;;  %v4454_v34 = vld [vmem:[#allocation4 + $0x28] sm:$0xff] }
 0x5e4   :  { %4516 = vmatpush1.msra.mxu0 %v4505_v42  ;;  %4587 = vmatpush1.msra.mxu1 %v4507_v45  ;;  %v4456_v42 = vld [vmem:[#allocation4 + $0x38] sm:$0xff]  ;;  %v4453_v45 = vld [vmem:[#allocation4 + $0x20] sm:$0xff] }
 0x5e5   :  { %4517 = vmatprep.subr.mxu0 %v4502_v38  ;;  %4588 = vmatprep.subr.mxu1 %v4504_v61  ;;  %v4455_v38 = vld [vmem:[#allocation4 + $0x30] sm:$0xff]  ;;  %v4450_v61 = vld [vmem:[#allocation4 + $0x8] sm:$0xff] }
 0x5e6   :  { %4518 = vmatpush1.msra.mxu0 %v4501_v56  ;;  %4589 = vmatpush1.msra.mxu1 %v4503_v35  ;;  %v4452_v56 = vld [vmem:[#allocation4 + $0x18] sm:$0xff]  ;;  %v4449_v35 = vld [vmem:[#allocation4] sm:$0xff] }
 0x5e7   :  { %4519 = vmatprep.subr.mxu0 %v4498_v52  ;;  %4590 = vmatprep.subr.mxu1 %v4500_v23  ;;  %v4451_v52 = vld [vmem:[#allocation4 + $0x10] sm:$0xff] }
 0x5e8   :  { %4520 = vmatpush1.msra.mxu0 %v4497_v39  ;;  %4591 = vmatpush1.msra.mxu1 %v4499_v30  ;;  %v4744_v23 = vld [vmem:[#allocation8 + $0x1e8] sm:$0xff]  ;;  %v4746_v39 = vld [vmem:[#allocation8 + $0x1f8] sm:$0xff] }
 0x5e9   :  { %4521 = vmatprep.subr.mxu0 %v4494_v57  ;;  %4592 = vmatprep.subr.mxu1 %v4496_v60  ;;  %v10664_v57 = vld [vmem:[#allocation40_spill] sm:$0xff] }
 0x5ea   :  { %4522 = vmatpush1.msra.mxu0 %v4493_v58  ;;  %4593 = vmatpush1.msra.mxu1 %v4495_v59 }
 0x5eb   :  { %4523 = vmatprep.subr.mxu0 %v4490_v28  ;;  %4594 = vmatprep.subr.mxu1 %v4492_v18  ;;  %v10665_v28 = vld [vmem:[#allocation41_spill] sm:$0xff] }
 0x5ec   :  { %4524 = vmatpush1.msra.mxu0 %v4489_v62  ;;  %4595 = vmatpush1.msra.mxu1 %v4491_v2 }
 0x5ed   :  { %4525 = vmatprep.subr.mxu0 %v4486_v4  ;;  %4596 = vmatprep.subr.mxu1 %v4488_v10  ;;  %v10666_v4 = vld [vmem:[#allocation26_spill] sm:$0xff] }
 0x5ee   :  { %4526 = vmatpush1.msra.mxu0 %v4485_v25  ;;  %4597 = vmatpush1.msra.mxu1 %v4487_v24 }
 0x5ef   :  { %4527 = vmatprep.subr.mxu0 %v4482_v5  ;;  %4598 = vmatprep.subr.mxu1 %v4484_v6  ;;  %v10667_v5 = vld [vmem:[#allocation27_spill] sm:$0xff] }
 0x5f0   :  { %4528 = vmatpush1.msra.mxu0 %v4481_v7  ;;  %4599 = vmatpush1.msra.mxu1 %v4483_v15 }
 0x5f1   :  { %4529 = vmatprep.subr.mxu0 %v4478_v1  ;;  %4600 = vmatprep.subr.mxu1 %v4480_v53 }
 0x5f2   :  { %4530 = vmatpush1.msra.mxu0 %v4477_v8  ;;  %4601 = vmatpush1.msra.mxu1 %v4479_v3 }
 0x5f3   :  { %4531 = vmatprep.subr.mxu0 %v4474_v11  ;;  %4602 = vmatprep.subr.mxu1 %v4476_v12 }
 0x5f4   :  { %4532 = vmatpush1.msra.mxu0 %v4473_v14  ;;  %4603 = vmatpush1.msra.mxu1 %v4475_v37 }
 0x5f5   :  { %4533 = vmatprep.subr.mxu0 %v4470_v26  ;;  %4604 = vmatprep.subr.mxu1 %v4472_v33 }
 0x5f6   :  { %4534 = vmatpush1.msra.mxu0 %v4469_v31  ;;  %4605 = vmatpush1.msra.mxu1 %v4471_v41 }
 0x5f7   :  { %4535 = vmatprep.subr.mxu0 %v4466_v40  ;;  %4606 = vmatprep.subr.mxu1 %v4468_v46  ;;  %v4743_v46 = vld [vmem:[#allocation8 + $0x1e0] sm:$0xff] }
 0x5f8   :  { %4536 = vmatpush1.msra.mxu0 %v4465_v43  ;;  %4607 = vmatpush1.msra.mxu1 %v4467_v54  ;;  %v4745_v43 = vld [vmem:[#allocation8 + $0x1f0] sm:$0xff]  ;;  %v4740_v54 = vld [vmem:[#allocation8 + $0x1c8] sm:$0xff] }
 0x5f9   :  { %4537 = vmatprep.subr.mxu0 %v4462_v44  ;;  %4608 = vmatprep.subr.mxu1 %v4464_v47  ;;  %v4742_v44 = vld [vmem:[#allocation8 + $0x1d8] sm:$0xff]  ;;  %v4739_v47 = vld [vmem:[#allocation8 + $0x1c0] sm:$0xff] }
 0x5fa   :  { %4538 = vmatpush1.msra.mxu0 %v4461_v48  ;;  %4609 = vmatpush1.msra.mxu1 %v4463_v51  ;;  %v4741_v48 = vld [vmem:[#allocation8 + $0x1d0] sm:$0xff]  ;;  %v4738_v51 = vld [vmem:[#allocation8 + $0x1b8] sm:$0xff] }
 0x5fb   :  { %4539 = vmatprep.subr.mxu0 %v4458_v29  ;;  %4610 = vmatprep.subr.mxu1 %v4460_v17  ;;  %v4735_v29 = vld [vmem:[#allocation8 + $0x1a0] sm:$0xff]  ;;  %v4737_v17 = vld [vmem:[#allocation8 + $0x1b0] sm:$0xff] }
 0x5fc   :  { %4540 = vmatpush1.msra.mxu0 %v4457_v19  ;;  %4611 = vmatpush1.msra.mxu1 %v4459_v36  ;;  %v4732_v19 = vld [vmem:[#allocation8 + $0x188] sm:$0xff]  ;;  %v4734_v36 = vld [vmem:[#allocation8 + $0x198] sm:$0xff] }
 0x5fd   :  { %4541 = vmatprep.subr.mxu0 %v4454_v34  ;;  %4612 = vmatprep.subr.mxu1 %v4456_v42  ;;  %v4731_v34 = vld [vmem:[#allocation8 + $0x180] sm:$0xff]  ;;  %v4733_v42 = vld [vmem:[#allocation8 + $0x190] sm:$0xff] }
 0x5fe   :  { %4542 = vmatpush1.msra.mxu0 %v4453_v45  ;;  %4613 = vmatpush1.msra.mxu1 %v4455_v38  ;;  %v4728_v45 = vld [vmem:[#allocation8 + $0x168] sm:$0xff]  ;;  %v4730_v38 = vld [vmem:[#allocation8 + $0x178] sm:$0xff] }
 0x5ff   :  { %4543 = vmatprep.subr.mxu0 %v4450_v61  ;;  %4614 = vmatprep.subr.mxu1 %v4452_v56  ;;  %v9437_v61 = vld [vmem:[#allocation9] sm:$0xf] }
 0x600   :  { %4544 = vmatpush1.msra.mxu0 %v4449_v35  ;;  %4577 = vmatprep.mubr.f32.mxu0 %v10534_v22  ;;  %v4727_v56 = vld [vmem:[#allocation8 + $0x160] sm:$0xff]  ;;  %v4729_v35 = vld [vmem:[#allocation8 + $0x170] sm:$0xff] }
 0x601   :  { %4615 = vmatpush1.msra.mxu1 %v4451_v52  ;;  %4648 = vmatprep.mubr.f32.mxu1 %v10534_v22  ;;  %v4724_v52 = vld [vmem:[#allocation8 + $0x148] sm:$0xff] }
 0x602   :  { %4833 = vmatprep.subr.mxu0 %v4744_v23  ;;  %4904 = vmatprep.subr.mxu1 %v4746_v39  ;;  %v4726_v23 = vld [vmem:[#allocation8 + $0x158] sm:$0xff]  ;;  %v4723_v39 = vld [vmem:[#allocation8 + $0x140] sm:$0xff] }
 0x61a   :  { %v3708_v30 = vpop.f32.mrf.mxu0  ;;  %v3779_v2 = vpop.f32.mrf.mxu1 }
 0x61b   :  { %v3784_v60 = vadd.f32 %v3708_v30, %v10664_v57  ;;  %v3786_v10 = vadd.f32 %v3779_v2, %v10666_v4  ;;  %v4725_v30 = vld [vmem:[#allocation8 + $0x150] sm:$0xff]  ;;  %v3945_v57 = vrot.slane %v9437_v61, %v8610_v32  ;;  %v4718_v2 = vld [vmem:[#allocation8 + $0x118] sm:$0xff] }
 0x61c   :  { %v3710_v58 = vpop.f32.mrf.mxu0  ;;  %v3781_v25 = vpop.f32.mrf.mxu1 }
 0x61d   :  { %v7417_v59 = vmul.f32 -1.442695, %v3784_v60  ;;  %v3785_v18 = vadd.f32 %v3710_v58, %v10665_v28  ;;  %v7419_v24 = vmul.f32 -1.442695, %v3786_v10  ;;  %v3787_v6 = vadd.f32 %v3781_v25, %v10667_v5  ;;  %v4720_v60 = vld [vmem:[#allocation8 + $0x128] sm:$0xff]  ;;  %v4722_v58 = vld [vmem:[#allocation8 + $0x138] sm:$0xff] }
 0x61e   :  { %v4721_v28 = vld [vmem:[#allocation8 + $0x130] sm:$0xff]  ;;  %v4715_v10 = vld [vmem:[#allocation8 + $0x100] sm:$0xff]  ;;  %v4712_v5 = vld [vmem:[#allocation8 + $0xe8] sm:$0xff] }
 0x61f   :  { %7725 = vpow2.f32 %v7417_v59  ;;  %v7418_v62 = vmul.f32 -1.442695, %v3785_v18  ;;  %v4719_v59 = vld [vmem:[#allocation8 + $0x120] sm:$0xff]  ;;  %v3949_v18 = vrot.slane %v9437_v61, %v10539_v21  ;;  %v4717_v25 = vld [vmem:[#allocation8 + $0x110] sm:$0xff] }
 0x621   :  { %7727 = vpow2.f32 %v7418_v62  ;;  %v4716_v62 = vld [vmem:[#allocation8 + $0x108] sm:$0xff] }
 0x622   :  { %7729 = vpow2.f32 %v7419_v24 }
 0x623   :  { %7731 = vtanh.f32 %v3787_v6  ;;  %v4714_v6 = vld [vmem:[#allocation8 + $0xf8] sm:$0xff] }
 0x62c   :  { %v7726_v7 = vpop.eup %7725 }
 0x62d   :  { %v3797_v15 = vadd.f32 1.0, %v7726_v7 }
 0x62e   :  { %v7728_v1 = vpop.eup %7727 }
 0x62f   :  { %7733 = vrcp.f32 %v3797_v15  ;;  %v3798_v53 = vadd.f32 1.0, %v7728_v1  ;;  %v7730_v8 = vpop.eup %7729  ;;  %v4711_v15 = vld [vmem:[#allocation8 + $0xe0] sm:$0xff]  ;;  %v4713_v1 = vld [vmem:[#allocation8 + $0xf0] sm:$0xff] }
 0x630   :  { %v7732_v3 = vpop.eup %7731  ;;  %v3799_v37 = vadd.f32 1.0, %v7730_v8 }
 0x631   :  { %7735 = vrcp.f32 %v3798_v53 }
 0x632   :  { %7737 = vrcp.f32 %v3799_v37 }
 0x63c   :  { %v7734_v11 = vpop.eup %7733 }
 0x63d   :  { %v3808_v12 = vmul.f32 %v7734_v11, %v7732_v3  ;;  %v4708_v3 = vld [vmem:[#allocation8 + $0xc8] sm:$0xff]  ;;  %v4710_v11 = vld [vmem:[#allocation8 + $0xd8] sm:$0xff] }
 0x63e   :  { %v7736_v14 = vpop.eup %7735 }
 0x63f   :  { %v3807_v26 = vmul.f32 %v7736_v14, %v9376_v16  ;;  %v7738_v31 = vpop.eup %7737  ;;  %v4736_v16 = vld [vmem:[#allocation8 + $0x1a8] sm:$0xff]  ;;  %v4709_v14 = vld [vmem:[#allocation8 + $0xd0] sm:$0xff] }
 0x641   :  { %v9430_v33 = vadd.f32 %v3808_v12, %v3807_v26  ;;  %v4707_v12 = vld [vmem:[#allocation8 + $0xc0] sm:$0xff]  ;;  %v4704_v26 = vld [vmem:[#allocation8 + $0xa8] sm:$0xff] }
 0x643   :  { %7739 = vtanh.f32 %v9430_v33 }
 0x650   :  { %v7740_v41 = vpop.eup %7739 }
 0x651   :  { %v9433_v40 = vmul.f32 %v7740_v41, %v7738_v31  ;;  %v4706_v31 = vld [vmem:[#allocation8 + $0xb8] sm:$0xff]  ;;  %v4703_v41 = vld [vmem:[#allocation8 + $0xa0] sm:$0xff] }
 0x653   :  { %4578 = vmatmul.mubr.f32.vlgmr.msra.gmra.mxu0 %v9433_v40  ;;  %4649 = vmatmul.mubr.f32.vlgmr.msra.gmra.mxu1 %v9433_v40 }
 0x654   :  { %4834 = vmatpush1.msra.mxu0 %v4743_v46  ;;  %4905 = vmatpush1.msra.mxu1 %v4745_v43  ;;  %v4705_v46 = vld [vmem:[#allocation8 + $0xb0] sm:$0xff]  ;;  %v4700_v43 = vld [vmem:[#allocation8 + $0x88] sm:$0xff] }
 0x655   :  { %4835 = vmatprep.subr.mxu0 %v4740_v54  ;;  %4906 = vmatprep.subr.mxu1 %v4742_v44  ;;  %v4702_v54 = vld [vmem:[#allocation8 + $0x98] sm:$0xff]  ;;  %v3953_v44 = vrot.slane %v9437_v61, %v10556_v13 }
 0x656   :  { %4836 = vmatpush1.msra.mxu0 %v4739_v47  ;;  %4907 = vmatpush1.msra.mxu1 %v4741_v48  ;;  %v4699_v47 = vld [vmem:[#allocation8 + $0x80] sm:$0xff]  ;;  %v4701_v48 = vld [vmem:[#allocation8 + $0x90] sm:$0xff] }
 0x657   :  { %4837 = vmatprep.subr.mxu0 %v4736_v16  ;;  %4908 = vmatprep.subr.mxu1 %v4738_v51  ;;  %v4696_v51 = vld [vmem:[#allocation8 + $0x68] sm:$0xff] }
 0x658   :  { %4838 = vmatpush1.msra.mxu0 %v4735_v29  ;;  %4909 = vmatpush1.msra.mxu1 %v4737_v17  ;;  %v4698_v29 = vld [vmem:[#allocation8 + $0x78] sm:$0xff]  ;;  %v4695_v17 = vld [vmem:[#allocation8 + $0x60] sm:$0xff] }
 0x659   :  { %4839 = vmatprep.subr.mxu0 %v4732_v19  ;;  %4910 = vmatprep.subr.mxu1 %v4734_v36  ;;  %v4697_v19 = vld [vmem:[#allocation8 + $0x70] sm:$0xff]  ;;  %v4692_v36 = vld [vmem:[#allocation8 + $0x48] sm:$0xff] }
 0x65a   :  { %4840 = vmatpush1.msra.mxu0 %v4731_v34  ;;  %4911 = vmatpush1.msra.mxu1 %v4733_v42  ;;  %v4694_v34 = vld [vmem:[#allocation8 + $0x58] sm:$0xff] }
 0x65b   :  { %4841 = vmatprep.subr.mxu0 %v4728_v45  ;;  %4912 = vmatprep.subr.mxu1 %v4730_v38  ;;  %v4691_v45 = vld [vmem:[#allocation8 + $0x40] sm:$0xff]  ;;  %v4693_v38 = vld [vmem:[#allocation8 + $0x50] sm:$0xff] }
 0x65c   :  { %4842 = vmatpush1.msra.mxu0 %v4727_v56  ;;  %4913 = vmatpush1.msra.mxu1 %v4729_v35  ;;  %v4688_v56 = vld [vmem:[#allocation8 + $0x28] sm:$0xff]  ;;  %v4690_v35 = vld [vmem:[#allocation8 + $0x38] sm:$0xff] }
 0x65d   :  { %4843 = vmatprep.subr.mxu0 %v4724_v52  ;;  %4914 = vmatprep.subr.mxu1 %v4726_v23  ;;  %v3957_v52 = vrot.slane %v9437_v61, %v10569_v49  ;;  %v4687_v23 = vld [vmem:[#allocation8 + $0x20] sm:$0xff] }
 0x65e   :  { %4844 = vmatpush1.msra.mxu0 %v4723_v39  ;;  %4915 = vmatpush1.msra.mxu1 %v4725_v30  ;;  %v4689_v39 = vld [vmem:[#allocation8 + $0x30] sm:$0xff] }
 0x65f   :  { %v4028_v4 = vpop.f32.mrf.mxu0  ;;  %4845 = vmatprep.subr.mxu0 %v4720_v60  ;;  %4916 = vmatprep.subr.mxu1 %v4722_v58  ;;  %v4099_v16 = vpop.f32.mrf.mxu1  ;;  %v4686_v60 = vld [vmem:[#allocation8 + $0x18] sm:$0xff] }
 0x660   :  { %v4029_v24 = vadd.f32 %v4028_v4, %v3945_v57  ;;  %4846 = vmatpush1.msra.mxu0 %v4719_v59  ;;  %4917 = vmatpush1.msra.mxu1 %v4721_v28  ;;  %v4100_v42 = vadd.f32 %v4099_v16, %v3953_v44  ;;  %v4684_v57 = vld [vmem:[#allocation8 + $0x8] sm:$0xff]  ;;  %v4683_v59 = vld [vmem:[#allocation8] sm:$0xff]  ;;  %v4685_v28 = vld [vmem:[#allocation8 + $0x10] sm:$0xff] }
 0x661   :  { %v4030_v7 = vpop.f32.mrf.mxu0  ;;  %4847 = vmatprep.subr.mxu0 %v4716_v62  ;;  %4918 = vmatprep.subr.mxu1 %v4718_v2  ;;  %v4101_v30 = vpop.f32.mrf.mxu1  ;;  %v4810_v62 = vld [vmem:[#allocation8 + $0x3f8] sm:$0xff]  ;;  %v4807_v4 = vld [vmem:[#allocation8 + $0x3e0] sm:$0xff]  ;;  %v4784_v16 = vld [vmem:[#allocation8 + $0x328] sm:$0xff] }
 0x662   :  { %v7420_v53 = vmul.f32 -1.442695, %v4029_v24  ;;  %v4031_v8 = vadd.f32 %v4030_v7, %v3949_v18  ;;  %4848 = vmatpush1.msra.mxu0 %v4715_v10  ;;  %4919 = vmatpush1.msra.mxu1 %v4717_v25  ;;  %v7422_v58 = vmul.f32 -1.442695, %v4100_v42  ;;  %v4808_v18 = vld [vmem:[#allocation8 + $0x3e8] sm:$0xff]  ;;  %v4102_v61 = vadd.f32 %v4101_v30, %v3957_v52  ;;  %v4809_v10 = vld [vmem:[#allocation8 + $0x3f0] sm:$0xff] }
 0x663   :  { %4849 = vmatprep.subr.mxu0 %v4712_v5  ;;  %4920 = vmatprep.subr.mxu1 %v4714_v6  ;;  %v4804_v24 = vld [vmem:[#allocation8 + $0x3c8] sm:$0xff]  ;;  %v4806_v5 = vld [vmem:[#allocation8 + $0x3d8] sm:$0xff]  ;;  %v4803_v7 = vld [vmem:[#allocation8 + $0x3c0] sm:$0xff] }
 0x664   :  { %7741 = vpow2.f32 %v7420_v53  ;;  %v7421_v37 = vmul.f32 -1.442695, %v4031_v8  ;;  %4850 = vmatpush1.msra.mxu0 %v4711_v15  ;;  %4921 = vmatpush1.msra.mxu1 %v4713_v1  ;;  %v4805_v15 = vld [vmem:[#allocation8 + $0x3d0] sm:$0xff]  ;;  %v4800_v53 = vld [vmem:[#allocation8 + $0x3a8] sm:$0xff]  ;;  %v4802_v8 = vld [vmem:[#allocation8 + $0x3b8] sm:$0xff] }
 0x665   :  { %4851 = vmatprep.subr.mxu0 %v4708_v3  ;;  %4922 = vmatprep.subr.mxu1 %v4710_v11  ;;  %v4799_v3 = vld [vmem:[#allocation8 + $0x3a0] sm:$0xff]  ;;  %v4801_v11 = vld [vmem:[#allocation8 + $0x3b0] sm:$0xff]  ;;  %v4790_v44 = vld [vmem:[#allocation8 + $0x358] sm:$0xff] }
 0x666   :  { %7743 = vpow2.f32 %v7421_v37  ;;  %4852 = vmatpush1.msra.mxu0 %v4707_v12  ;;  %4923 = vmatpush1.msra.mxu1 %v4709_v14  ;;  %v4796_v12 = vld [vmem:[#allocation8 + $0x388] sm:$0xff]  ;;  %v4798_v14 = vld [vmem:[#allocation8 + $0x398] sm:$0xff]  ;;  %v4795_v37 = vld [vmem:[#allocation8 + $0x380] sm:$0xff] }
 0x667   :  { %4853 = vmatprep.subr.mxu0 %v4704_v26  ;;  %4924 = vmatprep.subr.mxu1 %v4706_v31  ;;  %7745 = vpow2.f32 %v7422_v58  ;;  %v4797_v26 = vld [vmem:[#allocation8 + $0x390] sm:$0xff]  ;;  %v4792_v31 = vld [vmem:[#allocation8 + $0x368] sm:$0xff]  ;;  %v4775_v52 = vld [vmem:[#allocation8 + $0x2e0] sm:$0xff] }
 0x668   :  { %4854 = vmatpush1.msra.mxu0 %v4703_v41  ;;  %4925 = vmatpush1.msra.mxu1 %v4705_v46  ;;  %v4794_v41 = vld [vmem:[#allocation8 + $0x378] sm:$0xff]  ;;  %v4791_v46 = vld [vmem:[#allocation8 + $0x360] sm:$0xff]  ;;  %v4781_v42 = vld [vmem:[#allocation8 + $0x310] sm:$0xff] }
 0x669   :  { %4855 = vmatprep.subr.mxu0 %v4700_v43  ;;  %4926 = vmatprep.subr.mxu1 %v4702_v54  ;;  %v4793_v43 = vld [vmem:[#allocation8 + $0x370] sm:$0xff]  ;;  %v4788_v54 = vld [vmem:[#allocation8 + $0x348] sm:$0xff] }
 0x66a   :  { %4856 = vmatpush1.msra.mxu0 %v4699_v47  ;;  %4927 = vmatpush1.msra.mxu1 %v4701_v48  ;;  %v4787_v47 = vld [vmem:[#allocation8 + $0x340] sm:$0xff]  ;;  %v4789_v48 = vld [vmem:[#allocation8 + $0x350] sm:$0xff]  ;;  %v4772_v30 = vld [vmem:[#allocation8 + $0x2c8] sm:$0xff] }
 0x66b   :  { %4857 = vmatprep.subr.mxu0 %v4696_v51  ;;  %4928 = vmatprep.subr.mxu1 %v4698_v29  ;;  %v4786_v51 = vld [vmem:[#allocation8 + $0x338] sm:$0xff]  ;;  %v4783_v29 = vld [vmem:[#allocation8 + $0x320] sm:$0xff] }
 0x66c   :  { %4858 = vmatpush1.msra.mxu0 %v4695_v17  ;;  %4929 = vmatpush1.msra.mxu1 %v4697_v19  ;;  %v4785_v17 = vld [vmem:[#allocation8 + $0x330] sm:$0xff]  ;;  %v4780_v19 = vld [vmem:[#allocation8 + $0x308] sm:$0xff] }
 0x66d   :  { %4859 = vmatprep.subr.mxu0 %v4692_v36  ;;  %4930 = vmatprep.subr.mxu1 %v4694_v34  ;;  %v4782_v36 = vld [vmem:[#allocation8 + $0x318] sm:$0xff]  ;;  %v4779_v34 = vld [vmem:[#allocation8 + $0x300] sm:$0xff] }
 0x66e   :  { %4860 = vmatpush1.msra.mxu0 %v4691_v45  ;;  %4931 = vmatpush1.msra.mxu1 %v4693_v38  ;;  %v4776_v38 = vld [vmem:[#allocation8 + $0x2e8] sm:$0xff] }
 0x66f   :  { %4861 = vmatprep.subr.mxu0 %v4688_v56  ;;  %4932 = vmatprep.subr.mxu1 %v4690_v35  ;;  %v4778_v56 = vld [vmem:[#allocation8 + $0x2f8] sm:$0xff] }
 0x670   :  { %4862 = vmatpush1.msra.mxu0 %v4687_v23  ;;  %4933 = vmatpush1.msra.mxu1 %v4689_v39  ;;  %v4777_v23 = vld [vmem:[#allocation8 + $0x2f0] sm:$0xff] }
 0x671   :  { %v7742_v2 = vpop.eup %7741  ;;  %4863 = vmatprep.subr.mxu0 %v4684_v57  ;;  %4934 = vmatprep.subr.mxu1 %v4686_v60  ;;  %v4774_v57 = vld [vmem:[#allocation8 + $0x2d8] sm:$0xff] }
 0x672   :  { %v4113_v25 = vadd.f32 1.0, %v7742_v2  ;;  %4864 = vmatpush1.msra.mxu0 %v4683_v59  ;;  %4935 = vmatpush1.msra.mxu1 %v4685_v28  ;;  %v4771_v59 = vld [vmem:[#allocation8 + $0x2c0] sm:$0xff]  ;;  %v4773_v28 = vld [vmem:[#allocation8 + $0x2d0] sm:$0xff]  ;;  %v4768_v2 = vld [vmem:[#allocation8 + $0x2a8] sm:$0xff] }
 0x673   :  { %v7744_v6 = vpop.eup %7743  ;;  %4865 = vmatprep.subr.mxu0 %v4808_v18  ;;  %4936 = vmatprep.subr.mxu1 %v4810_v62 }
 0x674   :  { %7747 = vrcp.f32 %v4113_v25  ;;  %v4114_v1 = vadd.f32 1.0, %v7744_v6  ;;  %4866 = vmatpush2.msra.mxu0 %v4807_v4  ;;  %4937 = vmatpush2.msra.mxu1 %v4809_v10  ;;  %v7746_v45 = vpop.eup %7745  ;;  %v4767_v4 = vld [vmem:[#allocation8 + $0x2a0] sm:$0xff]  ;;  %v4769_v10 = vld [vmem:[#allocation8 + $0x2b0] sm:$0xff] }
 0x675   :  { %7749 = vtanh.f32 %v4102_v61  ;;  %4867 = vmatprep.subr.mxu0 %v4804_v24  ;;  %4938 = vmatprep.subr.mxu1 %v4806_v5  ;;  %v4115_v58 = vadd.f32 1.0, %v7746_v45  ;;  %v4770_v61 = vld [vmem:[#allocation8 + $0x2b8] sm:$0xff]  ;;  %v4764_v24 = vld [vmem:[#allocation8 + $0x288] sm:$0xff]  ;;  %v4763_v6 = vld [vmem:[#allocation8 + $0x280] sm:$0xff] }
 0x676   :  { %7751 = vrcp.f32 %v4114_v1  ;;  %4868 = vmatpush2.msra.mxu0 %v4803_v7  ;;  %4939 = vmatpush2.msra.mxu1 %v4805_v15  ;;  %v4766_v5 = vld [vmem:[#allocation8 + $0x298] sm:$0xff]  ;;  %v4760_v7 = vld [vmem:[#allocation8 + $0x268] sm:$0xff]  ;;  %v4759_v1 = vld [vmem:[#allocation8 + $0x260] sm:$0xff] }
 0x677   :  { %4869 = vmatprep.subr.mxu0 %v4800_v53  ;;  %4940 = vmatprep.subr.mxu1 %v4802_v8  ;;  %7753 = vrcp.f32 %v4115_v58  ;;  %v4762_v15 = vld [vmem:[#allocation8 + $0x278] sm:$0xff]  ;;  %v4761_v53 = vld [vmem:[#allocation8 + $0x270] sm:$0xff]  ;;  %v4756_v8 = vld [vmem:[#allocation8 + $0x248] sm:$0xff] }
 0x678   :  { %4870 = vmatpush2.msra.mxu0 %v4799_v3  ;;  %4941 = vmatpush2.msra.mxu1 %v4801_v11  ;;  %v4758_v3 = vld [vmem:[#allocation8 + $0x258] sm:$0xff]  ;;  %v4755_v11 = vld [vmem:[#allocation8 + $0x240] sm:$0xff]  ;;  %v5052_v45 = vld [vmem:[#allocation11 + $0x1a8] sm:$0xff] }
 0x679   :  { %4871 = vmatprep.subr.mxu0 %v4796_v12  ;;  %4942 = vmatprep.subr.mxu1 %v4798_v14  ;;  %v4757_v12 = vld [vmem:[#allocation8 + $0x250] sm:$0xff]  ;;  %v4752_v14 = vld [vmem:[#allocation8 + $0x228] sm:$0xff]  ;;  %v5046_v58 = vld [vmem:[#allocation11 + $0x178] sm:$0xff] }
 0x67a   :  { %4872 = vmatpush2.msra.mxu0 %v4795_v37  ;;  %4943 = vmatpush2.msra.mxu1 %v4797_v26  ;;  %v4754_v37 = vld [vmem:[#allocation8 + $0x238] sm:$0xff]  ;;  %v4751_v26 = vld [vmem:[#allocation8 + $0x220] sm:$0xff] }
 0x67b   :  { %4873 = vmatprep.subr.mxu0 %v4792_v31  ;;  %4944 = vmatprep.subr.mxu1 %v4794_v41  ;;  %v4753_v31 = vld [vmem:[#allocation8 + $0x230] sm:$0xff]  ;;  %v4748_v41 = vld [vmem:[#allocation8 + $0x208] sm:$0xff] }
 0x67c   :  { %4874 = vmatpush2.msra.mxu0 %v4791_v46  ;;  %4945 = vmatpush2.msra.mxu1 %v4793_v43  ;;  %v4750_v46 = vld [vmem:[#allocation8 + $0x218] sm:$0xff]  ;;  %v4747_v43 = vld [vmem:[#allocation8 + $0x200] sm:$0xff] }
 0x67d   :  { %4875 = vmatprep.subr.mxu0 %v4788_v54  ;;  %4946 = vmatprep.subr.mxu1 %v4790_v44  ;;  %v4749_v54 = vld [vmem:[#allocation8 + $0x210] sm:$0xff] }
 0x67e   :  { %4876 = vmatpush2.msra.mxu0 %v4787_v47  ;;  %4947 = vmatpush2.msra.mxu1 %v4789_v48  ;;  %v5060_v44 = vld [vmem:[#allocation11 + $0x1e8] sm:$0xff]  ;;  %v5062_v47 = vld [vmem:[#allocation11 + $0x1f8] sm:$0xff] }
 0x67f   :  { %4877 = vmatprep.subr.mxu0 %v4784_v16  ;;  %4948 = vmatprep.subr.mxu1 %v4786_v51 }
 0x680   :  { %4878 = vmatpush2.msra.mxu0 %v4783_v29  ;;  %4949 = vmatpush2.msra.mxu1 %v4785_v17  ;;  %v5059_v29 = vld [vmem:[#allocation11 + $0x1e0] sm:$0xff]  ;;  %v5061_v17 = vld [vmem:[#allocation11 + $0x1f0] sm:$0xff] }
 0x681   :  { %v7748_v35 = vpop.eup %7747  ;;  %4879 = vmatprep.subr.mxu0 %v4780_v19  ;;  %4950 = vmatprep.subr.mxu1 %v4782_v36  ;;  %v5056_v19 = vld [vmem:[#allocation11 + $0x1c8] sm:$0xff]  ;;  %v5058_v36 = vld [vmem:[#allocation11 + $0x1d8] sm:$0xff] }
 0x682   :  { %v7750_v39 = vpop.eup %7749  ;;  %4880 = vmatpush2.msra.mxu0 %v4779_v34  ;;  %4951 = vmatpush2.msra.mxu1 %v4781_v42  ;;  %v5055_v34 = vld [vmem:[#allocation11 + $0x1c0] sm:$0xff]  ;;  %v5057_v42 = vld [vmem:[#allocation11 + $0x1d0] sm:$0xff] }
 0x683   :  { %v7752_v60 = vpop.eup %7751  ;;  %4881 = vmatprep.subr.mxu0 %v4776_v38  ;;  %4952 = vmatprep.subr.mxu1 %v4778_v56  ;;  %v4124_v62 = vmul.f32 %v7750_v39, %v7748_v35  ;;  %v5054_v38 = vld [vmem:[#allocation11 + $0x1b8] sm:$0xff]  ;;  %v9457_v56 = vld [vmem:[#allocation12] sm:$0xf] }
 0x684   :  { %v4123_v18 = vmul.f32 %v7752_v60, %v9394_v63  ;;  %4882 = vmatpush2.msra.mxu0 %v4775_v52  ;;  %4953 = vmatpush2.msra.mxu1 %v4777_v23  ;;  %v4765_v63 = vld [vmem:[#allocation8 + $0x290] sm:$0xff]  ;;  %v7754_v48 = vpop.eup %7753  ;;  %v5051_v35 = vld [vmem:[#allocation11 + $0x1a0] sm:$0xff]  ;;  %v5050_v39 = vld [vmem:[#allocation11 + $0x198] sm:$0xff] }
 0x685   :  { %4883 = vmatprep.subr.mxu0 %v4772_v30  ;;  %4954 = vmatprep.subr.mxu1 %v4774_v57  ;;  %v5053_v52 = vld [vmem:[#allocation11 + $0x1b0] sm:$0xff]  ;;  %v5048_v23 = vld [vmem:[#allocation11 + $0x188] sm:$0xff]  ;;  %v5047_v30 = vld [vmem:[#allocation11 + $0x180] sm:$0xff] }
 0x686   :  { %v9448_v25 = vadd.f32 %v4124_v62, %v4123_v18  ;;  %4884 = vmatpush2.msra.mxu0 %v4771_v59  ;;  %4955 = vmatpush2.msra.mxu1 %v4773_v28  ;;  %v5049_v57 = vld [vmem:[#allocation11 + $0x190] sm:$0xff]  ;;  %v5044_v60 = vld [vmem:[#allocation11 + $0x168] sm:$0xff]  ;;  %v4265_v59 = vrot.slane %v9457_v56, %v10539_v21  ;;  %v5043_v28 = vld [vmem:[#allocation11 + $0x160] sm:$0xff] }
 0x687   :  { %4885 = vmatprep.subr.mxu0 %v4768_v2  ;;  %4956 = vmatprep.subr.mxu1 %v4770_v61  ;;  %v5045_v18 = vld [vmem:[#allocation11 + $0x170] sm:$0xff]  ;;  %v5040_v2 = vld [vmem:[#allocation11 + $0x148] sm:$0xff]  ;;  %v5042_v61 = vld [vmem:[#allocation11 + $0x158] sm:$0xff] }
 0x688   :  { %7755 = vtanh.f32 %v9448_v25  ;;  %4886 = vmatpush2.msra.mxu0 %v4767_v4  ;;  %4957 = vmatpush2.msra.mxu1 %v4769_v10  ;;  %v5039_v10 = vld [vmem:[#allocation11 + $0x140] sm:$0xff] }
 0x689   :  { %4887 = vmatprep.subr.mxu0 %v4764_v24  ;;  %4958 = vmatprep.subr.mxu1 %v4766_v5  ;;  %v5041_v24 = vld [vmem:[#allocation11 + $0x150] sm:$0xff] }
 0x68a   :  { %4888 = vmatpush2.msra.mxu0 %v4763_v6  ;;  %4959 = vmatpush2.msra.mxu1 %v4765_v63  ;;  %v5036_v6 = vld [vmem:[#allocation11 + $0x128] sm:$0xff]  ;;  %v5038_v63 = vld [vmem:[#allocation11 + $0x138] sm:$0xff] }
 0x68b   :  { %4889 = vmatprep.subr.mxu0 %v4760_v7  ;;  %4960 = vmatprep.subr.mxu1 %v4762_v15 }
 0x68c   :  { %4890 = vmatpush2.msra.mxu0 %v4759_v1  ;;  %4961 = vmatpush2.msra.mxu1 %v4761_v53  ;;  %v5035_v1 = vld [vmem:[#allocation11 + $0x120] sm:$0xff]  ;;  %v5037_v53 = vld [vmem:[#allocation11 + $0x130] sm:$0xff] }
 0x68d   :  { %4891 = vmatprep.subr.mxu0 %v4756_v8  ;;  %4962 = vmatprep.subr.mxu1 %v4758_v3  ;;  %v5032_v8 = vld [vmem:[#allocation11 + $0x108] sm:$0xff]  ;;  %v5034_v3 = vld [vmem:[#allocation11 + $0x118] sm:$0xff] }
 0x68e   :  { %4892 = vmatpush2.msra.mxu0 %v4755_v11  ;;  %4963 = vmatpush2.msra.mxu1 %v4757_v12  ;;  %v5031_v12 = vld [vmem:[#allocation11 + $0x100] sm:$0xff] }
 0x68f   :  { %4893 = vmatprep.subr.mxu0 %v4752_v14  ;;  %4964 = vmatprep.subr.mxu1 %v4754_v37  ;;  %v5033_v14 = vld [vmem:[#allocation11 + $0x110] sm:$0xff]  ;;  %v5028_v37 = vld [vmem:[#allocation11 + $0xe8] sm:$0xff] }
 0x690   :  { %4894 = vmatpush2.msra.mxu0 %v4751_v26  ;;  %4965 = vmatpush2.msra.mxu1 %v4753_v31  ;;  %v5030_v26 = vld [vmem:[#allocation11 + $0xf8] sm:$0xff]  ;;  %v5027_v31 = vld [vmem:[#allocation11 + $0xe0] sm:$0xff] }
 0x691   :  { %4895 = vmatprep.subr.mxu0 %v4748_v41  ;;  %4966 = vmatprep.subr.mxu1 %v4750_v46  ;;  %v5029_v41 = vld [vmem:[#allocation11 + $0xf0] sm:$0xff]  ;;  %v4269_v46 = vrot.slane %v9457_v56, %v10556_v13 }
 0x692   :  { %4896 = vmatpush2.msra.mxu0 %v4747_v43  ;;  %4967 = vmatpush2.msra.mxu1 %v4749_v54  ;;  %v5024_v43 = vld [vmem:[#allocation11 + $0xc8] sm:$0xff]  ;;  %v5026_v54 = vld [vmem:[#allocation11 + $0xd8] sm:$0xff] }
 0x693   :  { %5149 = vmatprep.subr.mxu0 %v5060_v44  ;;  %5220 = vmatprep.subr.mxu1 %v5062_v47  ;;  %v5023_v47 = vld [vmem:[#allocation11 + $0xc0] sm:$0xff] }
 0x695   :  { %v7756_v16 = vpop.eup %7755 }
 0x696   :  { %v9451_v51 = vmul.f32 %v7756_v16, %v7754_v48  ;;  %v5025_v48 = vld [vmem:[#allocation11 + $0xd0] sm:$0xff]  ;;  %v5020_v16 = vld [vmem:[#allocation11 + $0xa8] sm:$0xff] }
 0x698   :  { %4897 = vmatprep.mubr.f32.mxu0 %v9451_v51  ;;  %4968 = vmatprep.mubr.f32.mxu1 %v9451_v51 }
 0x699   :  { %4898 = vmatmul.mubr.f32.vlgmr.msra.gmra.mxu0 %v9433_v40  ;;  %4969 = vmatmul.mubr.f32.vlgmr.msra.gmra.mxu1 %v9433_v40  ;;  %v4261_v40 = vrot.slane %v9457_v56, %v8610_v32 }
 0x69a   :  { %5150 = vmatpush1.msra.mxu0 %v5059_v29  ;;  %5221 = vmatpush1.msra.mxu1 %v5061_v17  ;;  %v5022_v29 = vld [vmem:[#allocation11 + $0xb8] sm:$0xff]  ;;  %v5019_v17 = vld [vmem:[#allocation11 + $0xa0] sm:$0xff] }
 0x69b   :  { %5151 = vmatprep.subr.mxu0 %v5056_v19  ;;  %5222 = vmatprep.subr.mxu1 %v5058_v36  ;;  %v5021_v19 = vld [vmem:[#allocation11 + $0xb0] sm:$0xff] }
 0x69c   :  { %5152 = vmatpush1.msra.mxu0 %v5055_v34  ;;  %5223 = vmatpush1.msra.mxu1 %v5057_v42  ;;  %v5016_v34 = vld [vmem:[#allocation11 + $0x88] sm:$0xff]  ;;  %v5018_v42 = vld [vmem:[#allocation11 + $0x98] sm:$0xff] }
 0x69d   :  { %5153 = vmatprep.subr.mxu0 %v5052_v45  ;;  %5224 = vmatprep.subr.mxu1 %v5054_v38  ;;  %v5015_v45 = vld [vmem:[#allocation11 + $0x80] sm:$0xff]  ;;  %v5017_v38 = vld [vmem:[#allocation11 + $0x90] sm:$0xff] }
 0x69e   :  { %5154 = vmatpush1.msra.mxu0 %v5051_v35  ;;  %5225 = vmatpush1.msra.mxu1 %v5053_v52  ;;  %v4273_v35 = vrot.slane %v9457_v56, %v10569_v49  ;;  %v5012_v52 = vld [vmem:[#allocation11 + $0x68] sm:$0xff] }
 0x69f   :  { %5155 = vmatprep.subr.mxu0 %v5048_v23  ;;  %5226 = vmatprep.subr.mxu1 %v5050_v39  ;;  %v5014_v23 = vld [vmem:[#allocation11 + $0x78] sm:$0xff] }
 0x6a0   :  { %v4344_v62 = vpop.f32.mrf.mxu0  ;;  %5156 = vmatpush1.msra.mxu0 %v5047_v30  ;;  %5227 = vmatpush1.msra.mxu1 %v5049_v57  ;;  %v4415_v44 = vpop.f32.mrf.mxu1  ;;  %v5013_v30 = vld [vmem:[#allocation11 + $0x70] sm:$0xff] }
 0x6a1   :  { %v4345_v4 = vadd.f32 %v4344_v62, %v4261_v40  ;;  %5157 = vmatprep.subr.mxu0 %v5044_v60  ;;  %5228 = vmatprep.subr.mxu1 %v5046_v58  ;;  %v4416_v36 = vadd.f32 %v4415_v44, %v4269_v46  ;;  %v5011_v40 = vld [vmem:[#allocation11 + $0x60] sm:$0xff]  ;;  %v5008_v60 = vld [vmem:[#allocation11 + $0x48] sm:$0xff]  ;;  %v5010_v58 = vld [vmem:[#allocation11 + $0x58] sm:$0xff] }
 0x6a2   :  { %v4346_v5 = vpop.f32.mrf.mxu0  ;;  %5158 = vmatpush1.msra.mxu0 %v5043_v28  ;;  %5229 = vmatpush1.msra.mxu1 %v5045_v18  ;;  %v4417_v39 = vpop.f32.mrf.mxu1  ;;  %v5009_v28 = vld [vmem:[#allocation11 + $0x50] sm:$0xff]  ;;  %v5004_v62 = vld [vmem:[#allocation11 + $0x28] sm:$0xff]  ;;  %v5111_v44 = vld [vmem:[#allocation11 + $0x380] sm:$0xff] }
 0x6a3   :  { %v7423_v7 = vmul.f32 -1.442695, %v4345_v4  ;;  %v4347_v15 = vadd.f32 %v4346_v5, %v4265_v59  ;;  %5159 = vmatprep.subr.mxu0 %v5040_v2  ;;  %5230 = vmatprep.subr.mxu1 %v5042_v61  ;;  %v7425_v57 = vmul.f32 -1.442695, %v4416_v36  ;;  %v5007_v59 = vld [vmem:[#allocation11 + $0x40] sm:$0xff]  ;;  %v4418_v56 = vadd.f32 %v4417_v39, %v4273_v35  ;;  %v5006_v2 = vld [vmem:[#allocation11 + $0x38] sm:$0xff] }
 0x6a4   :  { %5160 = vmatpush1.msra.mxu0 %v5039_v10  ;;  %5231 = vmatpush1.msra.mxu1 %v5041_v24  ;;  %v5003_v4 = vld [vmem:[#allocation11 + $0x20] sm:$0xff]  ;;  %v5005_v10 = vld [vmem:[#allocation11 + $0x30] sm:$0xff]  ;;  %v5000_v5 = vld [vmem:[#allocation11 + $0x8] sm:$0xff] }
 0x6a5   :  { %7757 = vpow2.f32 %v7423_v7  ;;  %v7424_v11 = vmul.f32 -1.442695, %v4347_v15  ;;  %5161 = vmatprep.subr.mxu0 %v5036_v6  ;;  %5232 = vmatprep.subr.mxu1 %v5038_v63  ;;  %v5002_v6 = vld [vmem:[#allocation11 + $0x18] sm:$0xff]  ;;  %v4999_v7 = vld [vmem:[#allocation11] sm:$0xff]  ;;  %v5001_v15 = vld [vmem:[#allocation11 + $0x10] sm:$0xff] }
 0x6a6   :  { %5162 = vmatpush1.msra.mxu0 %v5035_v1  ;;  %5233 = vmatpush1.msra.mxu1 %v5037_v53  ;;  %v5124_v1 = vld [vmem:[#allocation11 + $0x3e8] sm:$0xff]  ;;  %v5126_v53 = vld [vmem:[#allocation11 + $0x3f8] sm:$0xff]  ;;  %v5117_v46 = vld [vmem:[#allocation11 + $0x3b0] sm:$0xff] }
 0x6a7   :  { %7759 = vpow2.f32 %v7424_v11  ;;  %5163 = vmatprep.subr.mxu0 %v5032_v8  ;;  %5234 = vmatprep.subr.mxu1 %v5034_v3  ;;  %v5123_v8 = vld [vmem:[#allocation11 + $0x3e0] sm:$0xff]  ;;  %v5125_v3 = vld [vmem:[#allocation11 + $0x3f0] sm:$0xff]  ;;  %v5120_v11 = vld [vmem:[#allocation11 + $0x3c8] sm:$0xff] }
 0x6a8   :  { %5164 = vmatpush1.msra.mxu0 %v5031_v12  ;;  %5235 = vmatpush1.msra.mxu1 %v5033_v14  ;;  %7761 = vpow2.f32 %v7425_v57  ;;  %v5122_v12 = vld [vmem:[#allocation11 + $0x3d8] sm:$0xff]  ;;  %v5119_v14 = vld [vmem:[#allocation11 + $0x3c0] sm:$0xff]  ;;  %v5100_v35 = vld [vmem:[#allocation11 + $0x328] sm:$0xff] }
 0x6a9   :  { %5165 = vmatprep.subr.mxu0 %v5028_v37  ;;  %5236 = vmatprep.subr.mxu1 %v5030_v26  ;;  %v5121_v37 = vld [vmem:[#allocation11 + $0x3d0] sm:$0xff]  ;;  %v5116_v26 = vld [vmem:[#allocation11 + $0x3a8] sm:$0xff]  ;;  %v5106_v36 = vld [vmem:[#allocation11 + $0x358] sm:$0xff] }
 0x6aa   :  { %5166 = vmatpush1.msra.mxu0 %v5027_v31  ;;  %5237 = vmatpush1.msra.mxu1 %v5029_v41  ;;  %v5118_v31 = vld [vmem:[#allocation11 + $0x3b8] sm:$0xff]  ;;  %v5115_v41 = vld [vmem:[#allocation11 + $0x3a0] sm:$0xff] }
 0x6ab   :  { %5167 = vmatprep.subr.mxu0 %v5024_v43  ;;  %5238 = vmatprep.subr.mxu1 %v5026_v54  ;;  %v5112_v43 = vld [vmem:[#allocation11 + $0x388] sm:$0xff]  ;;  %v5114_v54 = vld [vmem:[#allocation11 + $0x398] sm:$0xff]  ;;  %v5099_v39 = vld [vmem:[#allocation11 + $0x320] sm:$0xff] }
 0x6ac   :  { %5168 = vmatpush1.msra.mxu0 %v5023_v47  ;;  %5239 = vmatpush1.msra.mxu1 %v5025_v48  ;;  %v5113_v47 = vld [vmem:[#allocation11 + $0x390] sm:$0xff]  ;;  %v5108_v48 = vld [vmem:[#allocation11 + $0x368] sm:$0xff] }
 0x6ad   :  { %5169 = vmatprep.subr.mxu0 %v5020_v16  ;;  %5240 = vmatprep.subr.mxu1 %v5022_v29  ;;  %v5110_v16 = vld [vmem:[#allocation11 + $0x378] sm:$0xff]  ;;  %v5107_v29 = vld [vmem:[#allocation11 + $0x360] sm:$0xff] }
 0x6ae   :  { %5170 = vmatpush1.msra.mxu0 %v5019_v17  ;;  %5241 = vmatpush1.msra.mxu1 %v5021_v19  ;;  %v5109_v17 = vld [vmem:[#allocation11 + $0x370] sm:$0xff]  ;;  %v5104_v19 = vld [vmem:[#allocation11 + $0x348] sm:$0xff] }
 0x6af   :  { %5171 = vmatprep.subr.mxu0 %v5016_v34  ;;  %5242 = vmatprep.subr.mxu1 %v5018_v42  ;;  %v5103_v42 = vld [vmem:[#allocation11 + $0x340] sm:$0xff] }
 0x6b0   :  { %5172 = vmatpush1.msra.mxu0 %v5015_v45  ;;  %5243 = vmatpush1.msra.mxu1 %v5017_v38  ;;  %v5105_v45 = vld [vmem:[#allocation11 + $0x350] sm:$0xff] }
 0x6b1   :  { %5173 = vmatprep.subr.mxu0 %v5012_v52  ;;  %5244 = vmatprep.subr.mxu1 %v5014_v23  ;;  %v5102_v52 = vld [vmem:[#allocation11 + $0x338] sm:$0xff] }
 0x6b2   :  { %v7758_v18 = vpop.eup %7757  ;;  %5174 = vmatpush1.msra.mxu0 %v5011_v40  ;;  %5245 = vmatpush1.msra.mxu1 %v5013_v30  ;;  %v5101_v40 = vld [vmem:[#allocation11 + $0x330] sm:$0xff] }
 0x6b3   :  { %v4429_v61 = vadd.f32 1.0, %v7758_v18  ;;  %5175 = vmatprep.subr.mxu0 %v5008_v60  ;;  %5246 = vmatprep.subr.mxu1 %v5010_v58  ;;  %v5096_v60 = vld [vmem:[#allocation11 + $0x308] sm:$0xff]  ;;  %v5098_v58 = vld [vmem:[#allocation11 + $0x318] sm:$0xff]  ;;  %v5095_v18 = vld [vmem:[#allocation11 + $0x300] sm:$0xff] }
 0x6b4   :  { %v7760_v24 = vpop.eup %7759  ;;  %5176 = vmatpush1.msra.mxu0 %v5007_v59  ;;  %5247 = vmatpush1.msra.mxu1 %v5009_v28 }
 0x6b5   :  { %7763 = vrcp.f32 %v4429_v61  ;;  %v4430_v63 = vadd.f32 1.0, %v7760_v24  ;;  %5177 = vmatprep.subr.mxu0 %v5004_v62  ;;  %5248 = vmatprep.subr.mxu1 %v5006_v2  ;;  %v7762_v34 = vpop.eup %7761  ;;  %v5092_v62 = vld [vmem:[#allocation11 + $0x2e8] sm:$0xff]  ;;  %v5094_v2 = vld [vmem:[#allocation11 + $0x2f8] sm:$0xff] }
 0x6b6   :  { %7765 = vtanh.f32 %v4418_v56  ;;  %5178 = vmatpush1.msra.mxu0 %v5003_v4  ;;  %5249 = vmatpush1.msra.mxu1 %v5005_v10  ;;  %v4431_v57 = vadd.f32 1.0, %v7762_v34  ;;  %v5097_v56 = vld [vmem:[#allocation11 + $0x310] sm:$0xff]  ;;  %v5091_v4 = vld [vmem:[#allocation11 + $0x2e0] sm:$0xff]  ;;  %v5088_v24 = vld [vmem:[#allocation11 + $0x2c8] sm:$0xff] }
 0x6b7   :  { %7767 = vrcp.f32 %v4430_v63  ;;  %5179 = vmatprep.subr.mxu0 %v5000_v5  ;;  %5250 = vmatprep.subr.mxu1 %v5002_v6  ;;  %v5093_v10 = vld [vmem:[#allocation11 + $0x2f0] sm:$0xff]  ;;  %v5087_v5 = vld [vmem:[#allocation11 + $0x2c0] sm:$0xff]  ;;  %v5084_v63 = vld [vmem:[#allocation11 + $0x2a8] sm:$0xff] }
 0x6b8   :  { %5180 = vmatpush1.msra.mxu0 %v4999_v7  ;;  %5251 = vmatpush1.msra.mxu1 %v5001_v15  ;;  %7769 = vrcp.f32 %v4431_v57  ;;  %v5089_v6 = vld [vmem:[#allocation11 + $0x2d0] sm:$0xff]  ;;  %v5086_v7 = vld [vmem:[#allocation11 + $0x2b8] sm:$0xff]  ;;  %v5083_v15 = vld [vmem:[#allocation11 + $0x2a0] sm:$0xff] }
 0x6b9   :  { %5181 = vmatprep.subr.mxu0 %v5124_v1  ;;  %5252 = vmatprep.subr.mxu1 %v5126_v53  ;;  %v5085_v1 = vld [vmem:[#allocation11 + $0x2b0] sm:$0xff]  ;;  %v5080_v53 = vld [vmem:[#allocation11 + $0x288] sm:$0xff]  ;;  %v5373_v57 = vld [vmem:[#allocation4 + $0x1a8] sm:$0xff] }
 0x6ba   :  { %5182 = vmatpush2.msra.mxu0 %v5123_v8  ;;  %5253 = vmatpush2.msra.mxu1 %v5125_v3  ;;  %v5082_v8 = vld [vmem:[#allocation11 + $0x298] sm:$0xff]  ;;  %v5079_v3 = vld [vmem:[#allocation11 + $0x280] sm:$0xff] }
 0x6bb   :  { %5183 = vmatprep.subr.mxu0 %v5120_v11  ;;  %5254 = vmatprep.subr.mxu1 %v5122_v12  ;;  %v5081_v11 = vld [vmem:[#allocation11 + $0x290] sm:$0xff]  ;;  %v5076_v12 = vld [vmem:[#allocation11 + $0x268] sm:$0xff] }
 0x6bc   :  { %5184 = vmatpush2.msra.mxu0 %v5119_v14  ;;  %5255 = vmatpush2.msra.mxu1 %v5121_v37  ;;  %v5078_v14 = vld [vmem:[#allocation11 + $0x278] sm:$0xff]  ;;  %v5075_v37 = vld [vmem:[#allocation11 + $0x260] sm:$0xff] }
 0x6bd   :  { %5185 = vmatprep.subr.mxu0 %v5116_v26  ;;  %5256 = vmatprep.subr.mxu1 %v5118_v31  ;;  %v5077_v26 = vld [vmem:[#allocation11 + $0x270] sm:$0xff]  ;;  %v5072_v31 = vld [vmem:[#allocation11 + $0x248] sm:$0xff] }
 0x6be   :  { %5186 = vmatpush2.msra.mxu0 %v5115_v41  ;;  %5257 = vmatpush2.msra.mxu1 %v5117_v46  ;;  %v5074_v41 = vld [vmem:[#allocation11 + $0x258] sm:$0xff]  ;;  %v5071_v46 = vld [vmem:[#allocation11 + $0x240] sm:$0xff] }
 0x6bf   :  { %5187 = vmatprep.subr.mxu0 %v5112_v43  ;;  %5258 = vmatprep.subr.mxu1 %v5114_v54  ;;  %v5073_v43 = vld [vmem:[#allocation11 + $0x250] sm:$0xff]  ;;  %v5068_v54 = vld [vmem:[#allocation11 + $0x228] sm:$0xff] }
 0x6c0   :  { %5188 = vmatpush2.msra.mxu0 %v5111_v44  ;;  %5259 = vmatpush2.msra.mxu1 %v5113_v47  ;;  %v5070_v44 = vld [vmem:[#allocation11 + $0x238] sm:$0xff]  ;;  %v5067_v47 = vld [vmem:[#allocation11 + $0x220] sm:$0xff] }
 0x6c1   :  { %5189 = vmatprep.subr.mxu0 %v5108_v48  ;;  %5260 = vmatprep.subr.mxu1 %v5110_v16  ;;  %v5069_v48 = vld [vmem:[#allocation11 + $0x230] sm:$0xff]  ;;  %v5064_v16 = vld [vmem:[#allocation11 + $0x208] sm:$0xff] }
 0x6c2   :  { %v7764_v38 = vpop.eup %7763  ;;  %5190 = vmatpush2.msra.mxu0 %v5107_v29  ;;  %5261 = vmatpush2.msra.mxu1 %v5109_v17  ;;  %v5066_v29 = vld [vmem:[#allocation11 + $0x218] sm:$0xff] }
 0x6c3   :  { %v7766_v23 = vpop.eup %7765  ;;  %5191 = vmatprep.subr.mxu0 %v5104_v19  ;;  %5262 = vmatprep.subr.mxu1 %v5106_v36  ;;  %v5063_v19 = vld [vmem:[#allocation11 + $0x200] sm:$0xff]  ;;  %v5065_v36 = vld [vmem:[#allocation11 + $0x210] sm:$0xff] }
 0x6c4   :  { %v7768_v30 = vpop.eup %7767  ;;  %5192 = vmatpush2.msra.mxu0 %v5103_v42  ;;  %5263 = vmatpush2.msra.mxu1 %v5105_v45  ;;  %v4440_v28 = vmul.f32 %v7766_v23, %v7764_v38  ;;  %v5381_v45 = vld [vmem:[#allocation4 + $0x1e8] sm:$0xff]  ;;  %v5383_v38 = vld [vmem:[#allocation4 + $0x1f8] sm:$0xff] }
 0x6c5   :  { %v4439_v59 = vmul.f32 %v7768_v30, %v9414_v55  ;;  %5193 = vmatprep.subr.mxu0 %v5100_v35  ;;  %5264 = vmatprep.subr.mxu1 %v5102_v52  ;;  %v5090_v55 = vld [vmem:[#allocation11 + $0x2d8] sm:$0xff]  ;;  %v7770_v17 = vpop.eup %7769  ;;  %v5382_v52 = vld [vmem:[#allocation4 + $0x1f0] sm:$0xff]  ;;  %v5377_v23 = vld [vmem:[#allocation4 + $0x1c8] sm:$0xff] }
 0x6c6   :  { %5194 = vmatpush2.msra.mxu0 %v5099_v39  ;;  %5265 = vmatpush2.msra.mxu1 %v5101_v40  ;;  %v5380_v35 = vld [vmem:[#allocation4 + $0x1e0] sm:$0xff]  ;;  %v5379_v39 = vld [vmem:[#allocation4 + $0x1d8] sm:$0xff]  ;;  %v5378_v30 = vld [vmem:[#allocation4 + $0x1d0] sm:$0xff] }
 0x6c7   :  { %v9468_v61 = vadd.f32 %v4440_v28, %v4439_v59  ;;  %5195 = vmatprep.subr.mxu0 %v5096_v60  ;;  %5266 = vmatprep.subr.mxu1 %v5098_v58  ;;  %v5376_v40 = vld [vmem:[#allocation4 + $0x1c0] sm:$0xff]  ;;  %v5375_v60 = vld [vmem:[#allocation4 + $0x1b8] sm:$0xff]  ;;  %v5374_v59 = vld [vmem:[#allocation4 + $0x1b0] sm:$0xff] }
 0x6c8   :  { %5196 = vmatpush2.msra.mxu0 %v5095_v18  ;;  %5267 = vmatpush2.msra.mxu1 %v5097_v56  ;;  %v5372_v58 = vld [vmem:[#allocation4 + $0x1a0] sm:$0xff]  ;;  %v5369_v28 = vld [vmem:[#allocation4 + $0x188] sm:$0xff]  ;;  %v5371_v18 = vld [vmem:[#allocation4 + $0x198] sm:$0xff] }
 0x6c9   :  { %5197 = vmatprep.subr.mxu0 %v5092_v62  ;;  %5268 = vmatprep.subr.mxu1 %v5094_v2  ;;  %7771 = vtanh.f32 %v9468_v61  ;;  %v5370_v56 = vld [vmem:[#allocation4 + $0x190] sm:$0xff]  ;;  %v5365_v62 = vld [vmem:[#allocation4 + $0x168] sm:$0xff]  ;;  %v5367_v2 = vld [vmem:[#allocation4 + $0x178] sm:$0xff] }
 0x6ca   :  { %5198 = vmatpush2.msra.mxu0 %v5091_v4  ;;  %5269 = vmatpush2.msra.mxu1 %v5093_v10  ;;  %v5364_v4 = vld [vmem:[#allocation4 + $0x160] sm:$0xff]  ;;  %v5366_v10 = vld [vmem:[#allocation4 + $0x170] sm:$0xff] }
 0x6cb   :  { %5199 = vmatprep.subr.mxu0 %v5088_v24  ;;  %5270 = vmatprep.subr.mxu1 %v5090_v55  ;;  %v5361_v24 = vld [vmem:[#allocation4 + $0x148] sm:$0xff]  ;;  %v5363_v55 = vld [vmem:[#allocation4 + $0x158] sm:$0xff] }
 0x6cc   :  { %5200 = vmatpush2.msra.mxu0 %v5087_v5  ;;  %5271 = vmatpush2.msra.mxu1 %v5089_v6  ;;  %v5360_v5 = vld [vmem:[#allocation4 + $0x140] sm:$0xff]  ;;  %v5362_v6 = vld [vmem:[#allocation4 + $0x150] sm:$0xff] }
 0x6cd   :  { %5201 = vmatprep.subr.mxu0 %v5084_v63  ;;  %5272 = vmatprep.subr.mxu1 %v5086_v7  ;;  %v5357_v63 = vld [vmem:[#allocation4 + $0x128] sm:$0xff]  ;;  %v5359_v7 = vld [vmem:[#allocation4 + $0x138] sm:$0xff] }
 0x6ce   :  { %5202 = vmatpush2.msra.mxu0 %v5083_v15  ;;  %5273 = vmatpush2.msra.mxu1 %v5085_v1  ;;  %v5356_v15 = vld [vmem:[#allocation4 + $0x120] sm:$0xff]  ;;  %v5358_v1 = vld [vmem:[#allocation4 + $0x130] sm:$0xff] }
 0x6cf   :  { %5203 = vmatprep.subr.mxu0 %v5080_v53  ;;  %5274 = vmatprep.subr.mxu1 %v5082_v8  ;;  %v5353_v53 = vld [vmem:[#allocation4 + $0x108] sm:$0xff]  ;;  %v5355_v8 = vld [vmem:[#allocation4 + $0x118] sm:$0xff] }
 0x6d0   :  { %5204 = vmatpush2.msra.mxu0 %v5079_v3  ;;  %5275 = vmatpush2.msra.mxu1 %v5081_v11  ;;  %v5352_v3 = vld [vmem:[#allocation4 + $0x100] sm:$0xff]  ;;  %v5354_v11 = vld [vmem:[#allocation4 + $0x110] sm:$0xff] }
 0x6d1   :  { %5205 = vmatprep.subr.mxu0 %v5076_v12  ;;  %5276 = vmatprep.subr.mxu1 %v5078_v14  ;;  %v5349_v12 = vld [vmem:[#allocation4 + $0xe8] sm:$0xff]  ;;  %v5351_v14 = vld [vmem:[#allocation4 + $0xf8] sm:$0xff] }
 0x6d2   :  { %5206 = vmatpush2.msra.mxu0 %v5075_v37  ;;  %5277 = vmatpush2.msra.mxu1 %v5077_v26  ;;  %v5348_v37 = vld [vmem:[#allocation4 + $0xe0] sm:$0xff]  ;;  %v5350_v26 = vld [vmem:[#allocation4 + $0xf0] sm:$0xff] }
 0x6d3   :  { %5207 = vmatprep.subr.mxu0 %v5072_v31  ;;  %5278 = vmatprep.subr.mxu1 %v5074_v41  ;;  %v5345_v31 = vld [vmem:[#allocation4 + $0xc8] sm:$0xff]  ;;  %v5347_v41 = vld [vmem:[#allocation4 + $0xd8] sm:$0xff] }
 0x6d4   :  { %5208 = vmatpush2.msra.mxu0 %v5071_v46  ;;  %5279 = vmatpush2.msra.mxu1 %v5073_v43  ;;  %v5344_v46 = vld [vmem:[#allocation4 + $0xc0] sm:$0xff]  ;;  %v5346_v43 = vld [vmem:[#allocation4 + $0xd0] sm:$0xff] }
 0x6d5   :  { %5209 = vmatprep.subr.mxu0 %v5068_v54  ;;  %5280 = vmatprep.subr.mxu1 %v5070_v44  ;;  %v5341_v54 = vld [vmem:[#allocation4 + $0xa8] sm:$0xff]  ;;  %v5343_v44 = vld [vmem:[#allocation4 + $0xb8] sm:$0xff] }
 0x6d6   :  { %v7772_v34 = vpop.eup %7771  ;;  %5210 = vmatpush2.msra.mxu0 %v5067_v47  ;;  %5281 = vmatpush2.msra.mxu1 %v5069_v48  ;;  %v5340_v47 = vld [vmem:[#allocation4 + $0xa0] sm:$0xff]  ;;  %v5342_v48 = vld [vmem:[#allocation4 + $0xb0] sm:$0xff] }
 0x6d7   :  { %5211 = vmatprep.subr.mxu0 %v5064_v16  ;;  %5282 = vmatprep.subr.mxu1 %v5066_v29  ;;  %v9471_v42 = vmul.f32 %v7772_v34, %v7770_v17  ;;  %v5337_v16 = vld [vmem:[#allocation4 + $0x88] sm:$0xff]  ;;  %v5339_v29 = vld [vmem:[#allocation4 + $0x98] sm:$0xff]  ;;  %v5336_v17 = vld [vmem:[#allocation4 + $0x80] sm:$0xff] }
 0x6d8   :  { %5212 = vmatpush2.msra.mxu0 %v5063_v19  ;;  %5283 = vmatpush2.msra.mxu1 %v5065_v36  ;;  %v5338_v19 = vld [vmem:[#allocation4 + $0x90] sm:$0xff]  ;;  %v5333_v36 = vld [vmem:[#allocation4 + $0x68] sm:$0xff]  ;;  %v5335_v34 = vld [vmem:[#allocation4 + $0x78] sm:$0xff] }
 0x6d9   :  { %10668 = vst [vmem:[#allocation48_spill] sm:$0xff] %v9471_v42  ;;  %5213 = vmatprep.mubr.f32.mxu0 %v9471_v42  ;;  %5284 = vmatprep.mubr.f32.mxu1 %v9471_v42 }
 0x6da   :  { %5214 = vmatmul.mubr.f32.vlgmr.msra.gmra.mxu0 %v9451_v51  ;;  %5285 = vmatmul.mubr.f32.vlgmr.msra.gmra.mxu1 %v9451_v51  ;;  %v5368_v51 = vld [vmem:[#allocation4 + $0x180] sm:$0xff] }
 0x6db   :  { %5384 = vmatprep.subr.mxu0 %v5381_v45  ;;  %5455 = vmatprep.subr.mxu1 %v5383_v38  ;;  %v5332_v45 = vld [vmem:[#allocation4 + $0x60] sm:$0xff]  ;;  %v5334_v38 = vld [vmem:[#allocation4 + $0x70] sm:$0xff] }
 0x6dc   :  { %5385 = vmatpush1.msra.mxu0 %v5380_v35  ;;  %5456 = vmatpush1.msra.mxu1 %v5382_v52  ;;  %v5329_v35 = vld [vmem:[#allocation4 + $0x48] sm:$0xff]  ;;  %v5331_v52 = vld [vmem:[#allocation4 + $0x58] sm:$0xff] }
 0x6dd   :  { %5386 = vmatprep.subr.mxu0 %v5377_v23  ;;  %5457 = vmatprep.subr.mxu1 %v5379_v39  ;;  %v5328_v23 = vld [vmem:[#allocation4 + $0x40] sm:$0xff]  ;;  %v5330_v39 = vld [vmem:[#allocation4 + $0x50] sm:$0xff] }
 0x6de   :  { %5387 = vmatpush1.msra.mxu0 %v5376_v40  ;;  %5458 = vmatpush1.msra.mxu1 %v5378_v30  ;;  %v5325_v40 = vld [vmem:[#allocation4 + $0x28] sm:$0xff]  ;;  %v5327_v30 = vld [vmem:[#allocation4 + $0x38] sm:$0xff] }
 0x6df   :  { %5388 = vmatprep.subr.mxu0 %v5373_v57  ;;  %5459 = vmatprep.subr.mxu1 %v5375_v60  ;;  %v5324_v57 = vld [vmem:[#allocation4 + $0x20] sm:$0xff]  ;;  %v5326_v60 = vld [vmem:[#allocation4 + $0x30] sm:$0xff] }
 0x6e0   :  { %5389 = vmatpush1.msra.mxu0 %v5372_v58  ;;  %5460 = vmatpush1.msra.mxu1 %v5374_v59  ;;  %v5321_v58 = vld [vmem:[#allocation4 + $0x8] sm:$0xff]  ;;  %v5323_v59 = vld [vmem:[#allocation4 + $0x18] sm:$0xff] }
 0x6e1   :  { %5390 = vmatprep.subr.mxu0 %v5369_v28  ;;  %5461 = vmatprep.subr.mxu1 %v5371_v18  ;;  %v5320_v28 = vld [vmem:[#allocation4] sm:$0xff]  ;;  %v5322_v18 = vld [vmem:[#allocation4 + $0x10] sm:$0xff] }
 0x6e2   :  { %5391 = vmatpush1.msra.mxu0 %v5368_v51  ;;  %5462 = vmatpush1.msra.mxu1 %v5370_v56  ;;  %v5615_v51 = vld [vmem:[#allocation8 + $0x1e8] sm:$0xff]  ;;  %v5617_v56 = vld [vmem:[#allocation8 + $0x1f8] sm:$0xff] }
 0x6e3   :  { %5392 = vmatprep.subr.mxu0 %v5365_v62  ;;  %5463 = vmatprep.subr.mxu1 %v5367_v2  ;;  %v10669_v2 = vld [vmem:[#allocation42_spill] sm:$0xff] }
 0x6e4   :  { %5393 = vmatpush1.msra.mxu0 %v5364_v4  ;;  %5464 = vmatpush1.msra.mxu1 %v5366_v10 }
 0x6e5   :  { %5394 = vmatprep.subr.mxu0 %v5361_v24  ;;  %5465 = vmatprep.subr.mxu1 %v5363_v55  ;;  %v10670_v55 = vld [vmem:[#allocation43_spill] sm:$0xff] }
 0x6e6   :  { %5395 = vmatpush1.msra.mxu0 %v5360_v5  ;;  %5466 = vmatpush1.msra.mxu1 %v5362_v6 }
 0x6e7   :  { %5396 = vmatprep.subr.mxu0 %v5357_v63  ;;  %5467 = vmatprep.subr.mxu1 %v5359_v7  ;;  %v10671_v7 = vld [vmem:[#allocation28_spill] sm:$0xff] }
 0x6e8   :  { %5397 = vmatpush1.msra.mxu0 %v5356_v15  ;;  %5468 = vmatpush1.msra.mxu1 %v5358_v1 }
 0x6e9   :  { %5398 = vmatprep.subr.mxu0 %v5353_v53  ;;  %5469 = vmatprep.subr.mxu1 %v5355_v8  ;;  %v10672_v8 = vld [vmem:[#allocation29_spill] sm:$0xff] }
 0x6ea   :  { %5399 = vmatpush1.msra.mxu0 %v5352_v3  ;;  %5470 = vmatpush1.msra.mxu1 %v5354_v11 }
 0x6eb   :  { %5400 = vmatprep.subr.mxu0 %v5349_v12  ;;  %5471 = vmatprep.subr.mxu1 %v5351_v14 }
 0x6ec   :  { %5401 = vmatpush1.msra.mxu0 %v5348_v37  ;;  %5472 = vmatpush1.msra.mxu1 %v5350_v26 }
 0x6ed   :  { %5402 = vmatprep.subr.mxu0 %v5345_v31  ;;  %5473 = vmatprep.subr.mxu1 %v5347_v41 }
 0x6ee   :  { %5403 = vmatpush1.msra.mxu0 %v5344_v46  ;;  %5474 = vmatpush1.msra.mxu1 %v5346_v43 }
 0x6ef   :  { %5404 = vmatprep.subr.mxu0 %v5341_v54  ;;  %5475 = vmatprep.subr.mxu1 %v5343_v44 }
 0x6f0   :  { %5405 = vmatpush1.msra.mxu0 %v5340_v47  ;;  %5476 = vmatpush1.msra.mxu1 %v5342_v48 }
 0x6f1   :  { %5406 = vmatprep.subr.mxu0 %v5337_v16  ;;  %5477 = vmatprep.subr.mxu1 %v5339_v29  ;;  %v5614_v29 = vld [vmem:[#allocation8 + $0x1e0] sm:$0xff] }
 0x6f2   :  { %5407 = vmatpush1.msra.mxu0 %v5336_v17  ;;  %5478 = vmatpush1.msra.mxu1 %v5338_v19  ;;  %v5616_v17 = vld [vmem:[#allocation8 + $0x1f0] sm:$0xff]  ;;  %v5611_v19 = vld [vmem:[#allocation8 + $0x1c8] sm:$0xff] }
 0x6f3   :  { %5408 = vmatprep.subr.mxu0 %v5333_v36  ;;  %5479 = vmatprep.subr.mxu1 %v5335_v34  ;;  %v5613_v36 = vld [vmem:[#allocation8 + $0x1d8] sm:$0xff]  ;;  %v5610_v34 = vld [vmem:[#allocation8 + $0x1c0] sm:$0xff] }
 0x6f4   :  { %5409 = vmatpush1.msra.mxu0 %v5332_v45  ;;  %5480 = vmatpush1.msra.mxu1 %v5334_v38  ;;  %v5612_v45 = vld [vmem:[#allocation8 + $0x1d0] sm:$0xff]  ;;  %v5609_v38 = vld [vmem:[#allocation8 + $0x1b8] sm:$0xff] }
 0x6f5   :  { %5410 = vmatprep.subr.mxu0 %v5329_v35  ;;  %5481 = vmatprep.subr.mxu1 %v5331_v52  ;;  %v5606_v35 = vld [vmem:[#allocation8 + $0x1a0] sm:$0xff]  ;;  %v5608_v52 = vld [vmem:[#allocation8 + $0x1b0] sm:$0xff] }
 0x6f6   :  { %5411 = vmatpush1.msra.mxu0 %v5328_v23  ;;  %5482 = vmatpush1.msra.mxu1 %v5330_v39  ;;  %v5603_v23 = vld [vmem:[#allocation8 + $0x188] sm:$0xff]  ;;  %v5605_v39 = vld [vmem:[#allocation8 + $0x198] sm:$0xff] }
 0x6f7   :  { %5412 = vmatprep.subr.mxu0 %v5325_v40  ;;  %5483 = vmatprep.subr.mxu1 %v5327_v30  ;;  %v5602_v40 = vld [vmem:[#allocation8 + $0x180] sm:$0xff]  ;;  %v5604_v30 = vld [vmem:[#allocation8 + $0x190] sm:$0xff] }
 0x6f8   :  { %5413 = vmatpush1.msra.mxu0 %v5324_v57  ;;  %5484 = vmatpush1.msra.mxu1 %v5326_v60  ;;  %v5599_v57 = vld [vmem:[#allocation8 + $0x168] sm:$0xff]  ;;  %v5601_v60 = vld [vmem:[#allocation8 + $0x178] sm:$0xff] }
 0x6f9   :  { %5414 = vmatprep.subr.mxu0 %v5321_v58  ;;  %5485 = vmatprep.subr.mxu1 %v5323_v59  ;;  %v5598_v58 = vld [vmem:[#allocation8 + $0x160] sm:$0xff]  ;;  %v5600_v59 = vld [vmem:[#allocation8 + $0x170] sm:$0xff] }
 0x6fa   :  { %5415 = vmatpush1.msra.mxu0 %v5320_v28  ;;  %5448 = vmatprep.mubr.f32.mxu0 %v10534_v22  ;;  %v9491_v28 = vld [vmem:[#allocation9] sm:$0xf] }
 0x6fb   :  { %5486 = vmatpush1.msra.mxu1 %v5322_v18  ;;  %5519 = vmatprep.mubr.f32.mxu1 %v10534_v22  ;;  %v5595_v18 = vld [vmem:[#allocation8 + $0x148] sm:$0xff] }
 0x6fc   :  { %5704 = vmatprep.subr.mxu0 %v5615_v51  ;;  %5775 = vmatprep.subr.mxu1 %v5617_v56  ;;  %v5597_v51 = vld [vmem:[#allocation8 + $0x158] sm:$0xff]  ;;  %v5594_v56 = vld [vmem:[#allocation8 + $0x140] sm:$0xff] }
 0x713   :  { %v4579_v62 = vpop.f32.mrf.mxu0  ;;  %v4650_v63 = vpop.f32.mrf.mxu1 }
 0x714   :  { %v4655_v4 = vadd.f32 %v4579_v62, %v10669_v2  ;;  %v4657_v15 = vadd.f32 %v4650_v63, %v10671_v7  ;;  %v5596_v62 = vld [vmem:[#allocation8 + $0x150] sm:$0xff]  ;;  %v5591_v2 = vld [vmem:[#allocation8 + $0x128] sm:$0xff]  ;;  %v4820_v63 = vrot.slane %v9491_v28, %v10539_v21  ;;  %v5586_v7 = vld [vmem:[#allocation8 + $0x100] sm:$0xff] }
 0x715   :  { %v4581_v10 = vpop.f32.mrf.mxu0  ;;  %v4652_v1 = vpop.f32.mrf.mxu1 }
 0x716   :  { %v7426_v24 = vmul.f32 -1.442695, %v4655_v4  ;;  %v4656_v5 = vadd.f32 %v4581_v10, %v10670_v55  ;;  %v7428_v53 = vmul.f32 -1.442695, %v4657_v15  ;;  %v4658_v3 = vadd.f32 %v4652_v1, %v10672_v8  ;;  %v5593_v4 = vld [vmem:[#allocation8 + $0x138] sm:$0xff]  ;;  %v5592_v55 = vld [vmem:[#allocation8 + $0x130] sm:$0xff] }
 0x717   :  { %v4816_v10 = vrot.slane %v9491_v28, %v8610_v32  ;;  %v5588_v15 = vld [vmem:[#allocation8 + $0x110] sm:$0xff]  ;;  %v5585_v8 = vld [vmem:[#allocation8 + $0xf8] sm:$0xff] }
 0x718   :  { %7773 = vpow2.f32 %v7426_v24  ;;  %v7427_v6 = vmul.f32 -1.442695, %v4656_v5  ;;  %v5590_v24 = vld [vmem:[#allocation8 + $0x120] sm:$0xff]  ;;  %v5587_v5 = vld [vmem:[#allocation8 + $0x108] sm:$0xff] }
 0x71a   :  { %7775 = vpow2.f32 %v7427_v6  ;;  %v5589_v6 = vld [vmem:[#allocation8 + $0x118] sm:$0xff] }
 0x71b   :  { %7777 = vpow2.f32 %v7428_v53  ;;  %v5583_v53 = vld [vmem:[#allocation8 + $0xe8] sm:$0xff] }
 0x71c   :  { %7779 = vtanh.f32 %v4658_v3 }
 0x725   :  { %v7774_v22 = vpop.eup %7773 }
 0x726   :  { %v4668_v11 = vadd.f32 1.0, %v7774_v22  ;;  %v5582_v22 = vld [vmem:[#allocation8 + $0xe0] sm:$0xff] }
 0x727   :  { %v7776_v12 = vpop.eup %7775 }
 0x728   :  { %7781 = vrcp.f32 %v4668_v11  ;;  %v4669_v14 = vadd.f32 1.0, %v7776_v12  ;;  %v7778_v37 = vpop.eup %7777  ;;  %v5584_v11 = vld [vmem:[#allocation8 + $0xf0] sm:$0xff] }
 0x729   :  { %v7780_v26 = vpop.eup %7779  ;;  %v4670_v43 = vadd.f32 1.0, %v7778_v37  ;;  %v5581_v37 = vld [vmem:[#allocation8 + $0xd8] sm:$0xff] }
 0x72a   :  { %7783 = vrcp.f32 %v4669_v14  ;;  %v5579_v14 = vld [vmem:[#allocation8 + $0xc8] sm:$0xff] }
 0x72b   :  { %7785 = vrcp.f32 %v4670_v43  ;;  %v5575_v43 = vld [vmem:[#allocation8 + $0xa8] sm:$0xff] }
 0x735   :  { %v7782_v31 = vpop.eup %7781 }
 0x736   :  { %v4679_v41 = vmul.f32 %v7782_v31, %v7780_v26 }
 0x737   :  { %v7784_v46 = vpop.eup %7783 }
 0x738   :  { %v4678_v54 = vmul.f32 %v7784_v46, %v9430_v33  ;;  %v7786_v47 = vpop.eup %7785  ;;  %v5607_v33 = vld [vmem:[#allocation8 + $0x1a8] sm:$0xff]  ;;  %v5580_v46 = vld [vmem:[#allocation8 + $0xd0] sm:$0xff] }
 0x73a   :  { %v9484_v44 = vadd.f32 %v4679_v41, %v4678_v54  ;;  %v5578_v41 = vld [vmem:[#allocation8 + $0xc0] sm:$0xff]  ;;  %v5577_v54 = vld [vmem:[#allocation8 + $0xb8] sm:$0xff] }
 0x73c   :  { %7787 = vtanh.f32 %v9484_v44 }
 0x749   :  { %v7788_v48 = vpop.eup %7787 }
 0x74a   :  { %v9487_v16 = vmul.f32 %v7788_v48, %v7786_v47  ;;  %v5574_v48 = vld [vmem:[#allocation8 + $0xa0] sm:$0xff] }
 0x74c   :  { %5449 = vmatmul.mubr.f32.vlgmr.msra.gmra.mxu0 %v9487_v16  ;;  %5520 = vmatmul.mubr.f32.vlgmr.msra.gmra.mxu1 %v9487_v16 }
 0x74d   :  { %5705 = vmatpush1.msra.mxu0 %v5614_v29  ;;  %5776 = vmatpush1.msra.mxu1 %v5616_v17  ;;  %v5576_v29 = vld [vmem:[#allocation8 + $0xb0] sm:$0xff]  ;;  %v5571_v17 = vld [vmem:[#allocation8 + $0x88] sm:$0xff] }
 0x74e   :  { %5706 = vmatprep.subr.mxu0 %v5611_v19  ;;  %5777 = vmatprep.subr.mxu1 %v5613_v36  ;;  %v5573_v19 = vld [vmem:[#allocation8 + $0x98] sm:$0xff]  ;;  %v5570_v36 = vld [vmem:[#allocation8 + $0x80] sm:$0xff] }
 0x74f   :  { %5707 = vmatpush1.msra.mxu0 %v5610_v34  ;;  %5778 = vmatpush1.msra.mxu1 %v5612_v45  ;;  %v5572_v34 = vld [vmem:[#allocation8 + $0x90] sm:$0xff]  ;;  %v4824_v45 = vrot.slane %v9491_v28, %v10556_v13 }
 0x750   :  { %5708 = vmatprep.subr.mxu0 %v5607_v33  ;;  %5779 = vmatprep.subr.mxu1 %v5609_v38  ;;  %v5567_v33 = vld [vmem:[#allocation8 + $0x68] sm:$0xff]  ;;  %v5569_v38 = vld [vmem:[#allocation8 + $0x78] sm:$0xff] }
 0x751   :  { %5709 = vmatpush1.msra.mxu0 %v5606_v35  ;;  %5780 = vmatpush1.msra.mxu1 %v5608_v52  ;;  %v5566_v52 = vld [vmem:[#allocation8 + $0x60] sm:$0xff] }
 0x752   :  { %5710 = vmatprep.subr.mxu0 %v5603_v23  ;;  %5781 = vmatprep.subr.mxu1 %v5605_v39  ;;  %v5568_v23 = vld [vmem:[#allocation8 + $0x70] sm:$0xff]  ;;  %v5563_v39 = vld [vmem:[#allocation8 + $0x48] sm:$0xff] }
 0x753   :  { %5711 = vmatpush1.msra.mxu0 %v5602_v40  ;;  %5782 = vmatpush1.msra.mxu1 %v5604_v30  ;;  %v5565_v40 = vld [vmem:[#allocation8 + $0x58] sm:$0xff]  ;;  %v5562_v30 = vld [vmem:[#allocation8 + $0x40] sm:$0xff] }
 0x754   :  { %5712 = vmatprep.subr.mxu0 %v5599_v57  ;;  %5783 = vmatprep.subr.mxu1 %v5601_v60  ;;  %v5564_v57 = vld [vmem:[#allocation8 + $0x50] sm:$0xff] }
 0x755   :  { %5713 = vmatpush1.msra.mxu0 %v5598_v58  ;;  %5784 = vmatpush1.msra.mxu1 %v5600_v59  ;;  %v5559_v58 = vld [vmem:[#allocation8 + $0x28] sm:$0xff]  ;;  %v5561_v59 = vld [vmem:[#allocation8 + $0x38] sm:$0xff] }
 0x756   :  { %5714 = vmatprep.subr.mxu0 %v5595_v18  ;;  %5785 = vmatprep.subr.mxu1 %v5597_v51  ;;  %v5558_v18 = vld [vmem:[#allocation8 + $0x20] sm:$0xff]  ;;  %v5560_v51 = vld [vmem:[#allocation8 + $0x30] sm:$0xff] }
 0x757   :  { %5715 = vmatpush1.msra.mxu0 %v5594_v56  ;;  %5786 = vmatpush1.msra.mxu1 %v5596_v62  ;;  %v4828_v56 = vrot.slane %v9491_v28, %v10569_v49  ;;  %v5555_v62 = vld [vmem:[#allocation8 + $0x8] sm:$0xff] }
 0x758   :  { %5716 = vmatprep.subr.mxu0 %v5591_v2  ;;  %5787 = vmatprep.subr.mxu1 %v5593_v4  ;;  %v5557_v2 = vld [vmem:[#allocation8 + $0x18] sm:$0xff] }
 0x759   :  { %v4899_v1 = vpop.f32.mrf.mxu0  ;;  %5717 = vmatpush1.msra.mxu0 %v5590_v24  ;;  %5788 = vmatpush1.msra.mxu1 %v5592_v55  ;;  %v4970_v35 = vpop.f32.mrf.mxu1  ;;  %v5556_v24 = vld [vmem:[#allocation8 + $0x10] sm:$0xff] }
 0x75a   :  { %v4900_v3 = vadd.f32 %v4899_v1, %v4816_v10  ;;  %5718 = vmatprep.subr.mxu0 %v5587_v5  ;;  %5789 = vmatprep.subr.mxu1 %v5589_v6  ;;  %v4971_v60 = vadd.f32 %v4970_v35, %v4824_v45  ;;  %v5554_v10 = vld [vmem:[#allocation8] sm:$0xff]  ;;  %v5679_v5 = vld [vmem:[#allocation8 + $0x3e8] sm:$0xff]  ;;  %v5681_v6 = vld [vmem:[#allocation8 + $0x3f8] sm:$0xff] }
 0x75b   :  { %v4901_v12 = vpop.f32.mrf.mxu0  ;;  %5719 = vmatpush1.msra.mxu0 %v5586_v7  ;;  %5790 = vmatpush1.msra.mxu1 %v5588_v15  ;;  %v4972_v4 = vpop.f32.mrf.mxu1  ;;  %v5680_v7 = vld [vmem:[#allocation8 + $0x3f0] sm:$0xff]  ;;  %v5675_v1 = vld [vmem:[#allocation8 + $0x3c8] sm:$0xff]  ;;  %v5654_v35 = vld [vmem:[#allocation8 + $0x320] sm:$0xff] }
 0x75c   :  { %v7429_v26 = vmul.f32 -1.442695, %v4900_v3  ;;  %v4902_v31 = vadd.f32 %v4901_v12, %v4820_v63  ;;  %5720 = vmatprep.subr.mxu0 %v5583_v53  ;;  %5791 = vmatprep.subr.mxu1 %v5585_v8  ;;  %v7431_v55 = vmul.f32 -1.442695, %v4971_v60  ;;  %v5678_v63 = vld [vmem:[#allocation8 + $0x3e0] sm:$0xff]  ;;  %v4973_v28 = vadd.f32 %v4972_v4, %v4828_v56  ;;  %v5677_v53 = vld [vmem:[#allocation8 + $0x3d8] sm:$0xff] }
 0x75d   :  { %5721 = vmatpush1.msra.mxu0 %v5582_v22  ;;  %5792 = vmatpush1.msra.mxu1 %v5584_v11  ;;  %v5674_v3 = vld [vmem:[#allocation8 + $0x3c0] sm:$0xff]  ;;  %v5676_v22 = vld [vmem:[#allocation8 + $0x3d0] sm:$0xff]  ;;  %v5671_v12 = vld [vmem:[#allocation8 + $0x3a8] sm:$0xff] }
 0x75e   :  { %7789 = vpow2.f32 %v7429_v26  ;;  %v7430_v47 = vmul.f32 -1.442695, %v4902_v31  ;;  %5722 = vmatprep.subr.mxu0 %v5579_v14  ;;  %5793 = vmatprep.subr.mxu1 %v5581_v37  ;;  %v5673_v14 = vld [vmem:[#allocation8 + $0x3b8] sm:$0xff]  ;;  %v5670_v26 = vld [vmem:[#allocation8 + $0x3a0] sm:$0xff]  ;;  %v5672_v31 = vld [vmem:[#allocation8 + $0x3b0] sm:$0xff] }
 0x75f   :  { %5723 = vmatpush1.msra.mxu0 %v5578_v41  ;;  %5794 = vmatpush1.msra.mxu1 %v5580_v46  ;;  %v5667_v41 = vld [vmem:[#allocation8 + $0x388] sm:$0xff]  ;;  %v5669_v46 = vld [vmem:[#allocation8 + $0x398] sm:$0xff]  ;;  %v5660_v45 = vld [vmem:[#allocation8 + $0x350] sm:$0xff] }
 0x760   :  { %7791 = vpow2.f32 %v7430_v47  ;;  %5724 = vmatprep.subr.mxu0 %v5575_v43  ;;  %5795 = vmatprep.subr.mxu1 %v5577_v54  ;;  %v5666_v43 = vld [vmem:[#allocation8 + $0x380] sm:$0xff]  ;;  %v5668_v54 = vld [vmem:[#allocation8 + $0x390] sm:$0xff]  ;;  %v5663_v47 = vld [vmem:[#allocation8 + $0x368] sm:$0xff] }
 0x761   :  { %5725 = vmatpush1.msra.mxu0 %v5574_v48  ;;  %5796 = vmatpush1.msra.mxu1 %v5576_v29  ;;  %7793 = vpow2.f32 %v7431_v55  ;;  %v5665_v48 = vld [vmem:[#allocation8 + $0x378] sm:$0xff]  ;;  %v5662_v29 = vld [vmem:[#allocation8 + $0x360] sm:$0xff]  ;;  %v5643_v56 = vld [vmem:[#allocation8 + $0x2c8] sm:$0xff] }
 0x762   :  { %5726 = vmatprep.subr.mxu0 %v5571_v17  ;;  %5797 = vmatprep.subr.mxu1 %v5573_v19  ;;  %v5664_v17 = vld [vmem:[#allocation8 + $0x370] sm:$0xff]  ;;  %v5659_v19 = vld [vmem:[#allocation8 + $0x348] sm:$0xff]  ;;  %v5649_v60 = vld [vmem:[#allocation8 + $0x2f8] sm:$0xff] }
 0x763   :  { %5727 = vmatpush1.msra.mxu0 %v5570_v36  ;;  %5798 = vmatpush1.msra.mxu1 %v5572_v34  ;;  %v5661_v36 = vld [vmem:[#allocation8 + $0x358] sm:$0xff]  ;;  %v5658_v34 = vld [vmem:[#allocation8 + $0x340] sm:$0xff] }
 0x764   :  { %5728 = vmatprep.subr.mxu0 %v5567_v33  ;;  %5799 = vmatprep.subr.mxu1 %v5569_v38  ;;  %v5655_v33 = vld [vmem:[#allocation8 + $0x328] sm:$0xff]  ;;  %v5657_v38 = vld [vmem:[#allocation8 + $0x338] sm:$0xff]  ;;  %v5642_v4 = vld [vmem:[#allocation8 + $0x2c0] sm:$0xff] }
 0x765   :  { %5729 = vmatpush1.msra.mxu0 %v5566_v52  ;;  %5800 = vmatpush1.msra.mxu1 %v5568_v23  ;;  %v5656_v52 = vld [vmem:[#allocation8 + $0x330] sm:$0xff]  ;;  %v5651_v23 = vld [vmem:[#allocation8 + $0x308] sm:$0xff] }
 0x766   :  { %5730 = vmatprep.subr.mxu0 %v5563_v39  ;;  %5801 = vmatprep.subr.mxu1 %v5565_v40  ;;  %v5653_v39 = vld [vmem:[#allocation8 + $0x318] sm:$0xff]  ;;  %v5650_v40 = vld [vmem:[#allocation8 + $0x300] sm:$0xff] }
 0x767   :  { %5731 = vmatpush1.msra.mxu0 %v5562_v30  ;;  %5802 = vmatpush1.msra.mxu1 %v5564_v57  ;;  %v5652_v30 = vld [vmem:[#allocation8 + $0x310] sm:$0xff]  ;;  %v5647_v57 = vld [vmem:[#allocation8 + $0x2e8] sm:$0xff] }
 0x768   :  { %5732 = vmatprep.subr.mxu0 %v5559_v58  ;;  %5803 = vmatprep.subr.mxu1 %v5561_v59  ;;  %v5646_v59 = vld [vmem:[#allocation8 + $0x2e0] sm:$0xff] }
 0x769   :  { %5733 = vmatpush1.msra.mxu0 %v5558_v18  ;;  %5804 = vmatpush1.msra.mxu1 %v5560_v51  ;;  %v5648_v18 = vld [vmem:[#allocation8 + $0x2f0] sm:$0xff] }
 0x76a   :  { %5734 = vmatprep.subr.mxu0 %v5555_v62  ;;  %5805 = vmatprep.subr.mxu1 %v5557_v2  ;;  %v5645_v62 = vld [vmem:[#allocation8 + $0x2d8] sm:$0xff] }
 0x76b   :  { %v7790_v15 = vpop.eup %7789  ;;  %5735 = vmatpush1.msra.mxu0 %v5554_v10  ;;  %5806 = vmatpush1.msra.mxu1 %v5556_v24  ;;  %v5644_v10 = vld [vmem:[#allocation8 + $0x2d0] sm:$0xff] }
 0x76c   :  { %v4984_v8 = vadd.f32 1.0, %v7790_v15  ;;  %5736 = vmatprep.subr.mxu0 %v5679_v5  ;;  %5807 = vmatprep.subr.mxu1 %v5681_v6  ;;  %v5639_v5 = vld [vmem:[#allocation8 + $0x2a8] sm:$0xff]  ;;  %v5641_v6 = vld [vmem:[#allocation8 + $0x2b8] sm:$0xff]  ;;  %v5638_v15 = vld [vmem:[#allocation8 + $0x2a0] sm:$0xff] }
 0x76d   :  { %v7792_v11 = vpop.eup %7791  ;;  %5737 = vmatpush2.msra.mxu0 %v5678_v63  ;;  %5808 = vmatpush2.msra.mxu1 %v5680_v7 }
 0x76e   :  { %7795 = vrcp.f32 %v4984_v8  ;;  %v4985_v37 = vadd.f32 1.0, %v7792_v11  ;;  %5738 = vmatprep.subr.mxu0 %v5675_v1  ;;  %5809 = vmatprep.subr.mxu1 %v5677_v53  ;;  %v7794_v58 = vpop.eup %7793  ;;  %v5635_v1 = vld [vmem:[#allocation8 + $0x288] sm:$0xff]  ;;  %v5637_v53 = vld [vmem:[#allocation8 + $0x298] sm:$0xff] }
 0x76f   :  { %7797 = vtanh.f32 %v4973_v28  ;;  %5739 = vmatpush2.msra.mxu0 %v5674_v3  ;;  %5810 = vmatpush2.msra.mxu1 %v5676_v22  ;;  %v4986_v55 = vadd.f32 1.0, %v7794_v58  ;;  %v5640_v28 = vld [vmem:[#allocation8 + $0x2b0] sm:$0xff]  ;;  %v5634_v3 = vld [vmem:[#allocation8 + $0x280] sm:$0xff]  ;;  %v5631_v11 = vld [vmem:[#allocation8 + $0x268] sm:$0xff] }
 0x770   :  { %7799 = vrcp.f32 %v4985_v37  ;;  %5740 = vmatprep.subr.mxu0 %v5671_v12  ;;  %5811 = vmatprep.subr.mxu1 %v5673_v14  ;;  %v5636_v22 = vld [vmem:[#allocation8 + $0x290] sm:$0xff]  ;;  %v5630_v12 = vld [vmem:[#allocation8 + $0x260] sm:$0xff]  ;;  %v5627_v37 = vld [vmem:[#allocation8 + $0x248] sm:$0xff] }
 0x771   :  { %5741 = vmatpush2.msra.mxu0 %v5670_v26  ;;  %5812 = vmatpush2.msra.mxu1 %v5672_v31  ;;  %7801 = vrcp.f32 %v4986_v55  ;;  %v5632_v14 = vld [vmem:[#allocation8 + $0x270] sm:$0xff]  ;;  %v5629_v26 = vld [vmem:[#allocation8 + $0x258] sm:$0xff]  ;;  %v5626_v31 = vld [vmem:[#allocation8 + $0x240] sm:$0xff] }
 0x772   :  { %5742 = vmatprep.subr.mxu0 %v5667_v41  ;;  %5813 = vmatprep.subr.mxu1 %v5669_v46  ;;  %v5628_v41 = vld [vmem:[#allocation8 + $0x250] sm:$0xff]  ;;  %v5623_v46 = vld [vmem:[#allocation8 + $0x228] sm:$0xff]  ;;  %v9511_v58 = vld [vmem:[#allocation12] sm:$0xf] }
 0x773   :  { %5743 = vmatpush2.msra.mxu0 %v5666_v43  ;;  %5814 = vmatpush2.msra.mxu1 %v5668_v54  ;;  %v5625_v43 = vld [vmem:[#allocation8 + $0x238] sm:$0xff]  ;;  %v5622_v54 = vld [vmem:[#allocation8 + $0x220] sm:$0xff] }
 0x774   :  { %5744 = vmatprep.subr.mxu0 %v5663_v47  ;;  %5815 = vmatprep.subr.mxu1 %v5665_v48  ;;  %v5624_v47 = vld [vmem:[#allocation8 + $0x230] sm:$0xff]  ;;  %v5619_v48 = vld [vmem:[#allocation8 + $0x208] sm:$0xff] }
 0x775   :  { %5745 = vmatpush2.msra.mxu0 %v5662_v29  ;;  %5816 = vmatpush2.msra.mxu1 %v5664_v17  ;;  %v5621_v29 = vld [vmem:[#allocation8 + $0x218] sm:$0xff]  ;;  %v5618_v17 = vld [vmem:[#allocation8 + $0x200] sm:$0xff] }
 0x776   :  { %5746 = vmatprep.subr.mxu0 %v5659_v19  ;;  %5817 = vmatprep.subr.mxu1 %v5661_v36  ;;  %v5620_v19 = vld [vmem:[#allocation8 + $0x210] sm:$0xff]  ;;  %v5914_v55 = vld [vmem:[#allocation11 + $0x160] sm:$0xff] }
 0x777   :  { %5747 = vmatpush2.msra.mxu0 %v5658_v34  ;;  %5818 = vmatpush2.msra.mxu1 %v5660_v45  ;;  %v5931_v36 = vld [vmem:[#allocation11 + $0x1e8] sm:$0xff]  ;;  %v5933_v34 = vld [vmem:[#allocation11 + $0x1f8] sm:$0xff] }
 0x778   :  { %5748 = vmatprep.subr.mxu0 %v5655_v33  ;;  %5819 = vmatprep.subr.mxu1 %v5657_v38 }
 0x779   :  { %5749 = vmatpush2.msra.mxu0 %v5654_v35  ;;  %5820 = vmatpush2.msra.mxu1 %v5656_v52  ;;  %v5930_v35 = vld [vmem:[#allocation11 + $0x1e0] sm:$0xff]  ;;  %v5932_v52 = vld [vmem:[#allocation11 + $0x1f0] sm:$0xff] }
 0x77a   :  { %5750 = vmatprep.subr.mxu0 %v5651_v23  ;;  %5821 = vmatprep.subr.mxu1 %v5653_v39  ;;  %v5927_v23 = vld [vmem:[#allocation11 + $0x1c8] sm:$0xff]  ;;  %v5929_v39 = vld [vmem:[#allocation11 + $0x1d8] sm:$0xff] }
 0x77b   :  { %v7796_v51 = vpop.eup %7795  ;;  %5751 = vmatpush2.msra.mxu0 %v5650_v40  ;;  %5822 = vmatpush2.msra.mxu1 %v5652_v30  ;;  %v5926_v40 = vld [vmem:[#allocation11 + $0x1c0] sm:$0xff]  ;;  %v5928_v30 = vld [vmem:[#allocation11 + $0x1d0] sm:$0xff] }
 0x77c   :  { %v7798_v2 = vpop.eup %7797  ;;  %5752 = vmatprep.subr.mxu0 %v5647_v57  ;;  %5823 = vmatprep.subr.mxu1 %v5649_v60  ;;  %v5923_v57 = vld [vmem:[#allocation11 + $0x1a8] sm:$0xff]  ;;  %v5925_v60 = vld [vmem:[#allocation11 + $0x1b8] sm:$0xff] }
 0x77d   :  { %v7800_v24 = vpop.eup %7799  ;;  %5753 = vmatpush2.msra.mxu0 %v5646_v59  ;;  %5824 = vmatpush2.msra.mxu1 %v5648_v18  ;;  %v4995_v7 = vmul.f32 %v7798_v2, %v7796_v51  ;;  %v5922_v59 = vld [vmem:[#allocation11 + $0x1a0] sm:$0xff]  ;;  %v5924_v18 = vld [vmem:[#allocation11 + $0x1b0] sm:$0xff]  ;;  %v5919_v51 = vld [vmem:[#allocation11 + $0x188] sm:$0xff] }
 0x77e   :  { %v4994_v63 = vmul.f32 %v7800_v24, %v9448_v25  ;;  %5754 = vmatprep.subr.mxu0 %v5643_v56  ;;  %5825 = vmatprep.subr.mxu1 %v5645_v62  ;;  %v5633_v25 = vld [vmem:[#allocation8 + $0x278] sm:$0xff]  ;;  %v7802_v45 = vpop.eup %7801  ;;  %v5918_v62 = vld [vmem:[#allocation11 + $0x180] sm:$0xff]  ;;  %v5136_v24 = vrot.slane %v9511_v58, %v10539_v21 }
 0x77f   :  { %5755 = vmatpush2.msra.mxu0 %v5642_v4  ;;  %5826 = vmatpush2.msra.mxu1 %v5644_v10  ;;  %v5921_v56 = vld [vmem:[#allocation11 + $0x198] sm:$0xff]  ;;  %v5920_v2 = vld [vmem:[#allocation11 + $0x190] sm:$0xff]  ;;  %v5915_v4 = vld [vmem:[#allocation11 + $0x168] sm:$0xff] }
 0x780   :  { %v9502_v8 = vadd.f32 %v4995_v7, %v4994_v63  ;;  %5756 = vmatprep.subr.mxu0 %v5639_v5  ;;  %5827 = vmatprep.subr.mxu1 %v5641_v6  ;;  %v5917_v10 = vld [vmem:[#allocation11 + $0x178] sm:$0xff]  ;;  %v5916_v5 = vld [vmem:[#allocation11 + $0x170] sm:$0xff]  ;;  %v5911_v63 = vld [vmem:[#allocation11 + $0x148] sm:$0xff] }
 0x781   :  { %5757 = vmatpush2.msra.mxu0 %v5638_v15  ;;  %5828 = vmatpush2.msra.mxu1 %v5640_v28  ;;  %v5913_v7 = vld [vmem:[#allocation11 + $0x158] sm:$0xff]  ;;  %v5910_v28 = vld [vmem:[#allocation11 + $0x140] sm:$0xff] }
 0x782   :  { %7803 = vtanh.f32 %v9502_v8  ;;  %5758 = vmatprep.subr.mxu0 %v5635_v1  ;;  %5829 = vmatprep.subr.mxu1 %v5637_v53  ;;  %v5912_v1 = vld [vmem:[#allocation11 + $0x150] sm:$0xff] }
 0x783   :  { %5759 = vmatpush2.msra.mxu0 %v5634_v3  ;;  %5830 = vmatpush2.msra.mxu1 %v5636_v22  ;;  %v5907_v3 = vld [vmem:[#allocation11 + $0x128] sm:$0xff]  ;;  %v5909_v22 = vld [vmem:[#allocation11 + $0x138] sm:$0xff] }
 0x784   :  { %5760 = vmatprep.subr.mxu0 %v5631_v11  ;;  %5831 = vmatprep.subr.mxu1 %v5633_v25 }
 0x785   :  { %5761 = vmatpush2.msra.mxu0 %v5630_v12  ;;  %5832 = vmatpush2.msra.mxu1 %v5632_v14  ;;  %v5906_v12 = vld [vmem:[#allocation11 + $0x120] sm:$0xff]  ;;  %v5908_v14 = vld [vmem:[#allocation11 + $0x130] sm:$0xff] }
 0x786   :  { %5762 = vmatprep.subr.mxu0 %v5627_v37  ;;  %5833 = vmatprep.subr.mxu1 %v5629_v26  ;;  %v5903_v37 = vld [vmem:[#allocation11 + $0x108] sm:$0xff]  ;;  %v5905_v26 = vld [vmem:[#allocation11 + $0x118] sm:$0xff] }
 0x787   :  { %5763 = vmatpush2.msra.mxu0 %v5626_v31  ;;  %5834 = vmatpush2.msra.mxu1 %v5628_v41  ;;  %v5902_v41 = vld [vmem:[#allocation11 + $0x100] sm:$0xff] }
 0x788   :  { %5764 = vmatprep.subr.mxu0 %v5623_v46  ;;  %5835 = vmatprep.subr.mxu1 %v5625_v43  ;;  %v5904_v46 = vld [vmem:[#allocation11 + $0x110] sm:$0xff]  ;;  %v5899_v43 = vld [vmem:[#allocation11 + $0xe8] sm:$0xff] }
 0x789   :  { %5765 = vmatpush2.msra.mxu0 %v5622_v54  ;;  %5836 = vmatpush2.msra.mxu1 %v5624_v47  ;;  %v5901_v54 = vld [vmem:[#allocation11 + $0xf8] sm:$0xff]  ;;  %v5898_v47 = vld [vmem:[#allocation11 + $0xe0] sm:$0xff] }
 0x78a   :  { %5766 = vmatprep.subr.mxu0 %v5619_v48  ;;  %5837 = vmatprep.subr.mxu1 %v5621_v29  ;;  %v5900_v48 = vld [vmem:[#allocation11 + $0xf0] sm:$0xff]  ;;  %v5140_v29 = vrot.slane %v9511_v58, %v10556_v13 }
 0x78b   :  { %5767 = vmatpush2.msra.mxu0 %v5618_v17  ;;  %5838 = vmatpush2.msra.mxu1 %v5620_v19  ;;  %v5895_v17 = vld [vmem:[#allocation11 + $0xc8] sm:$0xff]  ;;  %v5897_v19 = vld [vmem:[#allocation11 + $0xd8] sm:$0xff] }
 0x78c   :  { %6020 = vmatprep.subr.mxu0 %v5931_v36  ;;  %6091 = vmatprep.subr.mxu1 %v5933_v34  ;;  %v5894_v34 = vld [vmem:[#allocation11 + $0xc0] sm:$0xff] }
 0x78f   :  { %v7804_v33 = vpop.eup %7803 }
 0x790   :  { %v9505_v38 = vmul.f32 %v7804_v33, %v7802_v45  ;;  %v5896_v45 = vld [vmem:[#allocation11 + $0xd0] sm:$0xff]  ;;  %v5891_v33 = vld [vmem:[#allocation11 + $0xa8] sm:$0xff] }
 0x792   :  { %5768 = vmatprep.mubr.f32.mxu0 %v9505_v38  ;;  %5839 = vmatprep.mubr.f32.mxu1 %v9505_v38 }
 0x793   :  { %5769 = vmatmul.mubr.f32.vlgmr.msra.gmra.mxu0 %v9487_v16  ;;  %5840 = vmatmul.mubr.f32.vlgmr.msra.gmra.mxu1 %v9487_v16  ;;  %v5132_v16 = vrot.slane %v9511_v58, %v8610_v32 }
 0x794   :  { %6021 = vmatpush1.msra.mxu0 %v5930_v35  ;;  %6092 = vmatpush1.msra.mxu1 %v5932_v52  ;;  %v5893_v35 = vld [vmem:[#allocation11 + $0xb8] sm:$0xff]  ;;  %v5890_v52 = vld [vmem:[#allocation11 + $0xa0] sm:$0xff] }
 0x795   :  { %6022 = vmatprep.subr.mxu0 %v5927_v23  ;;  %6093 = vmatprep.subr.mxu1 %v5929_v39  ;;  %v5892_v23 = vld [vmem:[#allocation11 + $0xb0] sm:$0xff] }
 0x796   :  { %6023 = vmatpush1.msra.mxu0 %v5926_v40  ;;  %6094 = vmatpush1.msra.mxu1 %v5928_v30  ;;  %v5887_v40 = vld [vmem:[#allocation11 + $0x88] sm:$0xff]  ;;  %v5889_v30 = vld [vmem:[#allocation11 + $0x98] sm:$0xff] }
 0x797   :  { %6024 = vmatprep.subr.mxu0 %v5923_v57  ;;  %6095 = vmatprep.subr.mxu1 %v5925_v60  ;;  %v5886_v57 = vld [vmem:[#allocation11 + $0x80] sm:$0xff]  ;;  %v5888_v60 = vld [vmem:[#allocation11 + $0x90] sm:$0xff] }
 0x798   :  { %6025 = vmatpush1.msra.mxu0 %v5922_v59  ;;  %6096 = vmatpush1.msra.mxu1 %v5924_v18  ;;  %v5144_v59 = vrot.slane %v9511_v58, %v10569_v49  ;;  %v5883_v18 = vld [vmem:[#allocation11 + $0x68] sm:$0xff] }
 0x799   :  { %6026 = vmatprep.subr.mxu0 %v5919_v51  ;;  %6097 = vmatprep.subr.mxu1 %v5921_v56  ;;  %v5885_v51 = vld [vmem:[#allocation11 + $0x78] sm:$0xff] }
 0x79a   :  { %v5215_v6 = vpop.f32.mrf.mxu0  ;;  %6027 = vmatpush1.msra.mxu0 %v5918_v62  ;;  %6098 = vmatpush1.msra.mxu1 %v5920_v2  ;;  %v5286_v36 = vpop.f32.mrf.mxu1  ;;  %v5884_v62 = vld [vmem:[#allocation11 + $0x70] sm:$0xff] }
 0x79b   :  { %v5216_v15 = vadd.f32 %v5215_v6, %v5132_v16  ;;  %6028 = vmatprep.subr.mxu0 %v5915_v4  ;;  %6099 = vmatprep.subr.mxu1 %v5917_v10  ;;  %v5287_v39 = vadd.f32 %v5286_v36, %v5140_v29  ;;  %v5882_v16 = vld [vmem:[#allocation11 + $0x60] sm:$0xff]  ;;  %v5879_v4 = vld [vmem:[#allocation11 + $0x48] sm:$0xff]  ;;  %v5881_v10 = vld [vmem:[#allocation11 + $0x58] sm:$0xff] }
 0x79c   :  { %v5217_v53 = vpop.f32.mrf.mxu0  ;;  %6029 = vmatpush1.msra.mxu0 %v5914_v55  ;;  %6100 = vmatpush1.msra.mxu1 %v5916_v5  ;;  %v5288_v56 = vpop.f32.mrf.mxu1  ;;  %v5880_v55 = vld [vmem:[#allocation11 + $0x50] sm:$0xff]  ;;  %v5875_v6 = vld [vmem:[#allocation11 + $0x28] sm:$0xff]  ;;  %v5982_v36 = vld [vmem:[#allocation11 + $0x380] sm:$0xff] }
 0x79d   :  { %v7432_v11 = vmul.f32 -1.442695, %v5216_v15  ;;  %v5218_v25 = vadd.f32 %v5217_v53, %v5136_v24  ;;  %6030 = vmatprep.subr.mxu0 %v5911_v63  ;;  %6101 = vmatprep.subr.mxu1 %v5913_v7  ;;  %v7434_v2 = vmul.f32 -1.442695, %v5287_v39  ;;  %v5878_v24 = vld [vmem:[#allocation11 + $0x40] sm:$0xff]  ;;  %v5289_v58 = vadd.f32 %v5288_v56, %v5144_v59  ;;  %v5877_v63 = vld [vmem:[#allocation11 + $0x38] sm:$0xff] }
 0x79e   :  { %6031 = vmatpush1.msra.mxu0 %v5910_v28  ;;  %6102 = vmatpush1.msra.mxu1 %v5912_v1  ;;  %v5874_v15 = vld [vmem:[#allocation11 + $0x20] sm:$0xff]  ;;  %v5876_v28 = vld [vmem:[#allocation11 + $0x30] sm:$0xff]  ;;  %v5871_v53 = vld [vmem:[#allocation11 + $0x8] sm:$0xff] }
 0x79f   :  { %7805 = vpow2.f32 %v7432_v11  ;;  %v7433_v31 = vmul.f32 -1.442695, %v5218_v25  ;;  %6032 = vmatprep.subr.mxu0 %v5907_v3  ;;  %6103 = vmatprep.subr.mxu1 %v5909_v22  ;;  %v5873_v3 = vld [vmem:[#allocation11 + $0x18] sm:$0xff]  ;;  %v5870_v11 = vld [vmem:[#allocation11] sm:$0xff]  ;;  %v5872_v25 = vld [vmem:[#allocation11 + $0x10] sm:$0xff] }
 0x7a0   :  { %6033 = vmatpush1.msra.mxu0 %v5906_v12  ;;  %6104 = vmatpush1.msra.mxu1 %v5908_v14  ;;  %v5995_v12 = vld [vmem:[#allocation11 + $0x3e8] sm:$0xff]  ;;  %v5997_v14 = vld [vmem:[#allocation11 + $0x3f8] sm:$0xff]  ;;  %v5988_v29 = vld [vmem:[#allocation11 + $0x3b0] sm:$0xff] }
 0x7a1   :  { %7807 = vpow2.f32 %v7433_v31  ;;  %6034 = vmatprep.subr.mxu0 %v5903_v37  ;;  %6105 = vmatprep.subr.mxu1 %v5905_v26  ;;  %v5994_v37 = vld [vmem:[#allocation11 + $0x3e0] sm:$0xff]  ;;  %v5996_v26 = vld [vmem:[#allocation11 + $0x3f0] sm:$0xff]  ;;  %v5991_v31 = vld [vmem:[#allocation11 + $0x3c8] sm:$0xff] }
 0x7a2   :  { %6035 = vmatpush1.msra.mxu0 %v5902_v41  ;;  %6106 = vmatpush1.msra.mxu1 %v5904_v46  ;;  %7809 = vpow2.f32 %v7434_v2  ;;  %v5993_v41 = vld [vmem:[#allocation11 + $0x3d8] sm:$0xff]  ;;  %v5990_v46 = vld [vmem:[#allocation11 + $0x3c0] sm:$0xff]  ;;  %v5971_v59 = vld [vmem:[#allocation11 + $0x328] sm:$0xff] }
 0x7a3   :  { %6036 = vmatprep.subr.mxu0 %v5899_v43  ;;  %6107 = vmatprep.subr.mxu1 %v5901_v54  ;;  %v5992_v43 = vld [vmem:[#allocation11 + $0x3d0] sm:$0xff]  ;;  %v5987_v54 = vld [vmem:[#allocation11 + $0x3a8] sm:$0xff]  ;;  %v5977_v39 = vld [vmem:[#allocation11 + $0x358] sm:$0xff] }
 0x7a4   :  { %6037 = vmatpush1.msra.mxu0 %v5898_v47  ;;  %6108 = vmatpush1.msra.mxu1 %v5900_v48  ;;  %v5989_v47 = vld [vmem:[#allocation11 + $0x3b8] sm:$0xff]  ;;  %v5986_v48 = vld [vmem:[#allocation11 + $0x3a0] sm:$0xff] }
 0x7a5   :  { %6038 = vmatprep.subr.mxu0 %v5895_v17  ;;  %6109 = vmatprep.subr.mxu1 %v5897_v19  ;;  %v5983_v17 = vld [vmem:[#allocation11 + $0x388] sm:$0xff]  ;;  %v5985_v19 = vld [vmem:[#allocation11 + $0x398] sm:$0xff]  ;;  %v5970_v56 = vld [vmem:[#allocation11 + $0x320] sm:$0xff] }
 0x7a6   :  { %6039 = vmatpush1.msra.mxu0 %v5894_v34  ;;  %6110 = vmatpush1.msra.mxu1 %v5896_v45  ;;  %v5984_v34 = vld [vmem:[#allocation11 + $0x390] sm:$0xff]  ;;  %v5979_v45 = vld [vmem:[#allocation11 + $0x368] sm:$0xff] }
 0x7a7   :  { %6040 = vmatprep.subr.mxu0 %v5891_v33  ;;  %6111 = vmatprep.subr.mxu1 %v5893_v35  ;;  %v5981_v33 = vld [vmem:[#allocation11 + $0x378] sm:$0xff]  ;;  %v5978_v35 = vld [vmem:[#allocation11 + $0x360] sm:$0xff] }
 0x7a8   :  { %6041 = vmatpush1.msra.mxu0 %v5890_v52  ;;  %6112 = vmatpush1.msra.mxu1 %v5892_v23  ;;  %v5980_v52 = vld [vmem:[#allocation11 + $0x370] sm:$0xff]  ;;  %v5975_v23 = vld [vmem:[#allocation11 + $0x348] sm:$0xff] }
 0x7a9   :  { %6042 = vmatprep.subr.mxu0 %v5887_v40  ;;  %6113 = vmatprep.subr.mxu1 %v5889_v30  ;;  %v5974_v30 = vld [vmem:[#allocation11 + $0x340] sm:$0xff] }
 0x7aa   :  { %6043 = vmatpush1.msra.mxu0 %v5886_v57  ;;  %6114 = vmatpush1.msra.mxu1 %v5888_v60  ;;  %v5976_v57 = vld [vmem:[#allocation11 + $0x350] sm:$0xff] }
 0x7ab   :  { %6044 = vmatprep.subr.mxu0 %v5883_v18  ;;  %6115 = vmatprep.subr.mxu1 %v5885_v51  ;;  %v5973_v18 = vld [vmem:[#allocation11 + $0x338] sm:$0xff] }
 0x7ac   :  { %v7806_v5 = vpop.eup %7805  ;;  %6045 = vmatpush1.msra.mxu0 %v5882_v16  ;;  %6116 = vmatpush1.msra.mxu1 %v5884_v62  ;;  %v5972_v16 = vld [vmem:[#allocation11 + $0x330] sm:$0xff] }
 0x7ad   :  { %v5300_v7 = vadd.f32 1.0, %v7806_v5  ;;  %6046 = vmatprep.subr.mxu0 %v5879_v4  ;;  %6117 = vmatprep.subr.mxu1 %v5881_v10  ;;  %v5967_v4 = vld [vmem:[#allocation11 + $0x308] sm:$0xff]  ;;  %v5969_v10 = vld [vmem:[#allocation11 + $0x318] sm:$0xff]  ;;  %v5966_v5 = vld [vmem:[#allocation11 + $0x300] sm:$0xff] }
 0x7ae   :  { %v7808_v1 = vpop.eup %7807  ;;  %6047 = vmatpush1.msra.mxu0 %v5878_v24  ;;  %6118 = vmatpush1.msra.mxu1 %v5880_v55 }
 0x7af   :  { %7811 = vrcp.f32 %v5300_v7  ;;  %v5301_v22 = vadd.f32 1.0, %v7808_v1  ;;  %6048 = vmatprep.subr.mxu0 %v5875_v6  ;;  %6119 = vmatprep.subr.mxu1 %v5877_v63  ;;  %v7810_v40 = vpop.eup %7809  ;;  %v5963_v6 = vld [vmem:[#allocation11 + $0x2e8] sm:$0xff]  ;;  %v5965_v63 = vld [vmem:[#allocation11 + $0x2f8] sm:$0xff] }
 0x7b0   :  { %7813 = vtanh.f32 %v5289_v58  ;;  %6049 = vmatpush1.msra.mxu0 %v5874_v15  ;;  %6120 = vmatpush1.msra.mxu1 %v5876_v28  ;;  %v5302_v2 = vadd.f32 1.0, %v7810_v40  ;;  %v5968_v58 = vld [vmem:[#allocation11 + $0x310] sm:$0xff]  ;;  %v5962_v15 = vld [vmem:[#allocation11 + $0x2e0] sm:$0xff]  ;;  %v5959_v1 = vld [vmem:[#allocation11 + $0x2c8] sm:$0xff] }
 0x7b1   :  { %7815 = vrcp.f32 %v5301_v22  ;;  %6050 = vmatprep.subr.mxu0 %v5871_v53  ;;  %6121 = vmatprep.subr.mxu1 %v5873_v3  ;;  %v5964_v28 = vld [vmem:[#allocation11 + $0x2f0] sm:$0xff]  ;;  %v5958_v53 = vld [vmem:[#allocation11 + $0x2c0] sm:$0xff]  ;;  %v5955_v22 = vld [vmem:[#allocation11 + $0x2a8] sm:$0xff] }
 0x7b2   :  { %6051 = vmatpush1.msra.mxu0 %v5870_v11  ;;  %6122 = vmatpush1.msra.mxu1 %v5872_v25  ;;  %7817 = vrcp.f32 %v5302_v2  ;;  %v5960_v3 = vld [vmem:[#allocation11 + $0x2d0] sm:$0xff]  ;;  %v5957_v11 = vld [vmem:[#allocation11 + $0x2b8] sm:$0xff]  ;;  %v5954_v25 = vld [vmem:[#allocation11 + $0x2a0] sm:$0xff] }
 0x7b3   :  { %6052 = vmatprep.subr.mxu0 %v5995_v12  ;;  %6123 = vmatprep.subr.mxu1 %v5997_v14  ;;  %v5956_v12 = vld [vmem:[#allocation11 + $0x2b0] sm:$0xff]  ;;  %v5951_v14 = vld [vmem:[#allocation11 + $0x288] sm:$0xff] }
 0x7b4   :  { %6053 = vmatpush2.msra.mxu0 %v5994_v37  ;;  %6124 = vmatpush2.msra.mxu1 %v5996_v26  ;;  %v5953_v37 = vld [vmem:[#allocation11 + $0x298] sm:$0xff]  ;;  %v5950_v26 = vld [vmem:[#allocation11 + $0x280] sm:$0xff] }
 0x7b5   :  { %6054 = vmatprep.subr.mxu0 %v5991_v31  ;;  %6125 = vmatprep.subr.mxu1 %v5993_v41  ;;  %v5952_v31 = vld [vmem:[#allocation11 + $0x290] sm:$0xff]  ;;  %v5947_v41 = vld [vmem:[#allocation11 + $0x268] sm:$0xff] }
 0x7b6   :  { %6055 = vmatpush2.msra.mxu0 %v5990_v46  ;;  %6126 = vmatpush2.msra.mxu1 %v5992_v43  ;;  %v5949_v46 = vld [vmem:[#allocation11 + $0x278] sm:$0xff]  ;;  %v5946_v43 = vld [vmem:[#allocation11 + $0x260] sm:$0xff] }
 0x7b7   :  { %6056 = vmatprep.subr.mxu0 %v5987_v54  ;;  %6127 = vmatprep.subr.mxu1 %v5989_v47  ;;  %v5948_v54 = vld [vmem:[#allocation11 + $0x270] sm:$0xff]  ;;  %v5943_v47 = vld [vmem:[#allocation11 + $0x248] sm:$0xff] }
 0x7b8   :  { %6057 = vmatpush2.msra.mxu0 %v5986_v48  ;;  %6128 = vmatpush2.msra.mxu1 %v5988_v29  ;;  %v5945_v48 = vld [vmem:[#allocation11 + $0x258] sm:$0xff]  ;;  %v5942_v29 = vld [vmem:[#allocation11 + $0x240] sm:$0xff] }
 0x7b9   :  { %6058 = vmatprep.subr.mxu0 %v5983_v17  ;;  %6129 = vmatprep.subr.mxu1 %v5985_v19  ;;  %v5944_v17 = vld [vmem:[#allocation11 + $0x250] sm:$0xff]  ;;  %v5939_v19 = vld [vmem:[#allocation11 + $0x228] sm:$0xff] }
 0x7ba   :  { %6059 = vmatpush2.msra.mxu0 %v5982_v36  ;;  %6130 = vmatpush2.msra.mxu1 %v5984_v34  ;;  %v5941_v36 = vld [vmem:[#allocation11 + $0x238] sm:$0xff]  ;;  %v5938_v34 = vld [vmem:[#allocation11 + $0x220] sm:$0xff] }
 0x7bb   :  { %6060 = vmatprep.subr.mxu0 %v5979_v45  ;;  %6131 = vmatprep.subr.mxu1 %v5981_v33  ;;  %v5940_v45 = vld [vmem:[#allocation11 + $0x230] sm:$0xff]  ;;  %v5935_v33 = vld [vmem:[#allocation11 + $0x208] sm:$0xff] }
 0x7bc   :  { %v7812_v60 = vpop.eup %7811  ;;  %6061 = vmatpush2.msra.mxu0 %v5978_v35  ;;  %6132 = vmatpush2.msra.mxu1 %v5980_v52  ;;  %v5937_v35 = vld [vmem:[#allocation11 + $0x218] sm:$0xff]  ;;  %v6240_v2 = vld [vmem:[#allocation8 + $0x1a8] sm:$0xff] }
 0x7bd   :  { %v7814_v51 = vpop.eup %7813  ;;  %6062 = vmatprep.subr.mxu0 %v5975_v23  ;;  %6133 = vmatprep.subr.mxu1 %v5977_v39  ;;  %v5934_v23 = vld [vmem:[#allocation11 + $0x200] sm:$0xff]  ;;  %v5936_v39 = vld [vmem:[#allocation11 + $0x210] sm:$0xff] }
 0x7be   :  { %v7816_v62 = vpop.eup %7815  ;;  %6063 = vmatpush2.msra.mxu0 %v5974_v30  ;;  %6134 = vmatpush2.msra.mxu1 %v5976_v57  ;;  %v5311_v55 = vmul.f32 %v7814_v51, %v7812_v60  ;;  %v6248_v57 = vld [vmem:[#allocation8 + $0x1e8] sm:$0xff]  ;;  %v6250_v60 = vld [vmem:[#allocation8 + $0x1f8] sm:$0xff] }
 0x7bf   :  { %v5310_v24 = vmul.f32 %v7816_v62, %v9468_v61  ;;  %6064 = vmatprep.subr.mxu0 %v5971_v59  ;;  %6135 = vmatprep.subr.mxu1 %v5973_v18  ;;  %v5961_v61 = vld [vmem:[#allocation11 + $0x2d8] sm:$0xff]  ;;  %v7818_v52 = vpop.eup %7817  ;;  %v6249_v18 = vld [vmem:[#allocation8 + $0x1f0] sm:$0xff]  ;;  %v6244_v51 = vld [vmem:[#allocation8 + $0x1c8] sm:$0xff] }
 0x7c0   :  { %6065 = vmatpush2.msra.mxu0 %v5970_v56  ;;  %6136 = vmatpush2.msra.mxu1 %v5972_v16  ;;  %v6247_v59 = vld [vmem:[#allocation8 + $0x1e0] sm:$0xff]  ;;  %v6246_v56 = vld [vmem:[#allocation8 + $0x1d8] sm:$0xff]  ;;  %v6245_v62 = vld [vmem:[#allocation8 + $0x1d0] sm:$0xff] }
 0x7c1   :  { %v9522_v7 = vadd.f32 %v5311_v55, %v5310_v24  ;;  %6066 = vmatprep.subr.mxu0 %v5967_v4  ;;  %6137 = vmatprep.subr.mxu1 %v5969_v10  ;;  %v6243_v16 = vld [vmem:[#allocation8 + $0x1c0] sm:$0xff]  ;;  %v6242_v4 = vld [vmem:[#allocation8 + $0x1b8] sm:$0xff]  ;;  %v6241_v24 = vld [vmem:[#allocation8 + $0x1b0] sm:$0xff] }
 0x7c2   :  { %6067 = vmatpush2.msra.mxu0 %v5966_v5  ;;  %6138 = vmatpush2.msra.mxu1 %v5968_v58  ;;  %v6239_v10 = vld [vmem:[#allocation8 + $0x1a0] sm:$0xff]  ;;  %v6236_v55 = vld [vmem:[#allocation8 + $0x188] sm:$0xff]  ;;  %v6238_v5 = vld [vmem:[#allocation8 + $0x198] sm:$0xff] }
 0x7c3   :  { %6068 = vmatprep.subr.mxu0 %v5963_v6  ;;  %6139 = vmatprep.subr.mxu1 %v5965_v63  ;;  %7819 = vtanh.f32 %v9522_v7  ;;  %v6237_v58 = vld [vmem:[#allocation8 + $0x190] sm:$0xff]  ;;  %v6232_v6 = vld [vmem:[#allocation8 + $0x168] sm:$0xff]  ;;  %v6234_v63 = vld [vmem:[#allocation8 + $0x178] sm:$0xff] }
 0x7c4   :  { %6069 = vmatpush2.msra.mxu0 %v5962_v15  ;;  %6140 = vmatpush2.msra.mxu1 %v5964_v28  ;;  %v6231_v15 = vld [vmem:[#allocation8 + $0x160] sm:$0xff]  ;;  %v6233_v28 = vld [vmem:[#allocation8 + $0x170] sm:$0xff] }
 0x7c5   :  { %6070 = vmatprep.subr.mxu0 %v5959_v1  ;;  %6141 = vmatprep.subr.mxu1 %v5961_v61  ;;  %v6228_v1 = vld [vmem:[#allocation8 + $0x148] sm:$0xff]  ;;  %v6230_v61 = vld [vmem:[#allocation8 + $0x158] sm:$0xff] }
 0x7c6   :  { %6071 = vmatpush2.msra.mxu0 %v5958_v53  ;;  %6142 = vmatpush2.msra.mxu1 %v5960_v3  ;;  %v6227_v53 = vld [vmem:[#allocation8 + $0x140] sm:$0xff]  ;;  %v6229_v3 = vld [vmem:[#allocation8 + $0x150] sm:$0xff] }
 0x7c7   :  { %6072 = vmatprep.subr.mxu0 %v5955_v22  ;;  %6143 = vmatprep.subr.mxu1 %v5957_v11  ;;  %v6224_v22 = vld [vmem:[#allocation8 + $0x128] sm:$0xff]  ;;  %v6226_v11 = vld [vmem:[#allocation8 + $0x138] sm:$0xff] }
 0x7c8   :  { %6073 = vmatpush2.msra.mxu0 %v5954_v25  ;;  %6144 = vmatpush2.msra.mxu1 %v5956_v12  ;;  %v6223_v25 = vld [vmem:[#allocation8 + $0x120] sm:$0xff]  ;;  %v6225_v12 = vld [vmem:[#allocation8 + $0x130] sm:$0xff] }
 0x7c9   :  { %6074 = vmatprep.subr.mxu0 %v5951_v14  ;;  %6145 = vmatprep.subr.mxu1 %v5953_v37  ;;  %v6220_v14 = vld [vmem:[#allocation8 + $0x108] sm:$0xff]  ;;  %v6222_v37 = vld [vmem:[#allocation8 + $0x118] sm:$0xff] }
 0x7ca   :  { %6075 = vmatpush2.msra.mxu0 %v5950_v26  ;;  %6146 = vmatpush2.msra.mxu1 %v5952_v31  ;;  %v6219_v26 = vld [vmem:[#allocation8 + $0x100] sm:$0xff]  ;;  %v6221_v31 = vld [vmem:[#allocation8 + $0x110] sm:$0xff] }
 0x7cb   :  { %6076 = vmatprep.subr.mxu0 %v5947_v41  ;;  %6147 = vmatprep.subr.mxu1 %v5949_v46  ;;  %v6216_v41 = vld [vmem:[#allocation8 + $0xe8] sm:$0xff]  ;;  %v6218_v46 = vld [vmem:[#allocation8 + $0xf8] sm:$0xff] }
 0x7cc   :  { %6077 = vmatpush2.msra.mxu0 %v5946_v43  ;;  %6148 = vmatpush2.msra.mxu1 %v5948_v54  ;;  %v6215_v43 = vld [vmem:[#allocation8 + $0xe0] sm:$0xff]  ;;  %v6217_v54 = vld [vmem:[#allocation8 + $0xf0] sm:$0xff] }
 0x7cd   :  { %6078 = vmatprep.subr.mxu0 %v5943_v47  ;;  %6149 = vmatprep.subr.mxu1 %v5945_v48  ;;  %v6212_v47 = vld [vmem:[#allocation8 + $0xc8] sm:$0xff]  ;;  %v6214_v48 = vld [vmem:[#allocation8 + $0xd8] sm:$0xff] }
 0x7ce   :  { %6079 = vmatpush2.msra.mxu0 %v5942_v29  ;;  %6150 = vmatpush2.msra.mxu1 %v5944_v17  ;;  %v6211_v29 = vld [vmem:[#allocation8 + $0xc0] sm:$0xff]  ;;  %v6213_v17 = vld [vmem:[#allocation8 + $0xd0] sm:$0xff] }
 0x7cf   :  { %6080 = vmatprep.subr.mxu0 %v5939_v19  ;;  %6151 = vmatprep.subr.mxu1 %v5941_v36  ;;  %v6208_v19 = vld [vmem:[#allocation8 + $0xa8] sm:$0xff]  ;;  %v6210_v36 = vld [vmem:[#allocation8 + $0xb8] sm:$0xff] }
 0x7d0   :  { %v7820_v40 = vpop.eup %7819  ;;  %6081 = vmatpush2.msra.mxu0 %v5938_v34  ;;  %6152 = vmatpush2.msra.mxu1 %v5940_v45  ;;  %v6207_v34 = vld [vmem:[#allocation8 + $0xa0] sm:$0xff]  ;;  %v6209_v45 = vld [vmem:[#allocation8 + $0xb0] sm:$0xff] }
 0x7d1   :  { %6082 = vmatprep.subr.mxu0 %v5935_v33  ;;  %6153 = vmatprep.subr.mxu1 %v5937_v35  ;;  %v9525_v30 = vmul.f32 %v7820_v40, %v7818_v52  ;;  %v6204_v33 = vld [vmem:[#allocation8 + $0x88] sm:$0xff]  ;;  %v6206_v35 = vld [vmem:[#allocation8 + $0x98] sm:$0xff]  ;;  %v6203_v52 = vld [vmem:[#allocation8 + $0x80] sm:$0xff] }
 0x7d2   :  { %6083 = vmatpush2.msra.mxu0 %v5934_v23  ;;  %6154 = vmatpush2.msra.mxu1 %v5936_v39  ;;  %v6205_v23 = vld [vmem:[#allocation8 + $0x90] sm:$0xff]  ;;  %v6200_v39 = vld [vmem:[#allocation8 + $0x68] sm:$0xff]  ;;  %v6202_v40 = vld [vmem:[#allocation8 + $0x78] sm:$0xff] }
 0x7d3   :  { %10673 = vst [vmem:[#allocation49_spill] sm:$0xff] %v9525_v30  ;;  %6084 = vmatprep.mubr.f32.mxu0 %v9525_v30  ;;  %6155 = vmatprep.mubr.f32.mxu1 %v9525_v30 }
 0x7d4   :  { %6085 = vmatmul.mubr.f32.vlgmr.msra.gmra.mxu0 %v9505_v38  ;;  %6156 = vmatmul.mubr.f32.vlgmr.msra.gmra.mxu1 %v9505_v38  ;;  %v6235_v38 = vld [vmem:[#allocation8 + $0x180] sm:$0xff] }
 0x7d5   :  { %6337 = vmatprep.subr.mxu0 %v6248_v57  ;;  %6408 = vmatprep.subr.mxu1 %v6250_v60  ;;  %v6199_v57 = vld [vmem:[#allocation8 + $0x60] sm:$0xff]  ;;  %v6201_v60 = vld [vmem:[#allocation8 + $0x70] sm:$0xff] }
 0x7d6   :  { %6338 = vmatpush1.msra.mxu0 %v6247_v59  ;;  %6409 = vmatpush1.msra.mxu1 %v6249_v18  ;;  %v6196_v59 = vld [vmem:[#allocation8 + $0x48] sm:$0xff]  ;;  %v6198_v18 = vld [vmem:[#allocation8 + $0x58] sm:$0xff] }
 0x7d7   :  { %6339 = vmatprep.subr.mxu0 %v6244_v51  ;;  %6410 = vmatprep.subr.mxu1 %v6246_v56  ;;  %v6195_v51 = vld [vmem:[#allocation8 + $0x40] sm:$0xff]  ;;  %v6197_v56 = vld [vmem:[#allocation8 + $0x50] sm:$0xff] }
 0x7d8   :  { %6340 = vmatpush1.msra.mxu0 %v6243_v16  ;;  %6411 = vmatpush1.msra.mxu1 %v6245_v62  ;;  %v6192_v16 = vld [vmem:[#allocation8 + $0x28] sm:$0xff]  ;;  %v6194_v62 = vld [vmem:[#allocation8 + $0x38] sm:$0xff] }
 0x7d9   :  { %6341 = vmatprep.subr.mxu0 %v6240_v2  ;;  %6412 = vmatprep.subr.mxu1 %v6242_v4  ;;  %v6191_v2 = vld [vmem:[#allocation8 + $0x20] sm:$0xff]  ;;  %v6193_v4 = vld [vmem:[#allocation8 + $0x30] sm:$0xff] }
 0x7da   :  { %6342 = vmatpush1.msra.mxu0 %v6239_v10  ;;  %6413 = vmatpush1.msra.mxu1 %v6241_v24  ;;  %v6188_v10 = vld [vmem:[#allocation8 + $0x8] sm:$0xff]  ;;  %v6190_v24 = vld [vmem:[#allocation8 + $0x18] sm:$0xff] }
 0x7db   :  { %6343 = vmatprep.subr.mxu0 %v6236_v55  ;;  %6414 = vmatprep.subr.mxu1 %v6238_v5  ;;  %v6187_v55 = vld [vmem:[#allocation8] sm:$0xff]  ;;  %v6189_v5 = vld [vmem:[#allocation8 + $0x10] sm:$0xff] }
 0x7dc   :  { %6344 = vmatpush1.msra.mxu0 %v6235_v38  ;;  %6415 = vmatpush1.msra.mxu1 %v6237_v58  ;;  %v6312_v38 = vld [vmem:[#allocation8 + $0x3e8] sm:$0xff]  ;;  %v6314_v58 = vld [vmem:[#allocation8 + $0x3f8] sm:$0xff] }
 0x7dd   :  { %6345 = vmatprep.subr.mxu0 %v6232_v6  ;;  %6416 = vmatprep.subr.mxu1 %v6234_v63  ;;  %v6311_v6 = vld [vmem:[#allocation8 + $0x3e0] sm:$0xff]  ;;  %v6313_v63 = vld [vmem:[#allocation8 + $0x3f0] sm:$0xff] }
 0x7de   :  { %6346 = vmatpush1.msra.mxu0 %v6231_v15  ;;  %6417 = vmatpush1.msra.mxu1 %v6233_v28  ;;  %v6308_v15 = vld [vmem:[#allocation8 + $0x3c8] sm:$0xff]  ;;  %v6310_v28 = vld [vmem:[#allocation8 + $0x3d8] sm:$0xff] }
 0x7df   :  { %6347 = vmatprep.subr.mxu0 %v6228_v1  ;;  %6418 = vmatprep.subr.mxu1 %v6230_v61  ;;  %v6307_v1 = vld [vmem:[#allocation8 + $0x3c0] sm:$0xff]  ;;  %v6309_v61 = vld [vmem:[#allocation8 + $0x3d0] sm:$0xff] }
 0x7e0   :  { %6348 = vmatpush1.msra.mxu0 %v6227_v53  ;;  %6419 = vmatpush1.msra.mxu1 %v6229_v3  ;;  %v6304_v53 = vld [vmem:[#allocation8 + $0x3a8] sm:$0xff]  ;;  %v6306_v3 = vld [vmem:[#allocation8 + $0x3b8] sm:$0xff] }
 0x7e1   :  { %6349 = vmatprep.subr.mxu0 %v6224_v22  ;;  %6420 = vmatprep.subr.mxu1 %v6226_v11  ;;  %v6303_v22 = vld [vmem:[#allocation8 + $0x3a0] sm:$0xff]  ;;  %v6305_v11 = vld [vmem:[#allocation8 + $0x3b0] sm:$0xff] }
 0x7e2   :  { %6350 = vmatpush1.msra.mxu0 %v6223_v25  ;;  %6421 = vmatpush1.msra.mxu1 %v6225_v12  ;;  %v6300_v25 = vld [vmem:[#allocation8 + $0x388] sm:$0xff]  ;;  %v6302_v12 = vld [vmem:[#allocation8 + $0x398] sm:$0xff] }
 0x7e3   :  { %6351 = vmatprep.subr.mxu0 %v6220_v14  ;;  %6422 = vmatprep.subr.mxu1 %v6222_v37  ;;  %v6299_v14 = vld [vmem:[#allocation8 + $0x380] sm:$0xff]  ;;  %v6301_v37 = vld [vmem:[#allocation8 + $0x390] sm:$0xff] }
 0x7e4   :  { %6352 = vmatpush1.msra.mxu0 %v6219_v26  ;;  %6423 = vmatpush1.msra.mxu1 %v6221_v31  ;;  %v6296_v26 = vld [vmem:[#allocation8 + $0x368] sm:$0xff]  ;;  %v6298_v31 = vld [vmem:[#allocation8 + $0x378] sm:$0xff] }
 0x7e5   :  { %6353 = vmatprep.subr.mxu0 %v6216_v41  ;;  %6424 = vmatprep.subr.mxu1 %v6218_v46  ;;  %v6295_v41 = vld [vmem:[#allocation8 + $0x360] sm:$0xff]  ;;  %v6297_v46 = vld [vmem:[#allocation8 + $0x370] sm:$0xff] }
 0x7e6   :  { %6354 = vmatpush1.msra.mxu0 %v6215_v43  ;;  %6425 = vmatpush1.msra.mxu1 %v6217_v54  ;;  %v6292_v43 = vld [vmem:[#allocation8 + $0x348] sm:$0xff]  ;;  %v6294_v54 = vld [vmem:[#allocation8 + $0x358] sm:$0xff] }
 0x7e7   :  { %6355 = vmatprep.subr.mxu0 %v6212_v47  ;;  %6426 = vmatprep.subr.mxu1 %v6214_v48  ;;  %v6291_v47 = vld [vmem:[#allocation8 + $0x340] sm:$0xff]  ;;  %v6293_v48 = vld [vmem:[#allocation8 + $0x350] sm:$0xff] }
 0x7e8   :  { %6356 = vmatpush1.msra.mxu0 %v6211_v29  ;;  %6427 = vmatpush1.msra.mxu1 %v6213_v17  ;;  %v6288_v29 = vld [vmem:[#allocation8 + $0x328] sm:$0xff]  ;;  %v6290_v17 = vld [vmem:[#allocation8 + $0x338] sm:$0xff] }
 0x7e9   :  { %6357 = vmatprep.subr.mxu0 %v6208_v19  ;;  %6428 = vmatprep.subr.mxu1 %v6210_v36  ;;  %v6287_v19 = vld [vmem:[#allocation8 + $0x320] sm:$0xff]  ;;  %v6289_v36 = vld [vmem:[#allocation8 + $0x330] sm:$0xff] }
 0x7ea   :  { %6358 = vmatpush1.msra.mxu0 %v6207_v34  ;;  %6429 = vmatpush1.msra.mxu1 %v6209_v45  ;;  %v6284_v34 = vld [vmem:[#allocation8 + $0x308] sm:$0xff]  ;;  %v6286_v45 = vld [vmem:[#allocation8 + $0x318] sm:$0xff] }
 0x7eb   :  { %6359 = vmatprep.subr.mxu0 %v6204_v33  ;;  %6430 = vmatprep.subr.mxu1 %v6206_v35  ;;  %v6283_v33 = vld [vmem:[#allocation8 + $0x300] sm:$0xff]  ;;  %v6285_v35 = vld [vmem:[#allocation8 + $0x310] sm:$0xff] }
 0x7ec   :  { %6360 = vmatpush1.msra.mxu0 %v6203_v52  ;;  %6431 = vmatpush1.msra.mxu1 %v6205_v23  ;;  %v6280_v52 = vld [vmem:[#allocation8 + $0x2e8] sm:$0xff]  ;;  %v6282_v23 = vld [vmem:[#allocation8 + $0x2f8] sm:$0xff] }
 0x7ed   :  { %6361 = vmatprep.subr.mxu0 %v6200_v39  ;;  %6432 = vmatprep.subr.mxu1 %v6202_v40  ;;  %v6279_v39 = vld [vmem:[#allocation8 + $0x2e0] sm:$0xff]  ;;  %v6281_v40 = vld [vmem:[#allocation8 + $0x2f0] sm:$0xff] }
 0x7ee   :  { %6362 = vmatpush1.msra.mxu0 %v6199_v57  ;;  %6433 = vmatpush1.msra.mxu1 %v6201_v60  ;;  %v6276_v57 = vld [vmem:[#allocation8 + $0x2c8] sm:$0xff]  ;;  %v6278_v60 = vld [vmem:[#allocation8 + $0x2d8] sm:$0xff] }
 0x7ef   :  { %6363 = vmatprep.subr.mxu0 %v6196_v59  ;;  %6434 = vmatprep.subr.mxu1 %v6198_v18  ;;  %v6275_v59 = vld [vmem:[#allocation8 + $0x2c0] sm:$0xff]  ;;  %v6277_v18 = vld [vmem:[#allocation8 + $0x2d0] sm:$0xff] }
 0x7f0   :  { %6364 = vmatpush1.msra.mxu0 %v6195_v51  ;;  %6435 = vmatpush1.msra.mxu1 %v6197_v56  ;;  %v6272_v51 = vld [vmem:[#allocation8 + $0x2a8] sm:$0xff]  ;;  %v6274_v56 = vld [vmem:[#allocation8 + $0x2b8] sm:$0xff] }
 0x7f1   :  { %6365 = vmatprep.subr.mxu0 %v6192_v16  ;;  %6436 = vmatprep.subr.mxu1 %v6194_v62  ;;  %v6271_v16 = vld [vmem:[#allocation8 + $0x2a0] sm:$0xff]  ;;  %v6273_v62 = vld [vmem:[#allocation8 + $0x2b0] sm:$0xff] }
 0x7f2   :  { %6366 = vmatpush1.msra.mxu0 %v6191_v2  ;;  %6437 = vmatpush1.msra.mxu1 %v6193_v4  ;;  %v6268_v2 = vld [vmem:[#allocation8 + $0x288] sm:$0xff]  ;;  %v6270_v4 = vld [vmem:[#allocation8 + $0x298] sm:$0xff] }
 0x7f3   :  { %6367 = vmatprep.subr.mxu0 %v6188_v10  ;;  %6438 = vmatprep.subr.mxu1 %v6190_v24  ;;  %v6267_v10 = vld [vmem:[#allocation8 + $0x280] sm:$0xff]  ;;  %v6269_v24 = vld [vmem:[#allocation8 + $0x290] sm:$0xff] }
 0x7f4   :  { %6368 = vmatpush1.msra.mxu0 %v6187_v55  ;;  %6439 = vmatpush1.msra.mxu1 %v6189_v5  ;;  %v6264_v55 = vld [vmem:[#allocation8 + $0x268] sm:$0xff]  ;;  %v6266_v5 = vld [vmem:[#allocation8 + $0x278] sm:$0xff] }
 0x7f5   :  { %6369 = vmatprep.subr.mxu0 %v6312_v38  ;;  %6440 = vmatprep.subr.mxu1 %v6314_v58  ;;  %v6263_v38 = vld [vmem:[#allocation8 + $0x260] sm:$0xff]  ;;  %v6265_v58 = vld [vmem:[#allocation8 + $0x270] sm:$0xff] }
 0x7f6   :  { %6370 = vmatpush2.msra.mxu0 %v6311_v6  ;;  %6441 = vmatpush2.msra.mxu1 %v6313_v63  ;;  %v6260_v63 = vld [vmem:[#allocation8 + $0x248] sm:$0xff] }
 0x7f7   :  { %6371 = vmatprep.subr.mxu0 %v6308_v15  ;;  %6442 = vmatprep.subr.mxu1 %v6310_v28  ;;  %v6262_v15 = vld [vmem:[#allocation8 + $0x258] sm:$0xff]  ;;  %v298_v28 = vadd.f32 %v9097_v9, %v8624_v0  ;;  %v6252_v0 = vld [vmem:[#allocation8 + $0x208] sm:$0xff] }
 0x7f8   :  { %6372 = vmatpush2.msra.mxu0 %v6307_v1  ;;  %6443 = vmatpush2.msra.mxu1 %v6309_v61  ;;  %v10674_v1 = vld [vmem:[#allocation44_spill] sm:$0xff] }
 0x7f9   :  { %6373 = vmatprep.subr.mxu0 %v6304_v53  ;;  %6444 = vmatprep.subr.mxu1 %v6306_v3  ;;  %v6259_v53 = vld [vmem:[#allocation8 + $0x240] sm:$0xff]  ;;  %v6261_v3 = vld [vmem:[#allocation8 + $0x250] sm:$0xff]  ;;  %v6254_v9 = vld [vmem:[#allocation8 + $0x218] sm:$0xff] }
 0x7fa   :  { %6374 = vmatpush2.msra.mxu0 %v6303_v22  ;;  %6445 = vmatpush2.msra.mxu1 %v6305_v11  ;;  %v6256_v11 = vld [vmem:[#allocation8 + $0x228] sm:$0xff] }
 0x7fb   :  { %6375 = vmatprep.subr.mxu0 %v6300_v25  ;;  %6446 = vmatprep.subr.mxu1 %v6302_v12  ;;  %v6258_v25 = vld [vmem:[#allocation8 + $0x238] sm:$0xff] }
 0x7fc   :  { %6376 = vmatpush2.msra.mxu0 %v6299_v14  ;;  %6447 = vmatpush2.msra.mxu1 %v6301_v37  ;;  %v6255_v37 = vld [vmem:[#allocation8 + $0x220] sm:$0xff] }
 0x7fd   :  { %6377 = vmatprep.subr.mxu0 %v6296_v26  ;;  %6448 = vmatprep.subr.mxu1 %v6298_v31  ;;  %v6257_v26 = vld [vmem:[#allocation8 + $0x230] sm:$0xff] }
 0x7fe   :  { %6378 = vmatpush2.msra.mxu0 %v6295_v41  ;;  %6449 = vmatpush2.msra.mxu1 %v6297_v46  ;;  %v6251_v41 = vld [vmem:[#allocation8 + $0x200] sm:$0xff]  ;;  %v6253_v46 = vld [vmem:[#allocation8 + $0x210] sm:$0xff] }
 0x7ff   :  { %6379 = vmatprep.subr.mxu0 %v6292_v43  ;;  %6450 = vmatprep.subr.mxu1 %v6294_v54  ;;  %v9534_v43 = vld [vmem:[#allocation11 + $0x1e8] sm:$0xff]  ;;  %v9536_v54 = vld [vmem:[#allocation11 + $0x1f8] sm:$0xff] }
 0x800   :  { %6380 = vmatpush2.msra.mxu0 %v6291_v47  ;;  %6451 = vmatpush2.msra.mxu1 %v6293_v48  ;;  %v10675_v48 = vld [vmem:[#allocation32_spill] sm:$0xff] }
 0x801   :  { %6381 = vmatprep.subr.mxu0 %v6288_v29  ;;  %6452 = vmatprep.subr.mxu1 %v6290_v17 }
 0x802   :  { %6382 = vmatpush2.msra.mxu0 %v6287_v19  ;;  %6453 = vmatpush2.msra.mxu1 %v6289_v36  ;;  %v10676_v36 = vld [vmem:[#allocation33_spill] sm:$0xff] }
 0x803   :  { %6383 = vmatprep.subr.mxu0 %v6284_v34  ;;  %6454 = vmatprep.subr.mxu1 %v6286_v45 }
 0x804   :  { %6384 = vmatpush2.msra.mxu0 %v6283_v33  ;;  %6455 = vmatpush2.msra.mxu1 %v6285_v35 }
 0x805   :  { %6385 = vmatprep.subr.mxu0 %v6280_v52  ;;  %6456 = vmatprep.subr.mxu1 %v6282_v23 }
 0x806   :  { %6386 = vmatpush2.msra.mxu0 %v6279_v39  ;;  %6457 = vmatpush2.msra.mxu1 %v6281_v40 }
 0x807   :  { %6387 = vmatprep.subr.mxu0 %v6276_v57  ;;  %6458 = vmatprep.subr.mxu1 %v6278_v60 }
 0x808   :  { %6388 = vmatpush2.msra.mxu0 %v6275_v59  ;;  %6459 = vmatpush2.msra.mxu1 %v6277_v18 }
 0x809   :  { %6389 = vmatprep.subr.mxu0 %v6272_v51  ;;  %6460 = vmatprep.subr.mxu1 %v6274_v56 }
 0x80a   :  { %6390 = vmatpush2.msra.mxu0 %v6271_v16  ;;  %6461 = vmatpush2.msra.mxu1 %v6273_v62 }
 0x80b   :  { %6391 = vmatprep.subr.mxu0 %v6268_v2  ;;  %6462 = vmatprep.subr.mxu1 %v6270_v4  ;;  %v5682_v2 = vld [vmem:[#allocation9] sm:$0xf] }
 0x80c   :  { %v5450_v6 = vpop.f32.mrf.mxu0  ;;  %6392 = vmatpush2.msra.mxu0 %v6267_v10  ;;  %6463 = vmatpush2.msra.mxu1 %v6269_v24  ;;  %v5521_v47 = vpop.f32.mrf.mxu1  ;;  %v5687_v4 = vrot.slane %v5682_v2, %v8610_v32  ;;  %v5691_v10 = vrot.slane %v5682_v2, %v10539_v21 }
 0x80d   :  { %v5526_v61 = vadd.f32 %v5450_v6, %v10674_v1  ;;  %6393 = vmatprep.subr.mxu0 %v6264_v55  ;;  %6464 = vmatprep.subr.mxu1 %v6266_v5  ;;  %v5528_v29 = vadd.f32 %v5521_v47, %v10675_v48 }
 0x80e   :  { %v5452_v22 = vpop.f32.mrf.mxu0  ;;  %6394 = vmatpush2.msra.mxu0 %v6263_v38  ;;  %6465 = vmatpush2.msra.mxu1 %v6265_v58  ;;  %v5523_v17 = vpop.f32.mrf.mxu1 }
 0x80f   :  { %v7435_v12 = vmul.f32 -1.442695, %v5526_v61  ;;  %v5527_v14 = vadd.f32 %v5452_v22, %v298_v28  ;;  %6395 = vmatprep.subr.mxu0 %v6260_v63  ;;  %6466 = vmatprep.subr.mxu1 %v6262_v15  ;;  %v7437_v19 = vmul.f32 -1.442695, %v5528_v29  ;;  %v5529_v34 = vadd.f32 %v5523_v17, %v10676_v36  ;;  %v9553_v29 = vld [vmem:[#allocation11 + $0x1e0] sm:$0xff]  ;;  %v9555_v17 = vld [vmem:[#allocation11 + $0x1f0] sm:$0xff] }
 0x810   :  { %6396 = vmatpush2.msra.mxu0 %v6259_v53  ;;  %6467 = vmatpush2.msra.mxu1 %v6261_v3  ;;  %v5699_v28 = vrot.slane %v5682_v2, %v10569_v49  ;;  %v9563_v36 = vld [vmem:[#allocation11 + $0x1c0] sm:$0xff] }
 0x811   :  { %7821 = vpow2.f32 %v7435_v12  ;;  %v7436_v31 = vmul.f32 -1.442695, %v5527_v14  ;;  %6397 = vmatprep.subr.mxu0 %v6256_v11  ;;  %6468 = vmatprep.subr.mxu1 %v6258_v25 }
 0x812   :  { %6398 = vmatpush2.msra.mxu0 %v6255_v37  ;;  %6469 = vmatpush2.msra.mxu1 %v6257_v26 }
 0x813   :  { %7823 = vpow2.f32 %v7436_v31  ;;  %6399 = vmatprep.subr.mxu0 %v6252_v0  ;;  %6470 = vmatprep.subr.mxu1 %v6254_v9 }
 0x814   :  { %6400 = vmatpush2.msra.mxu0 %v6251_v41  ;;  %6471 = vmatpush2.msra.mxu1 %v6253_v46  ;;  %7825 = vpow2.f32 %v7437_v19  ;;  %v9559_v19 = vld [vmem:[#allocation11 + $0x1c8] sm:$0xff] }
 0x815   :  { %6653 = vmatprep.subr.mxu0 %v9534_v43  ;;  %6724 = vmatprep.subr.mxu1 %v9536_v54  ;;  %7827 = vtanh.f32 %v5529_v34  ;;  %v9565_v34 = vld [vmem:[#allocation11 + $0x1d0] sm:$0xff] }
 0x81e   :  { %v7822_v45 = vpop.eup %7821 }
 0x81f   :  { %v5539_v33 = vadd.f32 1.0, %v7822_v45  ;;  %v9569_v45 = vld [vmem:[#allocation11 + $0x1a8] sm:$0xff] }
 0x820   :  { %v7824_v35 = vpop.eup %7823 }
 0x821   :  { %7829 = vrcp.f32 %v5539_v33  ;;  %v5540_v52 = vadd.f32 1.0, %v7824_v35  ;;  %v7826_v23 = vpop.eup %7825  ;;  %v9571_v33 = vld [vmem:[#allocation11 + $0x1b8] sm:$0xff]  ;;  %v9573_v35 = vld [vmem:[#allocation12] sm:$0xf] }
 0x822   :  { %v7828_v39 = vpop.eup %7827  ;;  %v5541_v59 = vadd.f32 1.0, %v7826_v23  ;;  %v9579_v23 = vld [vmem:[#allocation11 + $0x1b0] sm:$0xff]  ;;  %v6015_v30 = vrot.slane %v9573_v35, %v10569_v49  ;;  %v9717_v49 = vld [vmem:[#allocation11 + $0x40] sm:$0xff] }
 0x823   :  { %7831 = vrcp.f32 %v5540_v52  ;;  %v9577_v52 = vld [vmem:[#allocation11 + $0x1a0] sm:$0xff]  ;;  %10687 = vst [vmem:[#allocation60_spill] sm:$0xff] %v9717_v49 }
 0x824   :  { %7833 = vrcp.f32 %v5541_v59  ;;  %v9593_v59 = vld [vmem:[#allocation11 + $0x190] sm:$0xff] }
 0x82e   :  { %v7830_v40 = vpop.eup %7829 }
 0x82f   :  { %v5550_v57 = vmul.f32 %v7830_v40, %v7828_v39  ;;  %v9583_v39 = vld [vmem:[#allocation11 + $0x188] sm:$0xff]  ;;  %v9585_v40 = vld [vmem:[#allocation11 + $0x198] sm:$0xff] }
 0x830   :  { %v7832_v60 = vpop.eup %7831 }
 0x831   :  { %v5549_v18 = vmul.f32 %v7832_v60, %v9484_v44  ;;  %v7834_v56 = vpop.eup %7833  ;;  %v5695_v44 = vrot.slane %v5682_v2, %v10556_v13  ;;  %v9591_v60 = vld [vmem:[#allocation11 + $0x180] sm:$0xff] }
 0x833   :  { %v5551_v51 = vadd.f32 %v5550_v57, %v5549_v18  ;;  %v6003_v57 = vrot.slane %v9573_v35, %v8610_v32  ;;  %v9597_v18 = vld [vmem:[#allocation11 + $0x168] sm:$0xff] }
 0x835   :  { %7835 = vtanh.f32 %v5551_v51  ;;  %v9599_v51 = vld [vmem:[#allocation11 + $0x178] sm:$0xff] }
 0x842   :  { %v7836_v16 = vpop.eup %7835 }
 0x843   :  { %v5553_v62 = vmul.f32 %v7836_v16, %v7834_v56  ;;  %v6007_v56 = vrot.slane %v9573_v35, %v10539_v21  ;;  %v9605_v16 = vld [vmem:[#allocation11 + $0x160] sm:$0xff] }
 0x853   :  { %v5770_v24 = vpop.f32.mrf.mxu0  ;;  %v5841_v63 = vpop.f32.mrf.mxu1 }
 0x854   :  { %v5771_v55 = vadd.f32 %v5770_v24, %v5687_v4  ;;  %v5842_v15 = vadd.f32 %v5841_v63, %v5695_v44  ;;  %v9611_v4 = vld [vmem:[#allocation11 + $0x148] sm:$0xff] }
 0x855   :  { %v5772_v5 = vpop.f32.mrf.mxu0  ;;  %v5843_v1 = vpop.f32.mrf.mxu1 }
 0x856   :  { %v7438_v38 = vmul.f32 -1.442695, %v5771_v55  ;;  %v5773_v58 = vadd.f32 %v5772_v5, %v5691_v10  ;;  %v7440_v61 = vmul.f32 -1.442695, %v5842_v15  ;;  %v5844_v3 = vadd.f32 %v5843_v1, %v5699_v28  ;;  %v9613_v10 = vld [vmem:[#allocation11 + $0x158] sm:$0xff]  ;;  %v9617_v55 = vld [vmem:[#allocation11 + $0x140] sm:$0xff] }
 0x857   :  { %v9619_v5 = vld [vmem:[#allocation11 + $0x150] sm:$0xff]  ;;  %v9629_v15 = vld [vmem:[#allocation11 + $0x120] sm:$0xff]  ;;  %v9635_v1 = vld [vmem:[#allocation11 + $0x108] sm:$0xff] }
 0x858   :  { %7837 = vpow2.f32 %v7438_v38  ;;  %v7439_v6 = vmul.f32 -1.442695, %v5773_v58  ;;  %v9623_v58 = vld [vmem:[#allocation11 + $0x128] sm:$0xff]  ;;  %v9631_v28 = vld [vmem:[#allocation11 + $0x130] sm:$0xff] }
 0x85a   :  { %7839 = vpow2.f32 %v7439_v6  ;;  %v9625_v6 = vld [vmem:[#allocation11 + $0x138] sm:$0xff] }
 0x85b   :  { %7841 = vpow2.f32 %v7440_v61  ;;  %v9637_v61 = vld [vmem:[#allocation11 + $0x118] sm:$0xff] }
 0x865   :  { %v7838_v53 = vpop.eup %7837 }
 0x866   :  { %v5855_v22 = vadd.f32 1.0, %v7838_v53 }
 0x867   :  { %v7840_v11 = vpop.eup %7839 }
 0x868   :  { %7843 = vrcp.f32 %v5855_v22  ;;  %v5856_v25 = vadd.f32 1.0, %v7840_v11  ;;  %v7842_v12 = vpop.eup %7841  ;;  %v9643_v22 = vld [vmem:[#allocation11 + $0x110] sm:$0xff]  ;;  %v9647_v11 = vld [vmem:[#allocation11 + $0xe8] sm:$0xff] }
 0x869   :  { %7845 = vtanh.f32 %v5844_v3  ;;  %v5857_v0 = vadd.f32 1.0, %v7842_v12  ;;  %v9641_v3 = vld [vmem:[#allocation11 + $0x100] sm:$0xff] }
 0x86a   :  { %7847 = vrcp.f32 %v5856_v25  ;;  %v9649_v25 = vld [vmem:[#allocation11 + $0xf8] sm:$0xff]  ;;  %v9653_v12 = vld [vmem:[#allocation11 + $0xe0] sm:$0xff] }
 0x86b   :  { %7849 = vrcp.f32 %v5857_v0  ;;  %v9663_v0 = vld [vmem:[#allocation11 + $0xd8] sm:$0xff] }
 0x875   :  { %v7844_v14 = vpop.eup %7843 }
 0x876   :  { %v7846_v37 = vpop.eup %7845 }
 0x877   :  { %v7848_v26 = vpop.eup %7847  ;;  %v5866_v31 = vmul.f32 %v7846_v37, %v7844_v14  ;;  %v9655_v14 = vld [vmem:[#allocation11 + $0xf0] sm:$0xff]  ;;  %v6011_v37 = vrot.slane %v9573_v35, %v10556_v13  ;;  %v9711_v35 = vld [vmem:[#allocation11 + $0x48] sm:$0xff] }
 0x878   :  { %v5865_v9 = vmul.f32 %v7848_v26, %v9502_v8  ;;  %v7850_v46 = vpop.eup %7849  ;;  %v9561_v8 = vld [vmem:[#allocation11 + $0x1d8] sm:$0xff]  ;;  %v9661_v26 = vld [vmem:[#allocation11 + $0xc8] sm:$0xff]  ;;  %10685 = vst [vmem:[#allocation58_spill] sm:$0xff] %v9711_v35  ;;  %v9719_v13 = vld [vmem:[#allocation11 + $0x50] sm:$0xff] }
 0x879   :  { %10688 = vst [vmem:[#allocation61_spill] sm:$0xff] %v9719_v13 }
 0x87a   :  { %v9548_v41 = vadd.f32 %v5866_v31, %v5865_v9  ;;  %v9667_v31 = vld [vmem:[#allocation11 + $0xc0] sm:$0xff] }
 0x87c   :  { %10677 = vst [vmem:[#allocation50_spill] sm:$0xff] %v9548_v41  ;;  %7851 = vtanh.f32 %v9548_v41  ;;  %v9713_v41 = vld [vmem:[#allocation11 + $0x58] sm:$0xff] }
 0x87d   :  { %10686 = vst [vmem:[#allocation59_spill] sm:$0xff] %v9713_v41 }
 0x889   :  { %v7852_v47 = vpop.eup %7851 }
 0x88a   :  { %v9551_v48 = vmul.f32 %v7852_v47, %v7850_v46  ;;  %v9669_v46 = vld [vmem:[#allocation11 + $0xd0] sm:$0xff]  ;;  %v9673_v47 = vld [vmem:[#allocation11 + $0xa8] sm:$0xff] }
 0x88c   :  { %6401 = vmatprep.mubr.f32.mxu0 %v9551_v48  ;;  %6472 = vmatprep.mubr.f32.mxu1 %v9551_v48 }
 0x88d   :  { %6402 = vmatmul.mubr.f32.vlgmr.msra.gmra.mxu0 %v5553_v62  ;;  %6473 = vmatmul.mubr.f32.vlgmr.msra.gmra.mxu1 %v5553_v62  ;;  %v9607_v62 = vld [vmem:[#allocation11 + $0x170] sm:$0xff] }
 0x88e   :  { %6654 = vmatpush1.msra.mxu0 %v9553_v29  ;;  %6725 = vmatpush1.msra.mxu1 %v9555_v17 }
 0x88f   :  { %6655 = vmatprep.subr.mxu0 %v9559_v19  ;;  %6726 = vmatprep.subr.mxu1 %v9561_v8 }
 0x890   :  { %6656 = vmatpush1.msra.mxu0 %v9563_v36  ;;  %6727 = vmatpush1.msra.mxu1 %v9565_v34 }
 0x891   :  { %6657 = vmatprep.subr.mxu0 %v9569_v45  ;;  %6728 = vmatprep.subr.mxu1 %v9571_v33 }
 0x892   :  { %6658 = vmatpush1.msra.mxu0 %v9577_v52  ;;  %6729 = vmatpush1.msra.mxu1 %v9579_v23 }
 0x893   :  { %6659 = vmatprep.subr.mxu0 %v9583_v39  ;;  %6730 = vmatprep.subr.mxu1 %v9585_v40 }
 0x894   :  { %v6086_v2 = vpop.f32.mrf.mxu0  ;;  %6660 = vmatpush1.msra.mxu0 %v9591_v60  ;;  %6731 = vmatpush1.msra.mxu1 %v9593_v59  ;;  %v6157_v9 = vpop.f32.mrf.mxu1 }
 0x895   :  { %v6087_v24 = vadd.f32 %v6086_v2, %v6003_v57  ;;  %6661 = vmatprep.subr.mxu0 %v9597_v18  ;;  %6732 = vmatprep.subr.mxu1 %v9599_v51  ;;  %v9675_v57 = vld [vmem:[#allocation11 + $0xb8] sm:$0xff]  ;;  %v9681_v2 = vld [vmem:[#allocation11 + $0xb0] sm:$0xff] }
 0x896   :  { %v6088_v38 = vpop.f32.mrf.mxu0  ;;  %6662 = vmatpush1.msra.mxu0 %v9605_v16  ;;  %6733 = vmatpush1.msra.mxu1 %v9607_v62  ;;  %v6159_v42 = vpop.f32.mrf.mxu1 }
 0x897   :  { %v7441_v44 = vmul.f32 -1.442695, %v6087_v24  ;;  %v6089_v63 = vadd.f32 %v6088_v38, %v6007_v56  ;;  %6663 = vmatprep.subr.mxu0 %v9611_v4  ;;  %6734 = vmatprep.subr.mxu1 %v9613_v10  ;;  %v9679_v56 = vld [vmem:[#allocation11 + $0xa0] sm:$0xff]  ;;  %v6158_v24 = vadd.f32 %v6157_v9, %v6011_v37  ;;  %v9685_v38 = vld [vmem:[#allocation11 + $0x88] sm:$0xff]  ;;  %v9701_v9 = vld [vmem:[#allocation11 + $0x78] sm:$0xff]  ;;  %v6160_v21 = vadd.f32 %v6159_v42, %v6015_v30 }
 0x898   :  { %6664 = vmatpush1.msra.mxu0 %v9617_v55  ;;  %6735 = vmatpush1.msra.mxu1 %v9619_v5  ;;  %v9699_v37 = vld [vmem:[#allocation11 + $0x68] sm:$0xff]  ;;  %10682 = vst [vmem:[#allocation55_spill] sm:$0xff] %v9701_v9  ;;  %v9737_v30 = vld [vmem:[#allocation11 + $0x18] sm:$0xff] }
 0x899   :  { %7853 = vpow2.f32 %v7441_v44  ;;  %v7442_v53 = vmul.f32 -1.442695, %v6089_v63  ;;  %6665 = vmatprep.subr.mxu0 %v9623_v58  ;;  %6736 = vmatprep.subr.mxu1 %v9625_v6  ;;  %v9687_v44 = vld [vmem:[#allocation11 + $0x98] sm:$0xff]  ;;  %v9691_v63 = vld [vmem:[#allocation11 + $0x80] sm:$0xff]  ;;  %10681 = vst [vmem:[#allocation54_spill] sm:$0xff] %v9699_v37  ;;  %v9735_v42 = vld [vmem:[#allocation11 + $0x8] sm:$0xff] }
 0x89a   :  { %6666 = vmatpush1.msra.mxu0 %v9629_v15  ;;  %6737 = vmatpush1.msra.mxu1 %v9631_v28  ;;  %10678 = vst [vmem:[#allocation51_spill] sm:$0xff] %v9687_v44  ;;  %10679 = vst [vmem:[#allocation52_spill] sm:$0xff] %v9691_v63  ;;  %v7443_v20 = vmul.f32 -1.442695, %v6158_v24  ;;  %v9723_v24 = vld [vmem:[#allocation11 + $0x28] sm:$0xff] }
 0x89b   :  { %7855 = vpow2.f32 %v7442_v53  ;;  %6667 = vmatprep.subr.mxu0 %v9635_v1  ;;  %6738 = vmatprep.subr.mxu1 %v9637_v61  ;;  %v9693_v53 = vld [vmem:[#allocation11 + $0x90] sm:$0xff]  ;;  %10689 = vst [vmem:[#allocation62_spill] sm:$0xff] %v9723_v24  ;;  %10693 = vst [vmem:[#allocation66_spill] sm:$0xff] %v9735_v42 }
 0x89c   :  { %6668 = vmatpush1.msra.mxu0 %v9641_v3  ;;  %6739 = vmatpush1.msra.mxu1 %v9643_v22  ;;  %10680 = vst [vmem:[#allocation53_spill] sm:$0xff] %v9693_v53  ;;  %7857 = vpow2.f32 %v7443_v20  ;;  %10694 = vst [vmem:[#allocation67_spill] sm:$0xff] %v9737_v30  ;;  %v9747_v20 = vld [vmem:[#allocation11 + $0x3e8] sm:$0xff] }
 0x89d   :  { %6669 = vmatprep.subr.mxu0 %v9647_v11  ;;  %6740 = vmatprep.subr.mxu1 %v9649_v25  ;;  %10697 = vst [vmem:[#allocation70_spill] sm:$0xff] %v9747_v20 }
 0x89e   :  { %6670 = vmatpush1.msra.mxu0 %v9653_v12  ;;  %6741 = vmatpush1.msra.mxu1 %v9655_v14 }
 0x89f   :  { %6671 = vmatprep.subr.mxu0 %v9661_v26  ;;  %6742 = vmatprep.subr.mxu1 %v9663_v0 }
 0x8a0   :  { %6672 = vmatpush1.msra.mxu0 %v9667_v31  ;;  %6743 = vmatpush1.msra.mxu1 %v9669_v46 }
 0x8a1   :  { %6673 = vmatprep.subr.mxu0 %v9673_v47  ;;  %6744 = vmatprep.subr.mxu1 %v9675_v57 }
 0x8a2   :  { %6674 = vmatpush1.msra.mxu0 %v9679_v56  ;;  %6745 = vmatpush1.msra.mxu1 %v9681_v2 }
 0x8a3   :  { %6675 = vmatprep.subr.mxu0 %v9685_v38  ;;  %6746 = vmatprep.subr.mxu1 %v9687_v44 }
 0x8a4   :  { %6676 = vmatpush1.msra.mxu0 %v9691_v63  ;;  %6747 = vmatpush1.msra.mxu1 %v9693_v53  ;;  %v9725_v53 = vld [vmem:[#allocation11 + $0x38] sm:$0xff] }
 0x8a5   :  { %6677 = vmatprep.subr.mxu0 %v9699_v37  ;;  %6748 = vmatprep.subr.mxu1 %v9701_v9  ;;  %10690 = vst [vmem:[#allocation63_spill] sm:$0xff] %v9725_v53  ;;  %v9729_v9 = vld [vmem:[#allocation11 + $0x20] sm:$0xff]  ;;  %v9731_v37 = vld [vmem:[#allocation11 + $0x30] sm:$0xff] }
 0x8a6   :  { %v7854_v32 = vpop.eup %7853  ;;  %6678 = vmatpush1.msra.mxu0 %v9705_v50  ;;  %6749 = vmatpush1.msra.mxu1 %v9707_v27  ;;  %10691 = vst [vmem:[#allocation64_spill] sm:$0xff] %v9729_v9  ;;  %10692 = vst [vmem:[#allocation65_spill] sm:$0xff] %v9731_v37 }
 0x8a7   :  { %v6171_v63 = vadd.f32 1.0, %v7854_v32  ;;  %6679 = vmatprep.subr.mxu0 %v9711_v35  ;;  %6750 = vmatprep.subr.mxu1 %v9713_v41  ;;  %v9741_v41 = vld [vmem:[#allocation11] sm:$0xff]  ;;  %v9743_v35 = vld [vmem:[#allocation11 + $0x10] sm:$0xff] }
 0x8a8   :  { %v7856_v44 = vpop.eup %7855  ;;  %6680 = vmatpush1.msra.mxu0 %v9717_v49  ;;  %6751 = vmatpush1.msra.mxu1 %v9719_v13  ;;  %10695 = vst [vmem:[#allocation68_spill] sm:$0xff] %v9741_v41  ;;  %10696 = vst [vmem:[#allocation69_spill] sm:$0xff] %v9743_v35  ;;  %v9749_v13 = vld [vmem:[#allocation11 + $0x3f8] sm:$0xff] }
 0x8a9   :  { %7859 = vrcp.f32 %v6171_v63  ;;  %v6172_v32 = vadd.f32 1.0, %v7856_v44  ;;  %6681 = vmatprep.subr.mxu0 %v9723_v24  ;;  %6752 = vmatprep.subr.mxu1 %v9725_v53  ;;  %10698 = vst [vmem:[#allocation71_spill] sm:$0xff] %v9749_v13  ;;  %v9753_v44 = vld [vmem:[#allocation11 + $0x3e0] sm:$0xff]  ;;  %v9755_v63 = vld [vmem:[#allocation11 + $0x3f0] sm:$0xff] }
 0x8aa   :  { %7861 = vtanh.f32 %v6160_v21  ;;  %6682 = vmatpush1.msra.mxu0 %v9729_v9  ;;  %6753 = vmatpush1.msra.mxu1 %v9731_v37  ;;  %10699 = vst [vmem:[#allocation72_spill] sm:$0xff] %v9753_v44  ;;  %10700 = vst [vmem:[#allocation73_spill] sm:$0xff] %v9755_v63  ;;  %v9759_v21 = vld [vmem:[#allocation11 + $0x3c8] sm:$0xff]  ;;  %v9761_v37 = vld [vmem:[#allocation11 + $0x3d8] sm:$0xff] }
 0x8ab   :  { %7863 = vrcp.f32 %v6172_v32  ;;  %6683 = vmatprep.subr.mxu0 %v9735_v42  ;;  %6754 = vmatprep.subr.mxu1 %v9737_v30  ;;  %10701 = vst [vmem:[#allocation74_spill] sm:$0xff] %v9759_v21  ;;  %10702 = vst [vmem:[#allocation75_spill] sm:$0xff] %v9761_v37  ;;  %v9765_v32 = vld [vmem:[#allocation11 + $0x3c0] sm:$0xff]  ;;  %v9767_v42 = vld [vmem:[#allocation11 + $0x3d0] sm:$0xff] }
 0x8ac   :  { %6684 = vmatpush1.msra.mxu0 %v9741_v41  ;;  %6755 = vmatpush1.msra.mxu1 %v9743_v35  ;;  %10703 = vst [vmem:[#allocation76_spill] sm:$0xff] %v9765_v32  ;;  %10704 = vst [vmem:[#allocation77_spill] sm:$0xff] %v9767_v42  ;;  %v9771_v30 = vld [vmem:[#allocation11 + $0x3a8] sm:$0xff]  ;;  %v9773_v41 = vld [vmem:[#allocation11 + $0x3b8] sm:$0xff] }
 0x8ad   :  { %6685 = vmatprep.subr.mxu0 %v9747_v20  ;;  %6756 = vmatprep.subr.mxu1 %v9749_v13  ;;  %10705 = vst [vmem:[#allocation78_spill] sm:$0xff] %v9771_v30  ;;  %10706 = vst [vmem:[#allocation79_spill] sm:$0xff] %v9773_v41  ;;  %v9777_v35 = vld [vmem:[#allocation11 + $0x3a0] sm:$0xff]  ;;  %v9779_v20 = vld [vmem:[#allocation11 + $0x3b0] sm:$0xff] }
 0x8ae   :  { %6686 = vmatpush2.msra.mxu0 %v9753_v44  ;;  %6757 = vmatpush2.msra.mxu1 %v9755_v63  ;;  %10707 = vst [vmem:[#allocation80_spill] sm:$0xff] %v9777_v35  ;;  %10708 = vst [vmem:[#allocation81_spill] sm:$0xff] %v9779_v20  ;;  %v9783_v13 = vld [vmem:[#allocation11 + $0x388] sm:$0xff]  ;;  %v9785_v44 = vld [vmem:[#allocation11 + $0x398] sm:$0xff] }
 0x8af   :  { %6687 = vmatprep.subr.mxu0 %v9759_v21  ;;  %6758 = vmatprep.subr.mxu1 %v9761_v37  ;;  %10709 = vst [vmem:[#allocation82_spill] sm:$0xff] %v9783_v13  ;;  %10710 = vst [vmem:[#allocation83_spill] sm:$0xff] %v9785_v44  ;;  %v9789_v63 = vld [vmem:[#allocation11 + $0x380] sm:$0xff]  ;;  %v9791_v21 = vld [vmem:[#allocation11 + $0x390] sm:$0xff] }
 0x8b0   :  { %6688 = vmatpush2.msra.mxu0 %v9765_v32  ;;  %6759 = vmatpush2.msra.mxu1 %v9767_v42  ;;  %10711 = vst [vmem:[#allocation84_spill] sm:$0xff] %v9789_v63  ;;  %10712 = vst [vmem:[#allocation85_spill] sm:$0xff] %v9791_v21  ;;  %v9795_v37 = vld [vmem:[#allocation11 + $0x368] sm:$0xff]  ;;  %v9797_v32 = vld [vmem:[#allocation11 + $0x378] sm:$0xff] }
 0x8b1   :  { %6689 = vmatprep.subr.mxu0 %v9771_v30  ;;  %6760 = vmatprep.subr.mxu1 %v9773_v41  ;;  %10713 = vst [vmem:[#allocation86_spill] sm:$0xff] %v9795_v37  ;;  %10714 = vst [vmem:[#allocation87_spill] sm:$0xff] %v9797_v32  ;;  %v9801_v42 = vld [vmem:[#allocation11 + $0x360] sm:$0xff]  ;;  %v9803_v30 = vld [vmem:[#allocation11 + $0x370] sm:$0xff] }
 0x8b2   :  { %6690 = vmatpush2.msra.mxu0 %v9777_v35  ;;  %6761 = vmatpush2.msra.mxu1 %v9779_v20  ;;  %10715 = vst [vmem:[#allocation88_spill] sm:$0xff] %v9801_v42  ;;  %10716 = vst [vmem:[#allocation89_spill] sm:$0xff] %v9803_v30  ;;  %v9807_v41 = vld [vmem:[#allocation11 + $0x348] sm:$0xff]  ;;  %v9809_v35 = vld [vmem:[#allocation11 + $0x358] sm:$0xff]  ;;  %v7858_v20 = vpop.eup %7857 }
 0x8b3   :  { %6691 = vmatprep.subr.mxu0 %v9783_v13  ;;  %6762 = vmatprep.subr.mxu1 %v9785_v44  ;;  %10717 = vst [vmem:[#allocation90_spill] sm:$0xff] %v9807_v41  ;;  %10718 = vst [vmem:[#allocation91_spill] sm:$0xff] %v9809_v35  ;;  %v9813_v13 = vld [vmem:[#allocation11 + $0x340] sm:$0xff]  ;;  %v9815_v44 = vld [vmem:[#allocation11 + $0x350] sm:$0xff]  ;;  %v6173_v49 = vadd.f32 1.0, %v7858_v20 }
 0x8b4   :  { %6692 = vmatpush2.msra.mxu0 %v9789_v63  ;;  %6763 = vmatpush2.msra.mxu1 %v9791_v21  ;;  %10719 = vst [vmem:[#allocation92_spill] sm:$0xff] %v9813_v13  ;;  %10720 = vst [vmem:[#allocation93_spill] sm:$0xff] %v9815_v44  ;;  %v9819_v63 = vld [vmem:[#allocation11 + $0x328] sm:$0xff]  ;;  %v9821_v21 = vld [vmem:[#allocation11 + $0x338] sm:$0xff] }
 0x8b5   :  { %6693 = vmatprep.subr.mxu0 %v9795_v37  ;;  %6764 = vmatprep.subr.mxu1 %v9797_v32  ;;  %v9825_v37 = vld [vmem:[#allocation11 + $0x320] sm:$0xff]  ;;  %v9827_v32 = vld [vmem:[#allocation11 + $0x330] sm:$0xff]  ;;  %v9844_v20 = vld [vmem:[#allocation11 + $0x2e8] sm:$0xff]  ;;  %7865 = vrcp.f32 %v6173_v49 }
 0x8b6   :  { %v7860_v9 = vpop.eup %7859  ;;  %6694 = vmatpush2.msra.mxu0 %v9801_v42  ;;  %6765 = vmatpush2.msra.mxu1 %v9803_v30  ;;  %v9831_v30 = vld [vmem:[#allocation11 + $0x308] sm:$0xff]  ;;  %v9833_v42 = vld [vmem:[#allocation11 + $0x318] sm:$0xff]  ;;  %10723 = vst [vmem:[#allocation96_spill] sm:$0xff] %v9844_v20 }
 0x8b7   :  { %v7862_v53 = vpop.eup %7861  ;;  %6695 = vmatprep.subr.mxu0 %v9807_v41  ;;  %6766 = vmatprep.subr.mxu1 %v9809_v35  ;;  %v9838_v35 = vld [vmem:[#allocation11 + $0x300] sm:$0xff]  ;;  %v9840_v41 = vld [vmem:[#allocation11 + $0x310] sm:$0xff]  ;;  %v9871_v49 = vld [vmem:[#allocation11 + $0x2a8] sm:$0xff] }
 0x8b8   :  { %v7864_v24 = vpop.eup %7863  ;;  %6696 = vmatpush2.msra.mxu0 %v9813_v13  ;;  %6767 = vmatpush2.msra.mxu1 %v9815_v44  ;;  %v6182_v50 = vmul.f32 %v7862_v53, %v7860_v9  ;;  %10721 = vst [vmem:[#allocation94_spill] sm:$0xff] %v9838_v35  ;;  %10722 = vst [vmem:[#allocation95_spill] sm:$0xff] %v9840_v41  ;;  %v9846_v44 = vld [vmem:[#allocation11 + $0x2f8] sm:$0xff]  ;;  %v9854_v53 = vld [vmem:[#allocation11 + $0x2f0] sm:$0xff] }
 0x8b9   :  { %v6181_v27 = vmul.f32 %v7864_v24, %v9522_v7  ;;  %6697 = vmatprep.subr.mxu0 %v9819_v63  ;;  %6768 = vmatprep.subr.mxu1 %v9821_v21  ;;  %10724 = vst [vmem:[#allocation97_spill] sm:$0xff] %v9846_v44  ;;  %v9852_v7 = vld [vmem:[#allocation11 + $0x2e0] sm:$0xff]  ;;  %10727 = vst [vmem:[#allocation100_spill] sm:$0xff] %v9854_v53  ;;  %v9858_v9 = vld [vmem:[#allocation11 + $0x2c8] sm:$0xff] }
 0x8ba   :  { %6698 = vmatpush2.msra.mxu0 %v9825_v37  ;;  %6769 = vmatpush2.msra.mxu1 %v9827_v32  ;;  %10726 = vst [vmem:[#allocation99_spill] sm:$0xff] %v9852_v7  ;;  %10728 = vst [vmem:[#allocation101_spill] sm:$0xff] %v9858_v9  ;;  %v9860_v24 = vld [vmem:[#allocation11 + $0x2d8] sm:$0xff] }
 0x8bb   :  { %v9848_v13 = vadd.f32 %v6182_v50, %v6181_v27  ;;  %6699 = vmatprep.subr.mxu0 %v9831_v30  ;;  %6770 = vmatprep.subr.mxu1 %v9833_v42  ;;  %10729 = vst [vmem:[#allocation102_spill] sm:$0xff] %v9860_v24  ;;  %v9864_v27 = vld [vmem:[#allocation11 + $0x2c0] sm:$0xff]  ;;  %v9866_v50 = vld [vmem:[#allocation11 + $0x2d0] sm:$0xff]  ;;  %10732 = vst [vmem:[#allocation105_spill] sm:$0xff] %v9871_v49 }
 0x8bc   :  { %6700 = vmatpush2.msra.mxu0 %v9838_v35  ;;  %6771 = vmatpush2.msra.mxu1 %v9840_v41  ;;  %10730 = vst [vmem:[#allocation103_spill] sm:$0xff] %v9864_v27  ;;  %10731 = vst [vmem:[#allocation104_spill] sm:$0xff] %v9866_v50  ;;  %v9873_v41 = vld [vmem:[#allocation11 + $0x2b8] sm:$0xff] }
 0x8bd   :  { %10725 = vst [vmem:[#allocation98_spill] sm:$0xff] %v9848_v13  ;;  %6701 = vmatprep.subr.mxu0 %v9844_v20  ;;  %6772 = vmatprep.subr.mxu1 %v9846_v44  ;;  %7867 = vtanh.f32 %v9848_v13  ;;  %10733 = vst [vmem:[#allocation106_spill] sm:$0xff] %v9873_v41  ;;  %v9877_v20 = vld [vmem:[#allocation11 + $0x2a0] sm:$0xff]  ;;  %v9879_v44 = vld [vmem:[#allocation11 + $0x2b0] sm:$0xff] }
 0x8be   :  { %6702 = vmatpush2.msra.mxu0 %v9852_v7  ;;  %6773 = vmatpush2.msra.mxu1 %v9854_v53  ;;  %10734 = vst [vmem:[#allocation107_spill] sm:$0xff] %v9877_v20  ;;  %10735 = vst [vmem:[#allocation108_spill] sm:$0xff] %v9879_v44  ;;  %v9883_v13 = vld [vmem:[#allocation11 + $0x288] sm:$0xff]  ;;  %v9885_v7 = vld [vmem:[#allocation11 + $0x298] sm:$0xff] }
 0x8bf   :  { %6703 = vmatprep.subr.mxu0 %v9858_v9  ;;  %6774 = vmatprep.subr.mxu1 %v9860_v24  ;;  %10736 = vst [vmem:[#allocation109_spill] sm:$0xff] %v9883_v13  ;;  %10737 = vst [vmem:[#allocation110_spill] sm:$0xff] %v9885_v7  ;;  %v9889_v53 = vld [vmem:[#allocation11 + $0x280] sm:$0xff]  ;;  %v9891_v9 = vld [vmem:[#allocation11 + $0x290] sm:$0xff] }
 0x8c0   :  { %6704 = vmatpush2.msra.mxu0 %v9864_v27  ;;  %6775 = vmatpush2.msra.mxu1 %v9866_v50  ;;  %10738 = vst [vmem:[#allocation111_spill] sm:$0xff] %v9889_v53  ;;  %10739 = vst [vmem:[#allocation112_spill] sm:$0xff] %v9891_v9  ;;  %v9895_v24 = vld [vmem:[#allocation11 + $0x268] sm:$0xff]  ;;  %v9897_v27 = vld [vmem:[#allocation11 + $0x278] sm:$0xff] }
 0x8c1   :  { %6705 = vmatprep.subr.mxu0 %v9871_v49  ;;  %6776 = vmatprep.subr.mxu1 %v9873_v41  ;;  %10740 = vst [vmem:[#allocation113_spill] sm:$0xff] %v9895_v24  ;;  %10741 = vst [vmem:[#allocation114_spill] sm:$0xff] %v9897_v27  ;;  %v9901_v50 = vld [vmem:[#allocation11 + $0x260] sm:$0xff]  ;;  %v9903_v49 = vld [vmem:[#allocation11 + $0x270] sm:$0xff] }
 0x8c2   :  { %6706 = vmatpush2.msra.mxu0 %v9877_v20  ;;  %6777 = vmatpush2.msra.mxu1 %v9879_v44  ;;  %10742 = vst [vmem:[#allocation115_spill] sm:$0xff] %v9901_v50  ;;  %10743 = vst [vmem:[#allocation116_spill] sm:$0xff] %v9903_v49  ;;  %v9907_v41 = vld [vmem:[#allocation11 + $0x248] sm:$0xff]  ;;  %v9909_v20 = vld [vmem:[#allocation11 + $0x258] sm:$0xff] }
 0x8c3   :  { %6707 = vmatprep.subr.mxu0 %v9883_v13  ;;  %6778 = vmatprep.subr.mxu1 %v9885_v7  ;;  %10744 = vst [vmem:[#allocation117_spill] sm:$0xff] %v9907_v41  ;;  %10745 = vst [vmem:[#allocation118_spill] sm:$0xff] %v9909_v20  ;;  %v9913_v44 = vld [vmem:[#allocation11 + $0x240] sm:$0xff]  ;;  %v9915_v13 = vld [vmem:[#allocation11 + $0x250] sm:$0xff] }
 0x8c4   :  { %6708 = vmatpush2.msra.mxu0 %v9889_v53  ;;  %6779 = vmatpush2.msra.mxu1 %v9891_v9  ;;  %10746 = vst [vmem:[#allocation119_spill] sm:$0xff] %v9915_v13  ;;  %v9919_v7 = vld [vmem:[#allocation11 + $0x228] sm:$0xff]  ;;  %v9921_v53 = vld [vmem:[#allocation11 + $0x238] sm:$0xff]  ;;  %v9925_v9 = vld [vmem:[#allocation11 + $0x220] sm:$0xff] }
 0x8c5   :  { %6709 = vmatprep.subr.mxu0 %v9895_v24  ;;  %6780 = vmatprep.subr.mxu1 %v9897_v27  ;;  %v9927_v24 = vld [vmem:[#allocation11 + $0x230] sm:$0xff]  ;;  %v9931_v27 = vld [vmem:[#allocation11 + $0x208] sm:$0xff] }
 0x8c6   :  { %6710 = vmatpush2.msra.mxu0 %v9901_v50  ;;  %6781 = vmatpush2.msra.mxu1 %v9903_v49  ;;  %v9933_v50 = vld [vmem:[#allocation11 + $0x218] sm:$0xff]  ;;  %v7866_v49 = vpop.eup %7865 }
 0x8c7   :  { %6711 = vmatprep.subr.mxu0 %v9907_v41  ;;  %6782 = vmatprep.subr.mxu1 %v9909_v20  ;;  %v9937_v41 = vld [vmem:[#allocation11 + $0x200] sm:$0xff]  ;;  %v9939_v20 = vld [vmem:[#allocation11 + $0x210] sm:$0xff] }
 0x8c8   :  { %6712 = vmatpush2.msra.mxu0 %v9913_v44  ;;  %6783 = vmatpush2.msra.mxu1 %v9915_v13 }
 0x8c9   :  { %6713 = vmatprep.subr.mxu0 %v9919_v7  ;;  %6784 = vmatprep.subr.mxu1 %v9921_v53 }
 0x8ca   :  { %v7868_v35 = vpop.eup %7867  ;;  %6714 = vmatpush2.msra.mxu0 %v9925_v9  ;;  %6785 = vmatpush2.msra.mxu1 %v9927_v24 }
 0x8cb   :  { %6715 = vmatprep.subr.mxu0 %v9931_v27  ;;  %6786 = vmatprep.subr.mxu1 %v9933_v50  ;;  %v9945_v13 = vmul.f32 %v7868_v35, %v7866_v49  ;;  %v10793_v35 = vld [vmem:[#allocation97_spill] sm:$0xff]  ;;  %v10794_v49 = vld [vmem:[#allocation99_spill] sm:$0xff] }
 0x8cc   :  { %6716 = vmatpush2.msra.mxu0 %v9937_v41  ;;  %6787 = vmatpush2.msra.mxu1 %v9939_v20 }
 0x8cd   :  { %6717 = vmatprep.mubr.f32.mxu0 %v9945_v13  ;;  %6788 = vmatprep.mubr.f32.mxu1 %v9945_v13 }
 0x8ce   :  { %6718 = vmatmul.mubr.f32.vlgmr.msra.gmra.mxu0 %v9551_v48  ;;  %6789 = vmatmul.mubr.f32.vlgmr.msra.gmra.mxu1 %v9551_v48  ;;  %v10749_v48 = vld [vmem:[#allocation53_spill] sm:$0xff] }
 0x8cf   :  { %6970 = vmatprep.subr.mxu0 %v9534_v43  ;;  %7041 = vmatprep.subr.mxu1 %v9536_v54  ;;  %v10747_v43 = vld [vmem:[#allocation51_spill] sm:$0xff]  ;;  %v10748_v54 = vld [vmem:[#allocation52_spill] sm:$0xff] }
 0x8d0   :  { %6971 = vmatpush1.msra.mxu0 %v9553_v29  ;;  %7042 = vmatpush1.msra.mxu1 %v9555_v17  ;;  %v10750_v29 = vld [vmem:[#allocation54_spill] sm:$0xff]  ;;  %v10751_v17 = vld [vmem:[#allocation55_spill] sm:$0xff] }
 0x8d1   :  { %6972 = vmatprep.subr.mxu0 %v9559_v19  ;;  %7043 = vmatprep.subr.mxu1 %v9561_v8  ;;  %v10752_v19 = vld [vmem:[#allocation56_spill] sm:$0xff]  ;;  %v10753_v8 = vld [vmem:[#allocation57_spill] sm:$0xff] }
 0x8d2   :  { %6973 = vmatpush1.msra.mxu0 %v9563_v36  ;;  %7044 = vmatpush1.msra.mxu1 %v9565_v34  ;;  %v10754_v36 = vld [vmem:[#allocation58_spill] sm:$0xff]  ;;  %v10755_v34 = vld [vmem:[#allocation59_spill] sm:$0xff] }
 0x8d3   :  { %6974 = vmatprep.subr.mxu0 %v9569_v45  ;;  %7045 = vmatprep.subr.mxu1 %v9571_v33  ;;  %v10756_v45 = vld [vmem:[#allocation60_spill] sm:$0xff]  ;;  %v10757_v33 = vld [vmem:[#allocation61_spill] sm:$0xff] }
 0x8d4   :  { %6975 = vmatpush1.msra.mxu0 %v9577_v52  ;;  %7046 = vmatpush1.msra.mxu1 %v9579_v23  ;;  %v10758_v52 = vld [vmem:[#allocation62_spill] sm:$0xff]  ;;  %v10759_v23 = vld [vmem:[#allocation63_spill] sm:$0xff] }
 0x8d5   :  { %6976 = vmatprep.subr.mxu0 %v9583_v39  ;;  %7047 = vmatprep.subr.mxu1 %v9585_v40  ;;  %v10760_v39 = vld [vmem:[#allocation64_spill] sm:$0xff]  ;;  %v10761_v40 = vld [vmem:[#allocation65_spill] sm:$0xff] }
 0x8d6   :  { %6977 = vmatpush1.msra.mxu0 %v9591_v60  ;;  %7048 = vmatpush1.msra.mxu1 %v9593_v59  ;;  %v10762_v60 = vld [vmem:[#allocation66_spill] sm:$0xff]  ;;  %v10763_v59 = vld [vmem:[#allocation67_spill] sm:$0xff] }
 0x8d7   :  { %6978 = vmatprep.subr.mxu0 %v9597_v18  ;;  %7049 = vmatprep.subr.mxu1 %v9599_v51  ;;  %v10764_v18 = vld [vmem:[#allocation68_spill] sm:$0xff]  ;;  %v10765_v51 = vld [vmem:[#allocation69_spill] sm:$0xff] }
 0x8d8   :  { %6979 = vmatpush1.msra.mxu0 %v9605_v16  ;;  %7050 = vmatpush1.msra.mxu1 %v9607_v62  ;;  %v10766_v16 = vld [vmem:[#allocation70_spill] sm:$0xff]  ;;  %v10767_v62 = vld [vmem:[#allocation71_spill] sm:$0xff] }
 0x8d9   :  { %6980 = vmatprep.subr.mxu0 %v9611_v4  ;;  %7051 = vmatprep.subr.mxu1 %v9613_v10  ;;  %v10768_v4 = vld [vmem:[#allocation72_spill] sm:$0xff]  ;;  %v10769_v10 = vld [vmem:[#allocation73_spill] sm:$0xff] }
 0x8da   :  { %6981 = vmatpush1.msra.mxu0 %v9617_v55  ;;  %7052 = vmatpush1.msra.mxu1 %v9619_v5  ;;  %v10770_v55 = vld [vmem:[#allocation74_spill] sm:$0xff]  ;;  %v10771_v5 = vld [vmem:[#allocation75_spill] sm:$0xff] }
 0x8db   :  { %6982 = vmatprep.subr.mxu0 %v9623_v58  ;;  %7053 = vmatprep.subr.mxu1 %v9625_v6  ;;  %v10772_v58 = vld [vmem:[#allocation76_spill] sm:$0xff]  ;;  %v10773_v6 = vld [vmem:[#allocation77_spill] sm:$0xff] }
 0x8dc   :  { %6983 = vmatpush1.msra.mxu0 %v9629_v15  ;;  %7054 = vmatpush1.msra.mxu1 %v9631_v28  ;;  %v10774_v15 = vld [vmem:[#allocation78_spill] sm:$0xff]  ;;  %v10775_v28 = vld [vmem:[#allocation79_spill] sm:$0xff] }
 0x8dd   :  { %6984 = vmatprep.subr.mxu0 %v9635_v1  ;;  %7055 = vmatprep.subr.mxu1 %v9637_v61  ;;  %v10776_v1 = vld [vmem:[#allocation80_spill] sm:$0xff]  ;;  %v10777_v61 = vld [vmem:[#allocation81_spill] sm:$0xff] }
 0x8de   :  { %6985 = vmatpush1.msra.mxu0 %v9641_v3  ;;  %7056 = vmatpush1.msra.mxu1 %v9643_v22  ;;  %v10778_v3 = vld [vmem:[#allocation82_spill] sm:$0xff]  ;;  %v10779_v22 = vld [vmem:[#allocation83_spill] sm:$0xff] }
 0x8df   :  { %6986 = vmatprep.subr.mxu0 %v9647_v11  ;;  %7057 = vmatprep.subr.mxu1 %v9649_v25  ;;  %v10780_v11 = vld [vmem:[#allocation84_spill] sm:$0xff]  ;;  %v10781_v25 = vld [vmem:[#allocation85_spill] sm:$0xff] }
 0x8e0   :  { %6987 = vmatpush1.msra.mxu0 %v9653_v12  ;;  %7058 = vmatpush1.msra.mxu1 %v9655_v14  ;;  %v10782_v12 = vld [vmem:[#allocation86_spill] sm:$0xff]  ;;  %v10783_v14 = vld [vmem:[#allocation87_spill] sm:$0xff] }
 0x8e1   :  { %6988 = vmatprep.subr.mxu0 %v9661_v26  ;;  %7059 = vmatprep.subr.mxu1 %v9663_v0  ;;  %v10784_v26 = vld [vmem:[#allocation88_spill] sm:$0xff]  ;;  %v10785_v0 = vld [vmem:[#allocation89_spill] sm:$0xff] }
 0x8e2   :  { %6989 = vmatpush1.msra.mxu0 %v9667_v31  ;;  %7060 = vmatpush1.msra.mxu1 %v9669_v46  ;;  %v10786_v31 = vld [vmem:[#allocation90_spill] sm:$0xff]  ;;  %v10787_v46 = vld [vmem:[#allocation91_spill] sm:$0xff] }
 0x8e3   :  { %6990 = vmatprep.subr.mxu0 %v9673_v47  ;;  %7061 = vmatprep.subr.mxu1 %v9675_v57  ;;  %v10788_v47 = vld [vmem:[#allocation92_spill] sm:$0xff]  ;;  %v10789_v57 = vld [vmem:[#allocation93_spill] sm:$0xff] }
 0x8e4   :  { %6991 = vmatpush1.msra.mxu0 %v9679_v56  ;;  %7062 = vmatpush1.msra.mxu1 %v9681_v2  ;;  %v10790_v56 = vld [vmem:[#allocation94_spill] sm:$0xff]  ;;  %v10791_v2 = vld [vmem:[#allocation95_spill] sm:$0xff] }
 0x8e5   :  { %6992 = vmatprep.subr.mxu0 %v9685_v38  ;;  %7063 = vmatprep.subr.mxu1 %v10747_v43  ;;  %v10792_v38 = vld [vmem:[#allocation96_spill] sm:$0xff]  ;;  %v10801_v43 = vld [vmem:[#allocation106_spill] sm:$0xff] }
 0x8e6   :  { %6993 = vmatpush1.msra.mxu0 %v10748_v54  ;;  %7064 = vmatpush1.msra.mxu1 %v10749_v48  ;;  %v10802_v54 = vld [vmem:[#allocation107_spill] sm:$0xff]  ;;  %v10803_v48 = vld [vmem:[#allocation108_spill] sm:$0xff] }
 0x8e7   :  { %6994 = vmatprep.subr.mxu0 %v10750_v29  ;;  %7065 = vmatprep.subr.mxu1 %v10751_v17  ;;  %v10804_v29 = vld [vmem:[#allocation109_spill] sm:$0xff]  ;;  %v10805_v17 = vld [vmem:[#allocation110_spill] sm:$0xff] }
 0x8e8   :  { %6995 = vmatpush1.msra.mxu0 %v10752_v19  ;;  %7066 = vmatpush1.msra.mxu1 %v10753_v8  ;;  %v10806_v19 = vld [vmem:[#allocation111_spill] sm:$0xff]  ;;  %v10807_v8 = vld [vmem:[#allocation112_spill] sm:$0xff] }
 0x8e9   :  { %6996 = vmatprep.subr.mxu0 %v10754_v36  ;;  %7067 = vmatprep.subr.mxu1 %v10755_v34  ;;  %v10808_v36 = vld [vmem:[#allocation113_spill] sm:$0xff]  ;;  %v10809_v34 = vld [vmem:[#allocation114_spill] sm:$0xff] }
 0x8ea   :  { %6997 = vmatpush1.msra.mxu0 %v10756_v45  ;;  %7068 = vmatpush1.msra.mxu1 %v10757_v33  ;;  %v10810_v45 = vld [vmem:[#allocation115_spill] sm:$0xff]  ;;  %v10811_v33 = vld [vmem:[#allocation116_spill] sm:$0xff] }
 0x8eb   :  { %6998 = vmatprep.subr.mxu0 %v10758_v52  ;;  %7069 = vmatprep.subr.mxu1 %v10759_v23  ;;  %v10812_v52 = vld [vmem:[#allocation117_spill] sm:$0xff]  ;;  %v10813_v23 = vld [vmem:[#allocation118_spill] sm:$0xff] }
 0x8ec   :  { %6999 = vmatpush1.msra.mxu0 %v10760_v39  ;;  %7070 = vmatpush1.msra.mxu1 %v10761_v40  ;;  %v10814_v39 = vld [vmem:[#allocation119_spill] sm:$0xff] }
 0x8ed   :  { %7000 = vmatprep.subr.mxu0 %v10762_v60  ;;  %7071 = vmatprep.subr.mxu1 %v10763_v59  ;;  %v10816_v60 = vld [vmem:[#allocation30_spill] sm:$0xff] }
 0x8ee   :  { %7001 = vmatpush1.msra.mxu0 %v10764_v18  ;;  %7072 = vmatpush1.msra.mxu1 %v10765_v51  ;;  %v6631_v51 = vld [vmem:[#allocation12] sm:$0xf] }
 0x8ef   :  { %7002 = vmatprep.subr.mxu0 %v10766_v16  ;;  %7073 = vmatprep.subr.mxu1 %v10767_v62 }
 0x8f0   :  { %7003 = vmatpush2.msra.mxu0 %v10768_v4  ;;  %7074 = vmatpush2.msra.mxu1 %v10769_v10 }
 0x8f1   :  { %7004 = vmatprep.subr.mxu0 %v10770_v55  ;;  %7075 = vmatprep.subr.mxu1 %v10771_v5 }
 0x8f2   :  { %7005 = vmatpush2.msra.mxu0 %v10772_v58  ;;  %7076 = vmatpush2.msra.mxu1 %v10773_v6 }
 0x8f3   :  { %7006 = vmatprep.subr.mxu0 %v10774_v15  ;;  %7077 = vmatprep.subr.mxu1 %v10775_v28  ;;  %v10817_v15 = vld [vmem:[#allocation18_spill] sm:$0xff] }
 0x8f4   :  { %7007 = vmatpush2.msra.mxu0 %v10776_v1  ;;  %7078 = vmatpush2.msra.mxu1 %v10777_v61 }
 0x8f5   :  { %7008 = vmatprep.subr.mxu0 %v10778_v3  ;;  %7079 = vmatprep.subr.mxu1 %v10779_v22  ;;  %v6644_v3 = vrot.slane %v6631_v51, %v10817_v15 }
 0x8f6   :  { %7009 = vmatpush2.msra.mxu0 %v10780_v11  ;;  %7080 = vmatpush2.msra.mxu1 %v10781_v25 }
 0x8f7   :  { %7010 = vmatprep.subr.mxu0 %v10782_v12  ;;  %7081 = vmatprep.subr.mxu1 %v10783_v14  ;;  %v10818_v14 = vld [vmem:[#allocation19_spill] sm:$0xff] }
 0x8f8   :  { %7011 = vmatpush2.msra.mxu0 %v10784_v26  ;;  %7082 = vmatpush2.msra.mxu1 %v10785_v0 }
 0x8f9   :  { %7012 = vmatprep.subr.mxu0 %v10786_v31  ;;  %7083 = vmatprep.subr.mxu1 %v10787_v46 }
 0x8fa   :  { %7013 = vmatpush2.msra.mxu0 %v10788_v47  ;;  %7084 = vmatpush2.msra.mxu1 %v10789_v57  ;;  %v6648_v47 = vrot.slane %v6631_v51, %v10818_v14 }
 0x8fb   :  { %7014 = vmatprep.subr.mxu0 %v9819_v63  ;;  %7085 = vmatprep.subr.mxu1 %v9821_v21  ;;  %v10795_v63 = vld [vmem:[#allocation100_spill] sm:$0xff]  ;;  %v10796_v21 = vld [vmem:[#allocation101_spill] sm:$0xff] }
 0x8fc   :  { %7015 = vmatpush2.msra.mxu0 %v9825_v37  ;;  %7086 = vmatpush2.msra.mxu1 %v9827_v32  ;;  %v10797_v37 = vld [vmem:[#allocation102_spill] sm:$0xff]  ;;  %v10798_v32 = vld [vmem:[#allocation103_spill] sm:$0xff] }
 0x8fd   :  { %7016 = vmatprep.subr.mxu0 %v9831_v30  ;;  %7087 = vmatprep.subr.mxu1 %v9833_v42  ;;  %v10799_v30 = vld [vmem:[#allocation104_spill] sm:$0xff]  ;;  %v10800_v42 = vld [vmem:[#allocation105_spill] sm:$0xff] }
 0x8fe   :  { %7017 = vmatpush2.msra.mxu0 %v10790_v56  ;;  %7088 = vmatpush2.msra.mxu1 %v10791_v2 }
 0x8ff   :  { %7018 = vmatprep.subr.mxu0 %v10792_v38  ;;  %7089 = vmatprep.subr.mxu1 %v10793_v35 }
 0x900   :  { %7019 = vmatpush2.msra.mxu0 %v10794_v49  ;;  %7090 = vmatpush2.msra.mxu1 %v10795_v63 }
 0x901   :  { %7020 = vmatprep.subr.mxu0 %v10796_v21  ;;  %7091 = vmatprep.subr.mxu1 %v10797_v37 }
 0x902   :  { %7021 = vmatpush2.msra.mxu0 %v10798_v32  ;;  %7092 = vmatpush2.msra.mxu1 %v10799_v30 }
 0x903   :  { %7022 = vmatprep.subr.mxu0 %v10800_v42  ;;  %7093 = vmatprep.subr.mxu1 %v10801_v43  ;;  %v10819_v42 = vld [vmem:[#allocation50_spill] sm:$0xff] }
 0x904   :  { %7023 = vmatpush2.msra.mxu0 %v10802_v54  ;;  %7094 = vmatpush2.msra.mxu1 %v10803_v48 }
 0x905   :  { %7024 = vmatprep.subr.mxu0 %v10804_v29  ;;  %7095 = vmatprep.subr.mxu1 %v10805_v17 }
 0x906   :  { %7025 = vmatpush2.msra.mxu0 %v10806_v19  ;;  %7096 = vmatpush2.msra.mxu1 %v10807_v8 }
 0x907   :  { %7026 = vmatprep.subr.mxu0 %v10808_v36  ;;  %7097 = vmatprep.subr.mxu1 %v10809_v34 }
 0x908   :  { %7027 = vmatpush2.msra.mxu0 %v10810_v45  ;;  %7098 = vmatpush2.msra.mxu1 %v10811_v33  ;;  %v10820_v45 = vld [vmem:[#allocation98_spill] sm:$0xff] }
 0x909   :  { %7028 = vmatprep.subr.mxu0 %v10812_v52  ;;  %7099 = vmatprep.subr.mxu1 %v10813_v23 }
 0x90a   :  { %7029 = vmatpush2.msra.mxu0 %v9913_v44  ;;  %7100 = vmatpush2.msra.mxu1 %v10814_v39  ;;  %v10084_v44 = vld [vmem:[%s10194_s10 + $0x78] sm:$0xff] }
 0x90b   :  { %7030 = vmatprep.subr.mxu0 %v9919_v7  ;;  %7101 = vmatprep.subr.mxu1 %v9921_v53  ;;  %v6315_v53 = vld [vmem:[#allocation9] sm:$0xf] }
 0x90c   :  { %7031 = vmatpush2.msra.mxu0 %v9925_v9  ;;  %7102 = vmatpush2.msra.mxu1 %v9927_v24  ;;  %v10815_v9 = vld [vmem:[#allocation31_spill] sm:$0xff]  ;;  %v6328_v28 = vrot.slane %v6315_v53, %v10817_v15  ;;  %v6332_v26 = vrot.slane %v6315_v53, %v10818_v14 }
 0x90d   :  { %7032 = vmatprep.subr.mxu0 %v9931_v27  ;;  %7103 = vmatprep.subr.mxu1 %v9933_v50  ;;  %v6324_v40 = vrot.slane %v6315_v53, %v10815_v9  ;;  %v6320_v27 = vrot.slane %v6315_v53, %v10816_v60  ;;  %v6640_v16 = vrot.slane %v6631_v51, %v10815_v9 }
 0x90e   :  { %7033 = vmatpush2.msra.mxu0 %v9937_v41  ;;  %7104 = vmatpush2.msra.mxu1 %v9939_v20  ;;  %v6636_v20 = vrot.slane %v6631_v51, %v10816_v60  ;;  %v7157_v51 = vld [vmem:[%s10194_s10 + $0x60] sm:$0xff] }
 0x90f   :  { %7478 = vmatprep.subr.mxu0 %v10084_v44 }
 0x94d   :  { %v6403_v7 = vpop.f32.mrf.mxu0  ;;  %v6474_v55 = vpop.f32.mrf.mxu1 }
 0x94e   :  { %v6404_v50 = vadd.f32 %v6403_v7, %v6320_v27  ;;  %v6475_v25 = vadd.f32 %v6474_v55, %v6328_v28  ;;  %v7150_v55 = vld [vmem:[%s10194_s10 + $0x28] sm:$0xff] }
 0x94f   :  { %v6405_v24 = vpop.f32.mrf.mxu0  ;;  %v6476_v1 = vpop.f32.mrf.mxu1  ;;  %v7146_v28 = vld [vmem:[%s10194_s10 + $0x8] sm:$0xff] }
 0x950   :  { %v6406_v59 = vadd.f32 %v6405_v24, %v6324_v40  ;;  %v7444_v41 = vmul.f32 -1.442695, %v6404_v50  ;;  %v7446_v46 = vmul.f32 -1.442695, %v6475_v25  ;;  %v6477_v57 = vadd.f32 %v6476_v1, %v6332_v26  ;;  %v7159_v50 = vld [vmem:[%s10194_s10 + $0x70] sm:$0xff]  ;;  %v7145_v1 = vld [vmem:[%s10194_s10] sm:$0xff] }
 0x951   :  { %v6948_v25 = vld [vmem:[#allocation12] sm:$0xf] }
 0x952   :  { %v7445_v18 = vmul.f32 -1.442695, %v6406_v59  ;;  %v6957_v26 = vrot.slane %v6948_v25, %v10815_v9 }
 0x954   :  { %7869 = vpow2.f32 %v7445_v18  ;;  %v10821_v18 = vld [vmem:[#allocation45_spill] sm:$0xff] }
 0x955   :  { %7871 = vpow2.f32 %v7444_v41  ;;  %v7158_v41 = vld [vmem:[%s10194_s10 + $0x68] sm:$0xff] }
 0x961   :  { %v7870_v61 = vpop.eup %7869 }
 0x962   :  { %v7872_v11 = vpop.eup %7871  ;;  %v6489_v12 = vadd.f32 1.0, %v7870_v61  ;;  %v10822_v61 = vld [vmem:[#allocation46_spill] sm:$0xff] }
 0x963   :  { %v6488_v31 = vadd.f32 1.0, %v7872_v11  ;;  %v10825_v11 = vld [vmem:[#allocation49_spill] sm:$0xff] }
 0x98e   :  { %v6719_v62 = vpop.f32.mrf.mxu0  ;;  %v6790_v22 = vpop.f32.mrf.mxu1 }
 0x98f   :  { %v6720_v4 = vadd.f32 %v6719_v62, %v6636_v20  ;;  %v6791_v0 = vadd.f32 %v6790_v22, %v6644_v3  ;;  %v7156_v20 = vld [vmem:[%s10194_s10 + $0x58] sm:$0xff]  ;;  %v7153_v62 = vld [vmem:[%s10194_s10 + $0x40] sm:$0xff] }
 0x990   :  { %v6721_v10 = vpop.f32.mrf.mxu0  ;;  %v6792_v56 = vpop.f32.mrf.mxu1  ;;  %v10823_v3 = vld [vmem:[#allocation47_spill] sm:$0xff]  ;;  %v10824_v22 = vld [vmem:[#allocation48_spill] sm:$0xff] }
 0x991   :  { %v7447_v5 = vmul.f32 -1.442695, %v6720_v4  ;;  %v6722_v58 = vadd.f32 %v6721_v10, %v6640_v16  ;;  %v7449_v2 = vmul.f32 -1.442695, %v6791_v0  ;;  %v6793_v35 = vadd.f32 %v6792_v56, %v6648_v47  ;;  %v7154_v16 = vld [vmem:[%s10194_s10 + $0x48] sm:$0xff]  ;;  %v7152_v4 = vld [vmem:[%s10194_s10 + $0x38] sm:$0xff] }
 0x992   :  { %v7151_v10 = vld [vmem:[%s10194_s10 + $0x30] sm:$0xff] }
 0x993   :  { %7873 = vpow2.f32 %v7447_v5  ;;  %v7448_v6 = vmul.f32 -1.442695, %v6722_v58  ;;  %v7149_v5 = vld [vmem:[%s10194_s10 + $0x20] sm:$0xff]  ;;  %v7148_v58 = vld [vmem:[%s10194_s10 + $0x18] sm:$0xff] }
 0x995   :  { %7875 = vpow2.f32 %v7448_v6  ;;  %v7147_v6 = vld [vmem:[%s10194_s10 + $0x10] sm:$0xff] }
 0x996   :  { %7877 = vrcp.f32 %v6489_v12  ;;  %v6953_v12 = vrot.slane %v6948_v25, %v10816_v60 }
 0x997   :  { %7879 = vrcp.f32 %v6488_v31 }
 0x998   :  { %7881 = vpow2.f32 %v7446_v46 }
 0x999   :  { %7883 = vtanh.f32 %v6477_v57 }
 0x99a   :  { %7885 = vpow2.f32 %v7449_v2  ;;  %v6961_v2 = vrot.slane %v6948_v25, %v10817_v15 }
 0x9a0   :  { %v7874_v38 = vpop.eup %7873 }
 0x9a1   :  { %v6804_v49 = vadd.f32 1.0, %v7874_v38 }
 0x9a2   :  { %v7876_v63 = vpop.eup %7875 }
 0x9a3   :  { %7887 = vrcp.f32 %v6804_v49  ;;  %v6805_v21 = vadd.f32 1.0, %v7876_v63  ;;  %v7878_v37 = vpop.eup %7877 }
 0x9a4   :  { %7889 = vtanh.f32 %v6793_v35  ;;  %v7880_v32 = vpop.eup %7879  ;;  %v6498_v43 = vmul.f32 %v7878_v37, %v10819_v42 }
 0x9a5   :  { %7891 = vrcp.f32 %v6805_v21  ;;  %v7882_v30 = vpop.eup %7881 }
 0x9a6   :  { %v7884_v54 = vpop.eup %7883  ;;  %v6490_v23 = vadd.f32 1.0, %v7882_v30  ;;  %v7453_v30 = vld [vmem:[%s10195_s11] ss:$0 sm:$0xff] }
 0x9a7   :  { %v7886_v48 = vpop.eup %7885  ;;  %v6499_v29 = vmul.f32 %v7884_v54, %v7880_v32 }
 0x9a8   :  { %v6806_v34 = vadd.f32 1.0, %v7886_v48 }
 0x9a9   :  { %v6500_v8 = vadd.f32 %v6499_v29, %v6498_v43 }
 0x9ab   :  { %7893 = vtanh.f32 %v6500_v8 }
 0x9ac   :  { %7895 = vrcp.f32 %v6806_v34 }
 0x9b0   :  { %v7888_v17 = vpop.eup %7887 }
 0x9b1   :  { %v7890_v19 = vpop.eup %7889 }
 0x9b2   :  { %v7892_v36 = vpop.eup %7891  ;;  %v6815_v52 = vmul.f32 %v7890_v19, %v7888_v17 }
 0x9b3   :  { %v6814_v33 = vmul.f32 %v7892_v36, %v10820_v45 }
 0x9b5   :  { %v10097_v39 = vadd.f32 %v6815_v52, %v6814_v33 }
 0x9b7   :  { %7897 = vtanh.f32 %v10097_v39 }
 0x9b8   :  { %7899 = vrcp.f32 %v6490_v23  ;;  %v7894_v7 = vpop.eup %7893 }
 0x9b9   :  { %v7896_v53 = vpop.eup %7895 }
 0x9c4   :  { %v7898_v40 = vpop.eup %7897 }
 0x9c5   :  { %v7900_v24 = vpop.eup %7899  ;;  %v6818_v27 = vmul.f32 %v7898_v40, %v7896_v53 }
 0x9c6   :  { %v6502_v59 = vmul.f32 %v7900_v24, %v7894_v7 }
 0x9c7   :  { %7034 = vmatprep.mubr.f32.mxu0 %v6818_v27  ;;  %7105 = vmatprep.mubr.f32.mxu1 %v6818_v27 }
 0x9c8   :  { %7035 = vmatmul.mubr.f32.vlgmr.msra.gmra.mxu0 %v6502_v59  ;;  %7106 = vmatmul.mubr.f32.vlgmr.msra.gmra.mxu1 %v6502_v59 }
 0x9c9   :  { %7479 = vmatpush3.msra.mxu0 %v10084_v44  ;;  %7510 = vmatprep.mubr.f32.mxu0 %v10821_v18  ;;  %v7155_v44 = vld [vmem:[%s10194_s10 + $0x50] sm:$0xff] }
 0x9ca   :  { %7480 = vmatprep.subr.mxu0 %v7159_v50 }
 0x9cb   :  { %7481 = vmatpush3.msra.mxu0 %v7159_v50 }
 0x9cc   :  { %7482 = vmatprep.subr.mxu0 %v7158_v41 }
 0x9cd   :  { %7483 = vmatpush3.msra.mxu0 %v7158_v41 }
 0x9ce   :  { %7484 = vmatprep.subr.mxu0 %v7157_v51 }
 0x9cf   :  { %7485 = vmatpush3.msra.mxu0 %v7157_v51 }
 0x9d0   :  { %7486 = vmatprep.subr.mxu0 %v7156_v20 }
 0x9d1   :  { %7487 = vmatpush3.msra.mxu0 %v7156_v20 }
 0x9d2   :  { %7488 = vmatprep.subr.mxu0 %v7155_v44 }
 0x9d3   :  { %7489 = vmatpush3.msra.mxu0 %v7155_v44 }
 0x9d4   :  { %7490 = vmatprep.subr.mxu0 %v7154_v16 }
 0x9d5   :  { %7491 = vmatpush3.msra.mxu0 %v7154_v16 }
 0x9d6   :  { %7492 = vmatprep.subr.mxu0 %v7153_v62 }
 0x9d7   :  { %7493 = vmatpush3.msra.mxu0 %v7153_v62 }
 0x9d8   :  { %7494 = vmatprep.subr.mxu0 %v7152_v4 }
 0x9d9   :  { %7495 = vmatpush3.msra.mxu0 %v7152_v4 }
 0x9da   :  { %7496 = vmatprep.subr.mxu0 %v7151_v10 }
 0x9db   :  { %7497 = vmatpush3.msra.mxu0 %v7151_v10 }
 0x9dc   :  { %7498 = vmatprep.subr.mxu0 %v7150_v55 }
 0x9dd   :  { %7499 = vmatpush3.msra.mxu0 %v7150_v55 }
 0x9de   :  { %7500 = vmatprep.subr.mxu0 %v7149_v5 }
 0x9df   :  { %7501 = vmatpush3.msra.mxu0 %v7149_v5 }
 0x9e0   :  { %7502 = vmatprep.subr.mxu0 %v7148_v58 }
 0x9e1   :  { %7503 = vmatpush3.msra.mxu0 %v7148_v58 }
 0x9e2   :  { %7504 = vmatprep.subr.mxu0 %v7147_v6 }
 0x9e3   :  { %7505 = vmatpush3.msra.mxu0 %v7147_v6 }
 0x9e4   :  { %7506 = vmatprep.subr.mxu0 %v7146_v28 }
 0x9e5   :  { %7507 = vmatpush3.msra.mxu0 %v7146_v28 }
 0x9e6   :  { %7508 = vmatprep.subr.mxu0 %v7145_v1 }
 0x9e7   :  { %7509 = vmatpush3.msra.mxu0 %v7145_v1 }
 0x9e8   :  { %7511 = vmatmul.mubr.f32.vlgmr.msra.gmra.mxu0 %v10822_v61 }
 0x9e9   :  { %7513 = vmatprep.mubr.f32.mxu0 %v10823_v3 }
 0x9ec   :  { %7514 = vmatmul.mubr.f32.gmra.mxu0 %v10824_v22 }
 0x9ed   :  { %7516 = vmatprep.mubr.f32.mxu0 %v10825_v11 }
 0x9f0   :  { %7517 = vmatmul.mubr.f32.gmra.mxu0 %v9945_v13  ;;  %v6965_v13 = vrot.slane %v6948_v25, %v10818_v14 }
 0x9f1   :  { %7519 = vmatprep.mubr.f32.mxu0 %v6818_v27 }
 0xa88   :  { %v7036_v0 = vpop.f32.mrf.mxu0  ;;  %v7107_v38 = vpop.f32.mrf.mxu1 }
 0xa89   :  { %v7037_v31 = vadd.f32 %v7036_v0, %v6953_v12  ;;  %v7108_v35 = vadd.f32 %v7107_v38, %v6961_v2 }
 0xa8a   :  { %v7038_v46 = vpop.f32.mrf.mxu0  ;;  %v7109_v49 = vpop.f32.mrf.mxu1 }
 0xa8b   :  { %v7450_v47 = vmul.f32 -1.442695, %v7037_v31  ;;  %v7039_v57 = vadd.f32 %v7038_v46, %v6957_v26  ;;  %v7452_v63 = vmul.f32 -1.442695, %v7108_v35  ;;  %v7110_v60 = vadd.f32 %v7109_v49, %v6965_v13 }
 0xa8d   :  { %7901 = vpow2.f32 %v7450_v47  ;;  %v7451_v56 = vmul.f32 -1.442695, %v7039_v57 }
 0xa8f   :  { %7903 = vpow2.f32 %v7451_v56 }
 0xa90   :  { %7905 = vpow2.f32 %v7452_v63 }
 0xa9a   :  { %v7902_v21 = vpop.eup %7901 }
 0xa9b   :  { %v7121_v37 = vadd.f32 1.0, %v7902_v21 }
 0xa9c   :  { %v7904_v9 = vpop.eup %7903 }
 0xa9d   :  { %7907 = vrcp.f32 %v7121_v37  ;;  %v7122_v32 = vadd.f32 1.0, %v7904_v9  ;;  %v7906_v42 = vpop.eup %7905 }
 0xa9e   :  { %7909 = vtanh.f32 %v7110_v60  ;;  %v7123_v17 = vadd.f32 1.0, %v7906_v42 }
 0xa9f   :  { %7911 = vrcp.f32 %v7122_v32 }
 0xaa0   :  { %7913 = vrcp.f32 %v7123_v17 }
 0xaa8   :  { %v7512_v15 = vpop.f32.mrf.mxu0 }
 0xaa9   :  { %v7240_v43 = vadd.f32 %v7512_v15, %v7453_v30 }
 0xaaa   :  { %v7908_v54 = vpop.eup %7907  ;;  %v7234_v14 = vpop.f32.mrf.mxu0 }
 0xaab   :  { %v7910_v48 = vpop.eup %7909  ;;  %7275 = vmax.xlane.f32.xlu0 %v7240_v43  ;;  %v7235_v34 = vadd.f32 %v7453_v30, %v7234_v14 }
 0xaac   :  { %v7912_v29 = vpop.eup %7911  ;;  %v7515_v19 = vpop.f32.mrf.mxu0  ;;  %v7132_v36 = vmul.f32 %v7910_v48, %v7908_v54 }
 0xaad   :  { %v7131_v8 = vmul.f32 %v7912_v29, %v10097_v39  ;;  %v7250_v45 = vadd.f32 %v7515_v19, %v7453_v30  ;;  %v7914_v27 = vpop.eup %7913 }
 0xaae   :  { %v7244_v33 = vpop.f32.mrf.mxu0 }
 0xaaf   :  { %v7133_v52 = vadd.f32 %v7132_v36, %v7131_v8  ;;  %7279 = vmax.xlane.f32.xlu1 %v7250_v45  ;;  %7273 = vmax.xlane.f32.xlu0 %v7235_v34  ;;  %v7245_v7 = vadd.f32 %v7453_v30, %v7244_v33 }
 0xab0   :  { %v7518_v23 = vpop.f32.mrf.mxu0 }
 0xab1   :  { %7915 = vtanh.f32 %v7133_v52  ;;  %v7260_v24 = vadd.f32 %v7518_v23, %v7453_v30 }
 0xab2   :  { %v7254_v53 = vpop.f32.mrf.mxu0 }
 0xab3   :  { %v7255_v40 = vadd.f32 %v7453_v30, %v7254_v53  ;;  %7277 = vmax.xlane.f32.xlu1 %v7245_v7 }
 0xab5   :  { %7281 = vmax.xlane.f32.xlu0 %v7255_v40 }
 0xab7   :  { %7283 = vmax.xlane.f32.xlu1 %v7260_v24 }
 0xabe   :  { %v7916_v59 = vpop.eup %7915 }
 0xabf   :  { %v7135_v39 = vmul.f32 %v7916_v59, %v7914_v27 }
 0xac1   :  { %7520 = vmatmul.mubr.f32.gmra.mxu0 %v7135_v39 }
 0xb34   :  { %v7276_v50 = vpop.xlane.xlu0 %7275 }
 0xb35   :  { %v7290_v20 = vsub.f32 %v7240_v43, %v7276_v50 }
 0xb37   :  { %v7299_v16 = vmul.f32 1.442695, %v7290_v20 }
 0xb38   :  { %v7280_v18 = vpop.xlane.xlu1 %7279  ;;  %v7274_v41 = vpop.xlane.xlu0 %7273 }
 0xb39   :  { %v7289_v44 = vsub.f32 %v7235_v34, %v7274_v41  ;;  %v7292_v62 = vsub.f32 %v7250_v45, %v7280_v18  ;;  %7917 = vpow2.f32 %v7299_v16 }
 0xb3b   :  { %v7297_v10 = vmul.f32 1.442695, %v7289_v44  ;;  %v7303_v58 = vmul.f32 1.442695, %v7292_v62 }
 0xb3c   :  { %v7278_v51 = vpop.xlane.xlu1 %7277 }
 0xb3d   :  { %v7291_v55 = vsub.f32 %v7245_v7, %v7278_v51  ;;  %7919 = vpow2.f32 %v7297_v10 }
 0xb3e   :  { %v7282_v5 = vpop.xlane.xlu0 %7281  ;;  %7921 = vpow2.f32 %v7303_v58 }
 0xb3f   :  { %v7301_v28 = vmul.f32 1.442695, %v7291_v55  ;;  %v7293_v1 = vsub.f32 %v7255_v40, %v7282_v5 }
 0xb40   :  { %v7284_v4 = vpop.xlane.xlu1 %7283 }
 0xb41   :  { %v7294_v6 = vsub.f32 %v7260_v24, %v7284_v4  ;;  %7923 = vpow2.f32 %v7301_v28  ;;  %v7305_v3 = vmul.f32 1.442695, %v7293_v1 }
 0xb43   :  { %v7307_v61 = vmul.f32 1.442695, %v7294_v6 }
 0xb45   :  { %7925 = vpow2.f32 %v7307_v61 }
 0xb46   :  { %7927 = vpow2.f32 %v7305_v3  ;;  %v7918_v26 = vpop.eup %7917 }
 0xb4a   :  { %v7920_v0 = vpop.eup %7919 }
 0xb4b   :  { %v7922_v31 = vpop.eup %7921 }
 0xb4e   :  { %v7924_v46 = vpop.eup %7923 }
 0xb52   :  { %v7926_v47 = vpop.eup %7925 }
 0xb53   :  { %v7928_v57 = vpop.eup %7927 }
 0xb81   :  { %v7521_v22 = vpop.f32.mrf.mxu0 }
 0xb82   :  { %v7270_v11 = vadd.f32 %v7521_v22, %v7453_v30 }
 0xb83   :  { %v7264_v25 = vpop.f32.mrf.mxu0 }
 0xb84   :  { %v7265_v12 = vadd.f32 %v7453_v30, %v7264_v25  ;;  %7287 = vmax.xlane.f32.xlu1 %v7270_v11 }
 0xb86   :  { %7285 = vmax.xlane.f32.xlu0 %v7265_v12 }
 0xb88   :  { %7315 = vadd.xlane.f32.xlu1 %v7918_v26 }
 0xb8a   :  { %7313 = vadd.xlane.f32.xlu0 %v7920_v0 }
 0xb8c   :  { %7319 = vadd.xlane.f32.xlu1 %v7922_v31 }
 0xb8e   :  { %7317 = vadd.xlane.f32.xlu0 %v7924_v46 }
 0xb90   :  { %7323 = vadd.xlane.f32.xlu1 %v7926_v47 }
 0xb92   :  { %7321 = vadd.xlane.f32.xlu0 %v7928_v57 }
 0xc0d   :  { %v7288_v56 = vpop.xlane.xlu1 %7287 }
 0xc0e   :  { %v7296_v2 = vsub.f32 %v7270_v11, %v7288_v56 }
 0xc0f   :  { %v7286_v38 = vpop.xlane.xlu0 %7285 }
 0xc10   :  { %v7311_v35 = vmul.f32 1.442695, %v7296_v2  ;;  %v7295_v13 = vsub.f32 %v7265_v12, %v7286_v38 }
 0xc11   :  { %v7316_v49 = vpop.xlane.xlu1 %7315 }
 0xc12   :  { %7929 = vpow2.f32 %v7311_v35  ;;  %v7309_v63 = vmul.f32 1.442695, %v7295_v13 }
 0xc13   :  { %7931 = vrcp.f32 %v7316_v49  ;;  %v7314_v21 = vpop.xlane.xlu0 %7313 }
 0xc14   :  { %7933 = vpow2.f32 %v7309_v63 }
 0xc15   :  { %7935 = vrcp.f32 %v7314_v21  ;;  %v7320_v60 = vpop.xlane.xlu1 %7319 }
 0xc16   :  { %7937 = vrcp.f32 %v7320_v60 }
 0xc17   :  { %v7318_v37 = vpop.xlane.xlu0 %7317 }
 0xc18   :  { %7939 = vrcp.f32 %v7318_v37 }
 0xc19   :  { %v7324_v9 = vpop.xlane.xlu1 %7323 }
 0xc1a   :  { %7941 = vrcp.f32 %v7324_v9 }
 0xc1b   :  { %v7322_v32 = vpop.xlane.xlu0 %7321 }
 0xc1c   :  { %7943 = vrcp.f32 %v7322_v32 }
 0xc1f   :  { %v7930_v30 = vpop.eup %7929 }
 0xc20   :  { %v7932_v15 = vpop.eup %7931  ;;  %7327 = vadd.xlane.f32.xlu1 %v7930_v30 }
 0xc21   :  { %v7934_v42 = vpop.eup %7933  ;;  %v7332_v43 = vmul.f32 %v7932_v15, %v7918_v26 }
 0xc22   :  { %v7936_v54 = vpop.eup %7935  ;;  %7325 = vadd.xlane.f32.xlu0 %v7934_v42 }
 0xc23   :  { %v7938_v14 = vpop.eup %7937  ;;  %7346 = vst [vmem:[%s10196_s12 + $0x8] sm:$0xff] %v7332_v43  ;;  %v7330_v48 = vmul.f32 %v7936_v54, %v7920_v0 }
 0xc24   :  { %v7336_v29 = vmul.f32 %v7938_v14, %v7922_v31 }
 0xc25   :  { %v7940_v17 = vpop.eup %7939  ;;  %7345 = vst [vmem:[%s10196_s12] sm:$0xff] %v7330_v48 }
 0xc26   :  { %7348 = vst [vmem:[%s10196_s12 + $0x18] sm:$0xff] %v7336_v29  ;;  %v7334_v19 = vmul.f32 %v7940_v17, %v7924_v46 }
 0xc27   :  { %v7942_v8 = vpop.eup %7941 }
 0xc28   :  { %7347 = vst [vmem:[%s10196_s12 + $0x10] sm:$0xff] %v7334_v19  ;;  %v7340_v36 = vmul.f32 %v7942_v8, %v7926_v47 }
 0xc29   :  { %v7944_v34 = vpop.eup %7943 }
 0xc2a   :  { %7350 = vst [vmem:[%s10196_s12 + $0x28] sm:$0xff] %v7340_v36  ;;  %v7338_v45 = vmul.f32 %v7944_v34, %v7928_v57 }
 0xc2c   :  { %7349 = vst [vmem:[%s10196_s12 + $0x20] sm:$0xff] %v7338_v45 }
 0xca9   :  { %v7328_v33 = vpop.xlane.xlu1 %7327 }
 0xcaa   :  { %7945 = vrcp.f32 %v7328_v33 }
 0xcab   :  { %v7326_v52 = vpop.xlane.xlu0 %7325 }
 0xcac   :  { %7947 = vrcp.f32 %v7326_v52 }
 0xcb7   :  { %v7946_v23 = vpop.eup %7945 }
 0xcb8   :  { %v7344_v7 = vmul.f32 %v7946_v23, %v7930_v30 }
 0xcb9   :  { %v7948_v53 = vpop.eup %7947 }
 0xcba   :  { %7352 = vst [vmem:[%s10196_s12 + $0x38] sm:$0xff] %v7344_v7  ;;  %v7342_v40 = vmul.f32 %v7948_v53, %v7934_v42 }
 0xcbc   :  { %7351 = vst [vmem:[%s10196_s12 + $0x30] sm:$0xff] %v7342_v40 }
 0xcbd   :  { %7357 = vsyncpa [#allocation5], 1 }
 0xcbe   :  { %7358 = vsyncpa [#allocation7], 1 }
 0xcbf   :  { %7359 = vsyncpa [#allocation10], 1 }
 0xcc0   :  { %7360 = vsyncpa [#allocation13], 1 }

</bundles_post_ra>
